<compile_context>
chip_gen: v7x
topology: tpu7x:2x2x1
jax: 0.10.0
libtpu: 0.0.40
codegen_flags: <defaults>
</compile_context>

<pallas_src>
import numpy as np
import jax
import jax.numpy as jnp
from jax import lax
from jax.experimental import pallas as pl
from jax.experimental.pallas import tpu as pltpu


def _make_autoencoder_kernel(E, BT, dims, lout_pad):
    L, L1, LW, LP1, L2, LB, LD1, LD2 = dims

    def kernel(x_ref, w1_ref, b1_ref, sel_ref, w2_ref, b2_ref,
               wd1_ref, wd2_ref, w3_ref, out_ref):
        # x_ref: (L*BT, 1) f32, rows interleaved as position*BT + batch.
        x = x_ref[...]
        w1 = w1_ref[...]                                     # (3, E) f32

        # ---- Conv1d(1, E, 3) + bias + ReLU (C_in == 1 -> VPU broadcast, f32) ----
        h1 = (x[0:L1 * BT, :] * w1[0:1, :]
              + x[BT:(L1 + 1) * BT, :] * w1[1:2, :]
              + x[2 * BT:(L1 + 2) * BT, :] * w1[2:3, :])     # (L1*BT, E)
        h1 = jnp.maximum(h1 + b1_ref[...], 0.0)
        # Dropout(p=0) is identity.
        # TODO(synk): dropout with p > 0 (training mode) not implemented.

        # ---- MaxPool1d(3) (stride 3): stride-1 window max (sublane-aligned
        #      slices), then stride-3 row pick via a tiny 0/1 selection matmul ----
        wm = jnp.maximum(jnp.maximum(h1[0:LW * BT, :], h1[BT:(LW + 1) * BT, :]),
                         h1[2 * BT:(LW + 2) * BT, :])        # (LW*BT, E)
        p1 = jnp.dot(sel_ref[...], wm.astype(jnp.bfloat16),
                     preferred_element_type=jnp.float32)     # (LP1*BT, E)
        p1 = p1.astype(jnp.bfloat16)                         # exact (0/1 pick)

        # ---- Conv1d(E, 200, 3) + bias + ReLU (3 tap matmuls, bf16 -> f32 acc) ----
        h2 = jnp.zeros((L2 * BT, 200), jnp.float32)
        for k in range(3):
            h2 = h2 + jnp.dot(p1[k * BT:(k + L2) * BT, :], w2_ref[k],
                              preferred_element_type=jnp.float32)
        h2 = jnp.maximum(h2 + b2_ref[...], 0.0)              # (L2*BT, 200)

        # ---- MaxPool1d(3, stride=1) ----
        bott = jnp.maximum(jnp.maximum(h2[0:LB * BT, :], h2[BT:(LB + 1) * BT, :]),
                           h2[2 * BT:(LB + 2) * BT, :])      # (LB*BT, 200)
        bott = bott.astype(jnp.bfloat16)

        # Transpose-conv tap accumulation in registers: each tap's matmul result
        # is placed at a sublane-aligned row offset via zero-row concatenation.
        def tconv_taps(inp_bf16, w_ref, num_taps, out_rows):
            acc = None
            for k in range(num_taps):
                pk = jnp.dot(inp_bf16, w_ref[k],
                             preferred_element_type=jnp.float32)
                pieces = []
                if k > 0:
                    pieces.append(jnp.zeros((k * BT, pk.shape[1]), jnp.float32))
                pieces.append(pk)
                tail = out_rows - pk.shape[0] - k * BT
                if tail > 0:
                    pieces.append(jnp.zeros((tail, pk.shape[1]), jnp.float32))
                term = pieces[0] if len(pieces) == 1 else jnp.concatenate(pieces, axis=0)
                acc = term if acc is None else acc + term
            return acc

        # ---- ConvTranspose1d(200, 300, 3, bias=False) ----
        y1 = tconv_taps(bott, wd1_ref, 3, LD1 * BT)          # (LD1*BT, 300) f32
        y1 = y1.astype(jnp.bfloat16)

        # ---- ConvTranspose1d(300, 300, 5, bias=False) ----
        y2 = tconv_taps(y1, wd2_ref, 5, LD2 * BT)            # (LD2*BT, 300) f32
        y2 = y2.astype(jnp.bfloat16)

        # ---- ConvTranspose1d(300, 1, 200, bias=False): one matmul per bottleneck
        #      position against a host-pre-shifted (300, LOUT_PAD) weight slab. ----
        acc = jnp.zeros((BT, lout_pad), jnp.float32)
        for j in range(LD2):
            acc = acc + jnp.dot(y2[j * BT:(j + 1) * BT, :], w3_ref[j],
                                preferred_element_type=jnp.float32)
        out_ref[...] = acc                                   # lane-dense (BT, 256)

    return kernel


def autoencoder_conv_forward(x, w1_t, b1, w2_t, b2, wd1_t, wd2_t, wd3_t,
                             *, block_b=32):
    """x: (B, 1, L); weights in PyTorch layouts (Conv1d: (O,I,K), ConvT1d: (I,O,K))."""
    x = x.astype(jnp.float32)                 # inputs.float()
    B, C, L = x.shape
    assert C == 1
    E = w1_t.shape[0]
    assert w2_t.shape[0] == 200 and wd1_t.shape[0] == 200  # hard-coded decoder

    # Layer lengths.
    L1 = L - 2                                # Conv1d(1, E, 3)
    LW = L1 - 2                               # stride-1 window max width
    LP1 = (L1 - 3) // 3 + 1                   # MaxPool1d(3)
    L2 = LP1 - 2                              # Conv1d(E, 200, 3)
    LB = L2 - 2                               # MaxPool1d(3, stride=1)
    LD1 = LB + 2                              # ConvTranspose1d(200, 300, 3)
    LD2 = LD1 + 4                             # ConvTranspose1d(300, 300, 5)
    LOUT = LD2 + 199                          # ConvTranspose1d(300, 1, 200)
    LOUT_PAD = ((LOUT + 127) // 128) * 128    # lane-dense output slab (211 -> 256)

    # Batch tiling: BT batch elements per grid step, multiple of 8.
    BT = min(block_b, ((B + 7) // 8) * 8)
    BT = ((BT + 7) // 8) * 8
    G = (B + BT - 1) // BT
    B_pad = G * BT

    # Input prep: (B,1,L) -> per-tile (L*BT, 1) with rows = position*BT + batch.
    xs = jnp.pad(x[:, 0, :], ((0, B_pad - B), (0, 0)))       # (B_pad, L)
    xs = xs.reshape(G, BT, L).transpose(0, 2, 1)             # (G, L, BT)
    xs = xs.reshape(G, L * BT, 1)

    # Kernel-friendly weight layouts (bf16 MXU operands, f32 for VPU-side params).
    w1 = jnp.transpose(w1_t[:, 0, :], (1, 0)).astype(jnp.float32)   # (3, E)
    b1_row = b1.reshape(1, E).astype(jnp.float32)
    w2u = jnp.transpose(w2_t, (2, 1, 0)).astype(jnp.bfloat16)       # (3, E, 200)
    b2_row = b2.reshape(1, 200).astype(jnp.float32)
    wd1u = jnp.transpose(wd1_t, (2, 0, 1)).astype(jnp.bfloat16)     # (3, 200, 300)
    wd2u = jnp.transpose(wd2_t, (2, 0, 1)).astype(jnp.bfloat16)     # (5, 300, 300)

    # 0/1 stride-3 row-selection matrix for MaxPool1d(3): picks row 3p*BT + b.
    sel_np = np.zeros((LP1 * BT, LW * BT), np.float32)
    rows = np.arange(LP1 * BT)
    sel_np[rows, (rows // BT) * 3 * BT + rows % BT] = 1.0
    sel = jnp.asarray(sel_np, dtype=jnp.bfloat16)

    # Final ConvTranspose1d(300, 1, 200) as LD2 pre-shifted (300, LOUT_PAD) slabs.
    w3_2d = wd3_t[:, 0, :].astype(jnp.float32)                      # (300, 200)
    w3u = jnp.stack([jnp.pad(w3_2d, ((0, 0), (j, LOUT_PAD - 200 - j)))
                     for j in range(LD2)], axis=0).astype(jnp.bfloat16)

    kernel = _make_autoencoder_kernel(
        E, BT, (L, L1, LW, LP1, L2, LB, LD1, LD2), LOUT_PAD)

    out = pl.pallas_call(
        kernel,
        out_shape=jax.ShapeDtypeStruct((G, BT, LOUT_PAD), jnp.float32),
        grid_spec=pltpu.PrefetchScalarGridSpec(
            num_scalar_prefetch=0,
            grid=(G,),
            in_specs=[
                pl.BlockSpec((None, L * BT, 1), lambda g: (g, 0, 0)),        # x
                pl.BlockSpec((3, E), lambda g: (0, 0)),                      # w1
                pl.BlockSpec((1, E), lambda g: (0, 0)),                      # b1
                pl.BlockSpec((LP1 * BT, LW * BT), lambda g: (0, 0)),         # sel
                pl.BlockSpec((3, E, 200), lambda g: (0, 0, 0)),              # w2
                pl.BlockSpec((1, 200), lambda g: (0, 0)),                    # b2
                pl.BlockSpec((3, 200, 300), lambda g: (0, 0, 0)),            # wd1
                pl.BlockSpec((5, 300, 300), lambda g: (0, 0, 0)),            # wd2
                pl.BlockSpec((LD2, 300, LOUT_PAD), lambda g: (0, 0, 0)),     # wd3 slabs
            ],
            out_specs=pl.BlockSpec((None, BT, LOUT_PAD), lambda g: (g, 0, 0)),
        ),
        compiler_params=pltpu.CompilerParams(
            dimension_semantics=("parallel",)),
    )(xs, w1, b1_row, sel, w2u, b2_row, wd1u, wd2u, w3u)

    out = out.reshape(B_pad, LOUT_PAD)[:B, :LOUT]
    return out.reshape(B, 1, LOUT)


# ----------------------- pure-JAX reference (for verification) -----------------------
def _ref_forward(x, params):
    w1, b1, w2, b2, wd1, wd2, wd3 = params
    dn = ("NCH", "OIH", "NCH")
    h = lax.conv_general_dilated(x, w1, (1,), "VALID", dimension_numbers=dn)
    h = jnp.maximum(h + b1[None, :, None], 0.0)
    h = lax.reduce_window(h, -jnp.inf, lax.max, (1, 1, 3), (1, 1, 3), "VALID")
    h = lax.conv_general_dilated(h, w2, (1,), "VALID", dimension_numbers=dn)
    h = jnp.maximum(h + b2[None, :, None], 0.0)
    h = lax.reduce_window(h, -jnp.inf, lax.max, (1, 1, 3), (1, 1, 1), "VALID")

    def tconv(z, w):  # w: (C_in, C_out, K), PyTorch ConvTranspose1d, stride 1, no bias
        Kk = w.shape[2]
        w_conv = jnp.flip(jnp.transpose(w, (1, 0, 2)), axis=2)   # (C_out, C_in, K)
        return lax.conv_general_dilated(z, w_conv, (1,), [(Kk - 1, Kk - 1)],
                                        dimension_numbers=dn)

    h = tconv(h, wd1)
    h = tconv(h, wd2)
    h = tconv(h, wd3)
    return h


if __name__ == "__main__":
    B, L, E = 8, 32, 8          # batch, input_size, encoder_size
    BOTTLENECK = 200            # forced by the hard-coded decoder ConvTranspose1d(200, ...)

    key = jax.random.PRNGKey(0)
    ks = jax.random.split(key, 8)

    def init(k, shape, fan_in):
        return (jax.random.normal(k, shape, jnp.float32) / np.sqrt(fan_in)).astype(jnp.float32)

    x = jax.random.normal(ks[0], (B, 1, L), jnp.float32)
    w1_t = init(ks[1], (E, 1, 3), 3)                      # Conv1d(1, E, 3)
    b1 = init(ks[2], (E,), 3)
    w2_t = init(ks[3], (BOTTLENECK, E, 3), 3 * E)         # Conv1d(E, 200, 3)
    b2 = init(ks[4], (BOTTLENECK,), 3 * E)
    wd1_t = init(ks[5], (200, 300, 3), 200 * 3)           # ConvTranspose1d(200, 300, 3)
    wd2_t = init(ks[6], (300, 300, 5), 300 * 5)           # ConvTranspose1d(300, 300, 5)
    wd3_t = init(ks[7], (300, 1, 200), 300 * 200)         # ConvTranspose1d(300, 1, 200)

    out = autoencoder_conv_forward(x, w1_t, b1, w2_t, b2, wd1_t, wd2_t, wd3_t)
    out = jax.block_until_ready(out)

    ref = jax.block_until_ready(_ref_forward(x, (w1_t, b1, w2_t, b2, wd1_t, wd2_t, wd3_t)))

    assert out.shape == ref.shape, (out.shape, ref.shape)
    rel_err = float(jnp.max(jnp.abs(out - ref)) / (jnp.max(jnp.abs(ref)) + 1e-8))
    if rel_err > 2e-2:
        raise AssertionError(f"kernel/reference mismatch: rel_err={rel_err}")
    print("KERNEL_OK")
</pallas_src>

<mosaic_0001>
module attributes {stable_mosaic.version = 11 : i64} {
  func.func @kernel(%arg0: i32, %arg1: memref<1x256x1xf32, #tpu.memory_space<vmem>>, %arg2: memref<3x8xf32, #tpu.memory_space<vmem>>, %arg3: memref<1x8xf32, #tpu.memory_space<vmem>>, %arg4: memref<80x224xbf16, #tpu.memory_space<vmem>>, %arg5: memref<3x8x200xbf16, #tpu.memory_space<vmem>>, %arg6: memref<1x200xf32, #tpu.memory_space<vmem>>, %arg7: memref<3x200x300xbf16, #tpu.memory_space<vmem>>, %arg8: memref<5x300x300xbf16, #tpu.memory_space<vmem>>, %arg9: memref<12x300x256xbf16, #tpu.memory_space<vmem>>, %arg10: memref<1x8x256xf32, #tpu.memory_space<vmem>>) attributes {dimension_semantics = [#tpu.dimension_semantics<parallel>], iteration_bounds = array<i64: 1>, scalar_prefetch = 0 : i64, scratch_operands = 0 : i64, tpu.core_type = #tpu.core_type<tc>, window_params = [{transform_indices = @transform_0, window_bounds = array<i64: 1, 256, 1>}, {pipeline_mode = #tpu.pipeline_mode<synchronous>, transform_indices = @transform_1, window_bounds = array<i64: 3, 8>}, {pipeline_mode = #tpu.pipeline_mode<synchronous>, transform_indices = @transform_2, window_bounds = array<i64: 1, 8>}, {pipeline_mode = #tpu.pipeline_mode<synchronous>, transform_indices = @transform_3, window_bounds = array<i64: 80, 224>}, {pipeline_mode = #tpu.pipeline_mode<synchronous>, transform_indices = @transform_4, window_bounds = array<i64: 3, 8, 200>}, {pipeline_mode = #tpu.pipeline_mode<synchronous>, transform_indices = @transform_5, window_bounds = array<i64: 1, 200>}, {pipeline_mode = #tpu.pipeline_mode<synchronous>, transform_indices = @transform_6, window_bounds = array<i64: 3, 200, 300>}, {pipeline_mode = #tpu.pipeline_mode<synchronous>, transform_indices = @transform_7, window_bounds = array<i64: 5, 300, 300>}, {pipeline_mode = #tpu.pipeline_mode<synchronous>, transform_indices = @transform_8, window_bounds = array<i64: 12, 300, 256>}, {transform_indices = @transform_9, window_bounds = array<i64: 1, 8, 256>}]} {
    %c0 = arith.constant 0 : index
    %c0_0 = arith.constant 0 : index
    %c0_1 = arith.constant 0 : index
    %0 = vector.load %arg1[%c0, %c0_0, %c0_1] : memref<1x256x1xf32, #tpu.memory_space<vmem>>, vector<1x256x1xf32>
    %1 = vector.shape_cast %0 : vector<1x256x1xf32> to vector<256x1xf32>
    %c0_2 = arith.constant 0 : index
    %c0_3 = arith.constant 0 : index
    %2 = vector.load %arg2[%c0_2, %c0_3] : memref<3x8xf32, #tpu.memory_space<vmem>>, vector<3x8xf32>
    %3 = vector.extract_strided_slice %1 {offsets = [0, 0], sizes = [240, 1], strides = [1, 1]} : vector<256x1xf32> to vector<240x1xf32>
    %4 = vector.extract_strided_slice %2 {offsets = [0, 0], sizes = [1, 8], strides = [1, 1]} : vector<3x8xf32> to vector<1x8xf32>
    %5 = vector.broadcast %3 : vector<240x1xf32> to vector<240x8xf32>
    %6 = vector.broadcast %4 : vector<1x8xf32> to vector<240x8xf32>
    %7 = arith.mulf %5, %6 : vector<240x8xf32>
    %8 = vector.extract_strided_slice %1 {offsets = [8, 0], sizes = [240, 1], strides = [1, 1]} : vector<256x1xf32> to vector<240x1xf32>
    %9 = vector.extract_strided_slice %2 {offsets = [1, 0], sizes = [1, 8], strides = [1, 1]} : vector<3x8xf32> to vector<1x8xf32>
    %10 = vector.broadcast %8 : vector<240x1xf32> to vector<240x8xf32>
    %11 = vector.broadcast %9 : vector<1x8xf32> to vector<240x8xf32>
    %12 = arith.mulf %10, %11 : vector<240x8xf32>
    %13 = arith.addf %7, %12 : vector<240x8xf32>
    %14 = vector.extract_strided_slice %1 {offsets = [16, 0], sizes = [240, 1], strides = [1, 1]} : vector<256x1xf32> to vector<240x1xf32>
    %15 = vector.extract_strided_slice %2 {offsets = [2, 0], sizes = [1, 8], strides = [1, 1]} : vector<3x8xf32> to vector<1x8xf32>
    %16 = vector.broadcast %14 : vector<240x1xf32> to vector<240x8xf32>
    %17 = vector.broadcast %15 : vector<1x8xf32> to vector<240x8xf32>
    %18 = arith.mulf %16, %17 : vector<240x8xf32>
    %19 = arith.addf %13, %18 : vector<240x8xf32>
    %c0_4 = arith.constant 0 : index
    %c0_5 = arith.constant 0 : index
    %20 = vector.load %arg3[%c0_4, %c0_5] : memref<1x8xf32, #tpu.memory_space<vmem>>, vector<1x8xf32>
    %21 = vector.broadcast %20 : vector<1x8xf32> to vector<240x8xf32>
    %22 = arith.addf %19, %21 : vector<240x8xf32>
    %cst = arith.constant 0.000000e+00 : f32
    %23 = vector.broadcast %cst : f32 to vector<240x8xf32>
    %24 = arith.maximumf %22, %23 : vector<240x8xf32>
    %25 = vector.extract_strided_slice %24 {offsets = [0, 0], sizes = [224, 8], strides = [1, 1]} : vector<240x8xf32> to vector<224x8xf32>
    %26 = vector.extract_strided_slice %24 {offsets = [8, 0], sizes = [224, 8], strides = [1, 1]} : vector<240x8xf32> to vector<224x8xf32>
    %27 = arith.maximumf %25, %26 : vector<224x8xf32>
    %28 = vector.extract_strided_slice %24 {offsets = [16, 0], sizes = [224, 8], strides = [1, 1]} : vector<240x8xf32> to vector<224x8xf32>
    %29 = arith.maximumf %27, %28 : vector<224x8xf32>
    %c0_6 = arith.constant 0 : index
    %c0_7 = arith.constant 0 : index
    %30 = vector.load %arg4[%c0_6, %c0_7] : memref<80x224xbf16, #tpu.memory_space<vmem>>, vector<80x224xbf16>
    %31 = arith.truncf %29 : vector<224x8xf32> to vector<224x8xbf16>
    %cst_8 = arith.constant dense<0.000000e+00> : vector<80x8xf32>
    %32 = tpu.matmul %30, %31, %cst_8 {dimension_numbers = #tpu.dot_dimension_numbers<[1], [0], [0], [1], [0, 0, 1, 1], [], []>} : vector<80x224xbf16>, vector<224x8xbf16>, vector<80x8xf32> -> vector<80x8xf32>
    %33 = arith.truncf %32 : vector<80x8xf32> to vector<80x8xbf16>
    %cst_9 = arith.constant 0.000000e+00 : f32
    %34 = vector.broadcast %cst_9 : f32 to vector<64x200xf32>
    %35 = vector.extract_strided_slice %33 {offsets = [0, 0], sizes = [64, 8], strides = [1, 1]} : vector<80x8xbf16> to vector<64x8xbf16>
    %c0_10 = arith.constant 0 : index
    %c0_11 = arith.constant 0 : index
    %c0_12 = arith.constant 0 : index
    %36 = vector.load %arg5[%c0_10, %c0_11, %c0_12] : memref<3x8x200xbf16, #tpu.memory_space<vmem>>, vector<1x8x200xbf16>
    %37 = vector.shape_cast %36 : vector<1x8x200xbf16> to vector<8x200xbf16>
    %cst_13 = arith.constant dense<0.000000e+00> : vector<64x200xf32>
    %38 = tpu.matmul %35, %37, %cst_13 {dimension_numbers = #tpu.dot_dimension_numbers<[1], [0], [0], [1], [0, 0, 1, 1], [], []>} : vector<64x8xbf16>, vector<8x200xbf16>, vector<64x200xf32> -> vector<64x200xf32>
    %39 = arith.addf %34, %38 : vector<64x200xf32>
    %40 = vector.extract_strided_slice %33 {offsets = [8, 0], sizes = [64, 8], strides = [1, 1]} : vector<80x8xbf16> to vector<64x8xbf16>
    %c1 = arith.constant 1 : index
    %c0_14 = arith.constant 0 : index
    %c0_15 = arith.constant 0 : index
    %41 = vector.load %arg5[%c1, %c0_14, %c0_15] : memref<3x8x200xbf16, #tpu.memory_space<vmem>>, vector<1x8x200xbf16>
    %42 = vector.shape_cast %41 : vector<1x8x200xbf16> to vector<8x200xbf16>
    %cst_16 = arith.constant dense<0.000000e+00> : vector<64x200xf32>
    %43 = tpu.matmul %40, %42, %cst_16 {dimension_numbers = #tpu.dot_dimension_numbers<[1], [0], [0], [1], [0, 0, 1, 1], [], []>} : vector<64x8xbf16>, vector<8x200xbf16>, vector<64x200xf32> -> vector<64x200xf32>
    %44 = arith.addf %39, %43 : vector<64x200xf32>
    %45 = vector.extract_strided_slice %33 {offsets = [16, 0], sizes = [64, 8], strides = [1, 1]} : vector<80x8xbf16> to vector<64x8xbf16>
    %c2 = arith.constant 2 : index
    %c0_17 = arith.constant 0 : index
    %c0_18 = arith.constant 0 : index
    %46 = vector.load %arg5[%c2, %c0_17, %c0_18] : memref<3x8x200xbf16, #tpu.memory_space<vmem>>, vector<1x8x200xbf16>
    %47 = vector.shape_cast %46 : vector<1x8x200xbf16> to vector<8x200xbf16>
    %cst_19 = arith.constant dense<0.000000e+00> : vector<64x200xf32>
    %48 = tpu.matmul %45, %47, %cst_19 {dimension_numbers = #tpu.dot_dimension_numbers<[1], [0], [0], [1], [0, 0, 1, 1], [], []>} : vector<64x8xbf16>, vector<8x200xbf16>, vector<64x200xf32> -> vector<64x200xf32>
    %49 = arith.addf %44, %48 : vector<64x200xf32>
    %c0_20 = arith.constant 0 : index
    %c0_21 = arith.constant 0 : index
    %50 = vector.load %arg6[%c0_20, %c0_21] : memref<1x200xf32, #tpu.memory_space<vmem>>, vector<1x200xf32>
    %51 = vector.broadcast %50 : vector<1x200xf32> to vector<64x200xf32>
    %52 = arith.addf %49, %51 : vector<64x200xf32>
    %cst_22 = arith.constant 0.000000e+00 : f32
    %53 = vector.broadcast %cst_22 : f32 to vector<64x200xf32>
    %54 = arith.maximumf %52, %53 : vector<64x200xf32>
    %55 = vector.extract_strided_slice %54 {offsets = [0, 0], sizes = [48, 200], strides = [1, 1]} : vector<64x200xf32> to vector<48x200xf32>
    %56 = vector.extract_strided_slice %54 {offsets = [8, 0], sizes = [48, 200], strides = [1, 1]} : vector<64x200xf32> to vector<48x200xf32>
    %57 = arith.maximumf %55, %56 : vector<48x200xf32>
    %58 = vector.extract_strided_slice %54 {offsets = [16, 0], sizes = [48, 200], strides = [1, 1]} : vector<64x200xf32> to vector<48x200xf32>
    %59 = arith.maximumf %57, %58 : vector<48x200xf32>
    %60 = arith.truncf %59 : vector<48x200xf32> to vector<48x200xbf16>
    %c0_23 = arith.constant 0 : index
    %c0_24 = arith.constant 0 : index
    %c0_25 = arith.constant 0 : index
    %61 = vector.load %arg7[%c0_23, %c0_24, %c0_25] : memref<3x200x300xbf16, #tpu.memory_space<vmem>>, vector<1x200x300xbf16>
    %62 = vector.shape_cast %61 : vector<1x200x300xbf16> to vector<200x300xbf16>
    %cst_26 = arith.constant dense<0.000000e+00> : vector<48x300xf32>
    %63 = tpu.matmul %60, %62, %cst_26 {dimension_numbers = #tpu.dot_dimension_numbers<[1], [0], [0], [1], [0, 0, 1, 1], [], []>} : vector<48x200xbf16>, vector<200x300xbf16>, vector<48x300xf32> -> vector<48x300xf32>
    %cst_27 = arith.constant 0.000000e+00 : f32
    %64 = vector.broadcast %cst_27 : f32 to vector<16x300xf32>
    %65 = tpu.concatenate %63, %64 in 0 : vector<48x300xf32>, vector<16x300xf32> -> vector<64x300xf32>
    %c1_28 = arith.constant 1 : index
    %c0_29 = arith.constant 0 : index
    %c0_30 = arith.constant 0 : index
    %66 = vector.load %arg7[%c1_28, %c0_29, %c0_30] : memref<3x200x300xbf16, #tpu.memory_space<vmem>>, vector<1x200x300xbf16>
    %67 = vector.shape_cast %66 : vector<1x200x300xbf16> to vector<200x300xbf16>
    %cst_31 = arith.constant dense<0.000000e+00> : vector<48x300xf32>
    %68 = tpu.matmul %60, %67, %cst_31 {dimension_numbers = #tpu.dot_dimension_numbers<[1], [0], [0], [1], [0, 0, 1, 1], [], []>} : vector<48x200xbf16>, vector<200x300xbf16>, vector<48x300xf32> -> vector<48x300xf32>
    %cst_32 = arith.constant 0.000000e+00 : f32
    %69 = vector.broadcast %cst_32 : f32 to vector<8x300xf32>
    %cst_33 = arith.constant 0.000000e+00 : f32
    %70 = vector.broadcast %cst_33 : f32 to vector<8x300xf32>
    %71 = tpu.concatenate %69, %68, %70 in 0 : vector<8x300xf32>, vector<48x300xf32>, vector<8x300xf32> -> vector<64x300xf32>
    %72 = arith.addf %65, %71 : vector<64x300xf32>
    %c2_34 = arith.constant 2 : index
    %c0_35 = arith.constant 0 : index
    %c0_36 = arith.constant 0 : index
    %73 = vector.load %arg7[%c2_34, %c0_35, %c0_36] : memref<3x200x300xbf16, #tpu.memory_space<vmem>>, vector<1x200x300xbf16>
    %74 = vector.shape_cast %73 : vector<1x200x300xbf16> to vector<200x300xbf16>
    %cst_37 = arith.constant dense<0.000000e+00> : vector<48x300xf32>
    %75 = tpu.matmul %60, %74, %cst_37 {dimension_numbers = #tpu.dot_dimension_numbers<[1], [0], [0], [1], [0, 0, 1, 1], [], []>} : vector<48x200xbf16>, vector<200x300xbf16>, vector<48x300xf32> -> vector<48x300xf32>
    %cst_38 = arith.constant 0.000000e+00 : f32
    %76 = vector.broadcast %cst_38 : f32 to vector<16x300xf32>
    %77 = tpu.concatenate %76, %75 in 0 : vector<16x300xf32>, vector<48x300xf32> -> vector<64x300xf32>
    %78 = arith.addf %72, %77 : vector<64x300xf32>
    %79 = arith.truncf %78 : vector<64x300xf32> to vector<64x300xbf16>
    %c0_39 = arith.constant 0 : index
    %c0_40 = arith.constant 0 : index
    %c0_41 = arith.constant 0 : index
    %80 = vector.load %arg8[%c0_39, %c0_40, %c0_41] : memref<5x300x300xbf16, #tpu.memory_space<vmem>>, vector<1x300x300xbf16>
    %81 = vector.shape_cast %80 : vector<1x300x300xbf16> to vector<300x300xbf16>
    %cst_42 = arith.constant dense<0.000000e+00> : vector<64x300xf32>
    %82 = tpu.matmul %79, %81, %cst_42 {dimension_numbers = #tpu.dot_dimension_numbers<[1], [0], [0], [1], [0, 0, 1, 1], [], []>} : vector<64x300xbf16>, vector<300x300xbf16>, vector<64x300xf32> -> vector<64x300xf32>
    %cst_43 = arith.constant 0.000000e+00 : f32
    %83 = vector.broadcast %cst_43 : f32 to vector<32x300xf32>
    %84 = tpu.concatenate %82, %83 in 0 : vector<64x300xf32>, vector<32x300xf32> -> vector<96x300xf32>
    %c1_44 = arith.constant 1 : index
    %c0_45 = arith.constant 0 : index
    %c0_46 = arith.constant 0 : index
    %85 = vector.load %arg8[%c1_44, %c0_45, %c0_46] : memref<5x300x300xbf16, #tpu.memory_space<vmem>>, vector<1x300x300xbf16>
    %86 = vector.shape_cast %85 : vector<1x300x300xbf16> to vector<300x300xbf16>
    %cst_47 = arith.constant dense<0.000000e+00> : vector<64x300xf32>
    %87 = tpu.matmul %79, %86, %cst_47 {dimension_numbers = #tpu.dot_dimension_numbers<[1], [0], [0], [1], [0, 0, 1, 1], [], []>} : vector<64x300xbf16>, vector<300x300xbf16>, vector<64x300xf32> -> vector<64x300xf32>
    %cst_48 = arith.constant 0.000000e+00 : f32
    %88 = vector.broadcast %cst_48 : f32 to vector<8x300xf32>
    %cst_49 = arith.constant 0.000000e+00 : f32
    %89 = vector.broadcast %cst_49 : f32 to vector<24x300xf32>
    %90 = tpu.concatenate %88, %87, %89 in 0 : vector<8x300xf32>, vector<64x300xf32>, vector<24x300xf32> -> vector<96x300xf32>
    %91 = arith.addf %84, %90 : vector<96x300xf32>
    %c2_50 = arith.constant 2 : index
    %c0_51 = arith.constant 0 : index
    %c0_52 = arith.constant 0 : index
    %92 = vector.load %arg8[%c2_50, %c0_51, %c0_52] : memref<5x300x300xbf16, #tpu.memory_space<vmem>>, vector<1x300x300xbf16>
    %93 = vector.shape_cast %92 : vector<1x300x300xbf16> to vector<300x300xbf16>
    %cst_53 = arith.constant dense<0.000000e+00> : vector<64x300xf32>
    %94 = tpu.matmul %79, %93, %cst_53 {dimension_numbers = #tpu.dot_dimension_numbers<[1], [0], [0], [1], [0, 0, 1, 1], [], []>} : vector<64x300xbf16>, vector<300x300xbf16>, vector<64x300xf32> -> vector<64x300xf32>
    %cst_54 = arith.constant 0.000000e+00 : f32
    %95 = vector.broadcast %cst_54 : f32 to vector<16x300xf32>
    %cst_55 = arith.constant 0.000000e+00 : f32
    %96 = vector.broadcast %cst_55 : f32 to vector<16x300xf32>
    %97 = tpu.concatenate %95, %94, %96 in 0 : vector<16x300xf32>, vector<64x300xf32>, vector<16x300xf32> -> vector<96x300xf32>
    %98 = arith.addf %91, %97 : vector<96x300xf32>
    %c3 = arith.constant 3 : index
    %c0_56 = arith.constant 0 : index
    %c0_57 = arith.constant 0 : index
    %99 = vector.load %arg8[%c3, %c0_56, %c0_57] : memref<5x300x300xbf16, #tpu.memory_space<vmem>>, vector<1x300x300xbf16>
    %100 = vector.shape_cast %99 : vector<1x300x300xbf16> to vector<300x300xbf16>
    %cst_58 = arith.constant dense<0.000000e+00> : vector<64x300xf32>
    %101 = tpu.matmul %79, %100, %cst_58 {dimension_numbers = #tpu.dot_dimension_numbers<[1], [0], [0], [1], [0, 0, 1, 1], [], []>} : vector<64x300xbf16>, vector<300x300xbf16>, vector<64x300xf32> -> vector<64x300xf32>
    %cst_59 = arith.constant 0.000000e+00 : f32
    %102 = vector.broadcast %cst_59 : f32 to vector<24x300xf32>
    %cst_60 = arith.constant 0.000000e+00 : f32
    %103 = vector.broadcast %cst_60 : f32 to vector<8x300xf32>
    %104 = tpu.concatenate %102, %101, %103 in 0 : vector<24x300xf32>, vector<64x300xf32>, vector<8x300xf32> -> vector<96x300xf32>
    %105 = arith.addf %98, %104 : vector<96x300xf32>
    %c4 = arith.constant 4 : index
    %c0_61 = arith.constant 0 : index
    %c0_62 = arith.constant 0 : index
    %106 = vector.load %arg8[%c4, %c0_61, %c0_62] : memref<5x300x300xbf16, #tpu.memory_space<vmem>>, vector<1x300x300xbf16>
    %107 = vector.shape_cast %106 : vector<1x300x300xbf16> to vector<300x300xbf16>
    %cst_63 = arith.constant dense<0.000000e+00> : vector<64x300xf32>
    %108 = tpu.matmul %79, %107, %cst_63 {dimension_numbers = #tpu.dot_dimension_numbers<[1], [0], [0], [1], [0, 0, 1, 1], [], []>} : vector<64x300xbf16>, vector<300x300xbf16>, vector<64x300xf32> -> vector<64x300xf32>
    %cst_64 = arith.constant 0.000000e+00 : f32
    %109 = vector.broadcast %cst_64 : f32 to vector<32x300xf32>
    %110 = tpu.concatenate %109, %108 in 0 : vector<32x300xf32>, vector<64x300xf32> -> vector<96x300xf32>
    %111 = arith.addf %105, %110 : vector<96x300xf32>
    %112 = arith.truncf %111 : vector<96x300xf32> to vector<96x300xbf16>
    %cst_65 = arith.constant 0.000000e+00 : f32
    %113 = vector.broadcast %cst_65 : f32 to vector<8x256xf32>
    %114 = vector.extract_strided_slice %112 {offsets = [0, 0], sizes = [8, 300], strides = [1, 1]} : vector<96x300xbf16> to vector<8x300xbf16>
    %c0_66 = arith.constant 0 : index
    %c0_67 = arith.constant 0 : index
    %c0_68 = arith.constant 0 : index
    %115 = vector.load %arg9[%c0_66, %c0_67, %c0_68] : memref<12x300x256xbf16, #tpu.memory_space<vmem>>, vector<1x300x256xbf16>
    %116 = vector.shape_cast %115 : vector<1x300x256xbf16> to vector<300x256xbf16>
    %cst_69 = arith.constant dense<0.000000e+00> : vector<8x256xf32>
    %117 = tpu.matmul %114, %116, %cst_69 {dimension_numbers = #tpu.dot_dimension_numbers<[1], [0], [0], [1], [0, 0, 1, 1], [], []>} : vector<8x300xbf16>, vector<300x256xbf16>, vector<8x256xf32> -> vector<8x256xf32>
    %118 = arith.addf %113, %117 : vector<8x256xf32>
    %119 = vector.extract_strided_slice %112 {offsets = [8, 0], sizes = [8, 300], strides = [1, 1]} : vector<96x300xbf16> to vector<8x300xbf16>
    %c1_70 = arith.constant 1 : index
    %c0_71 = arith.constant 0 : index
    %c0_72 = arith.constant 0 : index
    %120 = vector.load %arg9[%c1_70, %c0_71, %c0_72] : memref<12x300x256xbf16, #tpu.memory_space<vmem>>, vector<1x300x256xbf16>
    %121 = vector.shape_cast %120 : vector<1x300x256xbf16> to vector<300x256xbf16>
    %cst_73 = arith.constant dense<0.000000e+00> : vector<8x256xf32>
    %122 = tpu.matmul %119, %121, %cst_73 {dimension_numbers = #tpu.dot_dimension_numbers<[1], [0], [0], [1], [0, 0, 1, 1], [], []>} : vector<8x300xbf16>, vector<300x256xbf16>, vector<8x256xf32> -> vector<8x256xf32>
    %123 = arith.addf %118, %122 : vector<8x256xf32>
    %124 = vector.extract_strided_slice %112 {offsets = [16, 0], sizes = [8, 300], strides = [1, 1]} : vector<96x300xbf16> to vector<8x300xbf16>
    %c2_74 = arith.constant 2 : index
    %c0_75 = arith.constant 0 : index
    %c0_76 = arith.constant 0 : index
    %125 = vector.load %arg9[%c2_74, %c0_75, %c0_76] : memref<12x300x256xbf16, #tpu.memory_space<vmem>>, vector<1x300x256xbf16>
    %126 = vector.shape_cast %125 : vector<1x300x256xbf16> to vector<300x256xbf16>
    %cst_77 = arith.constant dense<0.000000e+00> : vector<8x256xf32>
    %127 = tpu.matmul %124, %126, %cst_77 {dimension_numbers = #tpu.dot_dimension_numbers<[1], [0], [0], [1], [0, 0, 1, 1], [], []>} : vector<8x300xbf16>, vector<300x256xbf16>, vector<8x256xf32> -> vector<8x256xf32>
    %128 = arith.addf %123, %127 : vector<8x256xf32>
    %129 = vector.extract_strided_slice %112 {offsets = [24, 0], sizes = [8, 300], strides = [1, 1]} : vector<96x300xbf16> to vector<8x300xbf16>
    %c3_78 = arith.constant 3 : index
    %c0_79 = arith.constant 0 : index
    %c0_80 = arith.constant 0 : index
    %130 = vector.load %arg9[%c3_78, %c0_79, %c0_80] : memref<12x300x256xbf16, #tpu.memory_space<vmem>>, vector<1x300x256xbf16>
    %131 = vector.shape_cast %130 : vector<1x300x256xbf16> to vector<300x256xbf16>
    %cst_81 = arith.constant dense<0.000000e+00> : vector<8x256xf32>
    %132 = tpu.matmul %129, %131, %cst_81 {dimension_numbers = #tpu.dot_dimension_numbers<[1], [0], [0], [1], [0, 0, 1, 1], [], []>} : vector<8x300xbf16>, vector<300x256xbf16>, vector<8x256xf32> -> vector<8x256xf32>
    %133 = arith.addf %128, %132 : vector<8x256xf32>
    %134 = vector.extract_strided_slice %112 {offsets = [32, 0], sizes = [8, 300], strides = [1, 1]} : vector<96x300xbf16> to vector<8x300xbf16>
    %c4_82 = arith.constant 4 : index
    %c0_83 = arith.constant 0 : index
    %c0_84 = arith.constant 0 : index
    %135 = vector.load %arg9[%c4_82, %c0_83, %c0_84] : memref<12x300x256xbf16, #tpu.memory_space<vmem>>, vector<1x300x256xbf16>
    %136 = vector.shape_cast %135 : vector<1x300x256xbf16> to vector<300x256xbf16>
    %cst_85 = arith.constant dense<0.000000e+00> : vector<8x256xf32>
    %137 = tpu.matmul %134, %136, %cst_85 {dimension_numbers = #tpu.dot_dimension_numbers<[1], [0], [0], [1], [0, 0, 1, 1], [], []>} : vector<8x300xbf16>, vector<300x256xbf16>, vector<8x256xf32> -> vector<8x256xf32>
    %138 = arith.addf %133, %137 : vector<8x256xf32>
    %139 = vector.extract_strided_slice %112 {offsets = [40, 0], sizes = [8, 300], strides = [1, 1]} : vector<96x300xbf16> to vector<8x300xbf16>
    %c5 = arith.constant 5 : index
    %c0_86 = arith.constant 0 : index
    %c0_87 = arith.constant 0 : index
    %140 = vector.load %arg9[%c5, %c0_86, %c0_87] : memref<12x300x256xbf16, #tpu.memory_space<vmem>>, vector<1x300x256xbf16>
    %141 = vector.shape_cast %140 : vector<1x300x256xbf16> to vector<300x256xbf16>
    %cst_88 = arith.constant dense<0.000000e+00> : vector<8x256xf32>
    %142 = tpu.matmul %139, %141, %cst_88 {dimension_numbers = #tpu.dot_dimension_numbers<[1], [0], [0], [1], [0, 0, 1, 1], [], []>} : vector<8x300xbf16>, vector<300x256xbf16>, vector<8x256xf32> -> vector<8x256xf32>
    %143 = arith.addf %138, %142 : vector<8x256xf32>
    %144 = vector.extract_strided_slice %112 {offsets = [48, 0], sizes = [8, 300], strides = [1, 1]} : vector<96x300xbf16> to vector<8x300xbf16>
    %c6 = arith.constant 6 : index
    %c0_89 = arith.constant 0 : index
    %c0_90 = arith.constant 0 : index
    %145 = vector.load %arg9[%c6, %c0_89, %c0_90] : memref<12x300x256xbf16, #tpu.memory_space<vmem>>, vector<1x300x256xbf16>
    %146 = vector.shape_cast %145 : vector<1x300x256xbf16> to vector<300x256xbf16>
    %cst_91 = arith.constant dense<0.000000e+00> : vector<8x256xf32>
    %147 = tpu.matmul %144, %146, %cst_91 {dimension_numbers = #tpu.dot_dimension_numbers<[1], [0], [0], [1], [0, 0, 1, 1], [], []>} : vector<8x300xbf16>, vector<300x256xbf16>, vector<8x256xf32> -> vector<8x256xf32>
    %148 = arith.addf %143, %147 : vector<8x256xf32>
    %149 = vector.extract_strided_slice %112 {offsets = [56, 0], sizes = [8, 300], strides = [1, 1]} : vector<96x300xbf16> to vector<8x300xbf16>
    %c7 = arith.constant 7 : index
    %c0_92 = arith.constant 0 : index
    %c0_93 = arith.constant 0 : index
    %150 = vector.load %arg9[%c7, %c0_92, %c0_93] : memref<12x300x256xbf16, #tpu.memory_space<vmem>>, vector<1x300x256xbf16>
    %151 = vector.shape_cast %150 : vector<1x300x256xbf16> to vector<300x256xbf16>
    %cst_94 = arith.constant dense<0.000000e+00> : vector<8x256xf32>
    %152 = tpu.matmul %149, %151, %cst_94 {dimension_numbers = #tpu.dot_dimension_numbers<[1], [0], [0], [1], [0, 0, 1, 1], [], []>} : vector<8x300xbf16>, vector<300x256xbf16>, vector<8x256xf32> -> vector<8x256xf32>
    %153 = arith.addf %148, %152 : vector<8x256xf32>
    %154 = vector.extract_strided_slice %112 {offsets = [64, 0], sizes = [8, 300], strides = [1, 1]} : vector<96x300xbf16> to vector<8x300xbf16>
    %c8 = arith.constant 8 : index
    %c0_95 = arith.constant 0 : index
    %c0_96 = arith.constant 0 : index
    %155 = vector.load %arg9[%c8, %c0_95, %c0_96] : memref<12x300x256xbf16, #tpu.memory_space<vmem>>, vector<1x300x256xbf16>
    %156 = vector.shape_cast %155 : vector<1x300x256xbf16> to vector<300x256xbf16>
    %cst_97 = arith.constant dense<0.000000e+00> : vector<8x256xf32>
    %157 = tpu.matmul %154, %156, %cst_97 {dimension_numbers = #tpu.dot_dimension_numbers<[1], [0], [0], [1], [0, 0, 1, 1], [], []>} : vector<8x300xbf16>, vector<300x256xbf16>, vector<8x256xf32> -> vector<8x256xf32>
    %158 = arith.addf %153, %157 : vector<8x256xf32>
    %159 = vector.extract_strided_slice %112 {offsets = [72, 0], sizes = [8, 300], strides = [1, 1]} : vector<96x300xbf16> to vector<8x300xbf16>
    %c9 = arith.constant 9 : index
    %c0_98 = arith.constant 0 : index
    %c0_99 = arith.constant 0 : index
    %160 = vector.load %arg9[%c9, %c0_98, %c0_99] : memref<12x300x256xbf16, #tpu.memory_space<vmem>>, vector<1x300x256xbf16>
    %161 = vector.shape_cast %160 : vector<1x300x256xbf16> to vector<300x256xbf16>
    %cst_100 = arith.constant dense<0.000000e+00> : vector<8x256xf32>
    %162 = tpu.matmul %159, %161, %cst_100 {dimension_numbers = #tpu.dot_dimension_numbers<[1], [0], [0], [1], [0, 0, 1, 1], [], []>} : vector<8x300xbf16>, vector<300x256xbf16>, vector<8x256xf32> -> vector<8x256xf32>
    %163 = arith.addf %158, %162 : vector<8x256xf32>
    %164 = vector.extract_strided_slice %112 {offsets = [80, 0], sizes = [8, 300], strides = [1, 1]} : vector<96x300xbf16> to vector<8x300xbf16>
    %c10 = arith.constant 10 : index
    %c0_101 = arith.constant 0 : index
    %c0_102 = arith.constant 0 : index
    %165 = vector.load %arg9[%c10, %c0_101, %c0_102] : memref<12x300x256xbf16, #tpu.memory_space<vmem>>, vector<1x300x256xbf16>
    %166 = vector.shape_cast %165 : vector<1x300x256xbf16> to vector<300x256xbf16>
    %cst_103 = arith.constant dense<0.000000e+00> : vector<8x256xf32>
    %167 = tpu.matmul %164, %166, %cst_103 {dimension_numbers = #tpu.dot_dimension_numbers<[1], [0], [0], [1], [0, 0, 1, 1], [], []>} : vector<8x300xbf16>, vector<300x256xbf16>, vector<8x256xf32> -> vector<8x256xf32>
    %168 = arith.addf %163, %167 : vector<8x256xf32>
    %169 = vector.extract_strided_slice %112 {offsets = [88, 0], sizes = [8, 300], strides = [1, 1]} : vector<96x300xbf16> to vector<8x300xbf16>
    %c11 = arith.constant 11 : index
    %c0_104 = arith.constant 0 : index
    %c0_105 = arith.constant 0 : index
    %170 = vector.load %arg9[%c11, %c0_104, %c0_105] : memref<12x300x256xbf16, #tpu.memory_space<vmem>>, vector<1x300x256xbf16>
    %171 = vector.shape_cast %170 : vector<1x300x256xbf16> to vector<300x256xbf16>
    %cst_106 = arith.constant dense<0.000000e+00> : vector<8x256xf32>
    %172 = tpu.matmul %169, %171, %cst_106 {dimension_numbers = #tpu.dot_dimension_numbers<[1], [0], [0], [1], [0, 0, 1, 1], [], []>} : vector<8x300xbf16>, vector<300x256xbf16>, vector<8x256xf32> -> vector<8x256xf32>
    %173 = arith.addf %168, %172 : vector<8x256xf32>
    %c0_107 = arith.constant 0 : index
    %c0_108 = arith.constant 0 : index
    %c0_109 = arith.constant 0 : index
    %174 = vector.load %arg10[%c0_107, %c0_108, %c0_109] : memref<1x8x256xf32, #tpu.memory_space<vmem>>, vector<1x8x256xf32>
    %175 = vector.shape_cast %174 : vector<1x8x256xf32> to vector<8x256xf32>
    %176 = vector.shape_cast %173 : vector<8x256xf32> to vector<1x8x256xf32>
    tpu.vector_store %arg10[%c0_107, %c0_108, %c0_109], %176 {strides = array<i32>} : memref<1x8x256xf32, #tpu.memory_space<vmem>>, vector<1x8x256xf32>,
    return
  }
  func.func @transform_0(%arg0: i32) -> (i32, i32, i32) {
    %c0_i32 = arith.constant 0 : i32
    %c0_i32_0 = arith.constant 0 : i32
    %c0_i32_1 = arith.constant 0 : i32
    return %arg0, %c0_i32, %c0_i32_0 : i32, i32, i32
  }
  func.func @transform_1(%arg0: i32) -> (i32, i32) {
    %c0_i32 = arith.constant 0 : i32
    %c0_i32_0 = arith.constant 0 : i32
    %c0_i32_1 = arith.constant 0 : i32
    return %c0_i32, %c0_i32_0 : i32, i32
  }
  func.func @transform_2(%arg0: i32) -> (i32, i32) {
    %c0_i32 = arith.constant 0 : i32
    %c0_i32_0 = arith.constant 0 : i32
    %c0_i32_1 = arith.constant 0 : i32
    return %c0_i32, %c0_i32_0 : i32, i32
  }
  func.func @transform_3(%arg0: i32) -> (i32, i32) {
    %c0_i32 = arith.constant 0 : i32
    %c0_i32_0 = arith.constant 0 : i32
    %c0_i32_1 = arith.constant 0 : i32
    return %c0_i32, %c0_i32_0 : i32, i32
  }
  func.func @transform_4(%arg0: i32) -> (i32, i32, i32) {
    %c0_i32 = arith.constant 0 : i32
    %c0_i32_0 = arith.constant 0 : i32
    %c0_i32_1 = arith.constant 0 : i32
    %c0_i32_2 = arith.constant 0 : i32
    return %c0_i32, %c0_i32_0, %c0_i32_1 : i32, i32, i32
  }
  func.func @transform_5(%arg0: i32) -> (i32, i32) {
    %c0_i32 = arith.constant 0 : i32
    %c0_i32_0 = arith.constant 0 : i32
    %c0_i32_1 = arith.constant 0 : i32
    return %c0_i32, %c0_i32_0 : i32, i32
  }
  func.func @transform_6(%arg0: i32) -> (i32, i32, i32) {
    %c0_i32 = arith.constant 0 : i32
    %c0_i32_0 = arith.constant 0 : i32
    %c0_i32_1 = arith.constant 0 : i32
    %c0_i32_2 = arith.constant 0 : i32
    return %c0_i32, %c0_i32_0, %c0_i32_1 : i32, i32, i32
  }
  func.func @transform_7(%arg0: i32) -> (i32, i32, i32) {
    %c0_i32 = arith.constant 0 : i32
    %c0_i32_0 = arith.constant 0 : i32
    %c0_i32_1 = arith.constant 0 : i32
    %c0_i32_2 = arith.constant 0 : i32
    return %c0_i32, %c0_i32_0, %c0_i32_1 : i32, i32, i32
  }
  func.func @transform_8(%arg0: i32) -> (i32, i32, i32) {
    %c0_i32 = arith.constant 0 : i32
    %c0_i32_0 = arith.constant 0 : i32
    %c0_i32_1 = arith.constant 0 : i32
    %c0_i32_2 = arith.constant 0 : i32
    return %c0_i32, %c0_i32_0, %c0_i32_1 : i32, i32, i32
  }
  func.func @transform_9(%arg0: i32) -> (i32, i32, i32) {
    %c0_i32 = arith.constant 0 : i32
    %c0_i32_0 = arith.constant 0 : i32
    %c0_i32_1 = arith.constant 0 : i32
    return %arg0, %c0_i32, %c0_i32_0 : i32, i32, i32
  }
}

</mosaic_0001>

<bundles_post_ra>
// kernel: tpu_custom_call.1
= control target key start
LH: loop header
LB: loop body
LE: loop exit
PB: predicated region body
PF: predicated region fallthrough
CT: control target
= control target key end

     0   :  { %14 = vsyncpa [#allocation3], 0  ;;  %s14235_s0 = inlined_call_operand.vmem [shape: f32[1,256,1], index: 0, kind: input, shape index: {}]   ;;  %s14236_s1 = inlined_call_operand.hbm [shape: f32[3,8], index: 1, kind: input, shape index: {}]   ;;  %s14237_s2 = inlined_call_operand.hbm [shape: f32[1,8], index: 2, kind: input, shape index: {}]   ;;  %s14238_s3 = inlined_call_operand.hbm [shape: bf16[80,224], index: 3, kind: input, shape index: {}]   ;;  %s14239_s4 = inlined_call_operand.hbm [shape: bf16[3,8,200], index: 4, kind: input, shape index: {}]   ;;  %s14240_s5 = inlined_call_operand.hbm [shape: f32[1,200], index: 5, kind: input, shape index: {}]   ;;  %s14241_s6 = inlined_call_operand.hbm [shape: bf16[3,200,300], index: 6, kind: input, shape index: {}]   ;;  %s14242_s7 = inlined_call_operand.hbm [shape: bf16[5,300,300], index: 7, kind: input, shape index: {}]   ;;  %s14243_s8 = inlined_call_operand.hbm [shape: bf16[12,300,256], index: 8, kind: input, shape index: {}]   ;;  %s14244_s9 = inlined_call_operand.hbm [shape: f32[1,8,256], index: 9, kind: output, shape index: {}]  }
   0x1   :  { %15 = vsyncpa [#allocation6], 0 }
   0x2   :  { %16 = vsyncpa [#allocation9], 0 }
   0x3   :  { %17 = vsyncpa [#allocation12], 0 }
   0x4   :  { %18 = vsyncpa [#allocation15], 0 }
   0x5   :  { %19 = vsyncpa [#allocation4], 0  ;;  %s12699_s30 = smov [#allocation5]   ;;  %s12489_s13 = scalar_lea.hbm %s14237_s2, 16 }
   0x6   :  { %s38_s10 = sshll.u32 %s12699_s30, 4  ;;  %p12490_p0 = scmp.ne.s32.totalorder %s14237_s2, %s12489_s13  ;;  %s39_s10 = int_to_ptr.vmem [resolvable:$true] %s38_s10 }
   0x7   :  { %p12493_p1 = scmp.lt.u32.totalorder %s12489_s13, %s14237_s2 }
   0x9   :  { %p12495_p2 = pnand %p12493_p1, %p12490_p0 }
   0xb   :  { %12498 = shalt.err (!%p12495_p2)
}
   0xc   :  { %s12499_s18 = scalar_lea.vmem %s39_s10, 16  ;;  %s12503_s19 = scalar_lea.vmem %s39_s10, 32 }
   0xd   :  { %p12500_p3 = scmp.ne.s32.totalorder %s39_s10, %s12499_s18  ;;  %p12504_p4 = scmp.lt.s32.totalorder %s39_s10, %s39_s10 }
   0xe   :  { %p12505_p5 = scmp.lt.s32.totalorder %s12503_s19, %s12499_s18 }
  0x10   :  { %p12506_p6 = por %p12505_p5, %p12504_p4 }
  0x12   :  { %p12507_p7 = pnand %p12506_p6, %p12500_p3 }
  0x14   :  { %12510 = shalt.err (!%p12507_p7)
}
  0x15   :  { %41 = dma.hbm_to_vmem [thread:$0]  %s14237_s2, 16, %s39_s10, [#allocation6]  }
  0x16   :  { %s12700_s22 = smov [#allocation8]   ;;  %s12701_s24 = smov [#allocation11]  }
  0x17   :  { %s59_s23 = sshll.u32 %s12700_s22, 4  ;;  %s81_s25 = sshll.u32 %s12701_s24, 4  ;;  %s60_s23 = int_to_ptr.vmem [resolvable:$true] %s59_s23  ;;  %s82_s25 = int_to_ptr.vmem [resolvable:$true] %s81_s25 }
  0x18   :  { %s12511_s28 = scalar_lea.hbm %s14239_s4, 384 }
  0x19   :  { %p12512_p8 = scmp.ne.s32.totalorder %s14239_s4, %s12511_s28  ;;  %p12515_p9 = scmp.lt.u32.totalorder %s12511_s28, %s14239_s4 }
  0x1b   :  { %p12517_p10 = pnand %p12515_p9, %p12512_p8 }
  0x1d   :  { %12520 = shalt.err (!%p12517_p10)
}
  0x1e   :  { %s12521_s2 = scalar_lea.vmem %s60_s23, 384  ;;  %p12526_p12 = scmp.lt.s32.totalorder %s60_s23, %s60_s23 }
  0x1f   :  { %p12522_p11 = scmp.ne.s32.totalorder %s60_s23, %s12521_s2  ;;  %p12527_p13 = scmp.lt.s32.totalorder %s12521_s2, %s12521_s2 }
  0x21   :  { %p12528_p0 = por %p12527_p13, %p12526_p12 }
  0x23   :  { %p12529_p1 = pnand %p12528_p0, %p12522_p11 }
  0x25   :  { %12532 = shalt.err (!%p12529_p1)
}
  0x26   :  { %s12702_s10 = smov 128   ;;  %s12703_s13 = smov 8  }
  0x27   :  { %65 = dma.hbm_to_vmem [thread:$0]  %s14239_s4, 384, %s60_s23, [#allocation9], %s12702_s10, %s12702_s10, %s12703_s13  }
  0x28   :  { %s12533_s18 = scalar_lea.hbm %s14241_s6, 14400 }
  0x29   :  { %p12534_p2 = scmp.ne.s32.totalorder %s14241_s6, %s12533_s18  ;;  %p12537_p3 = scmp.lt.u32.totalorder %s12533_s18, %s14241_s6 }
  0x2b   :  { %p12539_p4 = pnand %p12537_p3, %p12534_p2 }
  0x2d   :  { %12542 = shalt.err (!%p12539_p4)
}
  0x2e   :  { %s12543_s24 = scalar_lea.vmem %s82_s25, 14400  ;;  %p12548_p6 = scmp.lt.s32.totalorder %s82_s25, %s82_s25 }
  0x2f   :  { %p12544_p5 = scmp.ne.s32.totalorder %s82_s25, %s12543_s24  ;;  %p12549_p7 = scmp.lt.s32.totalorder %s12543_s24, %s12543_s24 }
  0x31   :  { %p12550_p8 = por %p12549_p7, %p12548_p6 }
  0x33   :  { %p12551_p9 = pnand %p12550_p8, %p12544_p5 }
  0x35   :  { %12554 = shalt.err (!%p12551_p9)
}
  0x36   :  { %s12704_s4 = smov 192   ;;  %s12705_s23 = smov 12  }
  0x37   :  { %87 = dma.hbm_to_vmem [thread:$0]  %s14241_s6, 14400, %s82_s25, [#allocation12], %s12704_s4, %s12704_s4, %s12705_s23  }
  0x38   :  { %s12706_s28 = smov [#allocation2]   ;;  %s12707_s30 = smov [#allocation7]  }
  0x39   :  { %s28_s29 = sshll.u32 %s12706_s28, 4  ;;  %s47_s11 = sshll.u32 %s12707_s30, 4  ;;  %s29_s29 = int_to_ptr.vmem [resolvable:$true] %s28_s29  ;;  %s48_s11 = int_to_ptr.vmem [resolvable:$true] %s47_s11 }
  0x3a   :  { %s12555_s14 = scalar_lea.hbm %s14236_s1, 64 }
  0x3b   :  { %p12556_p10 = scmp.ne.s32.totalorder %s14236_s1, %s12555_s14  ;;  %p12559_p11 = scmp.lt.u32.totalorder %s12555_s14, %s14236_s1 }
  0x3d   :  { %p12561_p12 = pnand %p12559_p11, %p12556_p10 }
  0x3f   :  { %12564 = shalt.err (!%p12561_p12)
}
  0x40   :  { %s12565_s6 = scalar_lea.vmem %s29_s29, 64  ;;  %p12570_p0 = scmp.lt.s32.totalorder %s29_s29, %s29_s29 }
  0x41   :  { %p12566_p13 = scmp.ne.s32.totalorder %s29_s29, %s12565_s6  ;;  %p12571_p1 = scmp.lt.s32.totalorder %s12565_s6, %s12565_s6 }
  0x43   :  { %p12572_p2 = por %p12571_p1, %p12570_p0 }
  0x45   :  { %p12573_p3 = pnand %p12572_p2, %p12566_p13 }
  0x47   :  { %12576 = shalt.err (!%p12573_p3)
}
  0x48   :  { %31 = dma.hbm_to_vmem [thread:$0]  %s14236_s1, 64, %s29_s29, [#allocation3]  }
  0x49   :  { %s12577_s22 = scalar_lea.hbm %s14238_s3, 1280 }
  0x4a   :  { %p12578_p4 = scmp.ne.s32.totalorder %s14238_s3, %s12577_s22  ;;  %p12581_p5 = scmp.lt.u32.totalorder %s12577_s22, %s14238_s3 }
  0x4c   :  { %p12583_p6 = pnand %p12581_p5, %p12578_p4 }
  0x4e   :  { %12586 = shalt.err (!%p12583_p6)
}
  0x4f   :  { %s12587_s30 = scalar_lea.vmem %s48_s11, 1280  ;;  %p12592_p8 = scmp.lt.s32.totalorder %s48_s11, %s48_s11 }
  0x50   :  { %p12588_p7 = scmp.ne.s32.totalorder %s48_s11, %s12587_s30  ;;  %p12593_p9 = scmp.lt.s32.totalorder %s12587_s30, %s12587_s30 }
  0x52   :  { %p12594_p10 = por %p12593_p9, %p12592_p8 }
  0x54   :  { %p12595_p11 = pnand %p12594_p10, %p12588_p7 }
  0x56   :  { %12598 = shalt.err (!%p12595_p11)
}
  0x57   :  { %53 = dma.hbm_to_vmem [thread:$0]  %s14238_s3, 1280, %s48_s11, [#allocation6], %s12702_s10, %s12702_s10, %s12703_s13  }
  0x58   :  { %s12708_s12 = smov [#allocation10]   ;;  %s12709_s14 = smov [#allocation13]  }
  0x59   :  { %s72_s2 = sshll.u32 %s12708_s12, 4  ;;  %s93_s15 = sshll.u32 %s12709_s14, 4  ;;  %s73_s2 = int_to_ptr.vmem [resolvable:$true] %s72_s2  ;;  %s94_s15 = int_to_ptr.vmem [resolvable:$true] %s93_s15 }
  0x5a   :  { %s12599_s18 = scalar_lea.hbm %s14240_s5, 32 }
  0x5b   :  { %p12600_p12 = scmp.ne.s32.totalorder %s14240_s5, %s12599_s18  ;;  %p12603_p13 = scmp.lt.u32.totalorder %s12599_s18, %s14240_s5 }
  0x5d   :  { %p12605_p0 = pnand %p12603_p13, %p12600_p12 }
  0x5f   :  { %12608 = shalt.err (!%p12605_p0)
}
  0x60   :  { %s12609_s3 = scalar_lea.vmem %s73_s2, 32  ;;  %p12614_p2 = scmp.lt.s32.totalorder %s73_s2, %s73_s2 }
  0x61   :  { %p12610_p1 = scmp.ne.s32.totalorder %s73_s2, %s12609_s3  ;;  %p12615_p3 = scmp.lt.s32.totalorder %s12609_s3, %s12609_s3 }
  0x63   :  { %p12616_p4 = por %p12615_p3, %p12614_p2 }
  0x65   :  { %p12617_p5 = pnand %p12616_p4, %p12610_p1 }
  0x67   :  { %12620 = shalt.err (!%p12617_p5)
}
  0x68   :  { %75 = dma.hbm_to_vmem [thread:$0]  %s14240_s5, 32, %s73_s2, [#allocation9]  }
  0x69   :  { %s12621_s26 = scalar_lea.hbm %s14242_s7, 36480 }
  0x6a   :  { %p12622_p6 = scmp.ne.s32.totalorder %s14242_s7, %s12621_s26  ;;  %p12625_p7 = scmp.lt.u32.totalorder %s12621_s26, %s14242_s7 }
  0x6c   :  { %p12627_p8 = pnand %p12625_p7, %p12622_p6 }
  0x6e   :  { %12630 = shalt.err (!%p12627_p8)
}
  0x6f   :  { %s12631_s29 = scalar_lea.vmem %s94_s15, 36480  ;;  %p12636_p10 = scmp.lt.s32.totalorder %s94_s15, %s94_s15 }
  0x70   :  { %p12632_p9 = scmp.ne.s32.totalorder %s94_s15, %s12631_s29  ;;  %p12637_p11 = scmp.lt.s32.totalorder %s12631_s29, %s12631_s29 }
  0x72   :  { %p12638_p12 = por %p12637_p11, %p12636_p10 }
  0x74   :  { %p12639_p13 = pnand %p12638_p12, %p12632_p9 }
  0x76   :  { %12642 = shalt.err (!%p12639_p13)
}
  0x77   :  { %99 = dma.hbm_to_vmem [thread:$0]  %s14242_s7, 36480, %s94_s15, [#allocation12], %s12704_s4, %s12704_s4, %s12705_s23  }
  0x78   :  { %s12710_s2 = smov [#allocation14]   ;;  %s12643_s18 = scalar_lea.hbm %s14243_s8, 58368 }
  0x79   :  { %s105_s14 = sshll.u32 %s12710_s2, 4  ;;  %p12644_p0 = scmp.ne.s32.totalorder %s14243_s8, %s12643_s18  ;;  %s106_s14 = int_to_ptr.vmem [resolvable:$true] %s105_s14 }
  0x7a   :  { %p12647_p1 = scmp.lt.u32.totalorder %s12643_s18, %s14243_s8 }
  0x7c   :  { %p12649_p2 = pnand %p12647_p1, %p12644_p0 }
  0x7e   :  { %12652 = shalt.err (!%p12649_p2)
}
  0x7f   :  { %s12653_s3 = scalar_lea.vmem %s106_s14, 58368  ;;  %p12658_p4 = scmp.lt.s32.totalorder %s106_s14, %s106_s14 }
  0x80   :  { %p12654_p3 = scmp.ne.s32.totalorder %s106_s14, %s12653_s3  ;;  %p12659_p5 = scmp.lt.s32.totalorder %s12653_s3, %s12653_s3 }
  0x82   :  { %p12660_p6 = por %p12659_p5, %p12658_p4 }
  0x84   :  { %p12661_p7 = pnand %p12660_p6, %p12654_p3 }
  0x86   :  { %12664 = shalt.err (!%p12661_p7)
}
  0x87   :  { %111 = dma.hbm_to_vmem [thread:$0]  %s14243_s8, 58368, %s106_s14, [#allocation15], %s12702_s10, %s12702_s10, %s12703_s13  }
  0x88   :  { %12687 = dma.done.wait [#allocation3], 64  }
  0x89   :  { %12688 = vsyncadd [#allocation3], 4294967232 }
  0x8a   :  { %12689 = dma.done.wait [#allocation6], 1296  }
  0x8b   :  { %12690 = vsyncadd [#allocation6], 4294966000 }
  0x8c   :  { %12691 = dma.done.wait [#allocation9], 416  }
  0x8d   :  { %12692 = vsyncadd [#allocation9], 4294966880 }
  0x8e   :  { %12693 = dma.done.wait [#allocation12], 50880  }
  0x8f   :  { %12694 = vsyncadd [#allocation12], 4294916416 }
  0x90   :  { %12695 = dma.done.wait [#allocation15], 58368  }
  0x91   :  { %12696 = vsyncadd [#allocation15], 4294908928  ;;  %v14245_v0 = vmov 0   ;;  %v139_v1 = vld [vmem:[%s14235_s0 + $0x10] sm:$0xff]  ;;  %v137_v2 = vld [vmem:[%s14235_s0] sm:$0xff]  ;;  %vm684_vm0 = vcmask 785408   ;;  %v320_v34 = vlaneseq }
  0x92   :  { %11249 = vset.pattern.permute.xlu1 %v14245_v0  ;;  %11248 = vset.pattern.permute.xlu0 %v14245_v0  ;;  %v140_v3 = vld [vmem:[%s14235_s0 + $0x18] sm:$0xff]  ;;  %v138_v4 = vld [vmem:[%s14235_s0 + $0x8] sm:$0xff]  ;;  %v141_v6 = vld [vmem:[%s14235_s0 + $0x20] sm:$0xff]  ;;  %vm786_vm1 = vcmask 1043456   ;;  %vm801_vm2 = vcmask 64512   ;;  %vm1419_vm3 = vcmask 588800  }
  0x93   :  { %700 = vmatprep.subr.bf16.mxu0 %v14245_v0  ;;  %853 = vmatprep.mubr.bf16.mxu1 %v14245_v0  ;;  %v142_v5 = vld [vmem:[%s14235_s0 + $0x28] sm:$0xff]  ;;  %v144_v7 = vld [vmem:[%s14235_s0 + $0x38] sm:$0xff]  ;;  %v143_v8 = vld [vmem:[%s14235_s0 + $0x30] sm:$0xff]  ;;  %v12975_v35 = vshrl.u32 %v320_v34, 7  ;;  %vm2765_vm4 = vcmask 1045504   ;;  %vm2752_vm5 = vcmask 359424  }
  0x94   :  { %182 = vperm.xlu1 %11249, %v139_v1   ;;  %172 = vperm.xlu0 %11248, %v137_v2   ;;  %v146_v9 = vld [vmem:[%s14235_s0 + $0x48] sm:$0xff]  ;;  %v145_v10 = vld [vmem:[%s14235_s0 + $0x40] sm:$0xff]  ;;  %v148_v11 = vld [vmem:[%s14235_s0 + $0x58] sm:$0xff] }
  0x95   :  { %v147_v12 = vld [vmem:[%s14235_s0 + $0x50] sm:$0xff]  ;;  %v150_v13 = vld [vmem:[%s14235_s0 + $0x68] sm:$0xff]  ;;  %v149_v14 = vld [vmem:[%s14235_s0 + $0x60] sm:$0xff]  ;;  %v361_v37 = vsub.s32 1, %v12975_v35  ;;  %v322_v38 = vsub.s32 0, %v12975_v35  ;;  %v430_v39 = vsub.s32 2, %v12975_v35 }
  0x96   :  { %v152_v15 = vld [vmem:[%s14235_s0 + $0x78] sm:$0xff]  ;;  %v151_v16 = vld [vmem:[%s14235_s0 + $0x70] sm:$0xff]  ;;  %v154_v17 = vld [vmem:[%s14235_s0 + $0x88] sm:$0xff] }
  0x97   :  { %v153_v18 = vld [vmem:[%s14235_s0 + $0x80] sm:$0xff]  ;;  %v156_v19 = vld [vmem:[%s14235_s0 + $0x98] sm:$0xff]  ;;  %v155_v20 = vld [vmem:[%s14235_s0 + $0x90] sm:$0xff] }
  0x98   :  { %187 = vperm.xlu1 %11249, %v140_v3   ;;  %177 = vperm.xlu0 %11248, %v138_v4   ;;  %v158_v21 = vld [vmem:[%s14235_s0 + $0xa8] sm:$0xff]  ;;  %v157_v22 = vld [vmem:[%s14235_s0 + $0xa0] sm:$0xff]  ;;  %v160_v23 = vld [vmem:[%s14235_s0 + $0xb8] sm:$0xff] }
  0x99   :  { %v159_v24 = vld [vmem:[%s14235_s0 + $0xb0] sm:$0xff]  ;;  %v162_v25 = vld [vmem:[%s14235_s0 + $0xc8] sm:$0xff]  ;;  %v161_v26 = vld [vmem:[%s14235_s0 + $0xc0] sm:$0xff] }
  0x9a   :  { %v164_v27 = vld [vmem:[%s14235_s0 + $0xd8] sm:$0xff]  ;;  %v163_v28 = vld [vmem:[%s14235_s0 + $0xd0] sm:$0xff]  ;;  %v166_v29 = vld [vmem:[%s14235_s0 + $0xe8] sm:$0xff] }
  0x9b   :  { %v165_v30 = vld [vmem:[%s14235_s0 + $0xe0] sm:$0xff]  ;;  %v168_v31 = vld [vmem:[%s14235_s0 + $0xf8] sm:$0xff]  ;;  %v167_v32 = vld [vmem:[%s14235_s0 + $0xf0] sm:$0xff]  ;;  %s12712_s0 = smov [#allocation16]  }
  0x9c   :  { %197 = vperm.xlu1 %11249, %v142_v5   ;;  %192 = vperm.xlu0 %11248, %v141_v6   ;;  %v11252_v33 = vld [vmem:[#allocation7 + $0x4] ss:$8 sps:$4 sm:$0xff]   ;;  %v169_v36 = vld [vmem:[#allocation2] sm:$0x7]  ;;  %v12994_v51 = vld [vmem:[#allocation5] ss:$0 sm:$0xff] }
  0x9d   :  { %9762 = vmatprep.mubr.msk.bf16.mxu0 %vm684_vm0, %v11252_v33  ;;  %v12982_v42 = vrot.slane %v169_v36, %v361_v37  ;;  %v12986_v43 = vrot.slane %v169_v36, %v322_v38  ;;  %v12988_v44 = vrot.slane %v169_v36, %v430_v39  ;;  %s9738_s21 = sshll.u32 %s12712_s0, 4  ;;  %s9739_s21 = int_to_ptr.vmem [resolvable:$true] %s9738_s21 }
  0x9e   :  { %s12665_s22 = scalar_lea.vmem %s9739_s21, 256  ;;  %p12670_p9 = scmp.lt.s32.totalorder %s9739_s21, %s9739_s21 }
  0x9f   :  { %p12666_p8 = scmp.ne.s32.totalorder %s9739_s21, %s12665_s22  ;;  %p12671_p10 = scmp.lt.s32.totalorder %s12665_s22, %s12665_s22 }
  0xa0   :  { %207 = vperm.xlu1 %11249, %v144_v7   ;;  %202 = vperm.xlu0 %11248, %v143_v8  }
  0xa1   :  { %p12672_p11 = por %p12671_p10, %p12670_p9 }
  0xa3   :  { %p12673_p12 = pnand %p12672_p11, %p12666_p8 }
  0xa4   :  { %217 = vperm.xlu1 %11249, %v146_v9   ;;  %212 = vperm.xlu0 %11248, %v145_v10  }
  0xa8   :  { %227 = vperm.xlu1 %11249, %v148_v11   ;;  %222 = vperm.xlu0 %11248, %v147_v12  }
  0xac   :  { %237 = vperm.xlu1 %11249, %v150_v13   ;;  %232 = vperm.xlu0 %11248, %v149_v14  }
  0xb0   :  { %247 = vperm.xlu1 %11249, %v152_v15   ;;  %242 = vperm.xlu0 %11248, %v151_v16  }
  0xb4   :  { %257 = vperm.xlu1 %11249, %v154_v17   ;;  %252 = vperm.xlu0 %11248, %v153_v18  }
  0xb8   :  { %267 = vperm.xlu1 %11249, %v156_v19   ;;  %262 = vperm.xlu0 %11248, %v155_v20  }
  0xbc   :  { %277 = vperm.xlu1 %11249, %v158_v21   ;;  %272 = vperm.xlu0 %11248, %v157_v22  }
  0xc0   :  { %287 = vperm.xlu1 %11249, %v160_v23   ;;  %282 = vperm.xlu0 %11248, %v159_v24  }
  0xc4   :  { %297 = vperm.xlu1 %11249, %v162_v25   ;;  %292 = vperm.xlu0 %11248, %v161_v26  }
  0xc8   :  { %307 = vperm.xlu1 %11249, %v164_v27   ;;  %302 = vperm.xlu0 %11248, %v163_v28  }
  0xcc   :  { %317 = vperm.xlu1 %11249, %v166_v29   ;;  %312 = vperm.xlu0 %11248, %v165_v30  }
  0xd0   :  { %425 = vperm.xlu1 %11249, %v168_v31   ;;  %356 = vperm.xlu0 %11248, %v167_v32  }
 0x113   :  { %v183_v40 = vpop.permute.xlu1 %182  ;;  %v173_v41 = vpop.permute.xlu0 %172 }
 0x114   :  { %v364_v47 = vmul.f32 %v12982_v42, %v183_v40  ;;  %v324_v50 = vmul.f32 %v12986_v43, %v173_v41  ;;  %v326_v53 = vmul.f32 %v12986_v43, %v183_v40  ;;  %v432_v56 = vmul.f32 %v12988_v44, %v183_v40 }
 0x117   :  { %v188_v45 = vpop.permute.xlu1 %187  ;;  %v178_v46 = vpop.permute.xlu0 %177 }
 0x118   :  { %v365_v48 = vmul.f32 %v12982_v42, %v188_v45  ;;  %v325_v49 = vmul.f32 %v12986_v43, %v178_v46  ;;  %v363_v52 = vmul.f32 %v12982_v42, %v178_v46  ;;  %v433_v54 = vmul.f32 %v12988_v44, %v188_v45 }
 0x119   :  { %v327_v60 = vmul.f32 %v12986_v43, %v188_v45 }
 0x11a   :  { %v394_v55 = vadd.f32 %v364_v47, %v325_v49  ;;  %v393_v57 = vadd.f32 %v363_v52, %v324_v50  ;;  %v395_v61 = vadd.f32 %v365_v48, %v326_v53 }
 0x11b   :  { %v198_v58 = vpop.permute.xlu1 %197  ;;  %v193_v59 = vpop.permute.xlu0 %192 }
 0x11c   :  { %v463_v62 = vadd.f32 %v433_v54, %v394_v55  ;;  %v367_v63 = vmul.f32 %v12982_v42, %v198_v58  ;;  %v462_v1 = vadd.f32 %v432_v56, %v393_v57  ;;  %v328_v2 = vmul.f32 %v12986_v43, %v193_v59 }
 0x11d   :  { %v366_v3 = vmul.f32 %v12982_v42, %v193_v59  ;;  %v434_v4 = vmul.f32 %v12988_v44, %v193_v59  ;;  %v329_v6 = vmul.f32 %v12986_v43, %v198_v58  ;;  %v435_v8 = vmul.f32 %v12988_v44, %v198_v58 }
 0x11e   :  { %v500_v5 = vadd.f32 %v12994_v51, %v463_v62  ;;  %v499_v7 = vadd.f32 %v12994_v51, %v462_v1  ;;  %v397_v13 = vadd.f32 %v367_v63, %v328_v2 }
 0x11f   :  { %v396_v9 = vadd.f32 %v366_v3, %v327_v60  ;;  %v464_v10 = vadd.f32 %v434_v4, %v395_v61  ;;  %v208_v11 = vpop.permute.xlu1 %207  ;;  %v203_v12 = vpop.permute.xlu0 %202 }
 0x120   :  { %v331_v14 = vmul.f32 %v12986_v43, %v208_v11  ;;  %v369_v15 = vmul.f32 %v12982_v42, %v208_v11  ;;  %v330_v16 = vmul.f32 %v12986_v43, %v203_v12  ;;  %v368_v19 = vmul.f32 %v12982_v42, %v203_v12 }
 0x121   :  { %v465_v17 = vadd.f32 %v435_v8, %v396_v9  ;;  %v501_v18 = vadd.f32 %v12994_v51, %v464_v10  ;;  %v436_v20 = vmul.f32 %v12988_v44, %v203_v12  ;;  %v437_v21 = vmul.f32 %v12988_v44, %v208_v11 }
 0x122   :  { %v399_v22 = vadd.f32 %v369_v15, %v330_v16  ;;  %v529_v23 = vmax.f32 %v499_v7, 0.0  ;;  %v530_v24 = vmax.f32 %v500_v5, 0.0  ;;  %v398_v25 = vadd.f32 %v368_v19, %v329_v6 }
 0x123   :  { %v466_v26 = vadd.f32 %v436_v20, %v397_v13  ;;  %v218_v27 = vpop.permute.xlu1 %217  ;;  %v213_v28 = vpop.permute.xlu0 %212  ;;  %v502_v29 = vadd.f32 %v12994_v51, %v465_v17  ;;  %v531_v30 = vmax.f32 %v501_v18, 0.0 }
 0x124   :  { %v333_v31 = vmul.f32 %v12986_v43, %v218_v27  ;;  %v371_v32 = vmul.f32 %v12982_v42, %v218_v27  ;;  %v439_v33 = vmul.f32 %v12988_v44, %v218_v27  ;;  %v332_v34 = vmul.f32 %v12986_v43, %v213_v28 }
 0x125   :  { %v467_v36 = vadd.f32 %v437_v21, %v398_v25  ;;  %v503_v39 = vadd.f32 %v12994_v51, %v466_v26  ;;  %v370_v40 = vmul.f32 %v12982_v42, %v213_v28  ;;  %v438_v41 = vmul.f32 %v12988_v44, %v213_v28 }
 0x126   :  { %v401_v45 = vadd.f32 %v371_v32, %v332_v34  ;;  %v532_v46 = vmax.f32 %v502_v29, 0.0  ;;  %v559_v47 = vmax.f32 %v529_v23, %v530_v24  ;;  %v560_v48 = vmax.f32 %v530_v24, %v531_v30 }
 0x127   :  { %v504_v49 = vadd.f32 %v12994_v51, %v467_v36  ;;  %v533_v50 = vmax.f32 %v503_v39, 0.0  ;;  %v400_v52 = vadd.f32 %v370_v40, %v331_v14  ;;  %v468_v53 = vadd.f32 %v438_v41, %v399_v22  ;;  %v228_v54 = vpop.permute.xlu1 %227  ;;  %v223_v55 = vpop.permute.xlu0 %222 }
 0x128   :  { %v335_v56 = vmul.f32 %v12986_v43, %v228_v54  ;;  %v373_v57 = vmul.f32 %v12982_v42, %v228_v54  ;;  %v441_v58 = vmul.f32 %v12988_v44, %v228_v54  ;;  %v334_v59 = vmul.f32 %v12986_v43, %v223_v55 }
 0x129   :  { %v534_v60 = vmax.f32 %v504_v49, 0.0  ;;  %v469_v61 = vadd.f32 %v439_v33, %v400_v52  ;;  %v505_v62 = vadd.f32 %v12994_v51, %v468_v53  ;;  %v372_v63 = vmul.f32 %v12982_v42, %v223_v55 }
 0x12a   :  { %v403_v1 = vadd.f32 %v373_v57, %v334_v59  ;;  %v440_v2 = vmul.f32 %v12988_v44, %v223_v55  ;;  %v587_v3 = vmax.f32 %v559_v47, %v531_v30  ;;  %v588_v4 = vmax.f32 %v560_v48, %v532_v46 }
 0x12b   :  { %v506_v5 = vadd.f32 %v12994_v51, %v469_v61  ;;  %v13033_v6 = vmax.f32 %v505_v62, 0.0  ;;  %v402_v7 = vadd.f32 %v372_v63, %v333_v31  ;;  %v238_v8 = vpop.permute.xlu1 %237  ;;  %v233_v9 = vpop.permute.xlu0 %232  ;;  %v561_v10 = vmax.f32 %v531_v30, %v532_v46 }
 0x12c   :  { %v470_v11 = vadd.f32 %v440_v2, %v401_v45  ;;  %v625_v12 = vpack.c.bf16 %v588_v4, %v587_v3  ;;  %v337_v13 = vmul.f32 %v12986_v43, %v238_v8  ;;  %v375_v14 = vmul.f32 %v12982_v42, %v238_v8 }
 0x12d   :  { %v13037_v15 = vmax.f32 %v506_v5, 0.0  ;;  %v471_v16 = vadd.f32 %v441_v58, %v402_v7  ;;  %v443_v17 = vmul.f32 %v12988_v44, %v238_v8  ;;  %v336_v18 = vmul.f32 %v12986_v43, %v233_v9 }
 0x12e   :  { %v507_v19 = vadd.f32 %v12994_v51, %v470_v11  ;;  %701 = vmatpush1.bf16.msra.mxu0 %v625_v12  ;;  %v374_v20 = vmul.f32 %v12982_v42, %v233_v9  ;;  %v442_v21 = vmul.f32 %v12988_v44, %v233_v9  ;;  %v562_v22 = vmax.f32 %v532_v46, %v533_v50 }
 0x12f   :  { %v508_v23 = vadd.f32 %v12994_v51, %v471_v16  ;;  %v405_v24 = vadd.f32 %v375_v14, %v336_v18  ;;  %702 = vmatprep.subr.bf16.mxu0 %v14245_v0  ;;  %v589_v25 = vmax.f32 %v561_v10, %v533_v50  ;;  %v248_v26 = vpop.permute.xlu1 %247  ;;  %v243_v27 = vpop.permute.xlu0 %242  ;;  %v563_v28 = vmax.f32 %v533_v50, %v534_v60 }
 0x130   :  { %v13046_v29 = vmax.f32 %v507_v19, 0.0  ;;  %v404_v30 = vadd.f32 %v374_v20, %v335_v56  ;;  %v472_v31 = vadd.f32 %v442_v21, %v403_v1  ;;  %v590_v32 = vmax.f32 %v562_v22, %v534_v60 }
 0x131   :  { %v13048_v33 = vmax.f32 %v508_v23, 0.0  ;;  %v339_v34 = vmul.f32 %v12986_v43, %v248_v26  ;;  %v377_v36 = vmul.f32 %v12982_v42, %v248_v26  ;;  %v445_v39 = vmul.f32 %v12988_v44, %v248_v26 }
 0x132   :  { %v473_v40 = vadd.f32 %v443_v17, %v404_v30  ;;  %v509_v41 = vadd.f32 %v12994_v51, %v472_v31  ;;  %v626_v45 = vpack.c.bf16 %v590_v32, %v589_v25  ;;  %v338_v46 = vmul.f32 %v12986_v43, %v243_v27 }
 0x133   :  { %v376_v47 = vmul.f32 %v12982_v42, %v243_v27  ;;  %v444_v48 = vmul.f32 %v12988_v44, %v243_v27  ;;  %v564_v49 = vmax.f32 %v534_v60, %v13033_v6  ;;  %v591_v50 = vmax.f32 %v563_v28, %v13033_v6  ;;  %v258_v52 = vpop.permute.xlu1 %257  ;;  %v253_v53 = vpop.permute.xlu0 %252 }
 0x134   :  { %v510_v54 = vadd.f32 %v12994_v51, %v473_v40  ;;  %v13060_v55 = vmax.f32 %v509_v41, 0.0  ;;  %703 = vmatpush1.bf16.msra.mxu0 %v626_v45  ;;  %v407_v56 = vadd.f32 %v377_v36, %v338_v46  ;;  %v341_v57 = vmul.f32 %v12986_v43, %v258_v52 }
 0x135   :  { %v406_v58 = vadd.f32 %v376_v47, %v337_v13  ;;  %v474_v59 = vadd.f32 %v444_v48, %v405_v24  ;;  %704 = vmatprep.subr.bf16.mxu0 %v14245_v0  ;;  %v592_v61 = vmax.f32 %v564_v49, %v13037_v15  ;;  %v379_v60 = vmul.f32 %v12982_v42, %v258_v52 }
 0x136   :  { %v13066_v62 = vmax.f32 %v510_v54, 0.0  ;;  %v447_v63 = vmul.f32 %v12988_v44, %v258_v52  ;;  %v340_v1 = vmul.f32 %v12986_v43, %v253_v53  ;;  %v378_v2 = vmul.f32 %v12982_v42, %v253_v53 }
 0x137   :  { %v475_v3 = vadd.f32 %v445_v39, %v406_v58  ;;  %v511_v4 = vadd.f32 %v12994_v51, %v474_v59  ;;  %v627_v5 = vpack.c.bf16 %v592_v61, %v591_v50  ;;  %v446_v7 = vmul.f32 %v12988_v44, %v253_v53  ;;  %v268_v8 = vpop.permute.xlu1 %267  ;;  %v263_v9 = vpop.permute.xlu0 %262 }
 0x138   :  { %v408_v10 = vadd.f32 %v378_v2, %v339_v34  ;;  %v409_v11 = vadd.f32 %v379_v60, %v340_v1  ;;  %v565_v12 = vmax.f32 %v13033_v6, %v13037_v15  ;;  %v566_v13 = vmax.f32 %v13037_v15, %v13046_v29 }
 0x139   :  { %v512_v14 = vadd.f32 %v12994_v51, %v475_v3  ;;  %v13078_v16 = vmax.f32 %v511_v4, 0.0  ;;  %705 = vmatpush1.bf16.msra.mxu0 %v627_v5  ;;  %v476_v17 = vadd.f32 %v446_v7, %v407_v56  ;;  %v343_v18 = vmul.f32 %v12986_v43, %v268_v8 }
 0x13a   :  { %v477_v19 = vadd.f32 %v447_v63, %v408_v10  ;;  %706 = vmatprep.subr.bf16.mxu0 %v14245_v0  ;;  %v593_v20 = vmax.f32 %v565_v12, %v13046_v29  ;;  %v594_v21 = vmax.f32 %v566_v13, %v13048_v33  ;;  %v381_v6 = vmul.f32 %v12982_v42, %v268_v8 }
 0x13b   :  { %v13085_v22 = vmax.f32 %v512_v14, 0.0  ;;  %v513_v15 = vadd.f32 %v12994_v51, %v476_v17  ;;  %v449_v23 = vmul.f32 %v12988_v44, %v268_v8  ;;  %v342_v24 = vmul.f32 %v12986_v43, %v263_v9  ;;  %v278_v25 = vpop.permute.xlu1 %277  ;;  %v273_v26 = vpop.permute.xlu0 %272 }
 0x13c   :  { %v514_v27 = vadd.f32 %v12994_v51, %v477_v19  ;;  %v628_v28 = vpack.c.bf16 %v594_v21, %v593_v20  ;;  %v380_v30 = vmul.f32 %v12982_v42, %v263_v9  ;;  %v448_v31 = vmul.f32 %v12988_v44, %v263_v9 }
 0x13d   :  { %v13093_v32 = vmax.f32 %v513_v15, 0.0  ;;  %v411_v34 = vadd.f32 %v381_v6, %v342_v24  ;;  %v567_v36 = vmax.f32 %v13046_v29, %v13048_v33  ;;  %v568_v39 = vmax.f32 %v13048_v33, %v13060_v55 }
 0x13e   :  { %v13099_v40 = vmax.f32 %v514_v27, 0.0  ;;  %707 = vmatpush1.bf16.msra.mxu0 %v628_v28  ;;  %v410_v41 = vadd.f32 %v380_v30, %v341_v57  ;;  %v478_v45 = vadd.f32 %v448_v31, %v409_v11  ;;  %v345_v46 = vmul.f32 %v12986_v43, %v278_v25 }
 0x13f   :  { %708 = vmatprep.subr.bf16.mxu0 %v14245_v0  ;;  %v595_v47 = vmax.f32 %v567_v36, %v13060_v55  ;;  %v596_v48 = vmax.f32 %v568_v39, %v13066_v62  ;;  %v383_v49 = vmul.f32 %v12982_v42, %v278_v25  ;;  %v451_v29 = vmul.f32 %v12988_v44, %v278_v25  ;;  %v288_v50 = vpop.permute.xlu1 %287  ;;  %v283_v52 = vpop.permute.xlu0 %282 }
 0x140   :  { %v479_v33 = vadd.f32 %v449_v23, %v410_v41  ;;  %v515_v53 = vadd.f32 %v12994_v51, %v478_v45  ;;  %v344_v54 = vmul.f32 %v12986_v43, %v273_v26  ;;  %v382_v56 = vmul.f32 %v12982_v42, %v273_v26 }
 0x141   :  { %v629_v57 = vpack.c.bf16 %v596_v48, %v595_v47  ;;  %v450_v58 = vmul.f32 %v12988_v44, %v273_v26  ;;  %v569_v59 = vmax.f32 %v13060_v55, %v13066_v62  ;;  %v570_v61 = vmax.f32 %v13066_v62, %v13078_v16 }
 0x142   :  { %v516_v60 = vadd.f32 %v12994_v51, %v479_v33  ;;  %v13116_v63 = vmax.f32 %v515_v53, 0.0  ;;  %v412_v1 = vadd.f32 %v382_v56, %v343_v18  ;;  %v413_v2 = vadd.f32 %v383_v49, %v344_v54 }
 0x143   :  { %709 = vmatpush1.bf16.msra.mxu0 %v629_v57  ;;  %v480_v3 = vadd.f32 %v450_v58, %v411_v34  ;;  %v597_v4 = vmax.f32 %v569_v59, %v13078_v16  ;;  %v598_v5 = vmax.f32 %v570_v61, %v13085_v22  ;;  %v347_v7 = vmul.f32 %v12986_v43, %v288_v50  ;;  %v298_v8 = vpop.permute.xlu1 %297  ;;  %v293_v9 = vpop.permute.xlu0 %292 }
 0x144   :  { %v13121_v55 = vmax.f32 %v516_v60, 0.0  ;;  %v481_v10 = vadd.f32 %v451_v29, %v412_v1  ;;  %710 = vmatprep.subr.bf16.mxu0 %v14245_v0  ;;  %v385_v62 = vmul.f32 %v12982_v42, %v288_v50  ;;  %v453_v11 = vmul.f32 %v12988_v44, %v288_v50 }
 0x145   :  { %v517_v12 = vadd.f32 %v12994_v51, %v480_v3  ;;  %v630_v13 = vpack.c.bf16 %v598_v5, %v597_v4  ;;  %v346_v14 = vmul.f32 %v12986_v43, %v283_v52  ;;  %v384_v17 = vmul.f32 %v12982_v42, %v283_v52 }
 0x146   :  { %v518_v18 = vadd.f32 %v12994_v51, %v481_v10  ;;  %v452_v19 = vmul.f32 %v12988_v44, %v283_v52  ;;  %v571_v20 = vmax.f32 %v13078_v16, %v13085_v22  ;;  %v572_v21 = vmax.f32 %v13085_v22, %v13093_v32 }
 0x147   :  { %v13135_v6 = vmax.f32 %v517_v12, 0.0  ;;  %711 = vmatpush1.bf16.msra.mxu0 %v630_v13  ;;  %v414_v15 = vadd.f32 %v384_v17, %v345_v46  ;;  %v415_v23 = vadd.f32 %v385_v62, %v346_v14  ;;  %v349_v24 = vmul.f32 %v12986_v43, %v298_v8  ;;  %v308_v25 = vpop.permute.xlu1 %307  ;;  %v303_v30 = vpop.permute.xlu0 %302 }
 0x148   :  { %v13138_v26 = vmax.f32 %v518_v18, 0.0  ;;  %v482_v27 = vadd.f32 %v452_v19, %v413_v2  ;;  %712 = vmatprep.subr.bf16.mxu0 %v14245_v0  ;;  %v599_v28 = vmax.f32 %v571_v20, %v13093_v32  ;;  %v600_v16 = vmax.f32 %v572_v21, %v13099_v40 }
 0x149   :  { %v483_v31 = vadd.f32 %v453_v11, %v414_v15  ;;  %v387_v22 = vmul.f32 %v12982_v42, %v298_v8  ;;  %v455_v34 = vmul.f32 %v12988_v44, %v298_v8  ;;  %v348_v36 = vmul.f32 %v12986_v43, %v293_v9 }
 0x14a   :  { %v519_v39 = vadd.f32 %v12994_v51, %v482_v27  ;;  %v631_v41 = vpack.c.bf16 %v600_v16, %v599_v28  ;;  %v386_v45 = vmul.f32 %v12982_v42, %v293_v9  ;;  %v454_v46 = vmul.f32 %v12988_v44, %v293_v9 }
 0x14b   :  { %v520_v47 = vadd.f32 %v12994_v51, %v483_v31  ;;  %v417_v48 = vadd.f32 %v387_v22, %v348_v36  ;;  %v573_v49 = vmax.f32 %v13093_v32, %v13099_v40  ;;  %v574_v29 = vmax.f32 %v13099_v40, %v13116_v63  ;;  %v318_v54 = vpop.permute.xlu1 %317  ;;  %v313_v1 = vpop.permute.xlu0 %312 }
 0x14c   :  { %v13154_v50 = vmax.f32 %v519_v39, 0.0  ;;  %713 = vmatpush1.bf16.msra.mxu0 %v631_v41  ;;  %v416_v52 = vadd.f32 %v386_v45, %v347_v7  ;;  %v484_v33 = vadd.f32 %v454_v46, %v415_v23  ;;  %v351_v53 = vmul.f32 %v12986_v43, %v308_v25 }
 0x14d   :  { %v13157_v56 = vmax.f32 %v520_v47, 0.0  ;;  %714 = vmatprep.subr.bf16.mxu0 %v14245_v0  ;;  %v601_v57 = vmax.f32 %v573_v49, %v13116_v63  ;;  %v602_v58 = vmax.f32 %v574_v29, %v13121_v55  ;;  %v389_v32 = vmul.f32 %v12982_v42, %v308_v25 }
 0x14e   :  { %v485_v59 = vadd.f32 %v455_v34, %v416_v52  ;;  %v521_v40 = vadd.f32 %v12994_v51, %v484_v33  ;;  %v457_v61 = vmul.f32 %v12988_v44, %v308_v25  ;;  %v350_v60 = vmul.f32 %v12986_v43, %v303_v30 }
 0x14f   :  { %v632_v2 = vpack.c.bf16 %v602_v58, %v601_v57  ;;  %v388_v3 = vmul.f32 %v12982_v42, %v303_v30  ;;  %v456_v4 = vmul.f32 %v12988_v44, %v303_v30  ;;  %v575_v5 = vmax.f32 %v13116_v63, %v13121_v55  ;;  %v426_v19 = vpop.permute.xlu1 %425  ;;  %v357_v28 = vpop.permute.xlu0 %356 }
 0x150   :  { %v522_v7 = vadd.f32 %v12994_v51, %v485_v59  ;;  %v551_v8 = vmax.f32 %v521_v40, 0.0  ;;  %v419_v9 = vadd.f32 %v389_v32, %v350_v60  ;;  %v576_v10 = vmax.f32 %v13121_v55, %v13135_v6 }
 0x151   :  { %715 = vmatpush1.bf16.msra.mxu0 %v632_v2  ;;  %v418_v62 = vadd.f32 %v388_v3, %v349_v24  ;;  %v486_v11 = vadd.f32 %v456_v4, %v417_v48  ;;  %v603_v12 = vmax.f32 %v575_v5, %v13135_v6  ;;  %v353_v13 = vmul.f32 %v12986_v43, %v318_v54 }
 0x152   :  { %v552_v14 = vmax.f32 %v522_v7, 0.0  ;;  %716 = vmatprep.subr.bf16.mxu0 %v14245_v0  ;;  %v604_v17 = vmax.f32 %v576_v10, %v13138_v26  ;;  %v391_v63 = vmul.f32 %v12982_v42, %v318_v54  ;;  %v459_v18 = vmul.f32 %v12988_v44, %v318_v54 }
 0x153   :  { %v487_v20 = vadd.f32 %v457_v61, %v418_v62  ;;  %v523_v55 = vadd.f32 %v12994_v51, %v486_v11  ;;  %v352_v21 = vmul.f32 %v12986_v43, %v313_v1  ;;  %v390_v15 = vmul.f32 %v12982_v42, %v313_v1 }
 0x154   :  { %v633_v23 = vpack.c.bf16 %v604_v17, %v603_v12  ;;  %v458_v24 = vmul.f32 %v12988_v44, %v313_v1  ;;  %v577_v25 = vmax.f32 %v13135_v6, %v13138_v26  ;;  %v578_v27 = vmax.f32 %v13138_v26, %v13154_v50  ;;  %v12488_v1 = vld [vmem:[#allocation5] ss:$0 sm:$0xff]  ;;  %v11255_v17 = vld [vmem:[#allocation7 + $0x10] ss:$8 sps:$4 sm:$0xff]  }
 0x155   :  { %v524_v16 = vadd.f32 %v12994_v51, %v487_v20  ;;  %v553_v30 = vmax.f32 %v523_v55, 0.0  ;;  %v420_v31 = vadd.f32 %v390_v15, %v351_v53  ;;  %v461_v22 = vmul.f32 %v12988_v44, %v426_v19  ;;  %v11259_v19 = vld [vmem:[#allocation7 + $0x34] ss:$8 sps:$4 sm:$0xff]   ;;  %v11261_v20 = vld [vmem:[#allocation7 + $0x30] ss:$8 sps:$4 sm:$0xff]  }
 0x156   :  { %717 = vmatpush1.bf16.msra.mxu0 %v633_v23  ;;  %v488_v43 = vadd.f32 %v458_v24, %v419_v9  ;;  %v605_v34 = vmax.f32 %v577_v25, %v13154_v50  ;;  %v606_v36 = vmax.f32 %v578_v27, %v13157_v56  ;;  %v421_v39 = vadd.f32 %v391_v63, %v352_v21  ;;  %v11256_v63 = vld [vmem:[#allocation7 + $0x24] ss:$8 sps:$4 sm:$0xff]   ;;  %v11264_v21 = vld [vmem:[#allocation7 + $0x40] ss:$8 sps:$4 sm:$0xff]   ;;  %v780_v15 = vld [vmem:[#allocation8 + $0x8] sm:$0xff] }
 0x157   :  { %v554_v41 = vmax.f32 %v524_v16, 0.0  ;;  %v489_v45 = vadd.f32 %v459_v18, %v420_v31  ;;  %718 = vmatprep.subr.bf16.mxu0 %v14245_v0  ;;  %v392_v6 = vmul.f32 %v12982_v42, %v357_v28  ;;  %v460_v26 = vmul.f32 %v12988_v44, %v357_v28  ;;  %v11258_v18 = vld [vmem:[#allocation7 + $0x20] ss:$8 sps:$4 sm:$0xff]   ;;  %v11262_v55 = vld [vmem:[#allocation7 + $0x44] ss:$8 sps:$4 sm:$0xff]   ;;  %v778_v27 = vld [vmem:[#allocation8] sm:$0xff] }
 0x158   :  { %v525_v46 = vadd.f32 %v12994_v51, %v488_v43  ;;  %v634_v47 = vpack.c.bf16 %v606_v36, %v605_v34  ;;  %v579_v48 = vmax.f32 %v13154_v50, %v13157_v56  ;;  %v580_v49 = vmax.f32 %v13157_v56, %v551_v8  ;;  %v11271_v16 = vld [vmem:[#allocation11] ss:$12 sps:$4 sm:$0xff]   ;;  %v11277_v31 = vld [vmem:[#allocation11 + $0x1c] ss:$12 sps:$4 sm:$0xff]  }
 0x159   :  { %v526_v29 = vadd.f32 %v12994_v51, %v489_v45  ;;  %v422_v52 = vadd.f32 %v392_v6, %v353_v13  ;;  %v490_v33 = vadd.f32 %v460_v26, %v421_v39  ;;  %v581_v53 = vmax.f32 %v551_v8, %v552_v14  ;;  %v11250_v13 = vld [vmem:[#allocation7] ss:$8 sps:$4 sm:$0xff]  }
 0x15a   :  { %v555_v54 = vmax.f32 %v525_v46, 0.0  ;;  %719 = vmatpush1.bf16.msra.mxu0 %v634_v47  ;;  %v607_v57 = vmax.f32 %v579_v48, %v551_v8  ;;  %v608_v58 = vmax.f32 %v580_v49, %v552_v14  ;;  %v582_v42 = vmax.f32 %v552_v14, %v553_v30  ;;  %v11253_v14 = vld [vmem:[#allocation7 + $0x14] ss:$8 sps:$4 sm:$0xff]   ;;  %v11291_v26 = vld [vmem:[#allocation11 + $0x78] ss:$12 sps:$4 sm:$0xff]  }
 0x15b   :  { %v556_v32 = vmax.f32 %v526_v29, 0.0  ;;  %v491_v44 = vadd.f32 %v461_v22, %v422_v52  ;;  %v527_v59 = vadd.f32 %v12994_v51, %v490_v33  ;;  %720 = vmatprep.subr.bf16.mxu0 %v14245_v0  ;;  %v609_v40 = vmax.f32 %v581_v53, %v553_v30  ;;  %v11275_v22 = vld [vmem:[#allocation11 + $0x18] ss:$12 sps:$4 sm:$0xff]   ;;  %v11281_v43 = vld [vmem:[#allocation11 + $0x34] ss:$12 sps:$4 sm:$0xff]  }
 0x15c   :  { %v635_v50 = vpack.c.bf16 %v608_v58, %v607_v57  ;;  %v610_v61 = vmax.f32 %v582_v42, %v554_v41  ;;  %v583_v56 = vmax.f32 %v553_v30, %v554_v41  ;;  %v584_v60 = vmax.f32 %v554_v41, %v555_v54  ;;  %v11273_v30 = vld [vmem:[#allocation11 + $0x4] ss:$12 sps:$4 sm:$0xff]   ;;  %v11285_v36 = vld [vmem:[#allocation11 + $0x4c] ss:$12 sps:$4 sm:$0xff]   ;;  %v11283_v39 = vld [vmem:[#allocation11 + $0x48] ss:$12 sps:$4 sm:$0xff]  }
 0x15d   :  { %v528_v2 = vadd.f32 %v12488_v1, %v491_v44  ;;  %v557_v3 = vmax.f32 %v527_v59, 0.0  ;;  %v585_v10 = vmax.f32 %v555_v54, %v556_v32  ;;  %v9768_v23 = vcombine.high %v780_v15, %v780_v15  ;;  %v11279_v34 = vld [vmem:[#allocation11 + $0x30] ss:$12 sps:$4 sm:$0xff]   ;;  %v11287_v45 = vld [vmem:[#allocation11 + $0x60] ss:$12 sps:$4 sm:$0xff]  }
 0x15e   :  { %721 = vmatpush1.bf16.msra.mxu0 %v635_v50  ;;  %v636_v4 = vpack.c.bf16 %v610_v61, %v609_v40  ;;  %v612_v5 = vmax.f32 %v584_v60, %v556_v32  ;;  %v611_v9 = vmax.f32 %v583_v56, %v555_v54  ;;  %v9767_v24 = vcombine.low %v780_v15, %v780_v15  ;;  %v11289_v41 = vld [vmem:[#allocation11 + $0x64] ss:$12 sps:$4 sm:$0xff]   ;;  %v11293_v6 = vld [vmem:[#allocation11 + $0x7c] ss:$12 sps:$4 sm:$0xff]   ;;  %v11297_v46 = vld [vmem:[#allocation11 + $0x94] ss:$12 sps:$4 sm:$0xff]  }
 0x15f   :  { %v558_v7 = vmax.f32 %v528_v2, 0.0  ;;  %v586_v8 = vmax.f32 %v556_v32, %v557_v3  ;;  %722 = vmatprep.subr.bf16.mxu0 %v14245_v0  ;;  %v613_v11 = vmax.f32 %v585_v10, %v557_v3  ;;  %9769 = vmatprep.subr.msk.bf16.mxu1 %vm786_vm1, %v9768_v23  ;;  %v9775_v28 = vcombine.high %v778_v27, %v778_v27  ;;  %v11295_v47 = vld [vmem:[#allocation11 + $0x90] ss:$12 sps:$4 sm:$0xff]   ;;  %v11301_v49 = vld [vmem:[#allocation11 + $0xac] ss:$12 sps:$4 sm:$0xff]  }
 0x160   :  { %v637_v51 = vpack.c.bf16 %v612_v5, %v611_v9  ;;  %v816_v25 = vsel %vm786_vm1, %v9767_v24, 0  ;;  %v11299_v54 = vld [vmem:[#allocation11 + $0xa8] ss:$12 sps:$4 sm:$0xff]   ;;  %v9774_v32 = vcombine.low %v778_v27, %v778_v27  ;;  %v11282_v27 = vld [vmem:[#allocation11 + $0x164] ss:$12 sps:$4 sm:$0xff]  }
 0x161   :  { %v614_v62 = vmax.f32 %v586_v8, %v558_v7  ;;  %822 = vmatpush1.bf16.msra.mxu1 %v816_v25  ;;  %v991_v40 = vld [vmem:[#allocation8 + $0x10] sm:$0xff] }
 0x162   :  { %723 = vmatpush1.bf16.msra.mxu0 %v636_v4  ;;  %9776 = vmatprep.subr.msk.bf16.mxu1 %vm786_vm1, %v9775_v28  ;;  %v912_v56 = vsel %vm786_vm1, %v9774_v32, 0  ;;  %v9782_v60 = vcombine.high %v991_v40, %v991_v40  ;;  %v9781_v15 = vcombine.low %v991_v40, %v991_v40  ;;  %v11274_v24 = vld [vmem:[#allocation11 + $0x134] ss:$12 sps:$4 sm:$0xff]   ;;  %v11278_v25 = vld [vmem:[#allocation11 + $0x14c] ss:$12 sps:$4 sm:$0xff]  }
 0x163   :  { %724 = vmatprep.subr.bf16.mxu0 %v14245_v0  ;;  %v638_v12 = vpack.c.bf16 %v614_v62, %v613_v11  ;;  %v11286_v28 = vld [vmem:[#allocation11 + $0x17c] ss:$12 sps:$4 sm:$0xff]  }
 0x164   :  { %v1001_v23 = vsel %vm786_vm1, %v9781_v15, 0 }
 0x166   :  { %725 = vmatpush1.bf16.msra.mxu0 %v637_v51 }
 0x167   :  { %726 = vmatprep.subr.bf16.mxu0 %v14245_v0 }
 0x16a   :  { %727 = vmatpush1.bf16.msra.mxu0 %v638_v12 }
 0x16b   :  { %1438 = vmatprep.subr.bf16.mxu0 %v11273_v30  ;;  %v11294_v30 = vld [vmem:[#allocation11 + $0x1ac] ss:$12 sps:$4 sm:$0xff]  }
 0x16d   :  { %733 = vmatmul.mubr.bf16.vlgmr.msra.gmra.mrb[0].mxu0 %v11250_v13 }
 0x16e   :  { %9763 = vmatprep.mubr.msk.bf16.mxu0 %vm684_vm0, %v11253_v14  ;;  %1439 = vmatpush1.bf16.msra.mxu0 %v11271_v16  ;;  %v11290_v16 = vld [vmem:[#allocation11 + $0x194] ss:$12 sps:$4 sm:$0xff]  }
 0x16f   :  { %1440 = vmatprep.subr.bf16.mxu0 %v11277_v31  ;;  %v11298_v31 = vld [vmem:[#allocation11 + $0x1c4] ss:$12 sps:$4 sm:$0xff]  }
 0x172   :  { %1441 = vmatpush1.bf16.msra.mxu0 %v11275_v22  ;;  %v11302_v22 = vld [vmem:[#allocation11 + $0x1dc] ss:$12 sps:$4 sm:$0xff]  }
 0x173   :  { %1442 = vmatprep.subr.bf16.mxu0 %v11281_v43  ;;  %v11305_v43 = vld [vmem:[#allocation11 + $0xc4] ss:$12 sps:$4 sm:$0xff]  }
 0x175   :  { %741 = vmatmul.mubr.bf16.gmra.mrb[4].mxu0 %v11255_v17 }
 0x176   :  { %9764 = vmatprep.mubr.msk.bf16.mxu0 %vm684_vm0, %v11256_v63  ;;  %1443 = vmatpush1.bf16.msra.mxu0 %v11279_v34  ;;  %v11303_v34 = vld [vmem:[#allocation11 + $0xc0] ss:$12 sps:$4 sm:$0xff]  }
 0x177   :  { %1444 = vmatprep.subr.bf16.mxu0 %v11285_v36  ;;  %v11306_v36 = vld [vmem:[#allocation11 + $0x1f4] ss:$12 sps:$4 sm:$0xff]  }
 0x17a   :  { %1445 = vmatpush1.bf16.msra.mxu0 %v11283_v39  ;;  %v11309_v39 = vld [vmem:[#allocation11 + $0xdc] ss:$12 sps:$4 sm:$0xff]  }
 0x17b   :  { %1446 = vmatprep.subr.bf16.mxu0 %v11289_v41  ;;  %v11307_v41 = vld [vmem:[#allocation11 + $0xd8] ss:$12 sps:$4 sm:$0xff]  }
 0x17d   :  { %749 = vmatmul.mubr.bf16.gmra.mrb[8].mxu0 %v11258_v18 }
 0x17e   :  { %9765 = vmatprep.mubr.msk.bf16.mxu0 %vm684_vm0, %v11259_v19  ;;  %1447 = vmatpush1.bf16.msra.mxu0 %v11287_v45  ;;  %v11310_v45 = vld [vmem:[#allocation11 + $0x20c] ss:$12 sps:$4 sm:$0xff]  }
 0x17f   :  { %1448 = vmatprep.subr.bf16.mxu0 %v11293_v6  ;;  %v11313_v6 = vld [vmem:[#allocation11 + $0xf4] ss:$12 sps:$4 sm:$0xff]  }
 0x182   :  { %1449 = vmatpush1.bf16.msra.mxu0 %v11291_v26  ;;  %v11311_v26 = vld [vmem:[#allocation11 + $0xf0] ss:$12 sps:$4 sm:$0xff]  }
 0x183   :  { %1450 = vmatprep.subr.bf16.mxu0 %v11297_v46  ;;  %v11314_v46 = vld [vmem:[#allocation11 + $0x224] ss:$12 sps:$4 sm:$0xff]  }
 0x185   :  { %757 = vmatmul.mubr.bf16.gmra.mrb[12].mxu0 %v11261_v20 }
 0x186   :  { %9766 = vmatprep.mubr.msk.bf16.mxu0 %vm684_vm0, %v11262_v55  ;;  %1451 = vmatpush1.bf16.msra.mxu0 %v11295_v47  ;;  %v11317_v47 = vld [vmem:[#allocation11 + $0x10c] ss:$12 sps:$4 sm:$0xff]  }
 0x187   :  { %1452 = vmatprep.subr.bf16.mxu0 %v11301_v49  ;;  %v11318_v49 = vld [vmem:[#allocation11 + $0x23c] ss:$12 sps:$4 sm:$0xff]  }
 0x18a   :  { %1453 = vmatpush1.bf16.msra.mxu0 %v11299_v54 }
 0x18b   :  { %1454 = vmatprep.subr.bf16.mxu0 %v11305_v43  ;;  %v11323_v43 = vld [vmem:[#allocation11 + $0x260] ss:$12 sps:$4 sm:$0xff]  }
 0x18d   :  { %765 = vmatmul.mubr.bf16.gmra.mrb[16].mxu0 %v11264_v21 }
 0x18e   :  { %1455 = vmatpush1.bf16.msra.mxu0 %v11303_v34 }
 0x18f   :  { %1456 = vmatprep.subr.bf16.mxu0 %v11309_v39 }
 0x192   :  { %1457 = vmatpush1.bf16.msra.mxu0 %v11307_v41 }
 0x193   :  { %1458 = vmatprep.subr.bf16.mxu0 %v11313_v6 }
 0x196   :  { %1459 = vmatpush1.bf16.msra.mxu0 %v11311_v26 }
 0x197   :  { %1460 = vmatprep.subr.bf16.mxu0 %v11317_v47 }
 0x240   :  { %v734_v48 = vpop.f32.mrb[0].mxu0 }
 0x241   :  { %v736_v29 = vpop.f32.mrb[1].mxu0 }
 0x242   :  { %v737_v52 = vpop.f32.mrb[2].mxu0  ;;  %v1217_v29 = vld [vmem:[#allocation11 + $0x120] sm:$0xff] }
 0x243   :  { %v773_v33 = vpack.c.bf16 %v737_v52, %v734_v48  ;;  %v739_v53 = vpop.f32.mrb[3].mxu0  ;;  %v11315_v48 = vld [vmem:[#allocation11 + $0x108] ss:$12 sps:$4 sm:$0xff]   ;;  %v9825_v52 = vcombine.high %v1217_v29, %v1217_v29 }
 0x244   :  { %1461 = vmatpush1.bf16.msra.mxu0 %v11315_v48  ;;  %v11321_v53 = vld [vmem:[#allocation11 + $0x254] ss:$0 sps:$4 sm:$0xff]  }
 0x245   :  { %v787_v50 = vrot.slane %v773_v33, 4  ;;  %9827 = vmatprep.subr.msk.bf16.mxu0 %vm786_vm1, %v9825_v52  ;;  %v11325_v52 = vld [vmem:[#allocation11 + $0x278] ss:$12 sps:$4 sm:$0xff]  }
 0x248   :  { %v742_v57 = vpop.f32.mrb[4].mxu0 }
 0x249   :  { %v744_v58 = vpop.f32.mrb[5].mxu0 }
 0x24a   :  { %v745_v42 = vpop.f32.mrb[6].mxu0  ;;  %v1095_v58 = vld [vmem:[#allocation10] sm:$0x3] }
 0x24b   :  { %v774_v44 = vpack.c.bf16 %v745_v42, %v742_v57  ;;  %v747_v59 = vpop.f32.mrb[7].mxu0  ;;  %v1816_v57 = vsel %vm786_vm1, %v11321_v53, 0  ;;  %v13261_v42 = vrot.slane %v1095_v58, %v322_v38  ;;  %v13265_v32 = vrot.slane %v1095_v58, %v361_v37 }
 0x24d   :  { %v788_v61 = vrot.slane %v774_v44, 4 }
 0x24f   :  { %v789_v1 = vsel %vm786_vm1, %v787_v50, %v788_v61 }
 0x250   :  { %v750_v2 = vpop.f32.mrb[8].mxu0  ;;  %9770 = vmatmul.mubr.msk.bf16.vlgmr.msra.gmra.mrb[0].mxu1 %vm801_vm2, %v789_v1 }
 0x251   :  { %v752_v3 = vpop.f32.mrb[9].mxu0  ;;  %918 = vmatpush1.bf16.msra.mxu1 %v912_v56  ;;  %863 = vmatprep.mubr.bf16.mxu1 %v14245_v0 }
 0x252   :  { %v753_v4 = vpop.f32.mrb[10].mxu0  ;;  %9783 = vmatprep.subr.msk.bf16.mxu1 %vm786_vm1, %v9782_v60 }
 0x253   :  { %v775_v5 = vpack.c.bf16 %v753_v4, %v750_v2  ;;  %v755_v7 = vpop.f32.mrb[11].mxu0 }
 0x255   :  { %v790_v8 = vrot.slane %v775_v5, 4 }
 0x257   :  { %v791_v9 = vsel %vm786_vm1, %v788_v61, %v790_v8 }
 0x258   :  { %v758_v10 = vpop.f32.mrb[12].mxu0  ;;  %9771 = vmatmul.mubr.msk.bf16.gmra.mrb[4].mxu1 %vm801_vm2, %v791_v9 }
 0x259   :  { %v760_v51 = vpop.f32.mrb[13].mxu0  ;;  %873 = vmatprep.mubr.bf16.mxu1 %v14245_v0 }
 0x25a   :  { %v761_v62 = vpop.f32.mrb[14].mxu0 }
 0x25b   :  { %v776_v11 = vpack.c.bf16 %v761_v62, %v758_v10  ;;  %v763_v12 = vpop.f32.mrb[15].mxu0 }
 0x25d   :  { %v792_v13 = vrot.slane %v776_v11, 4 }
 0x25f   :  { %v793_v14 = vsel %vm786_vm1, %v790_v8, %v792_v13 }
 0x260   :  { %v766_v17 = vpop.f32.mrb[16].mxu0  ;;  %9772 = vmatmul.mubr.msk.bf16.gmra.mrb[8].mxu1 %vm801_vm2, %v793_v14 }
 0x261   :  { %v768_v63 = vpop.f32.mrb[17].mxu0  ;;  %883 = vmatprep.mubr.bf16.mxu1 %v14245_v0 }
 0x262   :  { %v769_v18 = vpop.f32.mrb[18].mxu0 }
 0x263   :  { %v777_v19 = vpack.c.bf16 %v769_v18, %v766_v17  ;;  %v771_v20 = vpop.f32.mrb[19].mxu0 }
 0x265   :  { %v794_v55 = vrot.slane %v777_v19, 4 }
 0x267   :  { %v795_v21 = vsel %vm786_vm1, %v792_v13, %v794_v55 }
 0x268   :  { %9773 = vmatmul.mubr.msk.bf16.gmra.mrb[12].mxu1 %vm801_vm2, %v795_v21 }
 0x269   :  { %949 = vmatprep.mubr.bf16.mxu1 %v14245_v0 }
 0x270   :  { %9777 = vmatmul.mubr.msk.bf16.vlgmr.msra.gmra.mrb[0].mxu1 %vm801_vm2, %v773_v33  ;;  %v9824_v33 = vcombine.low %v1217_v29, %v1217_v29  ;;  %v11324_v29 = vld [vmem:[#allocation11 + $0x20] ss:$12 sps:$4 sm:$0xff]  }
 0x271   :  { %1007 = vmatpush1.bf16.msra.mxu1 %v1001_v23  ;;  %959 = vmatprep.mubr.bf16.mxu1 %v14245_v0 }
 0x272   :  { %1881 = vmatprep.subr.bf16.mxu1 %v14245_v0  ;;  %v1430_v54 = vsel %vm786_vm1, %v9824_v33, 0 }
 0x273   :  { %1463 = vmatpush1.bf16.msra.mxu0 %v1430_v54 }
 0x274   :  { %1501 = vmatprep.subr.bf16.mxu0 %v14245_v0 }
 0x278   :  { %9778 = vmatmul.mubr.msk.bf16.gmra.mrb[4].mxu1 %vm801_vm2, %v774_v44 }
 0x279   :  { %969 = vmatprep.mubr.bf16.mxu1 %v14245_v0 }
 0x280   :  { %9779 = vmatmul.mubr.msk.bf16.gmra.mrb[8].mxu1 %vm801_vm2, %v775_v5 }
 0x281   :  { %979 = vmatprep.mubr.bf16.mxu1 %v14245_v0 }
 0x288   :  { %9780 = vmatmul.mubr.msk.bf16.gmra.mrb[12].mxu1 %vm801_vm2, %v776_v11 }
 0x289   :  { %1038 = vmatprep.mubr.bf16.mxu1 %v14245_v0 }
 0x290   :  { %9784 = vmatmul.mubr.msk.bf16.vlgmr.msra.gmra.mrb[0].mxu1 %vm801_vm2, %v774_v44 }
 0x291   :  { %1048 = vmatprep.mubr.bf16.mxu1 %v14245_v0  ;;  %1882 = vmatpush1.bf16.msra.mxu1 %v11274_v24 }
 0x292   :  { %1883 = vmatprep.subr.bf16.mxu1 %v14245_v0 }
 0x295   :  { %1884 = vmatpush1.bf16.msra.mxu1 %v11278_v25 }
 0x296   :  { %1885 = vmatprep.subr.bf16.mxu1 %v14245_v0 }
 0x298   :  { %9785 = vmatmul.mubr.msk.bf16.gmra.mrb[4].mxu1 %vm801_vm2, %v775_v5 }
 0x299   :  { %1058 = vmatprep.mubr.bf16.mxu1 %v14245_v0  ;;  %1886 = vmatpush1.bf16.msra.mxu1 %v11282_v27 }
 0x29a   :  { %1887 = vmatprep.subr.bf16.mxu1 %v14245_v0 }
 0x29d   :  { %1888 = vmatpush1.bf16.msra.mxu1 %v11286_v28 }
 0x29e   :  { %1889 = vmatprep.subr.bf16.mxu1 %v14245_v0 }
 0x2a0   :  { %9786 = vmatmul.mubr.msk.bf16.gmra.mrb[8].mxu1 %vm801_vm2, %v776_v11 }
 0x2a1   :  { %1068 = vmatprep.mubr.bf16.mxu1 %v14245_v0  ;;  %1890 = vmatpush1.bf16.msra.mxu1 %v11290_v16 }
 0x2a2   :  { %1891 = vmatprep.subr.bf16.mxu1 %v14245_v0 }
 0x2a5   :  { %1892 = vmatpush1.bf16.msra.mxu1 %v11294_v30 }
 0x2a6   :  { %1893 = vmatprep.subr.bf16.mxu1 %v14245_v0 }
 0x2a8   :  { %9787 = vmatmul.mubr.msk.bf16.gmra.mrb[12].mxu1 %vm801_vm2, %v777_v19 }
 0x2a9   :  { %1894 = vmatpush1.bf16.msra.mxu1 %v11298_v31 }
 0x2aa   :  { %1895 = vmatprep.subr.bf16.mxu1 %v14245_v0 }
 0x2ad   :  { %1896 = vmatpush1.bf16.msra.mxu1 %v11302_v22  ;;  %v11322_v22 = vld [vmem:[#allocation11 + $0x8] ss:$12 sps:$4 sm:$0xff]  }
 0x2ae   :  { %1897 = vmatprep.subr.bf16.mxu1 %v14245_v0 }
 0x2b1   :  { %1898 = vmatpush1.bf16.msra.mxu1 %v11306_v36 }
 0x2b2   :  { %1899 = vmatprep.subr.bf16.mxu1 %v14245_v0 }
 0x2b5   :  { %1900 = vmatpush1.bf16.msra.mxu1 %v11310_v45 }
 0x2b6   :  { %1901 = vmatprep.subr.bf16.mxu1 %v14245_v0 }
 0x2b9   :  { %1902 = vmatpush1.bf16.msra.mxu1 %v11314_v46 }
 0x2ba   :  { %1903 = vmatprep.subr.bf16.mxu1 %v14245_v0 }
 0x2bd   :  { %1904 = vmatpush1.bf16.msra.mxu1 %v11318_v49 }
 0x2be   :  { %1905 = vmatprep.subr.bf16.mxu1 %v14245_v0 }
 0x2c1   :  { %1906 = vmatpush1.bf16.msra.mxu1 %v1816_v57 }
 0x2c2   :  { %2282 = vmatprep.subr.bf16.mxu1 %v14245_v0 }
 0x363   :  { %v1040_v44 = vpop.f32.mrb[0].mxu1 }
 0x364   :  { %v1107_v59 = vadd.f32 %v13261_v42, %v1040_v44  ;;  %v1042_v40 = vpop.f32.mrb[1].mxu1 }
 0x365   :  { %v1108_v50 = vadd.f32 %v13265_v32, %v1042_v40  ;;  %v1044_v61 = vpop.f32.mrb[2].mxu1 }
 0x366   :  { %v1109_v56 = vadd.f32 %v13261_v42, %v1044_v61  ;;  %v1046_v60 = vpop.f32.mrb[3].mxu1  ;;  %v1123_v2 = vmax.f32 %v1107_v59, 0.0 }
 0x367   :  { %v1110_v1 = vadd.f32 %v13265_v32, %v1046_v60  ;;  %v1124_v38 = vmax.f32 %v1108_v50, 0.0  ;;  %v11326_v60 = vld [vmem:[#allocation11 + $0x38] ss:$12 sps:$4 sm:$0xff]  }
 0x368   :  { %v1125_v3 = vmax.f32 %v1109_v56, 0.0 }
 0x369   :  { %v1126_v4 = vmax.f32 %v1110_v1, 0.0  ;;  %v11327_v1 = vld [vmem:[#allocation11 + $0x290] ss:$12 sps:$4 sm:$0xff]  }
 0x36a   :  { %v1139_v5 = vmax.f32 %v1123_v2, %v1125_v3 }
 0x36b   :  { %v1140_v35 = vmax.f32 %v1124_v38, %v1126_v4  ;;  %v1050_v37 = vpop.f32.mrb[4].mxu1 }
 0x36c   :  { %v1111_v7 = vadd.f32 %v13261_v42, %v1050_v37  ;;  %v1052_v8 = vpop.f32.mrb[5].mxu1 }
 0x36d   :  { %v1112_v9 = vadd.f32 %v13265_v32, %v1052_v8  ;;  %v1054_v10 = vpop.f32.mrb[6].mxu1 }
 0x36e   :  { %v1127_v51 = vmax.f32 %v1111_v7, 0.0  ;;  %v1113_v62 = vadd.f32 %v13261_v42, %v1054_v10  ;;  %v1056_v11 = vpop.f32.mrb[7].mxu1  ;;  %v11328_v10 = vld [vmem:[#allocation11 + $0x50] ss:$12 sps:$4 sm:$0xff]  }
 0x36f   :  { %v1128_v12 = vmax.f32 %v1112_v9, 0.0  ;;  %v1114_v13 = vadd.f32 %v13265_v32, %v1056_v11 }
 0x370   :  { %v1141_v14 = vmax.f32 %v1125_v3, %v1127_v51  ;;  %v1151_v17 = vmax.f32 %v1139_v5, %v1127_v51  ;;  %v1129_v63 = vmax.f32 %v1113_v62, 0.0 }
 0x371   :  { %v1142_v18 = vmax.f32 %v1126_v4, %v1128_v12  ;;  %v1152_v19 = vmax.f32 %v1140_v35, %v1128_v12  ;;  %v1130_v20 = vmax.f32 %v1114_v13, 0.0  ;;  %v11330_v13 = vld [vmem:[#allocation11 + $0x68] ss:$12 sps:$4 sm:$0xff]  }
 0x372   :  { %v1143_v55 = vmax.f32 %v1127_v51, %v1129_v63  ;;  %v1153_v21 = vmax.f32 %v1141_v14, %v1129_v63  ;;  %v11331_v14 = vld [vmem:[#allocation11 + $0x2c0] ss:$12 sps:$4 sm:$0xff]  }
 0x373   :  { %v1144_v15 = vmax.f32 %v1128_v12, %v1130_v20  ;;  %v1154_v23 = vmax.f32 %v1142_v18, %v1130_v20  ;;  %v1060_v24 = vpop.f32.mrb[8].mxu1  ;;  %v11334_v18 = vld [vmem:[#allocation11 + $0x98] ss:$12 sps:$4 sm:$0xff]  }
 0x374   :  { %v13275_v25 = vpack.c.bf16 %v1153_v21, %v1151_v17  ;;  %v1115_v27 = vadd.f32 %v13261_v42, %v1060_v24  ;;  %v1062_v28 = vpop.f32.mrb[9].mxu1  ;;  %v11332_v17 = vld [vmem:[#allocation11 + $0x80] ss:$12 sps:$4 sm:$0xff]   ;;  %v11338_v21 = vld [vmem:[#allocation11 + $0xc8] ss:$12 sps:$4 sm:$0xff]  }
 0x375   :  { %v13278_v16 = vpack.c.bf16 %v1154_v23, %v1152_v19  ;;  %v1116_v30 = vadd.f32 %v13265_v32, %v1062_v28  ;;  %v1064_v31 = vpop.f32.mrb[10].mxu1  ;;  %v11335_v19 = vld [vmem:[#allocation11 + $0x2f0] ss:$12 sps:$4 sm:$0xff]   ;;  %v11340_v23 = vld [vmem:[#allocation11 + $0xe0] ss:$12 sps:$4 sm:$0xff]  }
 0x376   :  { %v1131_v34 = vmax.f32 %v1115_v27, 0.0  ;;  %v1117_v36 = vadd.f32 %v13261_v42, %v1064_v31  ;;  %v1066_v39 = vpop.f32.mrb[11].mxu1  ;;  %v11341_v24 = vld [vmem:[#allocation11 + $0x338] ss:$12 sps:$4 sm:$0xff]   ;;  %v11343_v28 = vld [vmem:[#allocation11 + $0x350] ss:$12 sps:$4 sm:$0xff]  }
 0x377   :  { %v1132_v41 = vmax.f32 %v1116_v30, 0.0  ;;  %v1118_v45 = vadd.f32 %v13265_v32, %v1066_v39  ;;  %9828 = vmatprep.mubr.msk.bf16.mxu0 %vm1419_vm3, %v13278_v16  ;;  %9877 = vmatprep.mubr.msk.bf16.mxu1 %vm1419_vm3, %v13278_v16  ;;  %v11342_v27 = vld [vmem:[#allocation11 + $0xf8] ss:$12 sps:$4 sm:$0xff]   ;;  %v11344_v30 = vld [vmem:[#allocation11 + $0x110] ss:$12 sps:$4 sm:$0xff]  }
 0x378   :  { %v1145_v6 = vmax.f32 %v1129_v63, %v1131_v34  ;;  %v1155_v26 = vmax.f32 %v1143_v55, %v1131_v34  ;;  %v1133_v46 = vmax.f32 %v1117_v36, 0.0  ;;  %1471 = vmatmul.mubr.bf16.vlgmr.msra.gmra.mrb[20].mxu0 %v13275_v25  ;;  %1914 = vmatmul.mubr.bf16.vlgmr.msra.gmra.mrb[16].mxu1 %v13275_v25  ;;  %v11333_v63 = vld [vmem:[#allocation11 + $0x2d8] ss:$12 sps:$4 sm:$0xff]   ;;  %v11337_v55 = vld [vmem:[#allocation11 + $0x308] ss:$12 sps:$4 sm:$0xff]  }
 0x379   :  { %v1146_v47 = vmax.f32 %v1130_v20, %v1132_v41  ;;  %v1156_v48 = vmax.f32 %v1144_v15, %v1132_v41  ;;  %v1134_v49 = vmax.f32 %v1118_v45, 0.0  ;;  %1502 = vmatpush1.bf16.msra.mxu0 %v11322_v22  ;;  %2283 = vmatpush1.bf16.msra.mxu1 %v11323_v43  ;;  %v11336_v20 = vld [vmem:[#allocation11 + $0xb0] ss:$12 sps:$4 sm:$0xff]   ;;  %v11339_v15 = vld [vmem:[#allocation11 + $0x320] ss:$12 sps:$4 sm:$0xff]  }
 0x37a   :  { %v1157_v33 = vmax.f32 %v1145_v6, %v1133_v46  ;;  %v1147_v53 = vmax.f32 %v1131_v34, %v1133_v46  ;;  %1503 = vmatprep.subr.bf16.mxu0 %v14245_v0  ;;  %2284 = vmatprep.subr.bf16.mxu1 %v14245_v0  ;;  %v11345_v31 = vld [vmem:[#allocation11 + $0x368] ss:$12 sps:$4 sm:$0xff]   ;;  %v11347_v43 = vld [vmem:[#allocation11 + $0x380] ss:$0 sps:$4 sm:$0xff]   ;;  %v11350_v39 = vld [vmem:[#allocation11 + $0x130] ss:$12 sps:$4 sm:$0xff]  }
 0x37b   :  { %v1158_v54 = vmax.f32 %v1146_v47, %v1134_v49  ;;  %v1070_v57 = vpop.f32.mrb[12].mxu1  ;;  %v1148_v58 = vmax.f32 %v1132_v41, %v1134_v49  ;;  %v11346_v22 = vld [vmem:[#allocation11 + $0x128] ss:$0 sps:$4 sm:$0xff]   ;;  %v2217_v36 = vsel %vm786_vm1, %v11347_v43, 0  ;;  %v11348_v41 = vld [vmem:[#allocation11 + $0x12c] ss:$12 sps:$4 sm:$0xff]  }
 0x37c   :  { %v13291_v44 = vpack.c.bf16 %v1157_v33, %v1155_v26  ;;  %v1119_v59 = vadd.f32 %v13261_v42, %v1070_v57  ;;  %v1072_v40 = vpop.f32.mrb[13].mxu1  ;;  %v1436_v34 = vsel %vm786_vm1, %v11346_v22, 0  ;;  %v11353_v45 = vld [vmem:[#allocation11 + $0x148] ss:$12 sps:$4 sm:$0xff]   ;;  %v11351_v6 = vld [vmem:[#allocation11 + $0x144] ss:$12 sps:$4 sm:$0xff]  }
 0x37d   :  { %v13294_v50 = vpack.c.bf16 %v1158_v54, %v1156_v48  ;;  %v1120_v61 = vadd.f32 %v13265_v32, %v1072_v40  ;;  %1504 = vmatpush1.bf16.msra.mxu0 %v11324_v29  ;;  %2285 = vmatpush1.bf16.msra.mxu1 %v11325_v52  ;;  %v1074_v56 = vpop.f32.mrb[14].mxu1  ;;  %v11356_v26 = vld [vmem:[#allocation11 + $0x160] ss:$12 sps:$4 sm:$0xff]   ;;  %v11359_v47 = vld [vmem:[#allocation11 + $0x178] ss:$12 sps:$4 sm:$0xff]  }
 0x37e   :  { %v1135_v2 = vmax.f32 %v1119_v59, 0.0  ;;  %v1121_v3 = vadd.f32 %v13261_v42, %v1074_v56  ;;  %v1076_v38 = vpop.f32.mrb[15].mxu1  ;;  %1505 = vmatprep.subr.bf16.mxu0 %v14245_v0  ;;  %2286 = vmatprep.subr.bf16.mxu1 %v14245_v0  ;;  %v11357_v48 = vld [vmem:[#allocation11 + $0x174] ss:$12 sps:$4 sm:$0xff]   ;;  %v11360_v29 = vld [vmem:[#allocation11 + $0x18c] ss:$12 sps:$4 sm:$0xff]  }
 0x37f   :  { %v1136_v4 = vmax.f32 %v1120_v61, 0.0  ;;  %v1122_v5 = vadd.f32 %v13265_v32, %v1076_v38  ;;  %9829 = vmatprep.mubr.msk.bf16.mxu0 %vm1419_vm3, %v13294_v50  ;;  %9878 = vmatprep.mubr.msk.bf16.mxu1 %vm1419_vm3, %v13294_v50  ;;  %v11329_v32 = vld [vmem:[#allocation11 + $0x2a8] ss:$12 sps:$4 sm:$0xff]   ;;  %v11363_v33 = vld [vmem:[#allocation11 + $0x1a4] ss:$12 sps:$4 sm:$0xff]  }
 0x380   :  { %v1149_v35 = vmax.f32 %v1133_v46, %v1135_v2  ;;  %v1159_v37 = vmax.f32 %v1147_v53, %v1135_v2  ;;  %v1137_v7 = vmax.f32 %v1121_v3, 0.0  ;;  %1481 = vmatmul.mubr.bf16.gmra.mrb[24].mxu0 %v13291_v44  ;;  %1922 = vmatmul.mubr.bf16.gmra.mrb[20].mxu1 %v13291_v44  ;;  %v11354_v46 = vld [vmem:[#allocation11 + $0x15c] ss:$12 sps:$4 sm:$0xff]   ;;  %v11368_v53 = vld [vmem:[#allocation11 + $0x1c0] ss:$12 sps:$4 sm:$0xff]  }
 0x381   :  { %v1150_v42 = vmax.f32 %v1134_v49, %v1136_v4  ;;  %v1160_v8 = vmax.f32 %v1148_v58, %v1136_v4  ;;  %v1138_v9 = vmax.f32 %v1122_v5, 0.0  ;;  %1506 = vmatpush1.bf16.msra.mxu0 %v11326_v60  ;;  %2287 = vmatpush1.bf16.msra.mxu1 %v11327_v1  ;;  %v11362_v49 = vld [vmem:[#allocation11 + $0x190] ss:$12 sps:$4 sm:$0xff]   ;;  %v11365_v52 = vld [vmem:[#allocation11 + $0x1a8] ss:$12 sps:$4 sm:$0xff]  }
 0x382   :  { %v1161_v51 = vmax.f32 %v1149_v35, %v1137_v7  ;;  %1507 = vmatprep.subr.bf16.mxu0 %v14245_v0  ;;  %2288 = vmatprep.subr.bf16.mxu1 %v14245_v0  ;;  %v11366_v54 = vld [vmem:[#allocation11 + $0x1bc] ss:$12 sps:$4 sm:$0xff]   ;;  %v11371_v57 = vld [vmem:[#allocation11 + $0x1d8] ss:$12 sps:$4 sm:$0xff]   ;;  %v11369_v58 = vld [vmem:[#allocation11 + $0x1d4] ss:$12 sps:$4 sm:$0xff]  }
 0x383   :  { %v1162_v62 = vmax.f32 %v1150_v42, %v1138_v9  ;;  %v11374_v59 = vld [vmem:[#allocation11 + $0x1f0] ss:$12 sps:$4 sm:$0xff]   ;;  %v11372_v40 = vld [vmem:[#allocation11 + $0x1ec] ss:$12 sps:$4 sm:$0xff]   ;;  %v11377_v61 = vld [vmem:[#allocation11 + $0x208] ss:$12 sps:$4 sm:$0xff]  }
 0x384   :  { %v13309_v11 = vpack.c.bf16 %v1161_v51, %v1159_v37  ;;  %v11375_v56 = vld [vmem:[#allocation11 + $0x204] ss:$12 sps:$4 sm:$0xff]   ;;  %v11380_v60 = vld [vmem:[#allocation11 + $0x220] ss:$12 sps:$4 sm:$0xff]   ;;  %v11378_v1 = vld [vmem:[#allocation11 + $0x21c] ss:$12 sps:$4 sm:$0xff]  }
 0x385   :  { %v13311_v12 = vpack.c.bf16 %v1162_v62, %v1160_v8  ;;  %1508 = vmatpush1.bf16.msra.mxu0 %v11328_v10  ;;  %2289 = vmatpush1.bf16.msra.mxu1 %v11329_v32  ;;  %v11383_v2 = vld [vmem:[#allocation11 + $0x238] ss:$12 sps:$4 sm:$0xff]   ;;  %v1607_v3 = vld [vmem:[#allocation11 + $0x24c] sm:$0xff]  ;;  %v11381_v38 = vld [vmem:[#allocation11 + $0x234] ss:$12 sps:$4 sm:$0xff]  }
 0x386   :  { %1509 = vmatprep.subr.bf16.mxu0 %v14245_v0  ;;  %2290 = vmatprep.subr.bf16.mxu1 %v14245_v0  ;;  %v9871_v4 = vcombine.high %v1607_v3, %v1607_v3  ;;  %v9870_v5 = vcombine.low %v1607_v3, %v1607_v3  ;;  %v11388_v37 = vld [vmem:[#allocation11 + $0x25c] ss:$12 sps:$4 sm:$0xff]   ;;  %v11386_v7 = vld [vmem:[#allocation11 + $0x258] ss:$12 sps:$4 sm:$0xff]   ;;  %v11391_v42 = vld [vmem:[#allocation11 + $0x274] ss:$12 sps:$4 sm:$0xff]  }
 0x387   :  { %9830 = vmatprep.mubr.msk.bf16.mxu0 %vm1419_vm3, %v13311_v12  ;;  %9879 = vmatprep.mubr.msk.bf16.mxu1 %vm1419_vm3, %v13311_v12  ;;  %v11389_v8 = vld [vmem:[#allocation11 + $0x270] ss:$12 sps:$4 sm:$0xff]   ;;  %v11394_v9 = vld [vmem:[#allocation11 + $0x28c] ss:$12 sps:$4 sm:$0xff]   ;;  %v11392_v10 = vld [vmem:[#allocation11 + $0x288] ss:$12 sps:$4 sm:$0xff]  }
 0x388   :  { %1491 = vmatmul.mubr.bf16.gmra.mrb[28].mxu0 %v13309_v11  ;;  %1930 = vmatmul.mubr.bf16.gmra.mrb[24].mxu1 %v13309_v11  ;;  %v1810_v35 = vsel %vm786_vm1, %v9870_v5, 0  ;;  %v11397_v32 = vld [vmem:[#allocation11 + $0x2a4] ss:$12 sps:$4 sm:$0xff]   ;;  %v11395_v51 = vld [vmem:[#allocation11 + $0x2a0] ss:$12 sps:$4 sm:$0xff]  }
 0x389   :  { %1510 = vmatpush1.bf16.msra.mxu0 %v11330_v13  ;;  %2291 = vmatpush1.bf16.msra.mxu1 %v11331_v14  ;;  %v11400_v62 = vld [vmem:[#allocation11 + $0x2bc] ss:$12 sps:$4 sm:$0xff]   ;;  %v11398_v13 = vld [vmem:[#allocation11 + $0x2b8] ss:$12 sps:$4 sm:$0xff]   ;;  %v11403_v14 = vld [vmem:[#allocation11 + $0x2d4] ss:$12 sps:$4 sm:$0xff]  }
 0x38a   :  { %9831 = vmatprep.mubr.msk.bf16.mxu0 %vm1419_vm3, %v13278_v16  ;;  %9923 = vmatprep.mubr.msk.bf16.mxu1 %vm1419_vm3, %v13278_v16  ;;  %v11448_v3 = vld [vmem:[#allocation13 + $0xc0] ss:$12 sps:$4 sm:$0xff]   ;;  %v11453_v5 = vld [vmem:[#allocation13 + $0xd8] ss:$12 sps:$4 sm:$0xff]  }
 0x38b   :  { %1511 = vmatprep.subr.bf16.mxu0 %v14245_v0  ;;  %2292 = vmatprep.subr.bf16.mxu1 %v14245_v0 }
 0x38d   :  { %1512 = vmatpush1.bf16.msra.mxu0 %v11332_v17  ;;  %2293 = vmatpush1.bf16.msra.mxu1 %v11333_v63  ;;  %v11401_v17 = vld [vmem:[#allocation11 + $0x2d0] ss:$12 sps:$4 sm:$0xff]   ;;  %v11406_v63 = vld [vmem:[#allocation11 + $0x2ec] ss:$12 sps:$4 sm:$0xff]  }
 0x38e   :  { %1513 = vmatprep.subr.bf16.mxu0 %v14245_v0  ;;  %2294 = vmatprep.subr.bf16.mxu1 %v14245_v0 }
 0x391   :  { %1514 = vmatpush1.bf16.msra.mxu0 %v11334_v18  ;;  %2295 = vmatpush1.bf16.msra.mxu1 %v11335_v19  ;;  %v11404_v18 = vld [vmem:[#allocation11 + $0x2e8] ss:$12 sps:$4 sm:$0xff]   ;;  %v11409_v19 = vld [vmem:[#allocation11 + $0x304] ss:$12 sps:$4 sm:$0xff]  }
 0x392   :  { %1515 = vmatprep.subr.bf16.mxu0 %v14245_v0  ;;  %2296 = vmatprep.subr.bf16.mxu1 %v14245_v0 }
 0x395   :  { %1516 = vmatpush1.bf16.msra.mxu0 %v11336_v20  ;;  %2297 = vmatpush1.bf16.msra.mxu1 %v11337_v55  ;;  %v11407_v20 = vld [vmem:[#allocation11 + $0x300] ss:$12 sps:$4 sm:$0xff]   ;;  %v11412_v55 = vld [vmem:[#allocation11 + $0x31c] ss:$12 sps:$4 sm:$0xff]  }
 0x396   :  { %1517 = vmatprep.subr.bf16.mxu0 %v14245_v0  ;;  %2298 = vmatprep.subr.bf16.mxu1 %v14245_v0 }
 0x399   :  { %1518 = vmatpush1.bf16.msra.mxu0 %v11338_v21  ;;  %2299 = vmatpush1.bf16.msra.mxu1 %v11339_v15  ;;  %v11410_v21 = vld [vmem:[#allocation11 + $0x318] ss:$12 sps:$4 sm:$0xff]   ;;  %v11415_v15 = vld [vmem:[#allocation11 + $0x334] ss:$12 sps:$4 sm:$0xff]  }
 0x39a   :  { %1519 = vmatprep.subr.bf16.mxu0 %v14245_v0  ;;  %2300 = vmatprep.subr.bf16.mxu1 %v14245_v0 }
 0x39d   :  { %1520 = vmatpush1.bf16.msra.mxu0 %v11340_v23  ;;  %2301 = vmatpush1.bf16.msra.mxu1 %v11341_v24  ;;  %v11413_v23 = vld [vmem:[#allocation11 + $0x330] ss:$12 sps:$4 sm:$0xff]   ;;  %v11418_v24 = vld [vmem:[#allocation11 + $0x34c] ss:$12 sps:$4 sm:$0xff]  }
 0x39e   :  { %1521 = vmatprep.subr.bf16.mxu0 %v14245_v0  ;;  %2302 = vmatprep.subr.bf16.mxu1 %v14245_v0 }
 0x3a1   :  { %1522 = vmatpush1.bf16.msra.mxu0 %v11342_v27  ;;  %2303 = vmatpush1.bf16.msra.mxu1 %v11343_v28  ;;  %v11421_v27 = vld [vmem:[#allocation11 + $0x364] ss:$12 sps:$4 sm:$0xff]   ;;  %v2008_v28 = vld [vmem:[#allocation11 + $0x378] sm:$0xff] }
 0x3a2   :  { %1523 = vmatprep.subr.bf16.mxu0 %v14245_v0  ;;  %2304 = vmatprep.subr.bf16.mxu1 %v14245_v0  ;;  %v9916_v22 = vcombine.low %v2008_v28, %v2008_v28 }
 0x3a4   :  { %v2211_v43 = vsel %vm786_vm1, %v9916_v22, 0 }
 0x3a5   :  { %1524 = vmatpush1.bf16.msra.mxu0 %v11344_v30  ;;  %2305 = vmatpush1.bf16.msra.mxu1 %v11345_v31  ;;  %v11419_v30 = vld [vmem:[#allocation11 + $0x360] ss:$12 sps:$4 sm:$0xff]   ;;  %v9917_v31 = vcombine.high %v2008_v28, %v2008_v28 }
 0x3a6   :  { %1525 = vmatprep.subr.bf16.mxu0 %v14245_v0  ;;  %2306 = vmatprep.subr.bf16.mxu1 %v14245_v0 }
 0x3a9   :  { %1526 = vmatpush1.bf16.msra.mxu0 %v1436_v34  ;;  %2307 = vmatpush1.bf16.msra.mxu1 %v2217_v36  ;;  %v11426_v34 = vld [vmem:[#allocation13 + $0x4] ss:$12 sps:$4 sm:$0xff]   ;;  %v11424_v36 = vld [vmem:[#allocation13] ss:$12 sps:$4 sm:$0xff]  }
 0x3aa   :  { %1818 = vmatprep.subr.bf16.mxu0 %v11350_v39  ;;  %v11429_v39 = vld [vmem:[#allocation13 + $0x1c] ss:$12 sps:$4 sm:$0xff]  }
 0x3ac   :  { %1534 = vmatmul.mubr.bf16.vlgmr.msra.gmra.mrb[32].mxu0 %v13275_v25  ;;  %2315 = vmatmul.mubr.bf16.vlgmr.msra.gmra.mrb[28].mxu1 %v13275_v25 }
 0x3ad   :  { %9832 = vmatprep.mubr.msk.bf16.mxu0 %vm1419_vm3, %v13294_v50  ;;  %1819 = vmatpush1.bf16.msra.mxu0 %v11348_v41  ;;  %v11427_v41 = vld [vmem:[#allocation13 + $0x18] ss:$12 sps:$4 sm:$0xff]  }
 0x3ae   :  { %9924 = vmatprep.mubr.msk.bf16.mxu1 %vm1419_vm3, %v13294_v50  ;;  %1820 = vmatprep.subr.bf16.mxu0 %v11353_v45  ;;  %v11432_v45 = vld [vmem:[#allocation13 + $0x34] ss:$12 sps:$4 sm:$0xff]  }
 0x3b1   :  { %1821 = vmatpush1.bf16.msra.mxu0 %v11351_v6  ;;  %v11451_v6 = vld [vmem:[#allocation13 + $0xc8] ss:$12 sps:$4 sm:$0xff]  }
 0x3b2   :  { %1822 = vmatprep.subr.bf16.mxu0 %v11356_v26  ;;  %v11452_v26 = vld [vmem:[#allocation13 + $0x8] ss:$12 sps:$4 sm:$0xff]   ;;  %10736 = vmatprep.subr.bf16.mxu1 %v11451_v6 }
 0x3b3   :  { %10737 = vmatpush3.bf16.msra.mxu1 %v11452_v26 }
 0x3b4   :  { %1542 = vmatmul.mubr.bf16.gmra.mrb[36].mxu0 %v13291_v44  ;;  %2323 = vmatmul.mubr.bf16.gmra.mrb[32].mxu1 %v13291_v44 }
 0x3b5   :  { %9833 = vmatprep.mubr.msk.bf16.mxu0 %vm1419_vm3, %v13311_v12  ;;  %1823 = vmatpush1.bf16.msra.mxu0 %v11354_v46  ;;  %v11456_v46 = vld [vmem:[#allocation13 + $0xe0] ss:$12 sps:$4 sm:$0xff]  }
 0x3b6   :  { %9925 = vmatprep.mubr.msk.bf16.mxu1 %vm1419_vm3, %v13311_v12  ;;  %1824 = vmatprep.subr.bf16.mxu0 %v11359_v47  ;;  %v11430_v47 = vld [vmem:[#allocation13 + $0x30] ss:$12 sps:$4 sm:$0xff]  }
 0x3b7   :  { %10738 = vmatprep.subr.bf16.mxu1 %v11456_v46 }
 0x3b9   :  { %1825 = vmatpush1.bf16.msra.mxu0 %v11357_v48  ;;  %v11435_v48 = vld [vmem:[#allocation13 + $0x4c] ss:$12 sps:$4 sm:$0xff]  }
 0x3ba   :  { %1826 = vmatprep.subr.bf16.mxu0 %v11362_v49  ;;  %v11457_v49 = vld [vmem:[#allocation13 + $0x20] ss:$12 sps:$4 sm:$0xff]  }
 0x3bb   :  { %10739 = vmatpush3.bf16.msra.mxu1 %v11457_v49  ;;  %v11494_v49 = vld [vmem:[#allocation13 + $0x188] ss:$12 sps:$4 sm:$0xff]  }
 0x3bc   :  { %1550 = vmatmul.mubr.bf16.gmra.mrb[40].mxu0 %v13309_v11  ;;  %2331 = vmatmul.mubr.bf16.gmra.mrb[36].mxu1 %v13309_v11 }
 0x3bd   :  { %1827 = vmatpush1.bf16.msra.mxu0 %v11360_v29  ;;  %9874 = vmatprep.mubr.msk.bf16.mxu0 %vm1419_vm3, %v13278_v16  ;;  %v11461_v29 = vld [vmem:[#allocation13 + $0xf8] ss:$12 sps:$4 sm:$0xff]  }
 0x3be   :  { %1828 = vmatprep.subr.bf16.mxu0 %v11365_v52  ;;  %v11462_v52 = vld [vmem:[#allocation13 + $0x38] ss:$12 sps:$4 sm:$0xff]   ;;  %10740 = vmatprep.subr.bf16.mxu1 %v11461_v29 }
 0x3bf   :  { %10741 = vmatpush3.bf16.msra.mxu1 %v11462_v52 }
 0x3c1   :  { %1829 = vmatpush1.bf16.msra.mxu0 %v11363_v33  ;;  %v11466_v33 = vld [vmem:[#allocation13 + $0x110] ss:$12 sps:$4 sm:$0xff]  }
 0x3c2   :  { %1830 = vmatprep.subr.bf16.mxu0 %v11368_v53  ;;  %v11436_v53 = vld [vmem:[#allocation13 + $0x60] ss:$12 sps:$4 sm:$0xff]   ;;  %10742 = vmatprep.subr.bf16.mxu1 %v11466_v33 }
 0x3c5   :  { %1831 = vmatpush1.bf16.msra.mxu0 %v11366_v54  ;;  %v11441_v54 = vld [vmem:[#allocation13 + $0x7c] ss:$12 sps:$4 sm:$0xff]  }
 0x3c6   :  { %1832 = vmatprep.subr.bf16.mxu0 %v11371_v57  ;;  %v11467_v57 = vld [vmem:[#allocation13 + $0x50] ss:$12 sps:$4 sm:$0xff]  }
 0x3c7   :  { %10743 = vmatpush3.bf16.msra.mxu1 %v11467_v57 }
 0x3c9   :  { %1833 = vmatpush1.bf16.msra.mxu0 %v11369_v58  ;;  %v11471_v58 = vld [vmem:[#allocation13 + $0x128] ss:$12 sps:$4 sm:$0xff]  }
 0x3ca   :  { %1834 = vmatprep.subr.bf16.mxu0 %v11374_v59  ;;  %v11472_v59 = vld [vmem:[#allocation13 + $0x68] ss:$12 sps:$4 sm:$0xff]   ;;  %10744 = vmatprep.subr.bf16.mxu1 %v11471_v58 }
 0x3cb   :  { %10745 = vmatpush3.bf16.msra.mxu1 %v11472_v59 }
 0x3cd   :  { %1835 = vmatpush1.bf16.msra.mxu0 %v11372_v40  ;;  %v11476_v40 = vld [vmem:[#allocation13 + $0x140] ss:$12 sps:$4 sm:$0xff]  }
 0x3ce   :  { %1836 = vmatprep.subr.bf16.mxu0 %v11377_v61  ;;  %v11442_v61 = vld [vmem:[#allocation13 + $0x90] ss:$12 sps:$4 sm:$0xff]   ;;  %10746 = vmatprep.subr.bf16.mxu1 %v11476_v40 }
 0x3d1   :  { %1837 = vmatpush1.bf16.msra.mxu0 %v11375_v56  ;;  %v11447_v56 = vld [vmem:[#allocation13 + $0xac] ss:$12 sps:$4 sm:$0xff]  }
 0x3d2   :  { %1838 = vmatprep.subr.bf16.mxu0 %v11380_v60  ;;  %v11477_v60 = vld [vmem:[#allocation13 + $0x80] ss:$12 sps:$4 sm:$0xff]  }
 0x3d3   :  { %10747 = vmatpush3.bf16.msra.mxu1 %v11477_v60 }
 0x3d5   :  { %1839 = vmatpush1.bf16.msra.mxu0 %v11378_v1  ;;  %v11481_v1 = vld [vmem:[#allocation13 + $0x158] ss:$12 sps:$4 sm:$0xff]  }
 0x3d6   :  { %1840 = vmatprep.subr.bf16.mxu0 %v11383_v2  ;;  %v11445_v2 = vld [vmem:[#allocation13 + $0xa8] ss:$12 sps:$4 sm:$0xff]   ;;  %10748 = vmatprep.subr.bf16.mxu1 %v11481_v1 }
 0x3d9   :  { %1841 = vmatpush1.bf16.msra.mxu0 %v11381_v38  ;;  %v11455_v38 = vld [vmem:[#allocation13 + $0xdc] ss:$12 sps:$4 sm:$0xff]  }
 0x3da   :  { %9873 = vmatprep.subr.msk.bf16.mxu0 %vm786_vm1, %v9871_v4  ;;  %v11482_v4 = vld [vmem:[#allocation13 + $0x98] ss:$12 sps:$4 sm:$0xff]  }
 0x3db   :  { %10749 = vmatpush3.bf16.msra.mxu1 %v11482_v4 }
 0x3dd   :  { %1843 = vmatpush1.bf16.msra.mxu0 %v1810_v35  ;;  %v11486_v35 = vld [vmem:[#allocation13 + $0x170] ss:$12 sps:$4 sm:$0xff]  }
 0x3de   :  { %2219 = vmatprep.subr.bf16.mxu0 %v11388_v37  ;;  %v11460_v37 = vld [vmem:[#allocation13 + $0xf4] ss:$12 sps:$4 sm:$0xff]   ;;  %10750 = vmatprep.subr.bf16.mxu1 %v11486_v35 }
 0x3e0   :  { %1851 = vmatmul.mubr.bf16.vlgmr.msra.gmra.mrb[44].mxu0 %v13275_v25 }
 0x3e1   :  { %9875 = vmatprep.mubr.msk.bf16.mxu0 %vm1419_vm3, %v13294_v50  ;;  %2220 = vmatpush1.bf16.msra.mxu0 %v11386_v7  ;;  %v11487_v7 = vld [vmem:[#allocation13 + $0xb0] ss:$12 sps:$4 sm:$0xff]  }
 0x3e2   :  { %2221 = vmatprep.subr.bf16.mxu0 %v11391_v42  ;;  %10751 = vmatpush3.bf16.msra.mxu1 %v11487_v7  ;;  %v11458_v42 = vld [vmem:[#allocation13 + $0xf0] ss:$12 sps:$4 sm:$0xff]  }
 0x3e3   :  { %10971 = vmatprep.subr.bf16.mxu1 %v11494_v49 }
 0x3e5   :  { %2222 = vmatpush1.bf16.msra.mxu0 %v11389_v8  ;;  %v11465_v8 = vld [vmem:[#allocation13 + $0x10c] ss:$12 sps:$4 sm:$0xff]  }
 0x3e6   :  { %2223 = vmatprep.subr.bf16.mxu0 %v11394_v9  ;;  %v11463_v9 = vld [vmem:[#allocation13 + $0x108] ss:$12 sps:$4 sm:$0xff]  }
 0x3e8   :  { %1861 = vmatmul.mubr.bf16.gmra.mrb[48].mxu0 %v13291_v44 }
 0x3e9   :  { %9876 = vmatprep.mubr.msk.bf16.mxu0 %vm1419_vm3, %v13311_v12  ;;  %2224 = vmatpush1.bf16.msra.mxu0 %v11392_v10  ;;  %v11470_v10 = vld [vmem:[#allocation13 + $0x124] ss:$12 sps:$4 sm:$0xff]  }
 0x3ea   :  { %2225 = vmatprep.subr.bf16.mxu0 %v11397_v32  ;;  %v11468_v32 = vld [vmem:[#allocation13 + $0x120] ss:$12 sps:$4 sm:$0xff]  }
 0x3ed   :  { %2226 = vmatpush1.bf16.msra.mxu0 %v11395_v51  ;;  %v11475_v51 = vld [vmem:[#allocation13 + $0x13c] ss:$12 sps:$4 sm:$0xff]  }
 0x3ee   :  { %2227 = vmatprep.subr.bf16.mxu0 %v11400_v62  ;;  %v11473_v62 = vld [vmem:[#allocation13 + $0x138] ss:$12 sps:$4 sm:$0xff]  }
 0x3f0   :  { %1871 = vmatmul.mubr.bf16.gmra.mrb[52].mxu0 %v13309_v11 }
 0x3f1   :  { %2228 = vmatpush1.bf16.msra.mxu0 %v11398_v13  ;;  %9920 = vmatprep.mubr.msk.bf16.mxu0 %vm1419_vm3, %v13278_v16  ;;  %v11416_v16 = vld [vmem:[#allocation11 + $0x348] ss:$12 sps:$4 sm:$0xff]   ;;  %v11480_v13 = vld [vmem:[#allocation13 + $0x154] ss:$12 sps:$4 sm:$0xff]  }
 0x3f2   :  { %2229 = vmatprep.subr.bf16.mxu0 %v11403_v14  ;;  %v11478_v14 = vld [vmem:[#allocation13 + $0x150] ss:$12 sps:$4 sm:$0xff]  }
 0x3f5   :  { %2230 = vmatpush1.bf16.msra.mxu0 %v11401_v17  ;;  %v11485_v17 = vld [vmem:[#allocation13 + $0x16c] ss:$12 sps:$4 sm:$0xff]  }
 0x3f6   :  { %2231 = vmatprep.subr.bf16.mxu0 %v11406_v63 }
 0x3f9   :  { %2232 = vmatpush1.bf16.msra.mxu0 %v11404_v18 }
 0x3fa   :  { %2233 = vmatprep.subr.bf16.mxu0 %v11409_v19 }
 0x3fd   :  { %2234 = vmatpush1.bf16.msra.mxu0 %v11407_v20 }
 0x3fe   :  { %2235 = vmatprep.subr.bf16.mxu0 %v11412_v55 }
 0x401   :  { %2236 = vmatpush1.bf16.msra.mxu0 %v11410_v21 }
 0x402   :  { %2237 = vmatprep.subr.bf16.mxu0 %v11415_v15  ;;  %v11483_v15 = vld [vmem:[#allocation13 + $0x168] ss:$12 sps:$4 sm:$0xff]  }
 0x405   :  { %2238 = vmatpush1.bf16.msra.mxu0 %v11413_v23 }
 0x406   :  { %2239 = vmatprep.subr.bf16.mxu0 %v11418_v24 }
 0x409   :  { %2240 = vmatpush1.bf16.msra.mxu0 %v11416_v16 }
 0x40a   :  { %2241 = vmatprep.subr.bf16.mxu0 %v11421_v27 }
 0x40d   :  { %2242 = vmatpush1.bf16.msra.mxu0 %v11419_v30 }
 0x40e   :  { %9919 = vmatprep.subr.msk.bf16.mxu0 %vm786_vm1, %v9917_v31 }
 0x411   :  { %2244 = vmatpush1.bf16.msra.mxu0 %v2211_v43 }
 0x412   :  { %2775 = vmatprep.subr.bf16.mxu0 %v11426_v34 }
 0x414   :  { %2252 = vmatmul.mubr.bf16.vlgmr.msra.gmra.mrb[56].mxu0 %v13275_v25  ;;  %v11433_v25 = vld [vmem:[#allocation13 + $0x48] ss:$12 sps:$4 sm:$0xff]  }
 0x415   :  { %9921 = vmatprep.mubr.msk.bf16.mxu0 %vm1419_vm3, %v13294_v50  ;;  %2776 = vmatpush1.bf16.msra.mxu0 %v11424_v36  ;;  %v11438_v50 = vld [vmem:[#allocation13 + $0x64] ss:$12 sps:$4 sm:$0xff]  }
 0x416   :  { %2777 = vmatprep.subr.bf16.mxu0 %v11429_v39 }
 0x419   :  { %2778 = vmatpush1.bf16.msra.mxu0 %v11427_v41 }
 0x41a   :  { %2779 = vmatprep.subr.bf16.mxu0 %v11432_v45 }
 0x41c   :  { %2262 = vmatmul.mubr.bf16.gmra.mrb[60].mxu0 %v13291_v44  ;;  %v11439_v44 = vld [vmem:[#allocation13 + $0x78] ss:$12 sps:$4 sm:$0xff]  }
 0x41d   :  { %9922 = vmatprep.mubr.msk.bf16.mxu0 %vm1419_vm3, %v13311_v12  ;;  %2780 = vmatpush1.bf16.msra.mxu0 %v11430_v47  ;;  %v11444_v12 = vld [vmem:[#allocation13 + $0x94] ss:$12 sps:$4 sm:$0xff]  }
 0x41e   :  { %2781 = vmatprep.subr.bf16.mxu0 %v11435_v48  ;;  %v11490_v48 = vld [vmem:[#allocation13 + $0x184] ss:$12 sps:$4 sm:$0xff]  }
 0x421   :  { %2782 = vmatpush1.bf16.msra.mxu0 %v11433_v25 }
 0x422   :  { %2783 = vmatprep.subr.bf16.mxu0 %v11438_v50 }
 0x424   :  { %2272 = vmatmul.mubr.bf16.gmra.mrb[64].mxu0 %v13309_v11  ;;  %v11450_v11 = vld [vmem:[#allocation13 + $0xc4] ss:$12 sps:$4 sm:$0xff]  }
 0x425   :  { %2784 = vmatpush1.bf16.msra.mxu0 %v11436_v53 }
 0x426   :  { %2785 = vmatprep.subr.bf16.mxu0 %v11441_v54 }
 0x429   :  { %2786 = vmatpush1.bf16.msra.mxu0 %v11439_v44 }
 0x42a   :  { %2787 = vmatprep.subr.bf16.mxu0 %v11444_v12 }
 0x42d   :  { %2788 = vmatpush1.bf16.msra.mxu0 %v11442_v61 }
 0x42e   :  { %2789 = vmatprep.subr.bf16.mxu0 %v11447_v56 }
 0x431   :  { %2790 = vmatpush1.bf16.msra.mxu0 %v11445_v2 }
 0x432   :  { %2791 = vmatprep.subr.bf16.mxu0 %v11450_v11 }
 0x435   :  { %2792 = vmatpush1.bf16.msra.mxu0 %v11448_v3 }
 0x436   :  { %2793 = vmatprep.subr.bf16.mxu0 %v11455_v38 }
 0x439   :  { %2794 = vmatpush1.bf16.msra.mxu0 %v11453_v5 }
 0x43a   :  { %2795 = vmatprep.subr.bf16.mxu0 %v11460_v37 }
 0x43d   :  { %2796 = vmatpush1.bf16.msra.mxu0 %v11458_v42 }
 0x43e   :  { %2797 = vmatprep.subr.bf16.mxu0 %v11465_v8 }
 0x441   :  { %2798 = vmatpush1.bf16.msra.mxu0 %v11463_v9 }
 0x442   :  { %2799 = vmatprep.subr.bf16.mxu0 %v11470_v10 }
 0x445   :  { %2800 = vmatpush1.bf16.msra.mxu0 %v11468_v32 }
 0x446   :  { %2801 = vmatprep.subr.bf16.mxu0 %v11475_v51 }
 0x449   :  { %2802 = vmatpush1.bf16.msra.mxu0 %v11473_v62 }
 0x44a   :  { %2803 = vmatprep.subr.bf16.mxu0 %v11480_v13 }
 0x44b   :  { %v13379_v63 = vpop.f32.mrb[20].mxu0  ;;  %v1915_v18 = vpop.f32.mrb[16].mxu1 }
 0x44c   :  { %v13381_v19 = vpop.f32.mrb[21].mxu0  ;;  %v1917_v20 = vpop.f32.mrb[17].mxu1 }
 0x44d   :  { %v13383_v55 = vpop.f32.mrb[22].mxu0  ;;  %v1918_v21 = vpop.f32.mrb[18].mxu1  ;;  %2804 = vmatpush1.bf16.msra.mxu0 %v11478_v14 }
 0x44e   :  { %v13385_v23 = vpop.f32.mrb[23].mxu0  ;;  %v1920_v24 = vpop.f32.mrb[19].mxu1  ;;  %2805 = vmatprep.subr.bf16.mxu0 %v11485_v17 }
 0x451   :  { %2806 = vmatpush1.bf16.msra.mxu0 %v11483_v15 }
 0x452   :  { %2848 = vmatprep.subr.bf16.mxu0 %v11490_v48  ;;  %v11493_v48 = vld [vmem:[#allocation13 + $0x19c] ss:$12 sps:$4 sm:$0xff]  }
 0x453   :  { %v13387_v16 = vpop.f32.mrb[24].mxu0  ;;  %v1923_v27 = vpop.f32.mrb[20].mxu1 }
 0x454   :  { %v13389_v28 = vpop.f32.mrb[25].mxu0  ;;  %v1925_v30 = vpop.f32.mrb[21].mxu1 }
 0x455   :  { %v13391_v31 = vpop.f32.mrb[26].mxu0  ;;  %v1926_v22 = vpop.f32.mrb[22].mxu1 }
 0x456   :  { %v13393_v43 = vpop.f32.mrb[27].mxu0  ;;  %v1928_v34 = vpop.f32.mrb[23].mxu1 }
 0x45b   :  { %v13395_v36 = vpop.f32.mrb[28].mxu0  ;;  %v1931_v39 = vpop.f32.mrb[24].mxu1 }
 0x45c   :  { %v13397_v41 = vpop.f32.mrb[29].mxu0  ;;  %v1933_v45 = vpop.f32.mrb[25].mxu1 }
 0x45d   :  { %v13399_v6 = vpop.f32.mrb[30].mxu0  ;;  %v1934_v26 = vpop.f32.mrb[26].mxu1 }
 0x45e   :  { %v13401_v46 = vpop.f32.mrb[31].mxu0  ;;  %v1936_v47 = vpop.f32.mrb[27].mxu1 }
 0x45f   :  { %v11488_v47 = vld [vmem:[#allocation13 + $0x180] ss:$12 sps:$4 sm:$0xff]  }
 0x47f   :  { %v1535_v29 = vpop.f32.mrb[32].mxu0  ;;  %v2316_v25 = vpop.f32.mrb[28].mxu1 }
 0x480   :  { %v1537_v50 = vpop.f32.mrb[33].mxu0  ;;  %v2318_v52 = vpop.f32.mrb[29].mxu1 }
 0x481   :  { %v1538_v33 = vpop.f32.mrb[34].mxu0  ;;  %v2319_v53 = vpop.f32.mrb[30].mxu1 }
 0x482   :  { %v1943_v54 = vadd.f32 %v1915_v18, %v1538_v33  ;;  %v1540_v57 = vpop.f32.mrb[35].mxu0  ;;  %v2321_v58 = vpop.f32.mrb[31].mxu1 }
 0x483   :  { %v11502_v57 = vld [vmem:[#allocation13 + $0x1cc] ss:$12 sps:$4 sm:$0xff]  }
 0x484   :  { %v13403_v44 = vpack.c.bf16 %v1943_v54, %v1535_v29  ;;  %v11498_v29 = vld [vmem:[#allocation13 + $0x1a0] ss:$12 sps:$4 sm:$0xff]  }
 0x485   :  { %v11508_v58 = vld [vmem:[#allocation13 + $0x34c] ss:$12 sps:$4 sm:$0xff]  }
 0x486   :  { %14256 = vst [vmem:[#allocation23_spill] sm:$0xff] %v13403_v44 }
 0x487   :  { %v1543_v12 = vpop.f32.mrb[36].mxu0  ;;  %v2324_v59 = vpop.f32.mrb[32].mxu1 }
 0x488   :  { %v1946_v40 = vadd.f32 %v1918_v21, %v1543_v12  ;;  %v1545_v61 = vpop.f32.mrb[37].mxu0  ;;  %v2326_v56 = vpop.f32.mrb[33].mxu1 }
 0x489   :  { %v1546_v60 = vpop.f32.mrb[38].mxu0  ;;  %v2327_v1 = vpop.f32.mrb[34].mxu1 }
 0x48a   :  { %v2347_v2 = vadd.f32 %v2316_v25, %v1946_v40  ;;  %v1949_v11 = vadd.f32 %v1923_v27, %v1546_v60  ;;  %v1548_v3 = vpop.f32.mrb[39].mxu0  ;;  %v2329_v38 = vpop.f32.mrb[35].mxu1  ;;  %v11499_v25 = vld [vmem:[#allocation13 + $0x1b8] ss:$12 sps:$4 sm:$0x3f]  }
 0x48c   :  { %v2350_v4 = vadd.f32 %v2319_v53, %v1949_v11 }
 0x48e   :  { %v13405_v5 = vpack.c.bf16 %v2350_v4, %v2347_v2 }
 0x48f   :  { %v1551_v35 = vpop.f32.mrb[40].mxu0  ;;  %v2332_v37 = vpop.f32.mrb[36].mxu1 }
 0x490   :  { %14257 = vst [vmem:[#allocation24_spill] sm:$0xff] %v13405_v5  ;;  %v1952_v7 = vadd.f32 %v1926_v22, %v1551_v35  ;;  %v2359_v42 = vadd.f32 %v2332_v37, %v1934_v26  ;;  %v1553_v8 = vpop.f32.mrb[41].mxu0  ;;  %v2334_v9 = vpop.f32.mrb[37].mxu1 }
 0x491   :  { %v1554_v10 = vpop.f32.mrb[42].mxu0  ;;  %v2335_v32 = vpop.f32.mrb[38].mxu1 }
 0x492   :  { %v2353_v51 = vadd.f32 %v2324_v59, %v1952_v7  ;;  %v1955_v62 = vadd.f32 %v1931_v39, %v1554_v10  ;;  %v13407_v13 = vpack.c.bf16 %v2335_v32, %v2359_v42  ;;  %v1556_v14 = vpop.f32.mrb[43].mxu0  ;;  %v2337_v17 = vpop.f32.mrb[39].mxu1 }
 0x494   :  { %14258 = vst [vmem:[#allocation25_spill] sm:$0xff] %v13407_v13  ;;  %v2356_v18 = vadd.f32 %v2327_v1, %v1955_v62 }
 0x496   :  { %v13409_v20 = vpack.c.bf16 %v2356_v18, %v2353_v51 }
 0x498   :  { %14259 = vst [vmem:[#allocation26_spill] sm:$0xff] %v13409_v20 }
 0x4b3   :  { %v1852_v21 = vpop.f32.mrb[44].mxu0 }
 0x4b4   :  { %v1941_v15 = vadd.f32 %v1852_v21, %v13383_v55  ;;  %v1854_v24 = vpop.f32.mrb[45].mxu0 }
 0x4b5   :  { %v1942_v27 = vadd.f32 %v1854_v24, %v13385_v23  ;;  %v1856_v30 = vpop.f32.mrb[46].mxu0  ;;  %v11491_v23 = vld [vmem:[#allocation13 + $0x198] ss:$12 sps:$4 sm:$0xff]  }
 0x4b6   :  { %v13414_v22 = vpack.c.bf16 %v1941_v15, %v13379_v63  ;;  %v1944_v34 = vadd.f32 %v1856_v30, %v13387_v16  ;;  %v1858_v39 = vpop.f32.mrb[47].mxu0  ;;  %v11495_v63 = vld [vmem:[#allocation13 + $0x1b4] ss:$12 sps:$4 sm:$0x3f]  }
 0x4b7   :  { %v13418_v45 = vpack.c.bf16 %v1942_v27, %v13381_v19  ;;  %v1945_v26 = vadd.f32 %v1858_v39, %v13389_v28  ;;  %v11497_v19 = vld [vmem:[#allocation13 + $0x1b0] ss:$12 sps:$4 sm:$0x3f]   ;;  %v11500_v30 = vld [vmem:[#allocation13 + $0x1c8] ss:$12 sps:$4 sm:$0xff]  }
 0x4b8   :  { %v11506_v39 = vld [vmem:[#allocation13 + $0x348] ss:$12 sps:$4 sm:$0xff]  }
 0x4b9   :  { %2807 = vmatprep.mubr.bf16.mxu0 %v13418_v45  ;;  %2953 = vmatprep.mubr.bf16.mxu1 %v13418_v45 }
 0x4ba   :  { %2808 = vmatmul.mubr.bf16.vlgmr.msra.gmra.mrb[68].mxu0 %v13414_v22  ;;  %2954 = vmatmul.mubr.bf16.vlgmr.msra.gmra.mrb[40].mxu1 %v13414_v22 }
 0x4bb   :  { %v1862_v55 = vpop.f32.mrb[48].mxu0  ;;  %2849 = vmatpush1.bf16.msra.mxu0 %v11488_v47  ;;  %10972 = vmatpush3.bf16.msra.mxu1 %v11494_v49  ;;  %v2767_v49 = vsel %vm2765_vm4, %v11497_v19, 0  ;;  %v11503_v47 = vld [vmem:[#allocation13 + $0x1e0] ss:$12 sps:$4 sm:$0xff]  }
 0x4bc   :  { %v1947_v16 = vadd.f32 %v1862_v55, %v13391_v31  ;;  %v1864_v28 = vpop.f32.mrb[49].mxu0  ;;  %2850 = vmatprep.subr.bf16.mxu0 %v11493_v48  ;;  %10973 = vmatprep.subr.bf16.mxu1 %v11498_v29  ;;  %v2773_v31 = vsel %vm2765_vm4, %v11499_v25, 0  ;;  %v11511_v48 = vld [vmem:[#allocation13 + $0x1fc] ss:$12 sps:$4 sm:$0xff]   ;;  %v11517_v19 = vld [vmem:[#allocation13 + $0x214] ss:$12 sps:$4 sm:$0xff]  }
 0x4bd   :  { %v1948_v50 = vadd.f32 %v1864_v28, %v13393_v43  ;;  %v1866_v52 = vpop.f32.mrb[50].mxu0  ;;  %v11520_v55 = vld [vmem:[#allocation13 + $0x378] ss:$12 sps:$4 sm:$0x3f]  }
 0x4be   :  { %v1950_v33 = vadd.f32 %v1866_v52, %v13395_v36  ;;  %v1868_v53 = vpop.f32.mrb[51].mxu0  ;;  %v11524_v28 = vld [vmem:[#allocation13 + $0x458] ss:$12 sps:$4 sm:$0xff]   ;;  %v11521_v52 = vld [vmem:[#allocation13 + $0x228] ss:$12 sps:$4 sm:$0xff]  }
 0x4bf   :  { %v1951_v54 = vadd.f32 %v1868_v53, %v13397_v41  ;;  %2851 = vmatpush1.bf16.msra.mxu0 %v11491_v23  ;;  %10974 = vmatpush3.bf16.msra.mxu1 %v11498_v29  ;;  %v11512_v29 = vld [vmem:[#allocation13 + $0x360] ss:$12 sps:$4 sm:$0xff]   ;;  %v11509_v23 = vld [vmem:[#allocation13 + $0x1f8] ss:$12 sps:$4 sm:$0xff]  }
 0x4c0   :  { %9983 = vmatprep.subr.msk.bf16.mxu0 %vm2765_vm4, %v11495_v63  ;;  %11229 = vmatprep.subr.msk.bf16.mxu1 %vm2765_vm4, %v11499_v25  ;;  %v11518_v63 = vld [vmem:[#allocation13 + $0x37c] ss:$12 sps:$4 sm:$0x3f]   ;;  %v11528_v53 = vld [vmem:[#allocation13 + $0x244] ss:$12 sps:$4 sm:$0xff]  }
 0x4c1   :  { %v11515_v25 = vld [vmem:[#allocation13 + $0x210] ss:$12 sps:$4 sm:$0xff]  }
 0x4c3   :  { %v1872_v43 = vpop.f32.mrb[52].mxu0  ;;  %2853 = vmatpush1.bf16.msra.mxu0 %v2767_v49  ;;  %10976 = vmatpush3.bf16.msra.mxu1 %v2773_v31  ;;  %v11526_v49 = vld [vmem:[#allocation13 + $0x240] ss:$12 sps:$4 sm:$0xff]   ;;  %v11530_v31 = vld [vmem:[#allocation13 + $0x3b0] ss:$12 sps:$4 sm:$0xff]  }
 0x4c4   :  { %v1953_v36 = vadd.f32 %v1872_v43, %v13399_v6  ;;  %v1874_v12 = vpop.f32.mrb[53].mxu0  ;;  %3438 = vmatprep.subr.bf16.mxu0 %v11502_v57  ;;  %3511 = vmatprep.subr.bf16.mxu1 %v11508_v58  ;;  %v11533_v57 = vld [vmem:[#allocation13 + $0x25c] ss:$12 sps:$4 sm:$0xff]   ;;  %v11531_v43 = vld [vmem:[#allocation13 + $0x258] ss:$12 sps:$4 sm:$0xff]  }
 0x4c5   :  { %v1954_v41 = vadd.f32 %v1874_v12, %v13401_v46  ;;  %v1876_v59 = vpop.f32.mrb[54].mxu0  ;;  %v11534_v58 = vld [vmem:[#allocation13 + $0x488] ss:$12 sps:$4 sm:$0xff]  }
 0x4c6   :  { %v1878_v40 = vpop.f32.mrb[55].mxu0  ;;  %v11538_v12 = vld [vmem:[#allocation13 + $0x274] ss:$12 sps:$4 sm:$0xff]  }
 0x4e7   :  { %v2253_v61 = vpop.f32.mrb[56].mxu0 }
 0x4e8   :  { %v2345_v56 = vadd.f32 %v2253_v61, %v1944_v34  ;;  %v2255_v60 = vpop.f32.mrb[57].mxu0  ;;  %v11505_v34 = vld [vmem:[#allocation13 + $0x1e4] ss:$12 sps:$4 sm:$0xff]   ;;  %v11543_v61 = vld [vmem:[#allocation13 + $0x28c] ss:$12 sps:$4 sm:$0xff]  }
 0x4e9   :  { %v2346_v1 = vadd.f32 %v2255_v60, %v1945_v26  ;;  %v2257_v2 = vpop.f32.mrb[58].mxu0  ;;  %v11514_v26 = vld [vmem:[#allocation13 + $0x364] ss:$12 sps:$4 sm:$0xff]   ;;  %v11541_v60 = vld [vmem:[#allocation13 + $0x288] ss:$12 sps:$4 sm:$0xff]  }
 0x4ea   :  { %v2348_v11 = vadd.f32 %v2257_v2, %v1947_v16  ;;  %v2259_v3 = vpop.f32.mrb[59].mxu0  ;;  %v3430_v16 = vsel %vm2765_vm4, %v11520_v55, 0  ;;  %v11548_v2 = vld [vmem:[#allocation13 + $0x2a4] ss:$12 sps:$4 sm:$0xff]  }
 0x4eb   :  { %v2349_v38 = vadd.f32 %v2259_v3, %v1948_v50  ;;  %v11523_v50 = vld [vmem:[#allocation13 + $0x22c] ss:$12 sps:$4 sm:$0xff]   ;;  %v11574_v55 = vld [vmem:[#allocation13 + $0x1d0] ss:$12 sps:$4 sm:$0xff]  }
 0x4ec   :  { %v13435_v4 = vpack.c.bf16 %v2348_v11, %v2345_v56  ;;  %v11544_v56 = vld [vmem:[#allocation13 + $0x4b8] ss:$12 sps:$4 sm:$0xff]   ;;  %v11549_v11 = vld [vmem:[#allocation13 + $0x4d0] ss:$12 sps:$4 sm:$0xff]   ;;  %v11546_v3 = vld [vmem:[#allocation13 + $0x2a0] ss:$12 sps:$4 sm:$0xff]  }
 0x4ed   :  { %v13437_v35 = vpack.c.bf16 %v2349_v38, %v2346_v1  ;;  %v11545_v1 = vld [vmem:[#allocation13 + $0x3f8] ss:$12 sps:$4 sm:$0xff]   ;;  %v11550_v38 = vld [vmem:[#allocation13 + $0x410] ss:$12 sps:$4 sm:$0xff]  }
 0x4ef   :  { %v2263_v6 = vpop.f32.mrb[60].mxu0  ;;  %2817 = vmatprep.mubr.bf16.mxu0 %v13437_v35  ;;  %2961 = vmatprep.mubr.bf16.mxu1 %v13437_v35 }
 0x4f0   :  { %v2351_v46 = vadd.f32 %v2263_v6, %v1950_v33  ;;  %v2265_v37 = vpop.f32.mrb[61].mxu0  ;;  %2818 = vmatmul.mubr.bf16.gmra.mrb[72].mxu0 %v13435_v4  ;;  %2962 = vmatmul.mubr.bf16.gmra.mrb[44].mxu1 %v13435_v4  ;;  %v11525_v33 = vld [vmem:[#allocation13 + $0x398] ss:$12 sps:$4 sm:$0xff]   ;;  %v11553_v6 = vld [vmem:[#allocation13 + $0x2bc] ss:$12 sps:$4 sm:$0xff]  }
 0x4f1   :  { %v2352_v7 = vadd.f32 %v2265_v37, %v1951_v54  ;;  %v2267_v42 = vpop.f32.mrb[62].mxu0  ;;  %v11529_v54 = vld [vmem:[#allocation13 + $0x470] ss:$12 sps:$4 sm:$0xff]   ;;  %v11551_v37 = vld [vmem:[#allocation13 + $0x2b8] ss:$12 sps:$4 sm:$0xff]  }
 0x4f2   :  { %v2354_v8 = vadd.f32 %v2267_v42, %v1953_v36  ;;  %v2269_v9 = vpop.f32.mrb[63].mxu0  ;;  %v11535_v36 = vld [vmem:[#allocation13 + $0x3c8] ss:$12 sps:$4 sm:$0xff]  }
 0x4f3   :  { %v2355_v10 = vadd.f32 %v2269_v9, %v1954_v41  ;;  %v11539_v41 = vld [vmem:[#allocation13 + $0x4a0] ss:$12 sps:$4 sm:$0xff]   ;;  %v11556_v9 = vld [vmem:[#allocation13 + $0x2d0] ss:$12 sps:$4 sm:$0xff]  }
 0x4f4   :  { %v13443_v32 = vpack.c.bf16 %v2354_v8, %v2351_v46  ;;  %v11554_v46 = vld [vmem:[#allocation13 + $0x4e8] ss:$12 sps:$4 sm:$0xff]   ;;  %v11559_v8 = vld [vmem:[#allocation13 + $0x500] ss:$12 sps:$4 sm:$0xff]  }
 0x4f5   :  { %v13445_v51 = vpack.c.bf16 %v2355_v10, %v2352_v7  ;;  %v11555_v7 = vld [vmem:[#allocation13 + $0x428] ss:$12 sps:$4 sm:$0xff]   ;;  %v11560_v10 = vld [vmem:[#allocation13 + $0x440] ss:$12 sps:$4 sm:$0xff]  }
 0x4f6   :  { %v11558_v42 = vld [vmem:[#allocation13 + $0x2d4] ss:$12 sps:$4 sm:$0xff]  }
 0x4f7   :  { %v2273_v62 = vpop.f32.mrb[64].mxu0  ;;  %2827 = vmatprep.mubr.bf16.mxu0 %v13445_v51  ;;  %2969 = vmatprep.mubr.bf16.mxu1 %v13445_v51 }
 0x4f8   :  { %v2357_v14 = vadd.f32 %v2273_v62, %v1876_v59  ;;  %v2275_v17 = vpop.f32.mrb[65].mxu0  ;;  %2828 = vmatmul.mubr.bf16.gmra.mrb[76].mxu0 %v13443_v32  ;;  %2970 = vmatmul.mubr.bf16.gmra.mrb[48].mxu1 %v13443_v32  ;;  %v11536_v59 = vld [vmem:[#allocation13 + $0x270] ss:$12 sps:$4 sm:$0xff]   ;;  %v11563_v62 = vld [vmem:[#allocation13 + $0x2ec] ss:$12 sps:$4 sm:$0xff]  }
 0x4f9   :  { %v2358_v18 = vadd.f32 %v2275_v17, %v1878_v40  ;;  %v2277_v21 = vpop.f32.mrb[66].mxu0  ;;  %v11540_v40 = vld [vmem:[#allocation13 + $0x3e0] ss:$12 sps:$4 sm:$0xff]   ;;  %v11561_v17 = vld [vmem:[#allocation13 + $0x2e8] ss:$12 sps:$4 sm:$0xff]  }
 0x4fa   :  { %v13451_v15 = vpack.c.bf16 %v2277_v21, %v2357_v14  ;;  %v2279_v24 = vpop.f32.mrb[67].mxu0  ;;  %v11577_v14 = vld [vmem:[#allocation13 + $0x518] ss:$12 sps:$4 sm:$0xff]   ;;  %v11580_v21 = vld [vmem:[#allocation13 + $0x530] ss:$12 sps:$4 sm:$0xff]  }
 0x4fb   :  { %v13453_v27 = vpack.c.bf16 %v2279_v24, %v2358_v18  ;;  %v11566_v18 = vld [vmem:[#allocation13 + $0x304] ss:$12 sps:$4 sm:$0xff]   ;;  %v11564_v24 = vld [vmem:[#allocation13 + $0x300] ss:$12 sps:$4 sm:$0xff]  }
 0x4fd   :  { %2837 = vmatprep.mubr.bf16.mxu0 %v13453_v27  ;;  %2977 = vmatprep.mubr.bf16.mxu1 %v13453_v27 }
 0x500   :  { %2838 = vmatmul.mubr.bf16.gmra.mrb[80].mxu0 %v13451_v15  ;;  %2978 = vmatmul.mubr.bf16.gmra.mrb[52].mxu1 %v13451_v15 }
 0x501   :  { %10977 = vmatprep.mubr.msk.bf16.mxu1 %vm2752_vm5, %v13403_v44  ;;  %2880 = vmatprep.mubr.bf16.mxu0 %v14245_v0 }
 0x508   :  { %9984 = vmatmul.mubr.msk.bf16.vlgmr.msra.gmra.mrb[68].mxu0 %vm2752_vm5, %v13403_v44  ;;  %10978 = vmatmul.mubr.msk.bf16.vlgmr.msra.gmra.mrb[56].mxu1 %vm2752_vm5, %v13405_v5 }
 0x509   :  { %3439 = vmatpush1.bf16.msra.mxu0 %v11500_v30  ;;  %10981 = vmatprep.mubr.msk.bf16.mxu1 %vm2752_vm5, %v13409_v20  ;;  %v11569_v30 = vld [vmem:[#allocation13 + $0x31c] ss:$12 sps:$4 sm:$0xff]  }
 0x50a   :  { %3440 = vmatprep.subr.bf16.mxu0 %v11505_v34  ;;  %3512 = vmatpush1.bf16.msra.mxu1 %v11506_v39  ;;  %v11583_v34 = vld [vmem:[#allocation13 + $0x548] ss:$12 sps:$4 sm:$0x3f]   ;;  %v11567_v39 = vld [vmem:[#allocation13 + $0x318] ss:$12 sps:$4 sm:$0xff]  }
 0x50b   :  { %2890 = vmatprep.mubr.bf16.mxu0 %v14245_v0  ;;  %3513 = vmatprep.subr.bf16.mxu1 %v11514_v26  ;;  %v11572_v26 = vld [vmem:[#allocation13 + $0x334] ss:$12 sps:$4 sm:$0xff]  }
 0x50d   :  { %3441 = vmatpush1.bf16.msra.mxu0 %v11503_v47  ;;  %v4126_v47 = vsel %vm2765_vm4, %v11583_v34, 0 }
 0x50e   :  { %3442 = vmatprep.subr.bf16.mxu0 %v11511_v48  ;;  %3514 = vmatpush1.bf16.msra.mxu1 %v11512_v29  ;;  %v11590_v48 = vld [vmem:[#allocation13 + $0x6dc] ss:$12 sps:$4 sm:$0xff]  }
 0x50f   :  { %10049 = vmatprep.subr.msk.bf16.mxu1 %vm2765_vm4, %v11518_v63  ;;  %v11570_v29 = vld [vmem:[#allocation13 + $0x330] ss:$12 sps:$4 sm:$0xff]  }
 0x510   :  { %9985 = vmatmul.mubr.msk.bf16.gmra.mrb[72].mxu0 %vm2752_vm5, %v13405_v5  ;;  %10982 = vmatmul.mubr.msk.bf16.gmra.mrb[60].mxu1 %vm2752_vm5, %v13407_v13  ;;  %v11573_v63 = vld [vmem:[#allocation13 + $0x290] ss:$12 sps:$4 sm:$0xff]  }
 0x511   :  { %3443 = vmatpush1.bf16.msra.mxu0 %v11509_v23  ;;  %2900 = vmatprep.mubr.bf16.mxu0 %v14245_v0  ;;  %v11575_v23 = vld [vmem:[#allocation13 + $0x2a8] ss:$12 sps:$4 sm:$0xff]  }
 0x512   :  { %3444 = vmatprep.subr.bf16.mxu0 %v11517_v19  ;;  %3516 = vmatpush1.bf16.msra.mxu1 %v3430_v16  ;;  %v11576_v19 = vld [vmem:[#allocation13 + $0x1e8] ss:$12 sps:$4 sm:$0xff]   ;;  %v11578_v16 = vld [vmem:[#allocation13 + $0x2c0] ss:$12 sps:$4 sm:$0xff]  }
 0x513   :  { %3543 = vmatprep.mubr.bf16.mxu1 %v14245_v0  ;;  %10830 = vmatprep.subr.bf16.mxu1 %v11524_v28  ;;  %v11579_v28 = vld [vmem:[#allocation13 + $0x200] ss:$12 sps:$4 sm:$0xff]  }
 0x515   :  { %3445 = vmatpush1.bf16.msra.mxu0 %v11515_v25  ;;  %v11581_v25 = vld [vmem:[#allocation13 + $0x2d8] ss:$12 sps:$4 sm:$0xff]  }
 0x516   :  { %3446 = vmatprep.subr.bf16.mxu0 %v11523_v50  ;;  %v11582_v50 = vld [vmem:[#allocation13 + $0x218] ss:$12 sps:$4 sm:$0xff]  }
 0x518   :  { %9986 = vmatmul.mubr.msk.bf16.gmra.mrb[76].mxu0 %vm2752_vm5, %v13409_v20  ;;  %10050 = vmatmul.mubr.msk.bf16.vlgmr.msra.gmra.mrb[64].mxu1 %vm2752_vm5, %v13403_v44 }
 0x519   :  { %3447 = vmatpush1.bf16.msra.mxu0 %v11521_v52  ;;  %10831 = vmatpush3.bf16.msra.mxu1 %v11525_v33  ;;  %v11584_v52 = vld [vmem:[#allocation13 + $0x2f0] ss:$12 sps:$4 sm:$0xff]  }
 0x51a   :  { %3448 = vmatprep.subr.bf16.mxu0 %v11528_v53  ;;  %10832 = vmatprep.subr.bf16.mxu1 %v11529_v54  ;;  %v11585_v33 = vld [vmem:[#allocation13 + $0x230] ss:$12 sps:$4 sm:$0xff]   ;;  %v11586_v53 = vld [vmem:[#allocation13 + $0x308] ss:$12 sps:$4 sm:$0xff]   ;;  %v11588_v54 = vld [vmem:[#allocation13 + $0x6d8] ss:$12 sps:$4 sm:$0xff]  }
 0x51b   :  { %2910 = vmatprep.mubr.bf16.mxu0 %v14245_v0  ;;  %3553 = vmatprep.mubr.bf16.mxu1 %v14245_v0 }
 0x51d   :  { %3449 = vmatpush1.bf16.msra.mxu0 %v11526_v49  ;;  %10833 = vmatpush3.bf16.msra.mxu1 %v11530_v31  ;;  %v11595_v49 = vld [vmem:[#allocation13 + $0x6f4] ss:$12 sps:$4 sm:$0xff]  }
 0x51e   :  { %3450 = vmatprep.subr.bf16.mxu0 %v11533_v57  ;;  %10834 = vmatprep.subr.bf16.mxu1 %v11534_v58  ;;  %v11587_v31 = vld [vmem:[#allocation13 + $0x248] ss:$12 sps:$4 sm:$0xff]   ;;  %v11591_v57 = vld [vmem:[#allocation13 + $0x320] ss:$12 sps:$4 sm:$0xff]   ;;  %v11593_v58 = vld [vmem:[#allocation13 + $0x6f0] ss:$12 sps:$4 sm:$0xff]  }
 0x520   :  { %9987 = vmatmul.mubr.msk.bf16.gmra.mrb[80].mxu0 %vm2752_vm5, %v13407_v13  ;;  %10051 = vmatmul.mubr.msk.bf16.gmra.mrb[68].mxu1 %vm2752_vm5, %v13405_v5 }
 0x521   :  { %3451 = vmatpush1.bf16.msra.mxu0 %v11531_v43  ;;  %3470 = vmatprep.mubr.bf16.mxu0 %v13418_v45  ;;  %v11598_v43 = vld [vmem:[#allocation13 + $0x70c] ss:$12 sps:$4 sm:$0x3f]  }
 0x522   :  { %10835 = vmatpush3.bf16.msra.mxu1 %v11535_v36  ;;  %3452 = vmatprep.subr.bf16.mxu0 %v11538_v12  ;;  %v11600_v36 = vld [vmem:[#allocation13 + $0x708] ss:$12 sps:$4 sm:$0x3f]   ;;  %v11592_v12 = vld [vmem:[#allocation13 + $0x260] ss:$12 sps:$4 sm:$0xff]  }
 0x523   :  { %10836 = vmatprep.subr.bf16.mxu1 %v11539_v41  ;;  %3563 = vmatprep.mubr.bf16.mxu1 %v14245_v0  ;;  %v11596_v41 = vld [vmem:[#allocation13 + $0x338] ss:$12 sps:$4 sm:$0xff]  }
 0x525   :  { %3453 = vmatpush1.bf16.msra.mxu0 %v11536_v59  ;;  %v4813_v59 = vsel %vm2765_vm4, %v11600_v36, 0  ;;  %v11643_v36 = vld [vmem:[#allocation13 + $0x438] ss:$12 sps:$4 sm:$0xff]  }
 0x526   :  { %10837 = vmatpush3.bf16.msra.mxu1 %v11540_v40  ;;  %3454 = vmatprep.subr.bf16.mxu0 %v11543_v61  ;;  %v11602_v40 = vld [vmem:[#allocation13 + $0x7e8] ss:$12 sps:$4 sm:$0xff]   ;;  %v11597_v61 = vld [vmem:[#allocation13 + $0x278] ss:$12 sps:$4 sm:$0xff]  }
 0x527   :  { %10838 = vmatprep.subr.bf16.mxu1 %v11544_v56  ;;  %v11601_v56 = vld [vmem:[#allocation13 + $0x350] ss:$12 sps:$4 sm:$0xff]  }
 0x528   :  { %10052 = vmatmul.mubr.msk.bf16.gmra.mrb[72].mxu1 %vm2752_vm5, %v13409_v20 }
 0x529   :  { %3455 = vmatpush1.bf16.msra.mxu0 %v11541_v60  ;;  %3573 = vmatprep.mubr.bf16.mxu1 %v14245_v0  ;;  %v11608_v60 = vld [vmem:[#allocation13 + $0x368] ss:$12 sps:$4 sm:$0xff]  }
 0x52a   :  { %10839 = vmatpush3.bf16.msra.mxu1 %v11545_v1  ;;  %3456 = vmatprep.subr.bf16.mxu0 %v11548_v2  ;;  %v11603_v1 = vld [vmem:[#allocation13 + $0x728] ss:$12 sps:$4 sm:$0xff]   ;;  %v11604_v2 = vld [vmem:[#allocation13 + $0x800] ss:$12 sps:$4 sm:$0xff]  }
 0x52b   :  { %10840 = vmatprep.subr.bf16.mxu1 %v11549_v11  ;;  %v11614_v11 = vld [vmem:[#allocation13 + $0x380] ss:$12 sps:$4 sm:$0x3f]  }
 0x52d   :  { %3457 = vmatpush1.bf16.msra.mxu0 %v11546_v3  ;;  %v11605_v3 = vld [vmem:[#allocation13 + $0x740] ss:$12 sps:$4 sm:$0xff]  }
 0x52e   :  { %10841 = vmatpush3.bf16.msra.mxu1 %v11550_v38  ;;  %3458 = vmatprep.subr.bf16.mxu0 %v11553_v6  ;;  %v11606_v38 = vld [vmem:[#allocation13 + $0x818] ss:$12 sps:$4 sm:$0xff]   ;;  %v3436_v6 = vsel %vm2765_vm4, %v11614_v11, 0 }
 0x52f   :  { %10842 = vmatprep.subr.bf16.mxu1 %v11554_v46  ;;  %v11622_v46 = vld [vmem:[#allocation13 + $0x394] ss:$12 sps:$4 sm:$0xff]  }
 0x530   :  { %10053 = vmatmul.mubr.msk.bf16.gmra.mrb[76].mxu1 %vm2752_vm5, %v13407_v13 }
 0x531   :  { %3459 = vmatpush1.bf16.msra.mxu0 %v11551_v37  ;;  %4306 = vmatprep.mubr.bf16.mxu1 %v13418_v45  ;;  %v11607_v37 = vld [vmem:[#allocation13 + $0x758] ss:$12 sps:$4 sm:$0xff]  }
 0x532   :  { %10843 = vmatpush3.bf16.msra.mxu1 %v11555_v7  ;;  %3460 = vmatprep.subr.bf16.mxu0 %v11558_v42  ;;  %v11609_v7 = vld [vmem:[#allocation13 + $0x830] ss:$12 sps:$4 sm:$0xff]  }
 0x533   :  { %10844 = vmatprep.subr.bf16.mxu1 %v11559_v8  ;;  %v11610_v42 = vld [vmem:[#allocation13 + $0x770] ss:$12 sps:$4 sm:$0xff]   ;;  %v11611_v8 = vld [vmem:[#allocation13 + $0x848] ss:$12 sps:$4 sm:$0xff]  }
 0x535   :  { %3461 = vmatpush1.bf16.msra.mxu0 %v11556_v9  ;;  %v11612_v9 = vld [vmem:[#allocation13 + $0x788] ss:$12 sps:$4 sm:$0xff]  }
 0x536   :  { %10845 = vmatpush3.bf16.msra.mxu1 %v11560_v10  ;;  %3462 = vmatprep.subr.bf16.mxu0 %v11563_v62  ;;  %v11613_v10 = vld [vmem:[#allocation13 + $0x860] ss:$12 sps:$4 sm:$0xff]  }
 0x537   :  { %10999 = vmatprep.subr.bf16.mxu1 %v11577_v14  ;;  %v11615_v62 = vld [vmem:[#allocation13 + $0x7a0] ss:$12 sps:$4 sm:$0xff]  }
 0x539   :  { %3463 = vmatpush1.bf16.msra.mxu0 %v11561_v17  ;;  %4307 = vmatmul.mubr.bf16.vlgmr.msra.gmra.mrb[80].mxu1 %v13414_v22  ;;  %v11617_v17 = vld [vmem:[#allocation13 + $0x7b8] ss:$12 sps:$4 sm:$0xff]  }
 0x53a   :  { %4314 = vmatprep.mubr.bf16.mxu1 %v13437_v35  ;;  %3464 = vmatprep.subr.bf16.mxu0 %v11566_v18  ;;  %v11618_v18 = vld [vmem:[#allocation13 + $0x890] ss:$12 sps:$4 sm:$0xff]  }
 0x53b   :  { %11000 = vmatpush3.bf16.msra.mxu1 %v11577_v14  ;;  %v11616_v14 = vld [vmem:[#allocation13 + $0x878] ss:$12 sps:$4 sm:$0xff]  }
 0x53c   :  { %11001 = vmatprep.subr.bf16.mxu1 %v11580_v21 }
 0x53d   :  { %3465 = vmatpush1.bf16.msra.mxu0 %v11564_v24  ;;  %v11638_v24 = vld [vmem:[#allocation13 + $0x8a8] ss:$12 sps:$4 sm:$0xff]  }
 0x53e   :  { %3466 = vmatprep.subr.bf16.mxu0 %v11569_v30  ;;  %v11620_v30 = vld [vmem:[#allocation13 + $0x390] ss:$12 sps:$4 sm:$0xff]  }
 0x53f   :  { %11002 = vmatpush3.bf16.msra.mxu1 %v11580_v21  ;;  %v11619_v21 = vld [vmem:[#allocation13 + $0x7d0] ss:$12 sps:$4 sm:$0xff]  }
 0x540   :  { %11231 = vmatprep.subr.msk.bf16.mxu1 %vm2765_vm4, %v11583_v34  ;;  %v11625_v34 = vld [vmem:[#allocation13 + $0x3ac] ss:$12 sps:$4 sm:$0xff]  }
 0x541   :  { %3467 = vmatpush1.bf16.msra.mxu0 %v11567_v39  ;;  %4315 = vmatmul.mubr.bf16.gmra.mrb[84].mxu1 %v13435_v4  ;;  %v11642_v39 = vld [vmem:[#allocation13 + $0x8c0] ss:$12 sps:$4 sm:$0xff]  }
 0x542   :  { %4322 = vmatprep.mubr.bf16.mxu1 %v13445_v51  ;;  %3468 = vmatprep.subr.bf16.mxu0 %v11572_v26  ;;  %v11623_v26 = vld [vmem:[#allocation13 + $0x3a8] ss:$12 sps:$4 sm:$0xff]  }
 0x543   :  { %11004 = vmatpush3.bf16.msra.mxu1 %v4126_v47  ;;  %v11628_v47 = vld [vmem:[#allocation13 + $0x3c4] ss:$12 sps:$4 sm:$0xff]  }
 0x544   :  { %4894 = vmatprep.subr.bf16.mxu1 %v11590_v48  ;;  %v11646_v48 = vld [vmem:[#allocation13 + $0x8d8] ss:$12 sps:$4 sm:$0x3f]  }
 0x545   :  { %3469 = vmatpush1.bf16.msra.mxu0 %v11570_v29 }
 0x546   :  { %10783 = vmatprep.subr.bf16.mxu0 %v11573_v63  ;;  %v11626_v63 = vld [vmem:[#allocation13 + $0x3c0] ss:$12 sps:$4 sm:$0xff]  }
 0x548   :  { %3471 = vmatmul.mubr.bf16.vlgmr.msra.gmra.mrb[84].mxu0 %v13414_v22 }
 0x549   :  { %3480 = vmatprep.mubr.bf16.mxu0 %v13437_v35  ;;  %10784 = vmatpush3.bf16.msra.mxu0 %v11574_v55 }
 0x54a   :  { %4323 = vmatmul.mubr.bf16.gmra.mrb[88].mxu1 %v13443_v32  ;;  %10785 = vmatprep.subr.bf16.mxu0 %v11575_v23  ;;  %v11631_v23 = vld [vmem:[#allocation13 + $0x3dc] ss:$12 sps:$4 sm:$0xff]  }
 0x54b   :  { %4330 = vmatprep.mubr.bf16.mxu1 %v13453_v27 }
 0x54d   :  { %10786 = vmatpush3.bf16.msra.mxu0 %v11576_v19 }
 0x54e   :  { %10787 = vmatprep.subr.bf16.mxu0 %v11578_v16 }
 0x550   :  { %3481 = vmatmul.mubr.bf16.gmra.mrb[88].mxu0 %v13435_v4 }
 0x551   :  { %3490 = vmatprep.mubr.bf16.mxu0 %v13445_v51  ;;  %10788 = vmatpush3.bf16.msra.mxu0 %v11579_v28 }
 0x552   :  { %4331 = vmatmul.mubr.bf16.gmra.mrb[92].mxu1 %v13451_v15  ;;  %10789 = vmatprep.subr.bf16.mxu0 %v11581_v25  ;;  %v5515_v25 = vsel %vm2765_vm4, %v11646_v48, 0 }
 0x553   :  { %11005 = vmatprep.mubr.msk.bf16.mxu1 %vm2752_vm5, %v13403_v44 }
 0x555   :  { %10790 = vmatpush3.bf16.msra.mxu0 %v11582_v50  ;;  %v11685_v50 = vld [vmem:[#allocation14 + $0x134] ss:$8 sps:$4 sm:$0xff]  }
 0x556   :  { %10791 = vmatprep.subr.bf16.mxu0 %v11584_v52 }
 0x558   :  { %3491 = vmatmul.mubr.bf16.gmra.mrb[92].mxu0 %v13443_v32 }
 0x559   :  { %3500 = vmatprep.mubr.bf16.mxu0 %v13453_v27  ;;  %10792 = vmatpush3.bf16.msra.mxu0 %v11585_v33  ;;  %v11629_v33 = vld [vmem:[#allocation13 + $0x3d8] ss:$12 sps:$4 sm:$0xff]  }
 0x55a   :  { %11006 = vmatmul.mubr.msk.bf16.vlgmr.msra.gmra.mrb[96].mxu1 %vm2752_vm5, %v13405_v5  ;;  %10793 = vmatprep.subr.bf16.mxu0 %v11586_v53  ;;  %v11634_v53 = vld [vmem:[#allocation13 + $0x3f4] ss:$12 sps:$4 sm:$0xff]  }
 0x55b   :  { %11009 = vmatprep.mubr.msk.bf16.mxu1 %vm2752_vm5, %v13409_v20  ;;  %4895 = vmatpush1.bf16.msra.mxu1 %v11588_v54  ;;  %v11632_v54 = vld [vmem:[#allocation13 + $0x3f0] ss:$12 sps:$4 sm:$0xff]  }
 0x55c   :  { %4896 = vmatprep.subr.bf16.mxu1 %v11595_v49  ;;  %v11637_v49 = vld [vmem:[#allocation13 + $0x40c] ss:$12 sps:$4 sm:$0xff]  }
 0x55d   :  { %10794 = vmatpush3.bf16.msra.mxu0 %v11587_v31  ;;  %v11635_v31 = vld [vmem:[#allocation13 + $0x408] ss:$12 sps:$4 sm:$0xff]  }
 0x55e   :  { %10795 = vmatprep.subr.bf16.mxu0 %v11591_v57  ;;  %v11641_v57 = vld [vmem:[#allocation13 + $0x424] ss:$12 sps:$4 sm:$0xff]  }
 0x55f   :  { %4897 = vmatpush1.bf16.msra.mxu1 %v11593_v58  ;;  %v11639_v58 = vld [vmem:[#allocation13 + $0x420] ss:$12 sps:$4 sm:$0xff]  }
 0x560   :  { %3501 = vmatmul.mubr.bf16.gmra.mrb[96].mxu0 %v13451_v15  ;;  %10181 = vmatprep.subr.msk.bf16.mxu1 %vm2765_vm4, %v11598_v43  ;;  %v11645_v43 = vld [vmem:[#allocation13 + $0x43c] ss:$12 sps:$4 sm:$0xff]  }
 0x561   :  { %10796 = vmatpush3.bf16.msra.mxu0 %v11592_v12  ;;  %3616 = vmatprep.mubr.bf16.mxu0 %v13418_v45  ;;  %v11649_v12 = vld [vmem:[#allocation13 + $0x454] ss:$12 sps:$4 sm:$0xff]  }
 0x562   :  { %11010 = vmatmul.mubr.msk.bf16.gmra.mrb[100].mxu1 %vm2752_vm5, %v13407_v13  ;;  %10797 = vmatprep.subr.bf16.mxu0 %v11596_v41  ;;  %v11647_v41 = vld [vmem:[#allocation13 + $0x450] ss:$12 sps:$4 sm:$0xff]  }
 0x563   :  { %4899 = vmatpush1.bf16.msra.mxu1 %v4813_v59  ;;  %4926 = vmatprep.mubr.bf16.mxu1 %v14245_v0  ;;  %v11652_v59 = vld [vmem:[#allocation13 + $0x46c] ss:$12 sps:$4 sm:$0xff]  }
 0x564   :  { %10924 = vmatprep.subr.bf16.mxu1 %v11602_v40  ;;  %v11683_v40 = vld [vmem:[#allocation14 + $0x130] ss:$8 sps:$4 sm:$0xff]  }
 0x565   :  { %10798 = vmatpush3.bf16.msra.mxu0 %v11597_v61  ;;  %v11691_v61 = vld [vmem:[#allocation14 + $0x144] ss:$8 sps:$4 sm:$0xff]  }
 0x566   :  { %10985 = vmatprep.subr.bf16.mxu0 %v11601_v56 }
 0x568   :  { %3617 = vmatmul.mubr.bf16.vlgmr.msra.gmra.mrb[100].mxu0 %v13414_v22 }
 0x569   :  { %3624 = vmatprep.mubr.bf16.mxu0 %v13437_v35  ;;  %10986 = vmatpush3.bf16.msra.mxu0 %v11601_v56  ;;  %v11650_v56 = vld [vmem:[#allocation13 + $0x468] ss:$12 sps:$4 sm:$0xff]  }
 0x56a   :  { %10182 = vmatmul.mubr.msk.bf16.vlgmr.msra.gmra.mrb[104].mxu1 %vm2752_vm5, %v13403_v44  ;;  %10987 = vmatprep.subr.bf16.mxu0 %v11608_v60 }
 0x56b   :  { %10925 = vmatpush3.bf16.msra.mxu1 %v11603_v1  ;;  %4936 = vmatprep.mubr.bf16.mxu1 %v14245_v0  ;;  %v11689_v1 = vld [vmem:[#allocation14 + $0x140] ss:$8 sps:$4 sm:$0xff]  }
 0x56c   :  { %10926 = vmatprep.subr.bf16.mxu1 %v11604_v2  ;;  %v11697_v2 = vld [vmem:[#allocation14 + $0x154] ss:$8 sps:$4 sm:$0xff]  }
 0x56d   :  { %10988 = vmatpush3.bf16.msra.mxu0 %v11608_v60  ;;  %v11655_v60 = vld [vmem:[#allocation13 + $0x484] ss:$12 sps:$4 sm:$0xff]  }
 0x56e   :  { %11230 = vmatprep.subr.msk.bf16.mxu0 %vm2765_vm4, %v11614_v11  ;;  %v11653_v11 = vld [vmem:[#allocation13 + $0x480] ss:$12 sps:$4 sm:$0xff]  }
 0x56f   :  { %10927 = vmatpush3.bf16.msra.mxu1 %v11605_v3  ;;  %v11658_v3 = vld [vmem:[#allocation13 + $0x49c] ss:$12 sps:$4 sm:$0xff]  }
 0x570   :  { %3625 = vmatmul.mubr.bf16.gmra.mrb[104].mxu0 %v13435_v4  ;;  %10928 = vmatprep.subr.bf16.mxu1 %v11606_v38  ;;  %v11695_v38 = vld [vmem:[#allocation14 + $0x150] ss:$8 sps:$4 sm:$0xff]  }
 0x571   :  { %3632 = vmatprep.mubr.bf16.mxu0 %v13445_v51  ;;  %10990 = vmatpush3.bf16.msra.mxu0 %v3436_v6  ;;  %v11703_v6 = vld [vmem:[#allocation14 + $0x164] ss:$8 sps:$4 sm:$0xff]  }
 0x572   :  { %10183 = vmatmul.mubr.msk.bf16.gmra.mrb[108].mxu1 %vm2752_vm5, %v13405_v5  ;;  %4128 = vmatprep.subr.bf16.mxu0 %v11622_v46  ;;  %v11656_v46 = vld [vmem:[#allocation13 + $0x498] ss:$12 sps:$4 sm:$0xff]  }
 0x573   :  { %10929 = vmatpush3.bf16.msra.mxu1 %v11607_v37  ;;  %4946 = vmatprep.mubr.bf16.mxu1 %v14245_v0  ;;  %v11661_v37 = vld [vmem:[#allocation13 + $0x4b4] ss:$12 sps:$4 sm:$0xff]  }
 0x574   :  { %10930 = vmatprep.subr.bf16.mxu1 %v11609_v7  ;;  %v11701_v7 = vld [vmem:[#allocation14 + $0x160] ss:$8 sps:$4 sm:$0xff]  }
 0x577   :  { %10931 = vmatpush3.bf16.msra.mxu1 %v11610_v42  ;;  %v11709_v42 = vld [vmem:[#allocation14 + $0x174] ss:$8 sps:$4 sm:$0xff]  }
 0x578   :  { %3633 = vmatmul.mubr.bf16.gmra.mrb[108].mxu0 %v13443_v32  ;;  %10932 = vmatprep.subr.bf16.mxu1 %v11611_v8  ;;  %v11659_v8 = vld [vmem:[#allocation13 + $0x4b0] ss:$12 sps:$4 sm:$0xff]  }
 0x579   :  { %3640 = vmatprep.mubr.bf16.mxu0 %v13453_v27 }
 0x57a   :  { %10184 = vmatmul.mubr.msk.bf16.gmra.mrb[112].mxu1 %vm2752_vm5, %v13409_v20 }
 0x57b   :  { %10933 = vmatpush3.bf16.msra.mxu1 %v11612_v9  ;;  %4956 = vmatprep.mubr.bf16.mxu1 %v14245_v0  ;;  %v11664_v9 = vld [vmem:[#allocation13 + $0x4cc] ss:$12 sps:$4 sm:$0xff]  }
 0x57c   :  { %10934 = vmatprep.subr.bf16.mxu1 %v11613_v10  ;;  %v11707_v10 = vld [vmem:[#allocation14 + $0x170] ss:$8 sps:$4 sm:$0xff]  }
 0x57f   :  { %10935 = vmatpush3.bf16.msra.mxu1 %v11615_v62  ;;  %v11715_v62 = vld [vmem:[#allocation14 + $0x184] ss:$8 sps:$4 sm:$0xff]  }
 0x580   :  { %3641 = vmatmul.mubr.bf16.gmra.mrb[112].mxu0 %v13451_v15  ;;  %10936 = vmatprep.subr.bf16.mxu1 %v11616_v14  ;;  %v11662_v14 = vld [vmem:[#allocation13 + $0x4c8] ss:$12 sps:$4 sm:$0xff]  }
 0x581   :  { %10991 = vmatprep.mubr.msk.bf16.mxu0 %vm2752_vm5, %v13403_v44 }
 0x582   :  { %10185 = vmatmul.mubr.msk.bf16.gmra.mrb[116].mxu1 %vm2752_vm5, %v13407_v13 }
 0x583   :  { %10937 = vmatpush3.bf16.msra.mxu1 %v11617_v17  ;;  %5695 = vmatprep.mubr.bf16.mxu1 %v13418_v45  ;;  %v11667_v17 = vld [vmem:[#allocation13 + $0x4e4] ss:$12 sps:$4 sm:$0xff]  }
 0x584   :  { %10938 = vmatprep.subr.bf16.mxu1 %v11618_v18  ;;  %v11713_v18 = vld [vmem:[#allocation14 + $0x180] ss:$8 sps:$4 sm:$0xff]  }
 0x587   :  { %10939 = vmatpush3.bf16.msra.mxu1 %v11619_v21  ;;  %v11721_v21 = vld [vmem:[#allocation14 + $0x194] ss:$8 sps:$4 sm:$0xff]  }
 0x588   :  { %10992 = vmatmul.mubr.msk.bf16.vlgmr.msra.gmra.mrb[116].mxu0 %vm2752_vm5, %v13405_v5  ;;  %11027 = vmatprep.subr.bf16.mxu1 %v11638_v24 }
 0x589   :  { %4129 = vmatpush1.bf16.msra.mxu0 %v11620_v30  ;;  %10995 = vmatprep.mubr.msk.bf16.mxu0 %vm2752_vm5, %v13409_v20  ;;  %v11670_v30 = vld [vmem:[#allocation13 + $0x4fc] ss:$12 sps:$4 sm:$0xff]  }
 0x58a   :  { %5696 = vmatmul.mubr.bf16.vlgmr.msra.gmra.mrb[120].mxu1 %v13414_v22  ;;  %4130 = vmatprep.subr.bf16.mxu0 %v11625_v34  ;;  %v11719_v34 = vld [vmem:[#allocation14 + $0x190] ss:$8 sps:$4 sm:$0xff]  }
 0x58b   :  { %5703 = vmatprep.mubr.bf16.mxu1 %v13437_v35  ;;  %11028 = vmatpush3.bf16.msra.mxu1 %v11638_v24  ;;  %v11665_v24 = vld [vmem:[#allocation13 + $0x4e0] ss:$12 sps:$4 sm:$0xff]  }
 0x58c   :  { %11029 = vmatprep.subr.bf16.mxu1 %v11642_v39 }
 0x58d   :  { %4131 = vmatpush1.bf16.msra.mxu0 %v11623_v26  ;;  %v10752_v29 = vpop.f32.mrb[40].mxu1  ;;  %v11668_v26 = vld [vmem:[#allocation13 + $0x4f8] ss:$12 sps:$4 sm:$0xff]  }
 0x58e   :  { %v10753_v55 = vpop.f32.mrb[41].mxu1  ;;  %4132 = vmatprep.subr.bf16.mxu0 %v11628_v47  ;;  %v11673_v47 = vld [vmem:[#allocation13 + $0x514] ss:$12 sps:$4 sm:$0xff]  }
 0x58f   :  { %v13552_v19 = vadd.f32 %v10753_v55, %v10752_v29  ;;  %v10755_v16 = vpop.f32.mrb[42].mxu1  ;;  %11030 = vmatpush3.bf16.msra.mxu1 %v11642_v39  ;;  %v11727_v39 = vld [vmem:[#allocation14 + $0x1a4] ss:$8 sps:$4 sm:$0xff]   ;;  %v11725_v29 = vld [vmem:[#allocation14 + $0x1a0] ss:$8 sps:$4 sm:$0xff]  }
 0x590   :  { %10996 = vmatmul.mubr.msk.bf16.gmra.mrb[120].mxu0 %vm2752_vm5, %v13407_v13  ;;  %v10756_v28 = vpop.f32.mrb[43].mxu1  ;;  %11233 = vmatprep.subr.msk.bf16.mxu1 %vm2765_vm4, %v11646_v48  ;;  %v11733_v55 = vld [vmem:[#allocation14 + $0x1b4] ss:$8 sps:$4 sm:$0xff]  }
 0x591   :  { %4133 = vmatpush1.bf16.msra.mxu0 %v11626_v63  ;;  %v13558_v52 = vadd.f32 %v10756_v28, %v10755_v16  ;;  %4160 = vmatprep.mubr.bf16.mxu0 %v13418_v45  ;;  %v11671_v28 = vld [vmem:[#allocation13 + $0x510] ss:$12 sps:$4 sm:$0xff]  }
 0x592   :  { %5704 = vmatmul.mubr.bf16.gmra.mrb[124].mxu1 %v13435_v4  ;;  %4134 = vmatprep.subr.bf16.mxu0 %v11631_v23 }
 0x593   :  { %5711 = vmatprep.mubr.bf16.mxu1 %v13445_v51  ;;  %11032 = vmatpush3.bf16.msra.mxu1 %v5515_v25 }
 0x594   :  { %6129 = vmatprep.subr.bf16.mxu1 %v11685_v50  ;;  %v11676_v50 = vld [vmem:[#allocation13 + $0x52c] ss:$12 sps:$4 sm:$0xff]  }
 0x595   :  { %4135 = vmatpush1.bf16.msra.mxu0 %v11629_v33 }
 0x596   :  { %4136 = vmatprep.subr.bf16.mxu0 %v11634_v53  ;;  %v11731_v53 = vld [vmem:[#allocation14 + $0x1b0] ss:$8 sps:$4 sm:$0xff]  }
 0x599   :  { %4137 = vmatpush1.bf16.msra.mxu0 %v11632_v54  ;;  %v11739_v54 = vld [vmem:[#allocation14 + $0x1c4] ss:$8 sps:$4 sm:$0xff]  }
 0x59a   :  { %5712 = vmatmul.mubr.bf16.gmra.mrb[128].mxu1 %v13443_v32  ;;  %4138 = vmatprep.subr.bf16.mxu0 %v11637_v49  ;;  %v11674_v49 = vld [vmem:[#allocation13 + $0x528] ss:$12 sps:$4 sm:$0xff]  }
 0x59b   :  { %5719 = vmatprep.mubr.bf16.mxu1 %v13453_v27 }
 0x59d   :  { %4139 = vmatpush1.bf16.msra.mxu0 %v11635_v31  ;;  %v11677_v31 = vld [vmem:[#allocation13 + $0x544] ss:$12 sps:$4 sm:$0x3f]  }
 0x59e   :  { %4140 = vmatprep.subr.bf16.mxu0 %v11641_v57  ;;  %v11679_v57 = vld [vmem:[#allocation13 + $0x540] ss:$12 sps:$4 sm:$0x3f]  }
 0x5a1   :  { %4141 = vmatpush1.bf16.msra.mxu0 %v11639_v58 }
 0x5a2   :  { %5720 = vmatmul.mubr.bf16.gmra.mrb[132].mxu1 %v13451_v15  ;;  %4142 = vmatprep.subr.bf16.mxu0 %v11645_v43  ;;  %v11737_v43 = vld [vmem:[#allocation14 + $0x1c0] ss:$8 sps:$4 sm:$0xff]  }
 0x5a3   :  { %11033 = vmatprep.mubr.msk.bf16.mxu1 %vm2752_vm5, %v13403_v44 }
 0x5a5   :  { %4143 = vmatpush1.bf16.msra.mxu0 %v11643_v36 }
 0x5a6   :  { %4144 = vmatprep.subr.bf16.mxu0 %v11649_v12  ;;  %v11745_v12 = vld [vmem:[#allocation14 + $0x1d4] ss:$8 sps:$4 sm:$0xff]  }
 0x5a9   :  { %4145 = vmatpush1.bf16.msra.mxu0 %v11647_v41 }
 0x5aa   :  { %11034 = vmatmul.mubr.msk.bf16.vlgmr.msra.gmra.mrb[136].mxu1 %vm2752_vm5, %v13405_v5  ;;  %4146 = vmatprep.subr.bf16.mxu0 %v11652_v59 }
 0x5ab   :  { %11037 = vmatprep.mubr.msk.bf16.mxu1 %vm2752_vm5, %v13409_v20  ;;  %6130 = vmatpush1.bf16.msra.mxu1 %v11683_v40 }
 0x5ac   :  { %6131 = vmatprep.subr.bf16.mxu1 %v11691_v61  ;;  %v4120_v61 = vsel %vm2765_vm4, %v11679_v57, 0 }
 0x5ad   :  { %4147 = vmatpush1.bf16.msra.mxu0 %v11650_v56  ;;  %v11682_v56 = vld [vmem:[#allocation13 + $0x55c] ss:$12 sps:$4 sm:$0xff]  }
 0x5ae   :  { %4148 = vmatprep.subr.bf16.mxu0 %v11655_v60 }
 0x5af   :  { %6132 = vmatpush1.bf16.msra.mxu1 %v11689_v1  ;;  %v11743_v1 = vld [vmem:[#allocation14 + $0x1d0] ss:$8 sps:$4 sm:$0xff]  }
 0x5b0   :  { %6133 = vmatprep.subr.bf16.mxu1 %v11697_v2  ;;  %v11751_v2 = vld [vmem:[#allocation14 + $0x1e4] ss:$8 sps:$4 sm:$0xff]  }
 0x5b1   :  { %4149 = vmatpush1.bf16.msra.mxu0 %v11653_v11 }
 0x5b2   :  { %11038 = vmatmul.mubr.msk.bf16.gmra.mrb[140].mxu1 %vm2752_vm5, %v13407_v13  ;;  %4150 = vmatprep.subr.bf16.mxu0 %v11658_v3  ;;  %v11749_v3 = vld [vmem:[#allocation14 + $0x1e0] ss:$8 sps:$4 sm:$0xff]  }
 0x5b3   :  { %6134 = vmatpush1.bf16.msra.mxu1 %v11695_v38 }
 0x5b4   :  { %6135 = vmatprep.subr.bf16.mxu1 %v11703_v6  ;;  %v11757_v6 = vld [vmem:[#allocation14 + $0x1f4] ss:$8 sps:$4 sm:$0xff]  }
 0x5b5   :  { %4151 = vmatpush1.bf16.msra.mxu0 %v11656_v46 }
 0x5b6   :  { %4152 = vmatprep.subr.bf16.mxu0 %v11661_v37 }
 0x5b7   :  { %6136 = vmatpush1.bf16.msra.mxu1 %v11701_v7 }
 0x5b8   :  { %6137 = vmatprep.subr.bf16.mxu1 %v11709_v42 }
 0x5b9   :  { %4153 = vmatpush1.bf16.msra.mxu0 %v11659_v8  ;;  %v11755_v8 = vld [vmem:[#allocation14 + $0x1f0] ss:$8 sps:$4 sm:$0xff]  }
 0x5ba   :  { %4154 = vmatprep.subr.bf16.mxu0 %v11664_v9  ;;  %v11763_v9 = vld [vmem:[#allocation14 + $0x204] ss:$8 sps:$4 sm:$0xff]  }
 0x5bb   :  { %6138 = vmatpush1.bf16.msra.mxu1 %v11707_v10 }
 0x5bc   :  { %6139 = vmatprep.subr.bf16.mxu1 %v11715_v62 }
 0x5bd   :  { %4155 = vmatpush1.bf16.msra.mxu0 %v11662_v14  ;;  %v11761_v14 = vld [vmem:[#allocation14 + $0x200] ss:$8 sps:$4 sm:$0xff]  }
 0x5be   :  { %4156 = vmatprep.subr.bf16.mxu0 %v11667_v17 }
 0x5bf   :  { %6140 = vmatpush1.bf16.msra.mxu1 %v11713_v18 }
 0x5c0   :  { %6141 = vmatprep.subr.bf16.mxu1 %v11721_v21 }
 0x5c1   :  { %4157 = vmatpush1.bf16.msra.mxu0 %v11665_v24  ;;  %v11769_v24 = vld [vmem:[#allocation14 + $0x214] ss:$8 sps:$4 sm:$0xff]  }
 0x5c2   :  { %4158 = vmatprep.subr.bf16.mxu0 %v11670_v30 }
 0x5c3   :  { %v10758_v48 = vpop.f32.mrb[44].mxu1  ;;  %6142 = vmatpush1.bf16.msra.mxu1 %v11719_v34 }
 0x5c4   :  { %v10759_v63 = vpop.f32.mrb[45].mxu1  ;;  %6143 = vmatprep.subr.bf16.mxu1 %v11727_v39 }
 0x5c5   :  { %4159 = vmatpush1.bf16.msra.mxu0 %v11668_v26  ;;  %v10760_v23 = vadd.f32 %v10759_v63, %v10758_v48  ;;  %v10761_v16 = vpop.f32.mrb[46].mxu1  ;;  %v11767_v63 = vld [vmem:[#allocation14 + $0x210] ss:$8 sps:$4 sm:$0xff]  }
 0x5c6   :  { %v10762_v25 = vpop.f32.mrb[47].mxu1  ;;  %4201 = vmatprep.subr.bf16.mxu0 %v11673_v47 }
 0x5c7   :  { %v10763_v33 = vadd.f32 %v10762_v25, %v10761_v16  ;;  %6144 = vmatpush1.bf16.msra.mxu1 %v11725_v29  ;;  %v11773_v16 = vld [vmem:[#allocation14 + $0x220] ss:$8 sps:$4 sm:$0xff]  }
 0x5c8   :  { %4161 = vmatmul.mubr.bf16.vlgmr.msra.gmra.mrb[124].mxu0 %v13414_v22  ;;  %6145 = vmatprep.subr.bf16.mxu1 %v11733_v55  ;;  %v11775_v55 = vld [vmem:[#allocation14 + $0x224] ss:$8 sps:$4 sm:$0xff]  }
 0x5c9   :  { %4170 = vmatprep.mubr.bf16.mxu0 %v13437_v35  ;;  %4202 = vmatpush1.bf16.msra.mxu0 %v11671_v28 }
 0x5ca   :  { %4203 = vmatprep.subr.bf16.mxu0 %v11676_v50 }
 0x5cb   :  { %v10764_v58 = vpop.f32.mrb[48].mxu1  ;;  %6146 = vmatpush1.bf16.msra.mxu1 %v11731_v53 }
 0x5cc   :  { %v10765_v36 = vpop.f32.mrb[49].mxu1  ;;  %6147 = vmatprep.subr.bf16.mxu1 %v11739_v54 }
 0x5cd   :  { %v13576_v41 = vadd.f32 %v10765_v36, %v10764_v58  ;;  %v10767_v59 = vpop.f32.mrb[50].mxu1  ;;  %4204 = vmatpush1.bf16.msra.mxu0 %v11674_v49  ;;  %v11680_v49 = vld [vmem:[#allocation13 + $0x558] ss:$12 sps:$4 sm:$0xff]  }
 0x5ce   :  { %v10768_v40 = vpop.f32.mrb[51].mxu1  ;;  %10115 = vmatprep.subr.msk.bf16.mxu0 %vm2765_vm4, %v11677_v31 }
 0x5cf   :  { %v13580_v60 = vadd.f32 %v10768_v40, %v10767_v59  ;;  %6148 = vmatpush1.bf16.msra.mxu1 %v11737_v43  ;;  %v11688_v43 = vld [vmem:[#allocation13 + $0x574] ss:$12 sps:$4 sm:$0xff]  }
 0x5d0   :  { %4171 = vmatmul.mubr.bf16.gmra.mrb[128].mxu0 %v13435_v4  ;;  %6149 = vmatprep.subr.bf16.mxu1 %v11745_v12  ;;  %v11686_v12 = vld [vmem:[#allocation13 + $0x570] ss:$12 sps:$4 sm:$0xff]  }
 0x5d1   :  { %4180 = vmatprep.mubr.bf16.mxu0 %v13445_v51  ;;  %4206 = vmatpush1.bf16.msra.mxu0 %v4120_v61 }
 0x5d2   :  { %4821 = vmatprep.subr.bf16.mxu0 %v11682_v56 }
 0x5d3   :  { %v10770_v11 = vpop.f32.mrb[52].mxu1  ;;  %6150 = vmatpush1.bf16.msra.mxu1 %v11743_v1 }
 0x5d4   :  { %v10771_v38 = vpop.f32.mrb[53].mxu1  ;;  %6151 = vmatprep.subr.bf16.mxu1 %v11751_v2  ;;  %v11692_v2 = vld [vmem:[#allocation13 + $0x588] ss:$12 sps:$4 sm:$0xff]  }
 0x5d5   :  { %v10772_v46 = vadd.f32 %v10771_v38, %v10770_v11  ;;  %v10773_v37 = vpop.f32.mrb[54].mxu1  ;;  %v11700_v38 = vld [vmem:[#allocation13 + $0x5a4] ss:$12 sps:$4 sm:$0xff]  }
 0x5d6   :  { %v10774_v7 = vpop.f32.mrb[55].mxu1 }
 0x5d7   :  { %v10775_v42 = vadd.f32 %v10774_v7, %v10773_v37  ;;  %6152 = vmatpush1.bf16.msra.mxu1 %v11749_v3 }
 0x5d8   :  { %4181 = vmatmul.mubr.bf16.gmra.mrb[132].mxu0 %v13443_v32  ;;  %6153 = vmatprep.subr.bf16.mxu1 %v11757_v6  ;;  %v11698_v6 = vld [vmem:[#allocation13 + $0x5a0] ss:$12 sps:$4 sm:$0xff]  }
 0x5d9   :  { %4190 = vmatprep.mubr.bf16.mxu0 %v13453_v27 }
 0x5db   :  { %v13586_v10 = vpop.f32.mrb[68].mxu0  ;;  %v10979_v62 = vpop.f32.mrb[56].mxu1  ;;  %6154 = vmatpush1.bf16.msra.mxu1 %v11755_v8 }
 0x5dc   :  { %v13588_v17 = vadd.f32 %v10979_v62, %v10760_v23  ;;  %v13590_v18 = vpop.f32.mrb[69].mxu0  ;;  %v3020_v21 = vpop.f32.mrb[57].mxu1  ;;  %6155 = vmatprep.subr.bf16.mxu1 %v11763_v9 }
 0x5dd   :  { %v13593_v30 = vadd.f32 %v13552_v19, %v3020_v21  ;;  %v13595_v34 = vpop.f32.mrb[70].mxu0  ;;  %v10980_v39 = vpop.f32.mrb[58].mxu1 }
 0x5de   :  { %14260 = vst [vmem:[#allocation27_spill] sm:$0xff] %v13588_v17  ;;  %v13597_v26 = vadd.f32 %v10980_v39, %v10763_v33  ;;  %v13599_v47 = vpop.f32.mrb[71].mxu0  ;;  %v3023_v48 = vpop.f32.mrb[59].mxu1  ;;  %v11712_v39 = vld [vmem:[#allocation13 + $0x5d4] ss:$12 sps:$4 sm:$0xff]  }
 0x5df   :  { %v13602_v29 = vadd.f32 %v13558_v52, %v3023_v48  ;;  %6156 = vmatpush1.bf16.msra.mxu1 %v11761_v14  ;;  %v11796_v52 = vld [vmem:[#allocation14 + $0x234] ss:$8 sps:$4 sm:$0xff]  }
 0x5e0   :  { %4191 = vmatmul.mubr.bf16.gmra.mrb[136].mxu0 %v13451_v15  ;;  %6157 = vmatprep.subr.bf16.mxu1 %v11769_v24  ;;  %v11704_v14 = vld [vmem:[#allocation13 + $0x5b8] ss:$12 sps:$4 sm:$0xff]   ;;  %v11710_v48 = vld [vmem:[#allocation13 + $0x5d0] ss:$12 sps:$4 sm:$0xff]  }
 0x5e1   :  { %4233 = vmatprep.mubr.bf16.mxu0 %v14245_v0 }
 0x5e3   :  { %v13606_v19 = vpop.f32.mrb[72].mxu0  ;;  %v10983_v23 = vpop.f32.mrb[60].mxu1  ;;  %6158 = vmatpush1.bf16.msra.mxu1 %v11767_v63  ;;  %v11718_v63 = vld [vmem:[#allocation13 + $0x5ec] ss:$12 sps:$4 sm:$0xff]  }
 0x5e4   :  { %v13608_v28 = vadd.f32 %v10983_v23, %v10772_v46  ;;  %v13610_v25 = vpop.f32.mrb[73].mxu0  ;;  %v3036_v50 = vpop.f32.mrb[61].mxu1  ;;  %6159 = vmatprep.subr.bf16.mxu1 %v11775_v55  ;;  %v11706_v46 = vld [vmem:[#allocation13 + $0x5bc] ss:$12 sps:$4 sm:$0xff]  }
 0x5e5   :  { %v13613_v33 = vadd.f32 %v13576_v41, %v3036_v50  ;;  %v13615_v53 = vpop.f32.mrb[74].mxu0  ;;  %v10984_v54 = vpop.f32.mrb[62].mxu1  ;;  %v11694_v41 = vld [vmem:[#allocation13 + $0x58c] ss:$12 sps:$4 sm:$0xff]   ;;  %v11716_v50 = vld [vmem:[#allocation13 + $0x5e8] ss:$12 sps:$4 sm:$0xff]  }
 0x5e6   :  { %14261 = vst [vmem:[#allocation28_spill] sm:$0xff] %v13608_v28  ;;  %v13617_v31 = vadd.f32 %v10984_v54, %v10775_v42  ;;  %v13619_v57 = vpop.f32.mrb[75].mxu0  ;;  %v3039_v58 = vpop.f32.mrb[63].mxu1  ;;  %v11724_v54 = vld [vmem:[#allocation13 + $0x604] ss:$12 sps:$4 sm:$0xff]  }
 0x5e7   :  { %v13622_v36 = vadd.f32 %v13580_v60, %v3039_v58  ;;  %6160 = vmatpush1.bf16.msra.mxu1 %v11773_v16  ;;  %v11730_v58 = vld [vmem:[#allocation13 + $0x61c] ss:$12 sps:$4 sm:$0xff]   ;;  %v11752_v28 = vld [vmem:[#allocation13 + $0x678] ss:$12 sps:$4 sm:$0xff]  }
 0x5e8   :  { %14262 = vst [vmem:[#allocation29_spill] sm:$0xff] %v13617_v31  ;;  %10116 = vmatmul.mubr.msk.bf16.vlgmr.msra.gmra.mrb[124].mxu0 %vm2752_vm5, %v13403_v44  ;;  %6170 = vmatprep.subr.bf16.mxu1 %v11796_v52 }
 0x5e9   :  { %14263 = vst [vmem:[#allocation30_spill] sm:$0xff] %v13622_v36  ;;  %4822 = vmatpush1.bf16.msra.mxu0 %v11680_v49  ;;  %4243 = vmatprep.mubr.bf16.mxu0 %v14245_v0  ;;  %v11722_v49 = vld [vmem:[#allocation13 + $0x600] ss:$12 sps:$4 sm:$0xff]  }
 0x5ea   :  { %4823 = vmatprep.subr.bf16.mxu0 %v11688_v43 }
 0x5eb   :  { %v13627_v59 = vpop.f32.mrb[76].mxu0  ;;  %v13629_v40 = vpop.f32.mrb[64].mxu1 }
 0x5ec   :  { %v13631_v61 = vpop.f32.mrb[77].mxu0  ;;  %v13633_v56 = vpop.f32.mrb[65].mxu1 }
 0x5ed   :  { %4824 = vmatpush1.bf16.msra.mxu0 %v11686_v12  ;;  %v13635_v60 = vpop.f32.mrb[78].mxu0  ;;  %v13637_v1 = vpop.f32.mrb[66].mxu1 }
 0x5ee   :  { %4825 = vmatprep.subr.bf16.mxu0 %v11694_v41  ;;  %v13639_v11 = vpop.f32.mrb[79].mxu0  ;;  %v13641_v3 = vpop.f32.mrb[67].mxu1 }
 0x5f0   :  { %10117 = vmatmul.mubr.msk.bf16.gmra.mrb[128].mxu0 %vm2752_vm5, %v13405_v5 }
 0x5f1   :  { %4826 = vmatpush1.bf16.msra.mxu0 %v11692_v2  ;;  %4253 = vmatprep.mubr.bf16.mxu0 %v14245_v0  ;;  %v11728_v2 = vld [vmem:[#allocation13 + $0x618] ss:$12 sps:$4 sm:$0xff]  }
 0x5f2   :  { %4827 = vmatprep.subr.bf16.mxu0 %v11700_v38 }
 0x5f3   :  { %v13646_v37 = vpop.f32.mrb[80].mxu0  ;;  %v13648_v7 = vpop.f32.mrb[68].mxu1 }
 0x5f4   :  { %v13650_v42 = vpop.f32.mrb[81].mxu0  ;;  %v13652_v8 = vpop.f32.mrb[69].mxu1 }
 0x5f5   :  { %4828 = vmatpush1.bf16.msra.mxu0 %v11698_v6  ;;  %v13654_v9 = vpop.f32.mrb[82].mxu0  ;;  %v13656_v62 = vpop.f32.mrb[70].mxu1  ;;  %v11736_v6 = vld [vmem:[#allocation13 + $0x634] ss:$12 sps:$4 sm:$0xff]  }
 0x5f6   :  { %4829 = vmatprep.subr.bf16.mxu0 %v11706_v46  ;;  %v13658_v21 = vpop.f32.mrb[83].mxu0  ;;  %v13660_v24 = vpop.f32.mrb[71].mxu1  ;;  %v11734_v46 = vld [vmem:[#allocation13 + $0x630] ss:$12 sps:$4 sm:$0xff]  }
 0x5f8   :  { %10118 = vmatmul.mubr.msk.bf16.gmra.mrb[132].mxu0 %vm2752_vm5, %v13409_v20  ;;  %v11754_v20 = vld [vmem:[#allocation13 + $0x67c] ss:$12 sps:$4 sm:$0xff]  }
 0x5f9   :  { %4830 = vmatpush1.bf16.msra.mxu0 %v11704_v14  ;;  %4263 = vmatprep.mubr.bf16.mxu0 %v14245_v0  ;;  %v11742_v14 = vld [vmem:[#allocation13 + $0x64c] ss:$12 sps:$4 sm:$0xff]  }
 0x5fa   :  { %4831 = vmatprep.subr.bf16.mxu0 %v11712_v39 }
 0x5fb   :  { %v13665_v55 = vpop.f32.mrb[72].mxu1 }
 0x5fc   :  { %v13667_v23 = vpop.f32.mrb[73].mxu1 }
 0x5fd   :  { %4832 = vmatpush1.bf16.msra.mxu0 %v11710_v48  ;;  %v13669_v16 = vpop.f32.mrb[74].mxu1 }
 0x5fe   :  { %4833 = vmatprep.subr.bf16.mxu0 %v11718_v63  ;;  %v13671_v52 = vpop.f32.mrb[75].mxu1  ;;  %v11740_v63 = vld [vmem:[#allocation13 + $0x648] ss:$12 sps:$4 sm:$0xff]  }
 0x600   :  { %10119 = vmatmul.mubr.msk.bf16.gmra.mrb[136].mxu0 %vm2752_vm5, %v13407_v13 }
 0x601   :  { %4834 = vmatpush1.bf16.msra.mxu0 %v11716_v50  ;;  %4853 = vmatprep.mubr.bf16.mxu0 %v13418_v45 }
 0x602   :  { %4835 = vmatprep.subr.bf16.mxu0 %v11724_v54 }
 0x603   :  { %v13676_v43 = vpop.f32.mrb[76].mxu1 }
 0x604   :  { %v13678_v12 = vpop.f32.mrb[77].mxu1 }
 0x605   :  { %4836 = vmatpush1.bf16.msra.mxu0 %v11722_v49  ;;  %v13680_v41 = vpop.f32.mrb[78].mxu1  ;;  %v11748_v49 = vld [vmem:[#allocation13 + $0x664] ss:$12 sps:$4 sm:$0xff]  }
 0x606   :  { %4837 = vmatprep.subr.bf16.mxu0 %v11730_v58  ;;  %v13682_v38 = vpop.f32.mrb[79].mxu1  ;;  %v11746_v58 = vld [vmem:[#allocation13 + $0x660] ss:$12 sps:$4 sm:$0xff]  }
 0x609   :  { %4838 = vmatpush1.bf16.msra.mxu0 %v11728_v2 }
 0x60a   :  { %4839 = vmatprep.subr.bf16.mxu0 %v11736_v6 }
 0x60c   :  { %v10846_v39 = vpop.f32.mrb[80].mxu1 }
 0x60d   :  { %4840 = vmatpush1.bf16.msra.mxu0 %v11734_v46  ;;  %v10847_v48 = vpop.f32.mrb[81].mxu1 }
 0x60e   :  { %v13684_v50 = vadd.f32 %v10847_v48, %v10846_v39  ;;  %v10849_v54 = vpop.f32.mrb[82].mxu1  ;;  %4841 = vmatprep.subr.bf16.mxu0 %v11742_v14  ;;  %v11760_v39 = vld [vmem:[#allocation13 + $0x694] ss:$12 sps:$4 sm:$0xff]   ;;  %v11758_v14 = vld [vmem:[#allocation13 + $0x690] ss:$12 sps:$4 sm:$0xff]  }
 0x60f   :  { %v10850_v0 = vpop.f32.mrb[83].mxu1 }
 0x610   :  { %v13686_v13 = vadd.f32 %v10850_v0, %v10849_v54  ;;  %v11766_v0 = vld [vmem:[#allocation13 + $0x6ac] ss:$12 sps:$4 sm:$0xff]  }
 0x611   :  { %4842 = vmatpush1.bf16.msra.mxu0 %v11740_v63 }
 0x612   :  { %4843 = vmatprep.subr.bf16.mxu0 %v11748_v49 }
 0x614   :  { %v10852_v2 = vpop.f32.mrb[84].mxu1 }
 0x615   :  { %4844 = vmatpush1.bf16.msra.mxu0 %v11746_v58  ;;  %v10853_v6 = vpop.f32.mrb[85].mxu1 }
 0x616   :  { %v13688_v5 = vadd.f32 %v10853_v6, %v10852_v2  ;;  %v10855_v46 = vpop.f32.mrb[86].mxu1  ;;  %4845 = vmatprep.subr.bf16.mxu0 %v11754_v20  ;;  %v11764_v6 = vld [vmem:[#allocation13 + $0x6a8] ss:$12 sps:$4 sm:$0xff]  }
 0x617   :  { %v10856_v48 = vpop.f32.mrb[87].mxu1 }
 0x618   :  { %v13690_v36 = vadd.f32 %v10856_v48, %v10855_v46 }
 0x619   :  { %4846 = vmatpush1.bf16.msra.mxu0 %v11752_v28  ;;  %v11772_v28 = vld [vmem:[#allocation13 + $0x6c4] ss:$12 sps:$4 sm:$0xff]  }
 0x61a   :  { %4847 = vmatprep.subr.bf16.mxu0 %v11760_v39 }
 0x61b   :  { %v3472_v63 = vpop.f32.mrb[84].mxu0 }
 0x61c   :  { %v3546_v54 = vadd.f32 %v13629_v40, %v3472_v63  ;;  %v3474_v49 = vpop.f32.mrb[85].mxu0 }
 0x61d   :  { %4848 = vmatpush1.bf16.msra.mxu0 %v11758_v14  ;;  %v3548_v58 = vadd.f32 %v13633_v56, %v3474_v49  ;;  %v10858_v31 = vpop.f32.mrb[88].mxu1  ;;  %v3476_v2 = vpop.f32.mrb[86].mxu0 }
 0x61e   :  { %v3717_v20 = vadd.f32 %v3546_v54, %v13595_v34  ;;  %v3550_v44 = vadd.f32 %v13637_v1, %v3476_v2  ;;  %v10859_v46 = vpop.f32.mrb[89].mxu1  ;;  %v3478_v48 = vpop.f32.mrb[87].mxu0  ;;  %4849 = vmatprep.subr.bf16.mxu0 %v11766_v0  ;;  %v11770_v0 = vld [vmem:[#allocation13 + $0x6c0] ss:$12 sps:$4 sm:$0xff]  }
 0x61f   :  { %v3718_v39 = vadd.f32 %v3548_v58, %v13599_v47  ;;  %v13697_v17 = vadd.f32 %v10859_v46, %v10858_v31  ;;  %v3552_v40 = vadd.f32 %v13641_v3, %v3478_v48  ;;  %v10861_v14 = vpop.f32.mrb[90].mxu1  ;;  %v11776_v31 = vld [vmem:[#allocation13 + $0x620] ss:$12 sps:$4 sm:$0xff]  }
 0x620   :  { %v13701_v56 = vpack.c.bf16 %v3717_v20, %v13586_v10  ;;  %v10862_v63 = vpop.f32.mrb[91].mxu1  ;;  %v13704_v49 = vadd.f32 %v3550_v44, %v13606_v19  ;;  %v11794_v54 = vld [vmem:[#allocation14 + $0x230] ss:$8 sps:$4 sm:$0xff]  }
 0x621   :  { %v13707_v34 = vpack.c.bf16 %v3718_v39, %v13590_v18  ;;  %v13709_v1 = vadd.f32 %v10862_v63, %v10861_v14  ;;  %4850 = vmatpush1.bf16.msra.mxu0 %v11764_v6  ;;  %v13712_v47 = vadd.f32 %v3552_v40, %v13610_v25  ;;  %v11800_v18 = vld [vmem:[#allocation14 + $0x244] ss:$8 sps:$4 sm:$0xff]   ;;  %v11778_v39 = vld [vmem:[#allocation13 + $0x638] ss:$12 sps:$4 sm:$0xff]  }
 0x622   :  { %14264 = vst [vmem:[#allocation31_spill] sm:$0xff] %v13701_v56  ;;  %4851 = vmatprep.subr.bf16.mxu0 %v11772_v28  ;;  %v5927_v58 = vrot.slane %v13701_v56, 4  ;;  %v11777_v25 = vld [vmem:[#allocation13 + $0x560] ss:$12 sps:$4 sm:$0xff]  }
 0x623   :  { %v3482_v3 = vpop.f32.mrb[88].mxu0  ;;  %v5928_v10 = vrot.slane %v13707_v34, 4 }
 0x624   :  { %v3556_v44 = vadd.f32 %v13648_v7, %v3482_v3  ;;  %v3484_v19 = vpop.f32.mrb[89].mxu0  ;;  %v14265_v3 = vmov 0  }
 0x625   :  { %4852 = vmatpush1.bf16.msra.mxu0 %v11770_v0  ;;  %v3558_v2 = vadd.f32 %v13652_v8, %v3484_v19  ;;  %v10864_v6 = vpop.f32.mrb[92].mxu1  ;;  %v3486_v20 = vpop.f32.mrb[90].mxu0  ;;  %6161 = vmatprep.mubr.bf16.mxu1 %v5928_v10  ;;  %v11798_v8 = vld [vmem:[#allocation14 + $0x240] ss:$8 sps:$4 sm:$0xff]  }
 0x626   :  { %v3560_v46 = vadd.f32 %v13656_v62, %v3486_v20  ;;  %v10865_v48 = vpop.f32.mrb[93].mxu1  ;;  %v3488_v28 = vpop.f32.mrb[91].mxu0  ;;  %10877 = vmatprep.subr.bf16.mxu0 %v11776_v31  ;;  %6162 = vmatmul.mubr.bf16.vlgmr.msra.gmra.mrb[144].mxu1 %v5927_v58  ;;  %v13720_v40 = vadd.f32 %v3556_v44, %v13615_v53  ;;  %v11801_v0 = vld [vmem:[#allocation14 + $0x254] ss:$8 sps:$4 sm:$0x3f]  }
 0x627   :  { %v13722_v7 = vadd.f32 %v10865_v48, %v10864_v6  ;;  %v3562_v14 = vadd.f32 %v13660_v24, %v3488_v28  ;;  %v10867_v63 = vpop.f32.mrb[94].mxu1  ;;  %6171 = vmatpush1.bf16.msra.mxu1 %v11794_v54  ;;  %6202 = vmatprep.mubr.bf16.mxu1 %v14265_v3  ;;  %v13727_v62 = vadd.f32 %v3558_v2, %v13619_v57  ;;  %v11803_v10 = vld [vmem:[#allocation14 + $0x250] ss:$8 sps:$4 sm:$0x3f]   ;;  %v11780_v44 = vld [vmem:[#allocation13 + $0x650] ss:$12 sps:$4 sm:$0xff]  }
 0x628   :  { %4854 = vmatmul.mubr.bf16.vlgmr.msra.gmra.mrb[140].mxu0 %v13414_v22  ;;  %v10868_v31 = vpop.f32.mrb[95].mxu1  ;;  %6172 = vmatprep.subr.bf16.mxu1 %v11800_v18  ;;  %v13731_v53 = vadd.f32 %v3560_v46, %v13627_v59  ;;  %v11779_v24 = vld [vmem:[#allocation13 + $0x578] ss:$12 sps:$4 sm:$0xff]   ;;  %v6124_v59 = vsel %vm2765_vm4, %v11803_v10, 0  ;;  %v11806_v18 = vld [vmem:[#allocation14 + $0x104] ss:$8 sps:$4 sm:$0xff]  }
 0x629   :  { %v10869_v58 = vadd.f32 %v10868_v31, %v10867_v63  ;;  %4863 = vmatprep.mubr.bf16.mxu0 %v13437_v35  ;;  %10878 = vmatpush3.bf16.msra.mxu0 %v11777_v25  ;;  %v13735_v54 = vadd.f32 %v3562_v14, %v13631_v61  ;;  %v11781_v46 = vld [vmem:[#allocation13 + $0x590] ss:$12 sps:$4 sm:$0xff]  }
 0x62a   :  { %10879 = vmatprep.subr.bf16.mxu0 %v11778_v39 }
 0x62b   :  { %v3492_v57 = vpop.f32.mrb[92].mxu0  ;;  %6173 = vmatpush1.bf16.msra.mxu1 %v11798_v8 }
 0x62c   :  { %v3566_v19 = vadd.f32 %v13665_v55, %v3492_v57  ;;  %v3494_v2 = vpop.f32.mrb[93].mxu0  ;;  %10294 = vmatprep.subr.msk.bf16.mxu1 %vm2765_vm4, %v11801_v0  ;;  %v11782_v55 = vld [vmem:[#allocation13 + $0x668] ss:$12 sps:$4 sm:$0xff]  }
 0x62d   :  { %10880 = vmatpush3.bf16.msra.mxu0 %v11779_v24  ;;  %v3568_v6 = vadd.f32 %v13667_v23, %v3494_v2  ;;  %v11007_v20 = vpop.f32.mrb[96].mxu1  ;;  %v3496_v25 = vpop.f32.mrb[94].mxu0 }
 0x62e   :  { %v13742_v61 = vadd.f32 %v11007_v20, %v13688_v5  ;;  %v3570_v48 = vadd.f32 %v13669_v16, %v3496_v25  ;;  %v4373_v28 = vpop.f32.mrb[97].mxu1  ;;  %v3498_v39 = vpop.f32.mrb[95].mxu0  ;;  %10881 = vmatprep.subr.bf16.mxu0 %v11780_v44  ;;  %v13746_v14 = vadd.f32 %v3566_v19, %v13635_v60 }
 0x62f   :  { %v13749_v63 = vadd.f32 %v13684_v50, %v4373_v28  ;;  %v3572_v23 = vadd.f32 %v13671_v52, %v3498_v39  ;;  %v11008_v8 = vpop.f32.mrb[98].mxu1  ;;  %6175 = vmatpush1.bf16.msra.mxu1 %v6124_v59  ;;  %v13753_v0 = vadd.f32 %v3568_v6, %v13639_v11  ;;  %v11783_v52 = vld [vmem:[#allocation13 + $0x5a8] ss:$12 sps:$4 sm:$0xff]   ;;  %v11789_v39 = vld [vmem:[#allocation13 + $0x5f0] ss:$12 sps:$4 sm:$0xff]  }
 0x630   :  { %v13756_v5 = vadd.f32 %v11008_v8, %v13690_v36  ;;  %4864 = vmatmul.mubr.bf16.gmra.mrb[144].mxu0 %v13435_v4  ;;  %v4376_v16 = vpop.f32.mrb[99].mxu1  ;;  %6449 = vmatprep.subr.bf16.mxu1 %v11806_v18  ;;  %v13760_v60 = vadd.f32 %v3570_v48, %v13646_v37  ;;  %v11784_v36 = vld [vmem:[#allocation13 + $0x680] ss:$12 sps:$4 sm:$0xff]   ;;  %v11786_v18 = vld [vmem:[#allocation13 + $0x698] ss:$12 sps:$4 sm:$0xff]  }
 0x631   :  { %v13763_v50 = vadd.f32 %v13686_v13, %v4376_v16  ;;  %4873 = vmatprep.mubr.bf16.mxu0 %v13445_v51  ;;  %10882 = vmatpush3.bf16.msra.mxu0 %v11781_v46  ;;  %v13767_v11 = vadd.f32 %v3572_v23, %v13650_v42  ;;  %v11785_v13 = vld [vmem:[#allocation13 + $0x5c0] ss:$12 sps:$4 sm:$0xff]  }
 0x632   :  { %10883 = vmatprep.subr.bf16.mxu0 %v11782_v55 }
 0x633   :  { %v3502_v31 = vpop.f32.mrb[96].mxu0 }
 0x634   :  { %v3576_v10 = vadd.f32 %v13676_v43, %v3502_v31  ;;  %v3504_v24 = vpop.f32.mrb[97].mxu0  ;;  %v11792_v31 = vld [vmem:[#allocation13 + $0x6e0] ss:$12 sps:$4 sm:$0xff]  }
 0x635   :  { %10884 = vmatpush3.bf16.msra.mxu0 %v11783_v52  ;;  %v3578_v37 = vadd.f32 %v13678_v12, %v3504_v24  ;;  %v11011_v44 = vpop.f32.mrb[100].mxu1  ;;  %v3506_v57 = vpop.f32.mrb[98].mxu0 }
 0x636   :  { %v13772_v19 = vadd.f32 %v11011_v44, %v13722_v7  ;;  %v13775_v2 = vadd.f32 %v13680_v41, %v3506_v57  ;;  %v4389_v42 = vpop.f32.mrb[101].mxu1  ;;  %v3508_v59 = vpop.f32.mrb[99].mxu0  ;;  %10885 = vmatprep.subr.bf16.mxu0 %v11784_v36  ;;  %v13778_v6 = vadd.f32 %v3576_v10, %v13654_v9  ;;  %v11788_v9 = vld [vmem:[#allocation13 + $0x6b0] ss:$12 sps:$4 sm:$0xff]   ;;  %v11791_v36 = vld [vmem:[#allocation13 + $0x608] ss:$12 sps:$4 sm:$0xff]  }
 0x637   :  { %v13781_v43 = vadd.f32 %v13697_v17, %v4389_v42  ;;  %v13784_v12 = vadd.f32 %v13682_v38, %v3508_v59  ;;  %v11012_v20 = vpop.f32.mrb[102].mxu1  ;;  %v13787_v7 = vadd.f32 %v3578_v37, %v13658_v21  ;;  %v11787_v17 = vld [vmem:[#allocation13 + $0x5d8] ss:$12 sps:$4 sm:$0xff]  }
 0x638   :  { %v13789_v25 = vadd.f32 %v11012_v20, %v10869_v58  ;;  %4874 = vmatmul.mubr.bf16.gmra.mrb[148].mxu0 %v13443_v32  ;;  %v4392_v41 = vpop.f32.mrb[103].mxu1  ;;  %v11793_v59 = vld [vmem:[#allocation13 + $0x6f8] ss:$12 sps:$4 sm:$0xff]  }
 0x639   :  { %v13793_v46 = vadd.f32 %v13709_v1, %v4392_v41  ;;  %4883 = vmatprep.mubr.bf16.mxu0 %v13453_v27  ;;  %10886 = vmatpush3.bf16.msra.mxu0 %v11785_v13  ;;  %v11790_v1 = vld [vmem:[#allocation13 + $0x6c8] ss:$12 sps:$4 sm:$0xff]  }
 0x63a   :  { %14266 = vst [vmem:[#allocation32_spill] sm:$0xff] %v13789_v25  ;;  %10887 = vmatprep.subr.bf16.mxu0 %v11786_v18 }
 0x63b   :  { %v10799_v38 = vpop.f32.mrb[100].mxu0 }
 0x63c   :  { %v10800_v48 = vpop.f32.mrb[101].mxu0 }
 0x63d   :  { %10888 = vmatpush3.bf16.msra.mxu0 %v11787_v17  ;;  %v13796_v28 = vadd.f32 %v10800_v48, %v10799_v38  ;;  %v13798_v21 = vpop.f32.mrb[104].mxu1  ;;  %v10802_v58 = vpop.f32.mrb[102].mxu0  ;;  %v11797_v17 = vld [vmem:[#allocation13 + $0x710] ss:$12 sps:$4 sm:$0x3f]  }
 0x63e   :  { %v13800_v55 = vpop.f32.mrb[105].mxu1  ;;  %v10803_v23 = vpop.f32.mrb[103].mxu0  ;;  %10889 = vmatprep.subr.bf16.mxu0 %v11788_v9 }
 0x63f   :  { %v13802_v8 = vadd.f32 %v10803_v23, %v10802_v58  ;;  %v13804_v16 = vpop.f32.mrb[106].mxu1 }
 0x640   :  { %4884 = vmatmul.mubr.bf16.gmra.mrb[152].mxu0 %v13451_v15  ;;  %v13807_v52 = vpop.f32.mrb[107].mxu1 }
 0x641   :  { %10890 = vmatpush3.bf16.msra.mxu0 %v11789_v39  ;;  %4999 = vmatprep.mubr.bf16.mxu0 %v13418_v45 }
 0x642   :  { %10891 = vmatprep.subr.bf16.mxu0 %v11790_v1 }
 0x643   :  { %v10805_v10 = vpop.f32.mrb[104].mxu0 }
 0x644   :  { %v10806_v24 = vpop.f32.mrb[105].mxu0 }
 0x645   :  { %10892 = vmatpush3.bf16.msra.mxu0 %v11791_v36  ;;  %v10807_v37 = vadd.f32 %v10806_v24, %v10805_v10  ;;  %v13810_v44 = vpop.f32.mrb[108].mxu1  ;;  %v10808_v57 = vpop.f32.mrb[106].mxu0  ;;  %v4819_v36 = vsel %vm2765_vm4, %v11797_v17, 0  ;;  %v11809_v10 = vld [vmem:[#allocation13 + $0x724] ss:$12 sps:$4 sm:$0xff]  }
 0x646   :  { %v13812_v13 = vpop.f32.mrb[109].mxu1  ;;  %v10809_v42 = vpop.f32.mrb[107].mxu0  ;;  %11013 = vmatprep.subr.bf16.mxu0 %v11792_v31 }
 0x647   :  { %v10810_v18 = vadd.f32 %v10809_v42, %v10808_v57  ;;  %v13814_v20 = vpop.f32.mrb[110].mxu1 }
 0x648   :  { %14267 = vst [vmem:[#allocation33_spill] sm:$0xff] %v13814_v20  ;;  %5000 = vmatmul.mubr.bf16.vlgmr.msra.gmra.mrb[156].mxu0 %v13414_v22  ;;  %v13817_v41 = vpop.f32.mrb[111].mxu1 }
 0x649   :  { %14268 = vst [vmem:[#allocation34_spill] sm:$0xff] %v13817_v41  ;;  %5007 = vmatprep.mubr.bf16.mxu0 %v13437_v35  ;;  %11014 = vmatpush3.bf16.msra.mxu0 %v11792_v31 }
 0x64a   :  { %11015 = vmatprep.subr.bf16.mxu0 %v11793_v59 }
 0x64b   :  { %v10811_v9 = vpop.f32.mrb[108].mxu0 }
 0x64c   :  { %v10812_v38 = vpop.f32.mrb[109].mxu0 }
 0x64d   :  { %v10813_v48 = vadd.f32 %v10812_v38, %v10811_v9  ;;  %v13820_v58 = vpop.f32.mrb[112].mxu1  ;;  %v10814_v39 = vpop.f32.mrb[110].mxu0  ;;  %11016 = vmatpush3.bf16.msra.mxu0 %v11793_v59 }
 0x64e   :  { %14269 = vst [vmem:[#allocation35_spill] sm:$0xff] %v13820_v58  ;;  %v13822_v23 = vpop.f32.mrb[113].mxu1  ;;  %v10815_v1 = vpop.f32.mrb[111].mxu0  ;;  %11232 = vmatprep.subr.msk.bf16.mxu0 %vm2765_vm4, %v11797_v17 }
 0x64f   :  { %14270 = vst [vmem:[#allocation36_spill] sm:$0xff] %v13822_v23  ;;  %v13826_v24 = vadd.f32 %v10815_v1, %v10814_v39  ;;  %v13828_v31 = vpop.f32.mrb[114].mxu1 }
 0x650   :  { %14271 = vst [vmem:[#allocation37_spill] sm:$0xff] %v13828_v31  ;;  %5008 = vmatmul.mubr.bf16.gmra.mrb[160].mxu0 %v13435_v4  ;;  %v13831_v57 = vpop.f32.mrb[115].mxu1 }
 0x651   :  { %14272 = vst [vmem:[#allocation38_spill] sm:$0xff] %v13831_v57  ;;  %5015 = vmatprep.mubr.bf16.mxu0 %v13445_v51  ;;  %11018 = vmatpush3.bf16.msra.mxu0 %v4819_v36 }
 0x652   :  { %5517 = vmatprep.subr.bf16.mxu0 %v11809_v10 }
 0x653   :  { %v10817_v42 = vpop.f32.mrb[112].mxu0 }
 0x654   :  { %v10818_v59 = vpop.f32.mrb[113].mxu0 }
 0x655   :  { %v10819_v9 = vadd.f32 %v10818_v59, %v10817_v42  ;;  %v13834_v38 = vpop.f32.mrb[116].mxu1  ;;  %v10820_v25 = vpop.f32.mrb[114].mxu0 }
 0x656   :  { %14273 = vst [vmem:[#allocation39_spill] sm:$0xff] %v13834_v38  ;;  %v13836_v17 = vpop.f32.mrb[117].mxu1  ;;  %v10821_v39 = vpop.f32.mrb[115].mxu0 }
 0x657   :  { %14274 = vst [vmem:[#allocation40_spill] sm:$0xff] %v13836_v17  ;;  %v10822_v1 = vadd.f32 %v10821_v39, %v10820_v25  ;;  %v13838_v23 = vpop.f32.mrb[118].mxu1 }
 0x658   :  { %14275 = vst [vmem:[#allocation41_spill] sm:$0xff] %v13838_v23  ;;  %5016 = vmatmul.mubr.bf16.gmra.mrb[164].mxu0 %v13443_v32  ;;  %v13841_v31 = vpop.f32.mrb[119].mxu1 }
 0x659   :  { %14276 = vst [vmem:[#allocation42_spill] sm:$0xff] %v13841_v31  ;;  %5023 = vmatprep.mubr.bf16.mxu0 %v13453_v27 }
 0x65b   :  { %v10993_v36 = vpop.f32.mrb[116].mxu0 }
 0x65c   :  { %v3692_v10 = vadd.f32 %v10993_v36, %v10807_v37  ;;  %v3683_v57 = vpop.f32.mrb[117].mxu0 }
 0x65d   :  { %v3684_v42 = vadd.f32 %v13796_v28, %v3683_v57  ;;  %v10940_v59 = vpop.f32.mrb[120].mxu1  ;;  %v10994_v38 = vpop.f32.mrb[118].mxu0 }
 0x65e   :  { %v3725_v58 = vadd.f32 %v3692_v10, %v13597_v26  ;;  %v3695_v17 = vadd.f32 %v10994_v38, %v10810_v18  ;;  %v10941_v56 = vpop.f32.mrb[121].mxu1  ;;  %v3686_v25 = vpop.f32.mrb[119].mxu0  ;;  %v14277_v18 = vld [vmem:[#allocation27_spill] sm:$0xff]  ;;  %v11807_v10 = vld [vmem:[#allocation13 + $0x720] ss:$12 sps:$4 sm:$0xff]  }
 0x65f   :  { %v3719_v39 = vadd.f32 %v3684_v42, %v13602_v29  ;;  %v13847_v23 = vadd.f32 %v10941_v56, %v10940_v59  ;;  %v3687_v31 = vadd.f32 %v13802_v8, %v3686_v25  ;;  %v10943_v41 = vpop.f32.mrb[122].mxu1  ;;  %v14278_v38 = vld [vmem:[#allocation23_spill] sm:$0xff]  ;;  %v11804_v56 = vld [vmem:[#allocation14 + $0x100] ss:$8 sps:$4 sm:$0xff]  }
 0x660   :  { %v3728_v20 = vadd.f32 %v3695_v17, %v13613_v33  ;;  %5024 = vmatmul.mubr.bf16.gmra.mrb[168].mxu0 %v13451_v15  ;;  %v10944_v37 = vpop.f32.mrb[123].mxu1  ;;  %v13853_v28 = vadd.f32 %v13763_v50, %v3725_v58  ;;  %v11812_v58 = vld [vmem:[#allocation14 + $0x114] ss:$8 sps:$4 sm:$0xff]  }
 0x661   :  { %v13856_v26 = vpack.c.bf16 %v3719_v39, %v13593_v30  ;;  %v3722_v57 = vadd.f32 %v3687_v31, %v14277_v18  ;;  %11019 = vmatprep.mubr.msk.bf16.mxu0 %vm2752_vm5, %v14278_v38  ;;  %v13861_v29 = vadd.f32 %v10944_v37, %v10943_v41  ;;  %v11810_v41 = vld [vmem:[#allocation14 + $0x110] ss:$8 sps:$4 sm:$0xff]   ;;  %v11815_v25 = vld [vmem:[#allocation13 + $0x73c] ss:$12 sps:$4 sm:$0xff]  }
 0x662   :  { %v13864_v8 = vadd.f32 %v13742_v61, %v3728_v20  ;;  %v14281_v39 = vld [vmem:[#allocation29_spill] sm:$0xff] }
 0x663   :  { %v5929_v33 = vrot.slane %v13856_v26, 4  ;;  %v13868_v17 = vadd.f32 %v13749_v63, %v3722_v57  ;;  %v10997_v50 = vpop.f32.mrb[120].mxu0  ;;  %v11816_v63 = vld [vmem:[#allocation14 + $0x124] ss:$8 sps:$4 sm:$0x3f]  }
 0x664   :  { %14279 = vst [vmem:[#allocation27_spill] sm:$0xff] %v13864_v8  ;;  %v3708_v30 = vadd.f32 %v10997_v50, %v10819_v9  ;;  %v3699_v36 = vpop.f32.mrb[121].mxu0  ;;  %v14282_v57 = vld [vmem:[#allocation30_spill] sm:$0xff] }
 0x665   :  { %14280 = vst [vmem:[#allocation23_spill] sm:$0xff] %v13868_v17  ;;  %v3700_v31 = vadd.f32 %v10813_v48, %v3699_v36  ;;  %v10946_v42 = vpop.f32.mrb[124].mxu1  ;;  %v10998_v59 = vpop.f32.mrb[122].mxu0  ;;  %10295 = vmatmul.mubr.msk.bf16.vlgmr.msra.gmra.mrb[144].mxu1 %vm2752_vm5, %v5929_v33  ;;  %v11821_v8 = vld [vmem:[#allocation14 + $0x120] ss:$8 sps:$4 sm:$0x3f]  }
 0x666   :  { %v3737_v61 = vadd.f32 %v3708_v30, %v14281_v39  ;;  %v3711_v20 = vadd.f32 %v10998_v59, %v10822_v1  ;;  %v10947_v37 = vpop.f32.mrb[125].mxu1  ;;  %6450 = vmatpush1.bf16.msra.mxu1 %v11804_v56  ;;  %v3702_v18 = vpop.f32.mrb[123].mxu0  ;;  %6481 = vmatprep.mubr.bf16.mxu1 %v14265_v3  ;;  %v14283_v17 = vld [vmem:[#allocation24_spill] sm:$0xff]  ;;  %v6403_v39 = vsel %vm2765_vm4, %v11821_v8, 0 }
 0x667   :  { %v3731_v9 = vadd.f32 %v3700_v31, %v14282_v57  ;;  %v10948_v50 = vadd.f32 %v10947_v37, %v10946_v42  ;;  %v3703_v48 = vadd.f32 %v13826_v24, %v3702_v18  ;;  %v10949_v36 = vpop.f32.mrb[126].mxu1  ;;  %6451 = vmatprep.subr.bf16.mxu1 %v11812_v58  ;;  %v14284_v30 = vld [vmem:[#allocation28_spill] sm:$0xff]  ;;  %v14285_v31 = vld [vmem:[#allocation26_spill] sm:$0xff]  ;;  %v11824_v37 = vld [vmem:[#allocation13 + $0x76c] ss:$12 sps:$4 sm:$0xff]  }
 0x668   :  { %v13876_v33 = vadd.f32 %v13772_v19, %v3711_v20  ;;  %11020 = vmatmul.mubr.msk.bf16.vlgmr.msra.gmra.mrb[172].mxu0 %vm2752_vm5, %v14283_v17  ;;  %v10950_v1 = vpop.f32.mrb[127].mxu1  ;;  %v13881_v56 = vadd.f32 %v13793_v46, %v3737_v61  ;;  %v11813_v42 = vld [vmem:[#allocation13 + $0x738] ss:$12 sps:$4 sm:$0xff]   ;;  %v11820_v19 = vld [vmem:[#allocation13 + $0x754] ss:$12 sps:$4 sm:$0xff]   ;;  %v14286_v57 = vld [vmem:[#allocation25_spill] sm:$0xff] }
 0x669   :  { %v3734_v59 = vadd.f32 %v3703_v48, %v14284_v30  ;;  %5518 = vmatpush1.bf16.msra.mxu0 %v11807_v10  ;;  %11023 = vmatprep.mubr.msk.bf16.mxu0 %vm2752_vm5, %v14285_v31  ;;  %v10951_v24 = vadd.f32 %v10950_v1, %v10949_v36  ;;  %v13887_v58 = vadd.f32 %v13756_v5, %v3731_v9  ;;  %v11818_v61 = vld [vmem:[#allocation13 + $0x750] ss:$12 sps:$4 sm:$0xff]   ;;  %v11825_v9 = vld [vmem:[#allocation13 + $0x780] ss:$12 sps:$4 sm:$0xff]  }
 0x66a   :  { %5519 = vmatprep.subr.bf16.mxu0 %v11815_v25  ;;  %6452 = vmatpush1.bf16.msra.mxu1 %v11810_v41  ;;  %v11822_v25 = vld [vmem:[#allocation13 + $0x768] ss:$12 sps:$4 sm:$0xff]  }
 0x66b   :  { %10334 = vmatprep.subr.msk.bf16.mxu1 %vm2765_vm4, %v11816_v63  ;;  %v13892_v46 = vadd.f32 %v13781_v43, %v3734_v59  ;;  %v11827_v43 = vld [vmem:[#allocation13 + $0x784] ss:$12 sps:$4 sm:$0xff]   ;;  %v11830_v36 = vld [vmem:[#allocation13 + $0x79c] ss:$12 sps:$4 sm:$0xff]  }
 0x66d   :  { %5520 = vmatpush1.bf16.msra.mxu0 %v11813_v42  ;;  %v10952_v10 = vpop.f32.mrb[128].mxu1  ;;  %v11828_v42 = vld [vmem:[#allocation13 + $0x798] ss:$12 sps:$4 sm:$0xff]  }
 0x66e   :  { %5521 = vmatprep.subr.bf16.mxu0 %v11820_v19  ;;  %v10953_v20 = vpop.f32.mrb[129].mxu1  ;;  %6454 = vmatpush1.bf16.msra.mxu1 %v6403_v39  ;;  %v11833_v19 = vld [vmem:[#allocation13 + $0x7b4] ss:$12 sps:$4 sm:$0xff]   ;;  %v11831_v39 = vld [vmem:[#allocation13 + $0x7b0] ss:$12 sps:$4 sm:$0xff]  }
 0x66f   :  { %v10954_v18 = vadd.f32 %v10953_v20, %v10952_v10  ;;  %v10955_v5 = vpop.f32.mrb[130].mxu1  ;;  %v11836_v20 = vld [vmem:[#allocation13 + $0x7cc] ss:$12 sps:$4 sm:$0xff]  }
 0x670   :  { %11024 = vmatmul.mubr.msk.bf16.gmra.mrb[176].mxu0 %vm2752_vm5, %v14286_v57  ;;  %v10956_v41 = vpop.f32.mrb[131].mxu1 }
 0x671   :  { %5522 = vmatpush1.bf16.msra.mxu0 %v11818_v61  ;;  %5549 = vmatprep.mubr.bf16.mxu0 %v13418_v45  ;;  %v10957_v8 = vadd.f32 %v10956_v41, %v10955_v5 }
 0x672   :  { %10335 = vmatmul.mubr.msk.bf16.vlgmr.msra.gmra.mrb[148].mxu1 %vm2752_vm5, %v13856_v26  ;;  %5523 = vmatprep.subr.bf16.mxu0 %v11824_v37 }
 0x673   :  { %6799 = vmatprep.mubr.bf16.mxu1 %v14265_v3 }
 0x675   :  { %5524 = vmatpush1.bf16.msra.mxu0 %v11822_v25  ;;  %v10958_v63 = vpop.f32.mrb[132].mxu1 }
 0x676   :  { %5525 = vmatprep.subr.bf16.mxu0 %v11827_v43  ;;  %v10959_v48 = vpop.f32.mrb[133].mxu1 }
 0x677   :  { %v10960_v1 = vadd.f32 %v10959_v48, %v10958_v63  ;;  %v10961_v30 = vpop.f32.mrb[134].mxu1  ;;  %v11834_v63 = vld [vmem:[#allocation13 + $0x7c8] ss:$12 sps:$4 sm:$0xff]   ;;  %v11837_v48 = vld [vmem:[#allocation13 + $0x7e0] ss:$12 sps:$4 sm:$0xff]  }
 0x678   :  { %v10962_v59 = vpop.f32.mrb[135].mxu1 }
 0x679   :  { %5526 = vmatpush1.bf16.msra.mxu0 %v11825_v9  ;;  %v10963_v45 = vadd.f32 %v10962_v59, %v10961_v30  ;;  %v11839_v9 = vld [vmem:[#allocation13 + $0x7e4] ss:$12 sps:$4 sm:$0xff]  }
 0x67a   :  { %5527 = vmatprep.subr.bf16.mxu0 %v11830_v36 }
 0x67d   :  { %5528 = vmatpush1.bf16.msra.mxu0 %v11828_v42  ;;  %v11035_v26 = vpop.f32.mrb[136].mxu1 }
 0x67e   :  { %v13900_v10 = vadd.f32 %v11035_v26, %v10948_v50  ;;  %5529 = vmatprep.subr.bf16.mxu0 %v11833_v19  ;;  %v5762_v61 = vpop.f32.mrb[137].mxu1  ;;  %v11840_v26 = vld [vmem:[#allocation13 + $0x7f8] ss:$12 sps:$4 sm:$0xff]  }
 0x67f   :  { %v13903_v37 = vadd.f32 %v13847_v23, %v5762_v61  ;;  %v11036_v5 = vpop.f32.mrb[138].mxu1  ;;  %v11842_v23 = vld [vmem:[#allocation13 + $0x7fc] ss:$12 sps:$4 sm:$0xff]  }
 0x680   :  { %v13905_v41 = vadd.f32 %v11036_v5, %v10951_v24  ;;  %v5765_v25 = vpop.f32.mrb[139].mxu1  ;;  %v11843_v61 = vld [vmem:[#allocation13 + $0x810] ss:$12 sps:$4 sm:$0xff]  }
 0x681   :  { %5530 = vmatpush1.bf16.msra.mxu0 %v11831_v39  ;;  %v13908_v43 = vadd.f32 %v13861_v29, %v5765_v25  ;;  %v11845_v39 = vld [vmem:[#allocation13 + $0x814] ss:$12 sps:$4 sm:$0xff]   ;;  %v11851_v5 = vld [vmem:[#allocation13 + $0x844] ss:$12 sps:$4 sm:$0xff]  }
 0x682   :  { %5531 = vmatprep.subr.bf16.mxu0 %v11836_v20  ;;  %v11846_v20 = vld [vmem:[#allocation13 + $0x828] ss:$12 sps:$4 sm:$0xff]   ;;  %v11852_v25 = vld [vmem:[#allocation13 + $0x858] ss:$12 sps:$4 sm:$0xff]  }
 0x685   :  { %5532 = vmatpush1.bf16.msra.mxu0 %v11834_v63  ;;  %v11039_v50 = vpop.f32.mrb[140].mxu1  ;;  %v11855_v63 = vld [vmem:[#allocation13 + $0x870] ss:$12 sps:$4 sm:$0xff]  }
 0x686   :  { %v13910_v36 = vadd.f32 %v11039_v50, %v10960_v1  ;;  %5533 = vmatprep.subr.bf16.mxu0 %v11839_v9  ;;  %v5778_v30 = vpop.f32.mrb[141].mxu1  ;;  %v11848_v1 = vld [vmem:[#allocation13 + $0x82c] ss:$12 sps:$4 sm:$0xff]   ;;  %v11858_v50 = vld [vmem:[#allocation13 + $0x888] ss:$12 sps:$4 sm:$0xff]  }
 0x687   :  { %v13912_v59 = vadd.f32 %v10954_v18, %v5778_v30  ;;  %v11040_v24 = vpop.f32.mrb[142].mxu1  ;;  %v11849_v18 = vld [vmem:[#allocation13 + $0x840] ss:$12 sps:$4 sm:$0xff]  }
 0x688   :  { %v13914_v42 = vadd.f32 %v11040_v24, %v10963_v45  ;;  %v5781_v19 = vpop.f32.mrb[143].mxu1  ;;  %v11854_v45 = vld [vmem:[#allocation13 + $0x85c] ss:$12 sps:$4 sm:$0xff]   ;;  %v11860_v9 = vld [vmem:[#allocation13 + $0x88c] ss:$12 sps:$4 sm:$0xff]  }
 0x689   :  { %5534 = vmatpush1.bf16.msra.mxu0 %v11837_v48  ;;  %v13916_v29 = vadd.f32 %v10957_v8, %v5781_v19  ;;  %v11857_v8 = vld [vmem:[#allocation13 + $0x874] ss:$12 sps:$4 sm:$0xff]   ;;  %v11863_v48 = vld [vmem:[#allocation13 + $0x8a4] ss:$12 sps:$4 sm:$0xff]  }
 0x68a   :  { %5535 = vmatprep.subr.bf16.mxu0 %v11842_v23  ;;  %v11861_v30 = vld [vmem:[#allocation13 + $0x8a0] ss:$12 sps:$4 sm:$0xff]   ;;  %v11866_v23 = vld [vmem:[#allocation13 + $0x8bc] ss:$12 sps:$4 sm:$0xff]   ;;  %v11864_v24 = vld [vmem:[#allocation13 + $0x8b8] ss:$12 sps:$4 sm:$0xff]  }
 0x68b   :  { %v11867_v19 = vld [vmem:[#allocation13 + $0x8d4] ss:$12 sps:$4 sm:$0x3f]  }
 0x68d   :  { %5536 = vmatpush1.bf16.msra.mxu0 %v11840_v26  ;;  %v11869_v26 = vld [vmem:[#allocation13 + $0x8d0] ss:$12 sps:$4 sm:$0x3f]  }
 0x68e   :  { %5537 = vmatprep.subr.bf16.mxu0 %v11845_v39  ;;  %v5509_v39 = vsel %vm2765_vm4, %v11869_v26, 0 }
 0x691   :  { %5538 = vmatpush1.bf16.msra.mxu0 %v11843_v61  ;;  %v11872_v61 = vld [vmem:[#allocation14 + $0x4] ss:$8 sps:$4 sm:$0xff]  }
 0x692   :  { %5539 = vmatprep.subr.bf16.mxu0 %v11848_v1  ;;  %v11957_v1 = vld [vmem:[#allocation14 + $0x360] ss:$8 sps:$4 sm:$0xff]  }
 0x695   :  { %5540 = vmatpush1.bf16.msra.mxu0 %v11846_v20  ;;  %v11965_v20 = vld [vmem:[#allocation14 + $0x374] ss:$8 sps:$4 sm:$0xff]  }
 0x696   :  { %5541 = vmatprep.subr.bf16.mxu0 %v11851_v5 }
 0x699   :  { %5542 = vmatpush1.bf16.msra.mxu0 %v11849_v18 }
 0x69a   :  { %5543 = vmatprep.subr.bf16.mxu0 %v11854_v45 }
 0x69d   :  { %5544 = vmatpush1.bf16.msra.mxu0 %v11852_v25 }
 0x69e   :  { %5545 = vmatprep.subr.bf16.mxu0 %v11857_v8  ;;  %v11969_v8 = vld [vmem:[#allocation14 + $0x384] ss:$8 sps:$4 sm:$0x3f]  }
 0x6a1   :  { %5546 = vmatpush1.bf16.msra.mxu0 %v11855_v63  ;;  %v11971_v63 = vld [vmem:[#allocation14 + $0x380] ss:$8 sps:$4 sm:$0x3f]  }
 0x6a2   :  { %5547 = vmatprep.subr.bf16.mxu0 %v11860_v9 }
 0x6a5   :  { %5548 = vmatpush1.bf16.msra.mxu0 %v11858_v50 }
 0x6a6   :  { %5590 = vmatprep.subr.bf16.mxu0 %v11863_v48 }
 0x6a8   :  { %5550 = vmatmul.mubr.bf16.vlgmr.msra.gmra.mrb[180].mxu0 %v13414_v22  ;;  %v11959_v22 = vld [vmem:[#allocation14 + $0x364] ss:$8 sps:$4 sm:$0xff]  }
 0x6a9   :  { %5559 = vmatprep.mubr.bf16.mxu0 %v13437_v35  ;;  %5591 = vmatpush1.bf16.msra.mxu0 %v11861_v30  ;;  %v11963_v35 = vld [vmem:[#allocation14 + $0x370] ss:$8 sps:$4 sm:$0xff]   ;;  %v11870_v30 = vld [vmem:[#allocation14] ss:$8 sps:$4 sm:$0xff]  }
 0x6aa   :  { %5592 = vmatprep.subr.bf16.mxu0 %v11866_v23  ;;  %6767 = vmatprep.subr.bf16.mxu1 %v11959_v22  ;;  %v11876_v22 = vld [vmem:[#allocation14 + $0x20] ss:$8 sps:$4 sm:$0xff]  }
 0x6ab   :  { %6768 = vmatpush1.bf16.msra.mxu1 %v11957_v1 }
 0x6ac   :  { %6769 = vmatprep.subr.bf16.mxu1 %v11965_v20 }
 0x6ad   :  { %5593 = vmatpush1.bf16.msra.mxu0 %v11864_v24  ;;  %v11875_v24 = vld [vmem:[#allocation14 + $0x14] ss:$8 sps:$4 sm:$0xff]  }
 0x6ae   :  { %10247 = vmatprep.subr.msk.bf16.mxu0 %vm2765_vm4, %v11867_v19 }
 0x6af   :  { %6770 = vmatpush1.bf16.msra.mxu1 %v11963_v35  ;;  %v11881_v35 = vld [vmem:[#allocation14 + $0x34] ss:$8 sps:$4 sm:$0xff]  }
 0x6b0   :  { %5560 = vmatmul.mubr.bf16.gmra.mrb[184].mxu0 %v13435_v4  ;;  %10374 = vmatprep.subr.msk.bf16.mxu1 %vm2765_vm4, %v11969_v8  ;;  %v11887_v8 = vld [vmem:[#allocation14 + $0x54] ss:$8 sps:$4 sm:$0xff]  }
 0x6b1   :  { %5569 = vmatprep.mubr.bf16.mxu0 %v13445_v51  ;;  %5595 = vmatpush1.bf16.msra.mxu0 %v5509_v39 }
 0x6b2   :  { %6408 = vmatprep.subr.bf16.mxu0 %v11872_v61 }
 0x6b8   :  { %5570 = vmatmul.mubr.bf16.gmra.mrb[188].mxu0 %v13443_v32 }
 0x6b9   :  { %5579 = vmatprep.mubr.bf16.mxu0 %v13453_v27 }
 0x6bb   :  { %v4235_v5 = vpop.f32.mrb[124].mxu0 }
 0x6bc   :  { %v13927_v18 = vadd.f32 %v4235_v5, %v13704_v49  ;;  %v4237_v45 = vpop.f32.mrb[125].mxu0  ;;  %v6721_v49 = vsel %vm2765_vm4, %v11971_v63, 0  ;;  %v11885_v63 = vld [vmem:[#allocation14 + $0x50] ss:$8 sps:$4 sm:$0xff]  }
 0x6bd   :  { %v13930_v4 = vadd.f32 %v4237_v45, %v13712_v47  ;;  %v4239_v51 = vpop.f32.mrb[126].mxu0  ;;  %6772 = vmatpush1.bf16.msra.mxu1 %v6721_v49  ;;  %v11977_v47 = vld [vmem:[#allocation14 + $0x494] ss:$8 sps:$4 sm:$0xff]   ;;  %v11888_v49 = vld [vmem:[#allocation14 + $0x60] ss:$8 sps:$4 sm:$0xff]  }
 0x6be   :  { %v13933_v25 = vadd.f32 %v4239_v51, %v13720_v40  ;;  %v4241_v32 = vpop.f32.mrb[127].mxu0  ;;  %7095 = vmatprep.subr.bf16.mxu1 %v11977_v47  ;;  %v11891_v47 = vld [vmem:[#allocation14 + $0x70] ss:$8 sps:$4 sm:$0xff]  }
 0x6bf   :  { %v13936_v27 = vadd.f32 %v4241_v32, %v13727_v62  ;;  %v11882_v32 = vld [vmem:[#allocation14 + $0x40] ss:$8 sps:$4 sm:$0xff]  }
 0x6c0   :  { %5580 = vmatmul.mubr.bf16.gmra.mrb[192].mxu0 %v13451_v15 }
 0x6c1   :  { %5622 = vmatprep.mubr.bf16.mxu0 %v14265_v3 }
 0x6c3   :  { %v4245_v9 = vpop.f32.mrb[128].mxu0 }
 0x6c4   :  { %v13943_v40 = vadd.f32 %v4245_v9, %v13731_v53  ;;  %v4247_v50 = vpop.f32.mrb[129].mxu0  ;;  %v11873_v53 = vld [vmem:[#allocation14 + $0x10] ss:$8 sps:$4 sm:$0xff]   ;;  %v11896_v9 = vld [vmem:[#allocation14 + $0x84] ss:$8 sps:$4 sm:$0xff]  }
 0x6c5   :  { %v13946_v62 = vadd.f32 %v4247_v50, %v13735_v54  ;;  %v4249_v48 = vpop.f32.mrb[130].mxu0  ;;  %v11878_v54 = vld [vmem:[#allocation14 + $0x24] ss:$8 sps:$4 sm:$0xff]   ;;  %v11899_v50 = vld [vmem:[#allocation14 + $0x94] ss:$8 sps:$4 sm:$0xff]  }
 0x6c6   :  { %v13949_v15 = vadd.f32 %v4249_v48, %v13746_v14  ;;  %v4251_v23 = vpop.f32.mrb[131].mxu0  ;;  %v11897_v48 = vld [vmem:[#allocation14 + $0x90] ss:$8 sps:$4 sm:$0xff]  }
 0x6c7   :  { %v13952_v19 = vadd.f32 %v4251_v23, %v13753_v0  ;;  %v11900_v23 = vld [vmem:[#allocation14 + $0xa0] ss:$8 sps:$4 sm:$0xff]  }
 0x6c8   :  { %10248 = vmatmul.mubr.msk.bf16.vlgmr.msra.gmra.mrb[180].mxu0 %vm2752_vm5, %v14278_v38 }
 0x6c9   :  { %6409 = vmatpush1.bf16.msra.mxu0 %v11870_v30  ;;  %5632 = vmatprep.mubr.bf16.mxu0 %v14265_v3  ;;  %v11902_v30 = vld [vmem:[#allocation14 + $0xa4] ss:$8 sps:$4 sm:$0xff]  }
 0x6ca   :  { %6410 = vmatprep.subr.bf16.mxu0 %v11875_v24  ;;  %v11905_v24 = vld [vmem:[#allocation14 + $0xb4] ss:$8 sps:$4 sm:$0xff]  }
 0x6cb   :  { %v4255_v26 = vpop.f32.mrb[132].mxu0 }
 0x6cc   :  { %v13958_v39 = vadd.f32 %v4255_v26, %v13760_v60  ;;  %v4257_v14 = vpop.f32.mrb[133].mxu0  ;;  %v11879_v60 = vld [vmem:[#allocation14 + $0x30] ss:$8 sps:$4 sm:$0xff]  }
 0x6cd   :  { %6411 = vmatpush1.bf16.msra.mxu0 %v11873_v53  ;;  %v13961_v61 = vadd.f32 %v4257_v14, %v13767_v11  ;;  %v4259_v0 = vpop.f32.mrb[134].mxu0  ;;  %v11884_v11 = vld [vmem:[#allocation14 + $0x44] ss:$8 sps:$4 sm:$0xff]   ;;  %v11909_v26 = vld [vmem:[#allocation14 + $0xd0] ss:$8 sps:$4 sm:$0xff]  }
 0x6ce   :  { %v13964_v1 = vadd.f32 %v4259_v0, %v13778_v6  ;;  %6412 = vmatprep.subr.bf16.mxu0 %v11878_v54  ;;  %v4261_v38 = vpop.f32.mrb[135].mxu0  ;;  %v11908_v53 = vld [vmem:[#allocation14 + $0xc4] ss:$8 sps:$4 sm:$0xff]   ;;  %v11911_v54 = vld [vmem:[#allocation14 + $0xd4] ss:$8 sps:$4 sm:$0xff]  }
 0x6cf   :  { %v13967_v20 = vadd.f32 %v4261_v38, %v13787_v7  ;;  %v11914_v14 = vld [vmem:[#allocation14 + $0xe4] ss:$8 sps:$4 sm:$0xff]  }
 0x6d0   :  { %10249 = vmatmul.mubr.msk.bf16.gmra.mrb[184].mxu0 %vm2752_vm5, %v14283_v17 }
 0x6d1   :  { %6413 = vmatpush1.bf16.msra.mxu0 %v11876_v22  ;;  %5642 = vmatprep.mubr.bf16.mxu0 %v14265_v3 }
 0x6d2   :  { %6414 = vmatprep.subr.bf16.mxu0 %v11881_v35 }
 0x6d3   :  { %v4265_v5 = vpop.f32.mrb[136].mxu0 }
 0x6d4   :  { %v13973_v45 = vadd.f32 %v4265_v5, %v13775_v2  ;;  %v4267_v6 = vpop.f32.mrb[137].mxu0  ;;  %v11890_v2 = vld [vmem:[#allocation14 + $0x64] ss:$8 sps:$4 sm:$0xff]  }
 0x6d5   :  { %6415 = vmatpush1.bf16.msra.mxu0 %v11879_v60  ;;  %v13976_v51 = vadd.f32 %v4267_v6, %v13784_v12  ;;  %v13978_v7 = vpop.f32.mrb[138].mxu0  ;;  %v11893_v12 = vld [vmem:[#allocation14 + $0x74] ss:$8 sps:$4 sm:$0xff]  }
 0x6d6   :  { %6416 = vmatprep.subr.bf16.mxu0 %v11884_v11  ;;  %v13980_v17 = vpop.f32.mrb[139].mxu0  ;;  %v11912_v11 = vld [vmem:[#allocation14 + $0xe0] ss:$8 sps:$4 sm:$0xff]  }
 0x6d8   :  { %10250 = vmatmul.mubr.msk.bf16.gmra.mrb[188].mxu0 %vm2752_vm5, %v14285_v31  ;;  %v11894_v31 = vld [vmem:[#allocation14 + $0x80] ss:$8 sps:$4 sm:$0xff]  }
 0x6d9   :  { %6417 = vmatpush1.bf16.msra.mxu0 %v11882_v32  ;;  %5652 = vmatprep.mubr.bf16.mxu0 %v14265_v3 }
 0x6da   :  { %6418 = vmatprep.subr.bf16.mxu0 %v11887_v8  ;;  %v11917_v8 = vld [vmem:[#allocation14 + $0xf4] ss:$8 sps:$4 sm:$0xff]  }
 0x6dd   :  { %6419 = vmatpush1.bf16.msra.mxu0 %v11885_v63 }
 0x6de   :  { %6420 = vmatprep.subr.bf16.mxu0 %v11890_v2 }
 0x6e0   :  { %10251 = vmatmul.mubr.msk.bf16.gmra.mrb[192].mxu0 %vm2752_vm5, %v14286_v57  ;;  %v11903_v57 = vld [vmem:[#allocation14 + $0xb0] ss:$8 sps:$4 sm:$0xff]  }
 0x6e1   :  { %6421 = vmatpush1.bf16.msra.mxu0 %v11888_v49  ;;  %6440 = vmatprep.mubr.bf16.mxu0 %v13707_v34  ;;  %v11906_v34 = vld [vmem:[#allocation14 + $0xc0] ss:$8 sps:$4 sm:$0xff]  }
 0x6e2   :  { %6422 = vmatprep.subr.bf16.mxu0 %v11893_v12 }
 0x6e5   :  { %6423 = vmatpush1.bf16.msra.mxu0 %v11891_v47 }
 0x6e6   :  { %6424 = vmatprep.subr.bf16.mxu0 %v11896_v9 }
 0x6e9   :  { %6425 = vmatpush1.bf16.msra.mxu0 %v11894_v31  ;;  %v14287_v31 = vld [vmem:[#allocation33_spill] sm:$0xff] }
 0x6ea   :  { %6426 = vmatprep.subr.bf16.mxu0 %v11899_v50 }
 0x6ed   :  { %6427 = vmatpush1.bf16.msra.mxu0 %v11897_v48 }
 0x6ee   :  { %6428 = vmatprep.subr.bf16.mxu0 %v11902_v30 }
 0x6f1   :  { %6429 = vmatpush1.bf16.msra.mxu0 %v11900_v23 }
 0x6f2   :  { %6430 = vmatprep.subr.bf16.mxu0 %v11905_v24 }
 0x6f5   :  { %6431 = vmatpush1.bf16.msra.mxu0 %v11903_v57 }
 0x6f6   :  { %6432 = vmatprep.subr.bf16.mxu0 %v11908_v53 }
 0x6f9   :  { %6433 = vmatpush1.bf16.msra.mxu0 %v11906_v34 }
 0x6fa   :  { %6434 = vmatprep.subr.bf16.mxu0 %v11911_v54  ;;  %v14290_v54 = vld [vmem:[#allocation35_spill] sm:$0xff] }
 0x6fb   :  { %v4855_v0 = vpop.f32.mrb[140].mxu0 }
 0x6fc   :  { %v4929_v22 = vadd.f32 %v13798_v21, %v4855_v0  ;;  %v4857_v38 = vpop.f32.mrb[141].mxu0 }
 0x6fd   :  { %6435 = vmatpush1.bf16.msra.mxu0 %v11909_v26  ;;  %v4931_v35 = vadd.f32 %v13800_v55, %v4857_v38  ;;  %v4859_v60 = vpop.f32.mrb[142].mxu0  ;;  %v11915_v55 = vld [vmem:[#allocation14 + $0xf0] ss:$8 sps:$4 sm:$0xff]   ;;  %v11924_v38 = vld [vmem:[#allocation14 + $0x280] ss:$8 sps:$4 sm:$0xff]  }
 0x6fe   :  { %v5106_v5 = vadd.f32 %v4929_v22, %v13933_v25  ;;  %v4933_v6 = vadd.f32 %v13804_v16, %v4859_v60  ;;  %v4861_v32 = vpop.f32.mrb[143].mxu0  ;;  %6436 = vmatprep.subr.bf16.mxu0 %v11914_v14  ;;  %v11920_v25 = vld [vmem:[#allocation14 + $0x264] ss:$8 sps:$4 sm:$0xff]  }
 0x6ff   :  { %v5107_v63 = vadd.f32 %v4931_v35, %v13936_v27  ;;  %v4935_v2 = vadd.f32 %v13807_v52, %v4861_v32 }
 0x700   :  { %v13995_v49 = vpack.c.bf16 %v5106_v5, %v13927_v18  ;;  %v13998_v21 = vadd.f32 %v4933_v6, %v13943_v40  ;;  %v11918_v40 = vld [vmem:[#allocation14 + $0x260] ss:$8 sps:$4 sm:$0xff]  }
 0x701   :  { %6437 = vmatpush1.bf16.msra.mxu0 %v11912_v11  ;;  %v14001_v12 = vpack.c.bf16 %v5107_v63, %v13930_v4  ;;  %v14004_v16 = vadd.f32 %v4935_v2, %v13946_v62  ;;  %v11923_v4 = vld [vmem:[#allocation14 + $0x274] ss:$8 sps:$4 sm:$0xff]   ;;  %v14288_v62 = vld [vmem:[#allocation34_spill] sm:$0xff]  ;;  %v11927_v63 = vld [vmem:[#allocation14 + $0x290] ss:$8 sps:$4 sm:$0xff]  }
 0x702   :  { %6438 = vmatprep.subr.bf16.mxu0 %v11917_v8  ;;  %v11929_v11 = vld [vmem:[#allocation14 + $0x294] ss:$8 sps:$4 sm:$0xff]  }
 0x703   :  { %v4865_v47 = vpop.f32.mrb[144].mxu0 }
 0x704   :  { %v4939_v27 = vadd.f32 %v13810_v44, %v4865_v47  ;;  %v4867_v52 = vpop.f32.mrb[145].mxu0  ;;  %v14289_v44 = vld [vmem:[#allocation31_spill] sm:$0xff] }
 0x705   :  { %6439 = vmatpush1.bf16.msra.mxu0 %v11915_v55  ;;  %v4941_v18 = vadd.f32 %v13812_v13, %v4867_v52  ;;  %v4869_v9 = vpop.f32.mrb[146].mxu0  ;;  %v11921_v13 = vld [vmem:[#allocation14 + $0x270] ss:$8 sps:$4 sm:$0xff]   ;;  %v11932_v55 = vld [vmem:[#allocation14 + $0x2a4] ss:$8 sps:$4 sm:$0xff]  }
 0x706   :  { %v4943_v50 = vadd.f32 %v14287_v31, %v4869_v9  ;;  %v4871_v48 = vpop.f32.mrb[147].mxu0  ;;  %6726 = vmatprep.subr.bf16.mxu0 %v11920_v25  ;;  %v14010_v30 = vadd.f32 %v4939_v27, %v13949_v15  ;;  %v11926_v15 = vld [vmem:[#allocation14 + $0x284] ss:$8 sps:$4 sm:$0xff]   ;;  %v14294_v47 = vld [vmem:[#allocation39_spill] sm:$0xff]  ;;  %v14295_v52 = vld [vmem:[#allocation40_spill] sm:$0xff] }
 0x707   :  { %v4945_v23 = vadd.f32 %v14288_v62, %v4871_v48  ;;  %v14014_v24 = vadd.f32 %v4941_v18, %v13952_v19  ;;  %v14291_v19 = vld [vmem:[#allocation36_spill] sm:$0xff]  ;;  %v14297_v48 = vld [vmem:[#allocation42_spill] sm:$0xff] }
 0x708   :  { %6441 = vmatmul.mubr.bf16.vlgmr.msra.gmra.mrb[196].mxu0 %v14289_v44  ;;  %v14018_v57 = vadd.f32 %v4943_v50, %v13958_v39  ;;  %v14292_v39 = vld [vmem:[#allocation37_spill] sm:$0xff]  ;;  %v11935_v50 = vld [vmem:[#allocation14 + $0x2b4] ss:$8 sps:$4 sm:$0xff]  }
 0x709   :  { %6727 = vmatpush1.bf16.msra.mxu0 %v11918_v40  ;;  %6758 = vmatprep.mubr.bf16.mxu0 %v14001_v12  ;;  %v14022_v53 = vadd.f32 %v4945_v23, %v13961_v61  ;;  %v14293_v61 = vld [vmem:[#allocation38_spill] sm:$0xff]  ;;  %v14296_v40 = vld [vmem:[#allocation41_spill] sm:$0xff]  ;;  %v11933_v23 = vld [vmem:[#allocation14 + $0x2b0] ss:$8 sps:$4 sm:$0xff]  }
 0x70a   :  { %6728 = vmatprep.subr.bf16.mxu0 %v11923_v4  ;;  %v11938_v44 = vld [vmem:[#allocation14 + $0x2c4] ss:$8 sps:$4 sm:$0xff]  }
 0x70b   :  { %v4875_v34 = vpop.f32.mrb[148].mxu0 }
 0x70c   :  { %v4949_v26 = vadd.f32 %v14290_v54, %v4875_v34  ;;  %v4877_v14 = vpop.f32.mrb[149].mxu0 }
 0x70d   :  { %6729 = vmatpush1.bf16.msra.mxu0 %v11921_v13  ;;  %v4951_v0 = vadd.f32 %v14291_v19, %v4877_v14  ;;  %v4879_v22 = vpop.f32.mrb[150].mxu0 }
 0x70e   :  { %v4953_v35 = vadd.f32 %v14292_v39, %v4879_v22  ;;  %v4881_v60 = vpop.f32.mrb[151].mxu0  ;;  %6730 = vmatprep.subr.bf16.mxu0 %v11926_v15  ;;  %v14028_v5 = vadd.f32 %v4949_v26, %v13964_v1  ;;  %v11936_v26 = vld [vmem:[#allocation14 + $0x2c0] ss:$8 sps:$4 sm:$0xff]  }
 0x70f   :  { %v4955_v6 = vadd.f32 %v14293_v61, %v4881_v60  ;;  %v14032_v32 = vadd.f32 %v4951_v0, %v13967_v20  ;;  %v11930_v20 = vld [vmem:[#allocation14 + $0x2a0] ss:$8 sps:$4 sm:$0xff]   ;;  %v11939_v0 = vld [vmem:[#allocation14 + $0x2d0] ss:$8 sps:$4 sm:$0xff]   ;;  %v11947_v61 = vld [vmem:[#allocation14 + $0x2f4] ss:$8 sps:$4 sm:$0xff]  }
 0x710   :  { %v14035_v8 = vadd.f32 %v4953_v35, %v13973_v45  ;;  %v11942_v60 = vld [vmem:[#allocation14 + $0x2e0] ss:$8 sps:$4 sm:$0xff]  }
 0x711   :  { %6731 = vmatpush1.bf16.msra.mxu0 %v11924_v38  ;;  %v14038_v2 = vadd.f32 %v4955_v6, %v13976_v51 }
 0x712   :  { %6732 = vmatprep.subr.bf16.mxu0 %v11929_v11 }
 0x713   :  { %v4885_v25 = vpop.f32.mrb[152].mxu0 }
 0x714   :  { %v4959_v27 = vadd.f32 %v14294_v47, %v4885_v25  ;;  %v4887_v1 = vpop.f32.mrb[153].mxu0 }
 0x715   :  { %6733 = vmatpush1.bf16.msra.mxu0 %v11927_v63  ;;  %v4961_v18 = vadd.f32 %v14295_v52, %v4887_v1  ;;  %v4889_v9 = vpop.f32.mrb[154].mxu0  ;;  %v11945_v63 = vld [vmem:[#allocation14 + $0x2f0] ss:$8 sps:$4 sm:$0xff]   ;;  %v11948_v52 = vld [vmem:[#allocation14 + $0x300] ss:$8 sps:$4 sm:$0xff]  }
 0x716   :  { %v14043_v31 = vadd.f32 %v14296_v40, %v4889_v9  ;;  %v4891_v45 = vpop.f32.mrb[155].mxu0  ;;  %6734 = vmatprep.subr.bf16.mxu0 %v11932_v55  ;;  %v14046_v51 = vadd.f32 %v4959_v27, %v13978_v7  ;;  %v11941_v7 = vld [vmem:[#allocation14 + $0x2d4] ss:$8 sps:$4 sm:$0xff]   ;;  %v11950_v55 = vld [vmem:[#allocation14 + $0x304] ss:$8 sps:$4 sm:$0xff]  }
 0x717   :  { %v14049_v4 = vadd.f32 %v14297_v48, %v4891_v45  ;;  %v14052_v62 = vadd.f32 %v4961_v18, %v13980_v17  ;;  %v11944_v17 = vld [vmem:[#allocation14 + $0x2e4] ss:$8 sps:$4 sm:$0xff]   ;;  %v11953_v9 = vld [vmem:[#allocation14 + $0x314] ss:$8 sps:$4 sm:$0xff]   ;;  %v11951_v40 = vld [vmem:[#allocation14 + $0x310] ss:$8 sps:$4 sm:$0xff]  }
 0x718   :  { %v11956_v45 = vld [vmem:[#allocation14 + $0x324] ss:$8 sps:$4 sm:$0xff]  }
 0x719   :  { %6735 = vmatpush1.bf16.msra.mxu0 %v11930_v20 }
 0x71a   :  { %6736 = vmatprep.subr.bf16.mxu0 %v11935_v50 }
 0x71b   :  { %v10893_v13 = vpop.f32.mrb[156].mxu0 }
 0x71c   :  { %v10894_v15 = vpop.f32.mrb[157].mxu0 }
 0x71d   :  { %6737 = vmatpush1.bf16.msra.mxu0 %v11933_v23  ;;  %v10895_v34 = vadd.f32 %v10894_v15, %v10893_v13  ;;  %v10896_v54 = vpop.f32.mrb[158].mxu0  ;;  %v11954_v13 = vld [vmem:[#allocation14 + $0x320] ss:$8 sps:$4 sm:$0xff]  }
 0x71e   :  { %v10897_v14 = vpop.f32.mrb[159].mxu0  ;;  %6738 = vmatprep.subr.bf16.mxu0 %v11938_v44 }
 0x71f   :  { %v14054_v19 = vadd.f32 %v10897_v14, %v10896_v54  ;;  %v11962_v54 = vld [vmem:[#allocation14 + $0x334] ss:$8 sps:$4 sm:$0xff]  }
 0x721   :  { %6739 = vmatpush1.bf16.msra.mxu0 %v11936_v26 }
 0x722   :  { %6740 = vmatprep.subr.bf16.mxu0 %v11941_v7  ;;  %v11960_v7 = vld [vmem:[#allocation14 + $0x330] ss:$8 sps:$4 sm:$0xff]  }
 0x723   :  { %v10899_v22 = vpop.f32.mrb[160].mxu0 }
 0x724   :  { %v10900_v38 = vpop.f32.mrb[161].mxu0 }
 0x725   :  { %6741 = vmatpush1.bf16.msra.mxu0 %v11939_v0  ;;  %v10901_v39 = vadd.f32 %v10900_v38, %v10899_v22  ;;  %v10902_v35 = vpop.f32.mrb[162].mxu0  ;;  %v11968_v22 = vld [vmem:[#allocation14 + $0x344] ss:$8 sps:$4 sm:$0xff]  }
 0x726   :  { %v10903_v11 = vpop.f32.mrb[163].mxu0  ;;  %6742 = vmatprep.subr.bf16.mxu0 %v11944_v17 }
 0x727   :  { %v10904_v6 = vadd.f32 %v10903_v11, %v10902_v35 }
 0x729   :  { %6743 = vmatpush1.bf16.msra.mxu0 %v11942_v60 }
 0x72a   :  { %6744 = vmatprep.subr.bf16.mxu0 %v11947_v61 }
 0x72b   :  { %v10905_v25 = vpop.f32.mrb[164].mxu0 }
 0x72c   :  { %v10906_v47 = vpop.f32.mrb[165].mxu0 }
 0x72d   :  { %6745 = vmatpush1.bf16.msra.mxu0 %v11945_v63  ;;  %v14056_v27 = vadd.f32 %v10906_v47, %v10905_v25  ;;  %v10908_v1 = vpop.f32.mrb[166].mxu0 }
 0x72e   :  { %v10909_v18 = vpop.f32.mrb[167].mxu0  ;;  %6746 = vmatprep.subr.bf16.mxu0 %v11950_v55  ;;  %v11966_v55 = vld [vmem:[#allocation14 + $0x340] ss:$8 sps:$4 sm:$0xff]  }
 0x72f   :  { %v14058_v20 = vadd.f32 %v10909_v18, %v10908_v1 }
 0x731   :  { %6747 = vmatpush1.bf16.msra.mxu0 %v11948_v52  ;;  %v11974_v52 = vld [vmem:[#allocation14 + $0x354] ss:$8 sps:$4 sm:$0xff]  }
 0x732   :  { %6748 = vmatprep.subr.bf16.mxu0 %v11953_v9 }
 0x733   :  { %v10911_v50 = vpop.f32.mrb[168].mxu0 }
 0x734   :  { %v10912_v48 = vpop.f32.mrb[169].mxu0 }
 0x735   :  { %6749 = vmatpush1.bf16.msra.mxu0 %v11951_v40  ;;  %v10913_v23 = vadd.f32 %v10912_v48, %v10911_v50  ;;  %v10914_v44 = vpop.f32.mrb[170].mxu0  ;;  %v14298_v50 = vld [vmem:[#allocation23_spill] sm:$0xff] }
 0x736   :  { %v10915_v15 = vpop.f32.mrb[171].mxu0  ;;  %6750 = vmatprep.subr.bf16.mxu0 %v11956_v45 }
 0x737   :  { %v10916_v26 = vadd.f32 %v10915_v15, %v10914_v44  ;;  %v11980_v15 = vld [vmem:[#allocation14 + $0x394] ss:$8 sps:$4 sm:$0xff]  }
 0x738   :  { %v14060_v14 = vpop.f32.mrb[144].mxu1 }
 0x739   :  { %6751 = vmatpush1.bf16.msra.mxu0 %v11954_v13  ;;  %v14062_v0 = vpop.f32.mrb[145].mxu1 }
 0x73a   :  { %6752 = vmatprep.subr.bf16.mxu0 %v11962_v54  ;;  %v6208_v17 = vpop.f32.mrb[146].mxu1 }
 0x73b   :  { %v11021_v38 = vpop.f32.mrb[172].mxu0  ;;  %v6209_v35 = vpop.f32.mrb[147].mxu1  ;;  %v11986_v17 = vld [vmem:[#allocation14 + $0x3a4] ss:$8 sps:$4 sm:$0xff]  }
 0x73c   :  { %v5075_v60 = vadd.f32 %v11021_v38, %v10901_v39  ;;  %v5066_v11 = vpop.f32.mrb[173].mxu0  ;;  %v11975_v39 = vld [vmem:[#allocation14 + $0x490] ss:$8 sps:$4 sm:$0xff]  }
 0x73d   :  { %6753 = vmatpush1.bf16.msra.mxu0 %v11960_v7  ;;  %v5067_v61 = vadd.f32 %v10895_v34, %v5066_v11  ;;  %v11022_v63 = vpop.f32.mrb[174].mxu0  ;;  %v14299_v34 = vld [vmem:[#allocation27_spill] sm:$0xff]  ;;  %v11981_v7 = vld [vmem:[#allocation14 + $0x4a0] ss:$8 sps:$4 sm:$0xff]  }
 0x73e   :  { %v5114_v25 = vadd.f32 %v5075_v60, %v13887_v58  ;;  %v5078_v47 = vadd.f32 %v11022_v63, %v10904_v6  ;;  %v5069_v1 = vpop.f32.mrb[175].mxu0  ;;  %6754 = vmatprep.subr.bf16.mxu0 %v11968_v22  ;;  %v11972_v58 = vld [vmem:[#allocation14 + $0x350] ss:$8 sps:$4 sm:$0xff]   ;;  %v11983_v6 = vld [vmem:[#allocation14 + $0x4a4] ss:$8 sps:$4 sm:$0xff]  }
 0x73f   :  { %v5108_v18 = vadd.f32 %v5067_v61, %v13853_v28  ;;  %v5070_v9 = vadd.f32 %v14054_v19, %v5069_v1  ;;  %v14300_v60 = vld [vmem:[#allocation32_spill] sm:$0xff] }
 0x740   :  { %v5810_v40 = vadd.f32 %v13908_v43, %v5114_v25  ;;  %v5117_v45 = vadd.f32 %v5078_v47, %v13892_v46  ;;  %v11978_v46 = vld [vmem:[#allocation14 + $0x390] ss:$8 sps:$4 sm:$0xff]  }
 0x741   :  { %v14070_v48 = vpack.c.bf16 %v5108_v18, %v14298_v50  ;;  %v5111_v44 = vadd.f32 %v5070_v9, %v14299_v34  ;;  %6755 = vmatpush1.bf16.msra.mxu0 %v11966_v55  ;;  %v11987_v55 = vld [vmem:[#allocation14 + $0x4b4] ss:$8 sps:$4 sm:$0x3f]   ;;  %v11990_v34 = vld [vmem:[#allocation14 + $0x3b0] ss:$8 sps:$4 sm:$0xff]  }
 0x742   :  { %v5813_v13 = vadd.f32 %v13900_v10, %v5117_v45  ;;  %6756 = vmatprep.subr.bf16.mxu0 %v11974_v52  ;;  %v11995_v45 = vld [vmem:[#allocation14 + $0x5c4] ss:$8 sps:$4 sm:$0xff]  }
 0x743   :  { %v5807_v28 = vadd.f32 %v13903_v37, %v5111_v44  ;;  %v11025_v19 = vpop.f32.mrb[176].mxu0  ;;  %10375 = vmatmul.mubr.msk.bf16.vlgmr.msra.gmra.mrb[152].mxu1 %vm2752_vm5, %v14070_v48  ;;  %v11989_v37 = vld [vmem:[#allocation14 + $0x4b0] ss:$8 sps:$4 sm:$0x3f]   ;;  %v12001_v44 = vld [vmem:[#allocation14 + $0x5d4] ss:$8 sps:$4 sm:$0xff]  }
 0x744   :  { %v5091_v43 = vadd.f32 %v11025_v19, %v10913_v23  ;;  %7096 = vmatpush1.bf16.msra.mxu1 %v11975_v39  ;;  %v5082_v54 = vpop.f32.mrb[177].mxu0  ;;  %7127 = vmatprep.mubr.bf16.mxu1 %v14265_v3  ;;  %v12019_v19 = vld [vmem:[#allocation14 + $0x5f4] ss:$8 sps:$4 sm:$0xff]  }
 0x745   :  { %v14078_v22 = vpack.c.bf16 %v5810_v40, %v5807_v28  ;;  %6757 = vmatpush1.bf16.msra.mxu0 %v11972_v58  ;;  %v5083_v10 = vadd.f32 %v14056_v27, %v5082_v54  ;;  %v11026_v38 = vpop.f32.mrb[178].mxu0  ;;  %v14081_v35 = vpop.f32.mrb[148].mxu1  ;;  %7097 = vmatprep.subr.bf16.mxu1 %v11983_v6  ;;  %v6853_v27 = vrot.slane %v14001_v12, 4  ;;  %v11996_v58 = vld [vmem:[#allocation14 + $0x3c0] ss:$8 sps:$4 sm:$0xff]  }
 0x746   :  { %v5126_v11 = vadd.f32 %v5091_v43, %v14300_v60  ;;  %v5094_v61 = vadd.f32 %v11026_v38, %v10916_v26  ;;  %v5085_v23 = vpop.f32.mrb[179].mxu0  ;;  %v14084_v63 = vpop.f32.mrb[149].mxu1  ;;  %7054 = vmatprep.subr.bf16.mxu0 %v11980_v15  ;;  %v11999_v6 = vld [vmem:[#allocation14 + $0x5d0] ss:$8 sps:$4 sm:$0xff]   ;;  %v12008_v54 = vld [vmem:[#allocation14 + $0x3e0] ss:$8 sps:$4 sm:$0xff]  }
 0x747   :  { %v5120_v25 = vadd.f32 %v5083_v10, %v13881_v56  ;;  %v5086_v47 = vadd.f32 %v14058_v20, %v5085_v23  ;;  %v6487_v1 = vpop.f32.mrb[150].mxu1  ;;  %v11984_v56 = vld [vmem:[#allocation14 + $0x3a0] ss:$8 sps:$4 sm:$0xff]   ;;  %v7049_v20 = vsel %vm2765_vm4, %v11989_v37, 0  ;;  %v12002_v15 = vld [vmem:[#allocation14 + $0x3d0] ss:$8 sps:$4 sm:$0xff]  }
 0x748   :  { %v5822_v52 = vadd.f32 %v13916_v29, %v5126_v11  ;;  %v5825_v18 = vadd.f32 %v13910_v36, %v5094_v61  ;;  %6759 = vmatmul.mubr.bf16.vlgmr.msra.gmra.mrb[200].mxu0 %v13995_v49  ;;  %7098 = vmatpush1.bf16.msra.mxu1 %v11981_v7  ;;  %v6488_v26 = vpop.f32.mrb[151].mxu1  ;;  %v11992_v36 = vld [vmem:[#allocation14 + $0x3b4] ss:$8 sps:$4 sm:$0xff]   ;;  %v12017_v43 = vld [vmem:[#allocation14 + $0x5f0] ss:$8 sps:$4 sm:$0xff]  }
 0x749   :  { %v5816_v9 = vadd.f32 %v13905_v41, %v5120_v25  ;;  %v5123_v40 = vadd.f32 %v5086_v47, %v13876_v33  ;;  %7055 = vmatpush1.bf16.msra.mxu0 %v11978_v46  ;;  %7086 = vmatprep.mubr.bf16.mxu0 %v6853_v27  ;;  %v11993_v41 = vld [vmem:[#allocation14 + $0x5c0] ss:$8 sps:$4 sm:$0xff]   ;;  %v6854_v33 = vrot.slane %v14070_v48, 4  ;;  %v12004_v48 = vld [vmem:[#allocation14 + $0x3d4] ss:$8 sps:$4 sm:$0xff]  }
 0x74a   :  { %v14096_v12 = vpack.c.bf16 %v13914_v42, %v5825_v18  ;;  %7056 = vmatprep.subr.bf16.mxu0 %v11986_v17  ;;  %10414 = vmatprep.subr.msk.bf16.mxu1 %vm2765_vm4, %v11987_v55  ;;  %v11998_v42 = vld [vmem:[#allocation14 + $0x3c4] ss:$8 sps:$4 sm:$0xff]   ;;  %v12013_v17 = vld [vmem:[#allocation14 + $0x3f4] ss:$8 sps:$4 sm:$0xff]   ;;  %v12023_v10 = vld [vmem:[#allocation14 + $0x600] ss:$8 sps:$4 sm:$0xff]  }
 0x74b   :  { %v14099_v29 = vpack.c.bf16 %v5816_v9, %v5813_v13  ;;  %v5819_v39 = vadd.f32 %v13912_v59, %v5123_v40  ;;  %v12005_v59 = vld [vmem:[#allocation14 + $0x5e4] ss:$8 sps:$4 sm:$0x3f]   ;;  %v12007_v13 = vld [vmem:[#allocation14 + $0x5e0] ss:$8 sps:$4 sm:$0x3f]  }
 0x74c   :  { %7100 = vmatpush1.bf16.msra.mxu1 %v7049_v20  ;;  %v7369_v28 = vsel %vm2765_vm4, %v12007_v13, 0  ;;  %v12010_v46 = vld [vmem:[#allocation14 + $0x3e4] ss:$8 sps:$4 sm:$0xff]   ;;  %v12011_v38 = vld [vmem:[#allocation14 + $0x3f0] ss:$8 sps:$4 sm:$0xff]  }
 0x74d   :  { %v14103_v50 = vpack.c.bf16 %v5822_v52, %v5819_v39  ;;  %7057 = vmatpush1.bf16.msra.mxu0 %v11984_v56  ;;  %7415 = vmatprep.subr.bf16.mxu1 %v11995_v45  ;;  %v12025_v7 = vld [vmem:[#allocation14 + $0x604] ss:$8 sps:$4 sm:$0xff]   ;;  %v12031_v37 = vld [vmem:[#allocation14 + $0x614] ss:$8 sps:$4 sm:$0xff]   ;;  %v12029_v11 = vld [vmem:[#allocation14 + $0x610] ss:$8 sps:$4 sm:$0xff]  }
 0x74e   :  { %7058 = vmatprep.subr.bf16.mxu0 %v11992_v36  ;;  %v12016_v60 = vld [vmem:[#allocation14 + $0x404] ss:$8 sps:$4 sm:$0xff]   ;;  %v12014_v61 = vld [vmem:[#allocation14 + $0x400] ss:$8 sps:$4 sm:$0xff]   ;;  %v12022_v55 = vld [vmem:[#allocation14 + $0x414] ss:$8 sps:$4 sm:$0xff]  }
 0x74f   :  { %10415 = vmatmul.mubr.msk.bf16.vlgmr.msra.gmra.mrb[156].mxu1 %vm2752_vm5, %v6854_v33  ;;  %v12037_v23 = vld [vmem:[#allocation14 + $0x624] ss:$8 sps:$4 sm:$0xff]   ;;  %v12035_v25 = vld [vmem:[#allocation14 + $0x620] ss:$8 sps:$4 sm:$0xff]   ;;  %v12020_v47 = vld [vmem:[#allocation14 + $0x410] ss:$8 sps:$4 sm:$0xff]  }
 0x750   :  { %7416 = vmatpush1.bf16.msra.mxu1 %v11993_v41  ;;  %7447 = vmatprep.mubr.bf16.mxu1 %v14265_v3  ;;  %v12043_v1 = vld [vmem:[#allocation14 + $0x634] ss:$8 sps:$4 sm:$0xff]   ;;  %v12028_v27 = vld [vmem:[#allocation14 + $0x424] ss:$8 sps:$4 sm:$0xff]   ;;  %v12041_v52 = vld [vmem:[#allocation14 + $0x630] ss:$8 sps:$4 sm:$0xff]  }
 0x751   :  { %7059 = vmatpush1.bf16.msra.mxu0 %v11990_v34  ;;  %7417 = vmatprep.subr.bf16.mxu1 %v12001_v44  ;;  %v12026_v18 = vld [vmem:[#allocation14 + $0x420] ss:$8 sps:$4 sm:$0xff]   ;;  %v12049_v26 = vld [vmem:[#allocation14 + $0x644] ss:$8 sps:$4 sm:$0xff]   ;;  %v12034_v9 = vld [vmem:[#allocation14 + $0x434] ss:$8 sps:$4 sm:$0xff]  }
 0x752   :  { %7060 = vmatprep.subr.bf16.mxu0 %v11998_v42  ;;  %v12047_v40 = vld [vmem:[#allocation14 + $0x640] ss:$8 sps:$4 sm:$0xff]   ;;  %v12032_v56 = vld [vmem:[#allocation14 + $0x430] ss:$8 sps:$4 sm:$0xff]   ;;  %v12055_v20 = vld [vmem:[#allocation14 + $0x654] ss:$8 sps:$4 sm:$0xff]  }
 0x753   :  { %v12040_v45 = vld [vmem:[#allocation14 + $0x444] ss:$8 sps:$4 sm:$0xff]   ;;  %v12053_v36 = vld [vmem:[#allocation14 + $0x650] ss:$8 sps:$4 sm:$0xff]   ;;  %v12038_v39 = vld [vmem:[#allocation14 + $0x440] ss:$8 sps:$4 sm:$0xff]  }
 0x754   :  { %7418 = vmatpush1.bf16.msra.mxu1 %v11999_v6  ;;  %v12061_v41 = vld [vmem:[#allocation14 + $0x664] ss:$8 sps:$4 sm:$0xff]   ;;  %v12046_v33 = vld [vmem:[#allocation14 + $0x454] ss:$8 sps:$4 sm:$0xff]   ;;  %v12059_v34 = vld [vmem:[#allocation14 + $0x660] ss:$8 sps:$4 sm:$0xff]  }
 0x755   :  { %7061 = vmatpush1.bf16.msra.mxu0 %v11996_v58  ;;  %10454 = vmatprep.subr.msk.bf16.mxu1 %vm2765_vm4, %v12005_v59  ;;  %v12044_v44 = vld [vmem:[#allocation14 + $0x450] ss:$8 sps:$4 sm:$0xff]   ;;  %v12067_v42 = vld [vmem:[#allocation14 + $0x674] ss:$8 sps:$4 sm:$0xff]   ;;  %v12052_v58 = vld [vmem:[#allocation14 + $0x464] ss:$8 sps:$4 sm:$0xff]  }
 0x756   :  { %7062 = vmatprep.subr.bf16.mxu0 %v12004_v48  ;;  %v12065_v6 = vld [vmem:[#allocation14 + $0x670] ss:$8 sps:$4 sm:$0xff]   ;;  %v12050_v59 = vld [vmem:[#allocation14 + $0x460] ss:$8 sps:$4 sm:$0xff]   ;;  %v12073_v13 = vld [vmem:[#allocation14 + $0x684] ss:$8 sps:$4 sm:$0xff]  }
 0x757   :  { %v12058_v48 = vld [vmem:[#allocation14 + $0x474] ss:$8 sps:$4 sm:$0xff]  }
 0x758   :  { %7420 = vmatpush1.bf16.msra.mxu1 %v7369_v28  ;;  %v12056_v28 = vld [vmem:[#allocation14 + $0x470] ss:$8 sps:$4 sm:$0xff]  }
 0x759   :  { %7063 = vmatpush1.bf16.msra.mxu0 %v12002_v15  ;;  %7702 = vmatprep.subr.bf16.mxu1 %v12019_v19  ;;  %v12071_v15 = vld [vmem:[#allocation14 + $0x680] ss:$8 sps:$4 sm:$0xff]   ;;  %v12079_v19 = vld [vmem:[#allocation14 + $0x694] ss:$8 sps:$4 sm:$0xff]  }
 0x75a   :  { %7064 = vmatprep.subr.bf16.mxu0 %v12010_v46  ;;  %v12064_v46 = vld [vmem:[#allocation14 + $0x484] ss:$8 sps:$4 sm:$0xff]  }
 0x75b   :  { %10455 = vmatmul.mubr.msk.bf16.vlgmr.msra.gmra.mrb[160].mxu1 %vm2752_vm5, %v14078_v22 }
 0x75c   :  { %7703 = vmatpush1.bf16.msra.mxu1 %v12017_v43  ;;  %v12077_v43 = vld [vmem:[#allocation14 + $0x690] ss:$8 sps:$4 sm:$0xff]  }
 0x75d   :  { %7065 = vmatpush1.bf16.msra.mxu0 %v12008_v54  ;;  %7704 = vmatprep.subr.bf16.mxu1 %v12025_v7  ;;  %v12062_v54 = vld [vmem:[#allocation14 + $0x480] ss:$8 sps:$4 sm:$0xff]   ;;  %v12085_v7 = vld [vmem:[#allocation14 + $0x6a4] ss:$8 sps:$4 sm:$0xff]  }
 0x75e   :  { %7066 = vmatprep.subr.bf16.mxu0 %v12013_v17  ;;  %v12070_v17 = vld [vmem:[#allocation14 + $0x4c4] ss:$8 sps:$4 sm:$0xff]  }
 0x760   :  { %7705 = vmatpush1.bf16.msra.mxu1 %v12023_v10  ;;  %v12083_v10 = vld [vmem:[#allocation14 + $0x6a0] ss:$8 sps:$4 sm:$0xff]  }
 0x761   :  { %7067 = vmatpush1.bf16.msra.mxu0 %v12011_v38  ;;  %7706 = vmatprep.subr.bf16.mxu1 %v12031_v37  ;;  %v12068_v38 = vld [vmem:[#allocation14 + $0x4c0] ss:$8 sps:$4 sm:$0xff]   ;;  %v12091_v37 = vld [vmem:[#allocation14 + $0x6b4] ss:$8 sps:$4 sm:$0xff]  }
 0x762   :  { %7068 = vmatprep.subr.bf16.mxu0 %v12016_v60  ;;  %v6852_v60 = vrot.slane %v13995_v49, 4  ;;  %v12101_v49 = vld [vmem:[#allocation14 + $0x6d0] ss:$8 sps:$4 sm:$0xff]  }
 0x764   :  { %7707 = vmatpush1.bf16.msra.mxu1 %v12029_v11  ;;  %v12076_v11 = vld [vmem:[#allocation14 + $0x4d4] ss:$8 sps:$4 sm:$0xff]  }
 0x765   :  { %7069 = vmatpush1.bf16.msra.mxu0 %v12014_v61  ;;  %7708 = vmatprep.subr.bf16.mxu1 %v12037_v23  ;;  %v12089_v61 = vld [vmem:[#allocation14 + $0x6b0] ss:$8 sps:$4 sm:$0xff]  }
 0x766   :  { %7070 = vmatprep.subr.bf16.mxu0 %v12022_v55  ;;  %v12074_v23 = vld [vmem:[#allocation14 + $0x4d0] ss:$8 sps:$4 sm:$0xff]   ;;  %v12097_v55 = vld [vmem:[#allocation14 + $0x6c4] ss:$8 sps:$4 sm:$0xff]  }
 0x768   :  { %7709 = vmatpush1.bf16.msra.mxu1 %v12035_v25  ;;  %v12082_v25 = vld [vmem:[#allocation14 + $0x4e4] ss:$8 sps:$4 sm:$0xff]  }
 0x769   :  { %7071 = vmatpush1.bf16.msra.mxu0 %v12020_v47  ;;  %7710 = vmatprep.subr.bf16.mxu1 %v12043_v1  ;;  %v12095_v47 = vld [vmem:[#allocation14 + $0x6c0] ss:$8 sps:$4 sm:$0xff]  }
 0x76a   :  { %7072 = vmatprep.subr.bf16.mxu0 %v12028_v27  ;;  %v12080_v1 = vld [vmem:[#allocation14 + $0x4e0] ss:$8 sps:$4 sm:$0xff]   ;;  %v12103_v27 = vld [vmem:[#allocation14 + $0x6d4] ss:$8 sps:$4 sm:$0xff]  }
 0x76c   :  { %7711 = vmatpush1.bf16.msra.mxu1 %v12041_v52  ;;  %v12088_v52 = vld [vmem:[#allocation14 + $0x4f4] ss:$8 sps:$4 sm:$0xff]  }
 0x76d   :  { %7073 = vmatpush1.bf16.msra.mxu0 %v12026_v18  ;;  %7712 = vmatprep.subr.bf16.mxu1 %v12049_v26  ;;  %v12086_v18 = vld [vmem:[#allocation14 + $0x4f0] ss:$8 sps:$4 sm:$0xff]   ;;  %v12109_v26 = vld [vmem:[#allocation14 + $0x6e4] ss:$8 sps:$4 sm:$0xff]  }
 0x76e   :  { %7074 = vmatprep.subr.bf16.mxu0 %v12034_v9  ;;  %v12094_v9 = vld [vmem:[#allocation14 + $0x504] ss:$8 sps:$4 sm:$0xff]  }
 0x770   :  { %7713 = vmatpush1.bf16.msra.mxu1 %v12047_v40  ;;  %v12107_v40 = vld [vmem:[#allocation14 + $0x6e0] ss:$8 sps:$4 sm:$0xff]  }
 0x771   :  { %7075 = vmatpush1.bf16.msra.mxu0 %v12032_v56  ;;  %7714 = vmatprep.subr.bf16.mxu1 %v12055_v20  ;;  %v12092_v56 = vld [vmem:[#allocation14 + $0x500] ss:$8 sps:$4 sm:$0xff]   ;;  %v12115_v20 = vld [vmem:[#allocation14 + $0x6f4] ss:$8 sps:$4 sm:$0xff]  }
 0x772   :  { %7076 = vmatprep.subr.bf16.mxu0 %v12040_v45  ;;  %v12100_v45 = vld [vmem:[#allocation14 + $0x514] ss:$8 sps:$4 sm:$0xff]  }
 0x774   :  { %7715 = vmatpush1.bf16.msra.mxu1 %v12053_v36  ;;  %v12098_v36 = vld [vmem:[#allocation14 + $0x510] ss:$8 sps:$4 sm:$0xff]  }
 0x775   :  { %7077 = vmatpush1.bf16.msra.mxu0 %v12038_v39  ;;  %7716 = vmatprep.subr.bf16.mxu1 %v12061_v41  ;;  %v12106_v39 = vld [vmem:[#allocation14 + $0x524] ss:$8 sps:$4 sm:$0xff]  }
 0x776   :  { %7078 = vmatprep.subr.bf16.mxu0 %v12046_v33 }
 0x778   :  { %7717 = vmatpush1.bf16.msra.mxu1 %v12059_v34 }
 0x779   :  { %7079 = vmatpush1.bf16.msra.mxu0 %v12044_v44  ;;  %7718 = vmatprep.subr.bf16.mxu1 %v12067_v42 }
 0x77a   :  { %7080 = vmatprep.subr.bf16.mxu0 %v12052_v58  ;;  %v12104_v58 = vld [vmem:[#allocation14 + $0x520] ss:$8 sps:$4 sm:$0xff]  }
 0x77c   :  { %7719 = vmatpush1.bf16.msra.mxu1 %v12065_v6 }
 0x77d   :  { %7081 = vmatpush1.bf16.msra.mxu0 %v12050_v59  ;;  %7720 = vmatprep.subr.bf16.mxu1 %v12073_v13  ;;  %v12112_v13 = vld [vmem:[#allocation14 + $0x534] ss:$8 sps:$4 sm:$0xff]  }
 0x77e   :  { %7082 = vmatprep.subr.bf16.mxu0 %v12058_v48 }
 0x780   :  { %7721 = vmatpush1.bf16.msra.mxu1 %v12071_v15 }
 0x781   :  { %7083 = vmatpush1.bf16.msra.mxu0 %v12056_v28  ;;  %7722 = vmatprep.subr.bf16.mxu1 %v12079_v19  ;;  %v12110_v19 = vld [vmem:[#allocation14 + $0x530] ss:$8 sps:$4 sm:$0xff]  }
 0x782   :  { %7084 = vmatprep.subr.bf16.mxu0 %v12064_v46 }
 0x784   :  { %7723 = vmatpush1.bf16.msra.mxu1 %v12077_v43  ;;  %v12113_v43 = vld [vmem:[#allocation14 + $0x6f0] ss:$8 sps:$4 sm:$0xff]  }
 0x785   :  { %7085 = vmatpush1.bf16.msra.mxu0 %v12062_v54  ;;  %7724 = vmatprep.subr.bf16.mxu1 %v12085_v7 }
 0x786   :  { %7374 = vmatprep.subr.bf16.mxu0 %v12070_v17  ;;  %v12121_v17 = vld [vmem:[#allocation14 + $0x704] ss:$8 sps:$4 sm:$0xff]  }
 0x788   :  { %7087 = vmatmul.mubr.bf16.vlgmr.msra.gmra.mrb[204].mxu0 %v6852_v60  ;;  %7725 = vmatpush1.bf16.msra.mxu1 %v12083_v10 }
 0x789   :  { %7375 = vmatpush1.bf16.msra.mxu0 %v12068_v38  ;;  %7726 = vmatprep.subr.bf16.mxu1 %v12091_v37  ;;  %v12116_v38 = vld [vmem:[#allocation14 + $0x540] ss:$8 sps:$4 sm:$0xff]  }
 0x78a   :  { %7376 = vmatprep.subr.bf16.mxu0 %v12076_v11  ;;  %v12124_v11 = vld [vmem:[#allocation14 + $0x554] ss:$8 sps:$4 sm:$0xff]  }
 0x78c   :  { %7727 = vmatpush1.bf16.msra.mxu1 %v12089_v61 }
 0x78d   :  { %7377 = vmatpush1.bf16.msra.mxu0 %v12074_v23  ;;  %7728 = vmatprep.subr.bf16.mxu1 %v12097_v55  ;;  %v12119_v23 = vld [vmem:[#allocation14 + $0x700] ss:$8 sps:$4 sm:$0xff]   ;;  %v12127_v55 = vld [vmem:[#allocation14 + $0x710] ss:$8 sps:$4 sm:$0x3f]  }
 0x78e   :  { %7378 = vmatprep.subr.bf16.mxu0 %v12082_v25 }
 0x790   :  { %7729 = vmatpush1.bf16.msra.mxu1 %v12095_v47  ;;  %v12122_v47 = vld [vmem:[#allocation14 + $0x550] ss:$8 sps:$4 sm:$0xff]  }
 0x791   :  { %7379 = vmatpush1.bf16.msra.mxu0 %v12080_v1  ;;  %7730 = vmatprep.subr.bf16.mxu1 %v12103_v27 }
 0x792   :  { %7380 = vmatprep.subr.bf16.mxu0 %v12088_v52  ;;  %v7697_v52 = vsel %vm2765_vm4, %v12127_v55, 0  ;;  %v12173_v55 = vld [vmem:[#allocation14 + $0x7b0] ss:$8 sps:$4 sm:$0xff]  }
 0x794   :  { %7731 = vmatpush1.bf16.msra.mxu1 %v12101_v49  ;;  %v12133_v49 = vld [vmem:[#allocation14 + $0x724] ss:$8 sps:$4 sm:$0xff]  }
 0x795   :  { %7381 = vmatpush1.bf16.msra.mxu0 %v12086_v18  ;;  %7732 = vmatprep.subr.bf16.mxu1 %v12109_v26 }
 0x796   :  { %7382 = vmatprep.subr.bf16.mxu0 %v12094_v9  ;;  %v12128_v9 = vld [vmem:[#allocation14 + $0x560] ss:$8 sps:$4 sm:$0xff]  }
 0x798   :  { %7733 = vmatpush1.bf16.msra.mxu1 %v12107_v40 }
 0x799   :  { %7383 = vmatpush1.bf16.msra.mxu0 %v12092_v56  ;;  %7743 = vmatprep.subr.bf16.mxu1 %v12115_v20  ;;  %v12136_v20 = vld [vmem:[#allocation14 + $0x574] ss:$8 sps:$4 sm:$0xff]  }
 0x79a   :  { %7384 = vmatprep.subr.bf16.mxu0 %v12100_v45 }
 0x79b   :  { %v5624_v41 = vpop.f32.mrb[180].mxu0 }
 0x79c   :  { %v5805_v33 = vadd.f32 %v5624_v41, %v13998_v21  ;;  %v5626_v34 = vpop.f32.mrb[181].mxu0  ;;  %v12118_v21 = vld [vmem:[#allocation14 + $0x544] ss:$8 sps:$4 sm:$0xff]   ;;  %v12139_v41 = vld [vmem:[#allocation14 + $0x734] ss:$8 sps:$4 sm:$0xff]  }
 0x79d   :  { %v5806_v44 = vadd.f32 %v5626_v34, %v14004_v16  ;;  %7385 = vmatpush1.bf16.msra.mxu0 %v12098_v36  ;;  %v5628_v42 = vpop.f32.mrb[182].mxu0  ;;  %v7502_v36 = vrot.slane %v14078_v22, 4 }
 0x79e   :  { %v5808_v6 = vadd.f32 %v5628_v42, %v14010_v30  ;;  %v5630_v59 = vpop.f32.mrb[183].mxu0  ;;  %7386 = vmatprep.subr.bf16.mxu0 %v12106_v39  ;;  %v12145_v42 = vld [vmem:[#allocation14 + $0x744] ss:$8 sps:$4 sm:$0xff]  }
 0x79f   :  { %v5809_v48 = vadd.f32 %v5630_v59, %v14014_v24  ;;  %v12140_v59 = vld [vmem:[#allocation14 + $0x580] ss:$8 sps:$4 sm:$0xff]  }
 0x7a0   :  { %v14116_v15 = vpack.c.bf16 %v5808_v6, %v5805_v33 }
 0x7a1   :  { %v5836_v28 = vpack.c.bf16 %v5809_v48, %v5806_v44  ;;  %7387 = vmatpush1.bf16.msra.mxu0 %v12104_v58 }
 0x7a2   :  { %7388 = vmatprep.subr.bf16.mxu0 %v12112_v13  ;;  %v7500_v54 = vrot.slane %v14116_v15, 4 }
 0x7a3   :  { %v5634_v46 = vpop.f32.mrb[184].mxu0  ;;  %7406 = vmatprep.mubr.bf16.mxu0 %v5836_v28  ;;  %v7501_v16 = vrot.slane %v5836_v28, 4  ;;  %v12148_v28 = vld [vmem:[#allocation14 + $0x594] ss:$8 sps:$4 sm:$0xff]  }
 0x7a4   :  { %v5811_v30 = vadd.f32 %v5634_v46, %v14018_v57  ;;  %v5636_v7 = vpop.f32.mrb[185].mxu0  ;;  %v12151_v46 = vld [vmem:[#allocation14 + $0x754] ss:$8 sps:$4 sm:$0xff]  }
 0x7a5   :  { %v5812_v10 = vadd.f32 %v5636_v7, %v14022_v53  ;;  %7389 = vmatpush1.bf16.msra.mxu0 %v12110_v19  ;;  %v5638_v24 = vpop.f32.mrb[186].mxu0  ;;  %7734 = vmatprep.mubr.bf16.mxu1 %v7501_v16  ;;  %v12125_v53 = vld [vmem:[#allocation14 + $0x714] ss:$8 sps:$4 sm:$0x3f]   ;;  %v12154_v16 = vld [vmem:[#allocation14 + $0x5a4] ss:$8 sps:$4 sm:$0xff]  }
 0x7a6   :  { %v5814_v37 = vadd.f32 %v5638_v24, %v14028_v5  ;;  %v5640_v60 = vpop.f32.mrb[187].mxu0  ;;  %7735 = vmatmul.mubr.bf16.vlgmr.msra.gmra.mrb[160].mxu1 %v7500_v54  ;;  %7390 = vmatprep.subr.bf16.mxu0 %v12118_v21  ;;  %v12130_v5 = vld [vmem:[#allocation14 + $0x564] ss:$8 sps:$4 sm:$0xff]   ;;  %v12143_v21 = vld [vmem:[#allocation14 + $0x740] ss:$8 sps:$4 sm:$0xff]  }
 0x7a7   :  { %v5815_v61 = vadd.f32 %v5640_v60, %v14032_v32  ;;  %7744 = vmatpush1.bf16.msra.mxu1 %v12113_v43  ;;  %7775 = vmatprep.mubr.bf16.mxu1 %v14265_v3  ;;  %v12157_v43 = vld [vmem:[#allocation14 + $0x764] ss:$8 sps:$4 sm:$0xff]   ;;  %v12152_v54 = vld [vmem:[#allocation14 + $0x5a0] ss:$8 sps:$4 sm:$0xff]   ;;  %v12161_v24 = vld [vmem:[#allocation14 + $0x770] ss:$8 sps:$4 sm:$0xff]  }
 0x7a8   :  { %v14124_v57 = vpack.c.bf16 %v5814_v37, %v5811_v30  ;;  %7745 = vmatprep.subr.bf16.mxu1 %v12121_v17  ;;  %v12160_v30 = vld [vmem:[#allocation14 + $0x5b4] ss:$8 sps:$4 sm:$0xff]   ;;  %v12155_v7 = vld [vmem:[#allocation14 + $0x760] ss:$8 sps:$4 sm:$0xff]  }
 0x7a9   :  { %v14126_v25 = vpack.c.bf16 %v5815_v61, %v5812_v10  ;;  %7391 = vmatpush1.bf16.msra.mxu0 %v12116_v38  ;;  %v12163_v17 = vld [vmem:[#allocation14 + $0x774] ss:$8 sps:$4 sm:$0xff]   ;;  %v12158_v10 = vld [vmem:[#allocation14 + $0x5b0] ss:$8 sps:$4 sm:$0xff]   ;;  %v12166_v38 = vld [vmem:[#allocation14 + $0x784] ss:$8 sps:$4 sm:$0xff]  }
 0x7aa   :  { %7392 = vmatprep.subr.bf16.mxu0 %v12124_v11  ;;  %v12164_v37 = vld [vmem:[#allocation14 + $0x780] ss:$8 sps:$4 sm:$0xff]   ;;  %v12169_v60 = vld [vmem:[#allocation14 + $0x794] ss:$8 sps:$4 sm:$0xff]   ;;  %v12167_v11 = vld [vmem:[#allocation14 + $0x790] ss:$8 sps:$4 sm:$0xff]  }
 0x7ab   :  { %7746 = vmatpush1.bf16.msra.mxu1 %v12119_v23  ;;  %v5644_v1 = vpop.f32.mrb[188].mxu0  ;;  %v12172_v61 = vld [vmem:[#allocation14 + $0x7a4] ss:$8 sps:$4 sm:$0xff]   ;;  %v12170_v23 = vld [vmem:[#allocation14 + $0x7a0] ss:$8 sps:$4 sm:$0xff]  }
 0x7ac   :  { %v5817_v27 = vadd.f32 %v5644_v1, %v14035_v8  ;;  %v5646_v32 = vpop.f32.mrb[189].mxu0  ;;  %10494 = vmatprep.subr.msk.bf16.mxu1 %vm2765_vm4, %v12125_v53  ;;  %v12131_v8 = vld [vmem:[#allocation14 + $0x720] ss:$8 sps:$4 sm:$0xff]   ;;  %v12175_v53 = vld [vmem:[#allocation14 + $0x7b4] ss:$8 sps:$4 sm:$0xff]  }
 0x7ad   :  { %v5818_v18 = vadd.f32 %v5646_v32, %v14038_v2  ;;  %7393 = vmatpush1.bf16.msra.mxu0 %v12122_v47  ;;  %v5648_v26 = vpop.f32.mrb[190].mxu0  ;;  %v12134_v2 = vld [vmem:[#allocation14 + $0x570] ss:$8 sps:$4 sm:$0xff]   ;;  %v12178_v47 = vld [vmem:[#allocation14 + $0x7c4] ss:$8 sps:$4 sm:$0xff]  }
 0x7ae   :  { %v5820_v40 = vadd.f32 %v5648_v26, %v14046_v51  ;;  %v5650_v56 = vpop.f32.mrb[191].mxu0  ;;  %7394 = vmatprep.subr.bf16.mxu0 %v12130_v5  ;;  %v12142_v51 = vld [vmem:[#allocation14 + $0x584] ss:$8 sps:$4 sm:$0xff]   ;;  %v12176_v5 = vld [vmem:[#allocation14 + $0x7c0] ss:$8 sps:$4 sm:$0xff]  }
 0x7af   :  { %v5821_v45 = vadd.f32 %v5650_v56, %v14052_v62  ;;  %7748 = vmatpush1.bf16.msra.mxu1 %v7697_v52  ;;  %v12137_v62 = vld [vmem:[#allocation14 + $0x730] ss:$8 sps:$4 sm:$0xff]   ;;  %v12181_v1 = vld [vmem:[#allocation14 + $0x7d4] ss:$8 sps:$4 sm:$0xff]   ;;  %v12182_v56 = vld [vmem:[#allocation14 + $0x7e0] ss:$8 sps:$4 sm:$0xff]  }
 0x7b0   :  { %v14135_v39 = vpack.c.bf16 %v5820_v40, %v5817_v27  ;;  %8022 = vmatprep.subr.bf16.mxu1 %v12133_v49  ;;  %v12184_v49 = vld [vmem:[#allocation14 + $0x7e4] ss:$8 sps:$4 sm:$0xff]  }
 0x7b1   :  { %v14137_v33 = vpack.c.bf16 %v5821_v45, %v5818_v18  ;;  %7395 = vmatpush1.bf16.msra.mxu0 %v12128_v9  ;;  %v12187_v45 = vld [vmem:[#allocation14 + $0x7f4] ss:$8 sps:$4 sm:$0xff]  }
 0x7b2   :  { %10495 = vmatmul.mubr.msk.bf16.vlgmr.msra.gmra.mrb[160].mxu1 %vm2752_vm5, %v7502_v36  ;;  %7396 = vmatprep.subr.bf16.mxu0 %v12136_v20  ;;  %v12188_v36 = vld [vmem:[#allocation14 + $0x800] ss:$8 sps:$4 sm:$0xff]  }
 0x7b3   :  { %8023 = vmatpush1.bf16.msra.mxu1 %v12131_v8  ;;  %v5654_v34 = vpop.f32.mrb[192].mxu0  ;;  %8054 = vmatprep.mubr.bf16.mxu1 %v14126_v25  ;;  %v12185_v8 = vld [vmem:[#allocation14 + $0x7f0] ss:$8 sps:$4 sm:$0xff]  }
 0x7b4   :  { %v5823_v44 = vadd.f32 %v5654_v34, %v14043_v31  ;;  %v5656_v22 = vpop.f32.mrb[193].mxu0  ;;  %8024 = vmatprep.subr.bf16.mxu1 %v12139_v41  ;;  %v12146_v31 = vld [vmem:[#allocation14 + $0x590] ss:$8 sps:$4 sm:$0xff]   ;;  %v12200_v34 = vld [vmem:[#allocation14 + $0x844] ss:$8 sps:$4 sm:$0x3f]  }
 0x7b5   :  { %v5824_v58 = vadd.f32 %v5656_v22, %v14049_v4  ;;  %7397 = vmatpush1.bf16.msra.mxu0 %v12134_v2  ;;  %v5658_v6 = vpop.f32.mrb[194].mxu0  ;;  %v12149_v4 = vld [vmem:[#allocation14 + $0x750] ss:$8 sps:$4 sm:$0xff]   ;;  %v12194_v2 = vld [vmem:[#allocation14 + $0x820] ss:$8 sps:$4 sm:$0xff]  }
 0x7b6   :  { %v14143_v13 = vpack.c.bf16 %v5658_v6, %v5823_v44  ;;  %v5660_v48 = vpop.f32.mrb[195].mxu0  ;;  %7398 = vmatprep.subr.bf16.mxu0 %v12142_v51  ;;  %v12191_v41 = vld [vmem:[#allocation14 + $0x810] ss:$8 sps:$4 sm:$0xff]   ;;  %v12199_v51 = vld [vmem:[#allocation14 + $0x834] ss:$8 sps:$4 sm:$0xff]   ;;  %v8149_v6 = vrot.slane %v14126_v25, 4 }
 0x7b7   :  { %v14145_v19 = vpack.c.bf16 %v5660_v48, %v5824_v58  ;;  %8025 = vmatpush1.bf16.msra.mxu1 %v12137_v62  ;;  %v12202_v62 = vld [vmem:[#allocation14 + $0x840] ss:$8 sps:$4 sm:$0x3f]   ;;  %v12205_v22 = vld [vmem:[#allocation14 + $0x854] ss:$8 sps:$4 sm:$0xff]  }
 0x7b8   :  { %8026 = vmatprep.subr.bf16.mxu1 %v12145_v42  ;;  %v8017_v44 = vsel %vm2765_vm4, %v12202_v62, 0  ;;  %v12203_v42 = vld [vmem:[#allocation14 + $0x850] ss:$8 sps:$4 sm:$0xff]   ;;  %v12208_v58 = vld [vmem:[#allocation14 + $0x864] ss:$8 sps:$4 sm:$0xff]  }
 0x7b9   :  { %7399 = vmatpush1.bf16.msra.mxu0 %v12140_v59  ;;  %v12206_v59 = vld [vmem:[#allocation14 + $0x860] ss:$8 sps:$4 sm:$0xff]   ;;  %v12211_v48 = vld [vmem:[#allocation14 + $0x874] ss:$8 sps:$4 sm:$0xff]   ;;  %v12220_v25 = vld [vmem:[#allocation14 + $0x8a4] ss:$8 sps:$4 sm:$0xff]  }
 0x7ba   :  { %7400 = vmatprep.subr.bf16.mxu0 %v12148_v28  ;;  %v12209_v28 = vld [vmem:[#allocation14 + $0x870] ss:$8 sps:$4 sm:$0xff]   ;;  %v12254_v62 = vld [vmem:[#allocation14 + $0x960] ss:$8 sps:$4 sm:$0xff]  }
 0x7bb   :  { %8027 = vmatpush1.bf16.msra.mxu1 %v12143_v21  ;;  %v12214_v21 = vld [vmem:[#allocation14 + $0x884] ss:$8 sps:$4 sm:$0xff]  }
 0x7bc   :  { %8028 = vmatprep.subr.bf16.mxu1 %v12151_v46  ;;  %v12212_v46 = vld [vmem:[#allocation14 + $0x880] ss:$8 sps:$4 sm:$0xff]  }
 0x7bd   :  { %7401 = vmatpush1.bf16.msra.mxu0 %v12146_v31  ;;  %v12217_v31 = vld [vmem:[#allocation14 + $0x894] ss:$8 sps:$4 sm:$0xff]  }
 0x7be   :  { %7402 = vmatprep.subr.bf16.mxu0 %v12154_v16  ;;  %v12215_v16 = vld [vmem:[#allocation14 + $0x890] ss:$8 sps:$4 sm:$0xff]  }
 0x7bf   :  { %8029 = vmatpush1.bf16.msra.mxu1 %v12149_v4  ;;  %v12218_v4 = vld [vmem:[#allocation14 + $0x8a0] ss:$8 sps:$4 sm:$0xff]  }
 0x7c0   :  { %8030 = vmatprep.subr.bf16.mxu1 %v12157_v43  ;;  %v12223_v43 = vld [vmem:[#allocation14 + $0x8b4] ss:$8 sps:$4 sm:$0xff]  }
 0x7c1   :  { %7403 = vmatpush1.bf16.msra.mxu0 %v12152_v54  ;;  %v12221_v54 = vld [vmem:[#allocation14 + $0x8b0] ss:$8 sps:$4 sm:$0xff]  }
 0x7c2   :  { %7404 = vmatprep.subr.bf16.mxu0 %v12160_v30  ;;  %v12226_v30 = vld [vmem:[#allocation14 + $0x8c4] ss:$8 sps:$4 sm:$0xff]  }
 0x7c3   :  { %8031 = vmatpush1.bf16.msra.mxu1 %v12155_v7 }
 0x7c4   :  { %8032 = vmatprep.subr.bf16.mxu1 %v12163_v17 }
 0x7c5   :  { %7405 = vmatpush1.bf16.msra.mxu0 %v12158_v10  ;;  %v12224_v10 = vld [vmem:[#allocation14 + $0x8c0] ss:$8 sps:$4 sm:$0xff]  }
 0x7c7   :  { %8033 = vmatpush1.bf16.msra.mxu1 %v12161_v24 }
 0x7c8   :  { %7407 = vmatmul.mubr.bf16.vlgmr.msra.gmra.mrb[208].mxu0 %v14116_v15  ;;  %8034 = vmatprep.subr.bf16.mxu1 %v12166_v38  ;;  %v12179_v15 = vld [vmem:[#allocation14 + $0x7d0] ss:$8 sps:$4 sm:$0xff]   ;;  %v12229_v38 = vld [vmem:[#allocation14 + $0x8d4] ss:$8 sps:$4 sm:$0xff]  }
 0x7cb   :  { %8035 = vmatpush1.bf16.msra.mxu1 %v12164_v37 }
 0x7cc   :  { %8036 = vmatprep.subr.bf16.mxu1 %v12169_v60 }
 0x7cf   :  { %8037 = vmatpush1.bf16.msra.mxu1 %v12167_v11  ;;  %v12227_v11 = vld [vmem:[#allocation14 + $0x8d0] ss:$8 sps:$4 sm:$0xff]  }
 0x7d0   :  { %8038 = vmatprep.subr.bf16.mxu1 %v12172_v61 }
 0x7d3   :  { %8039 = vmatpush1.bf16.msra.mxu1 %v12170_v23 }
 0x7d4   :  { %8040 = vmatprep.subr.bf16.mxu1 %v12175_v53  ;;  %v12232_v53 = vld [vmem:[#allocation14 + $0x8e4] ss:$8 sps:$4 sm:$0xff]  }
 0x7d7   :  { %8041 = vmatpush1.bf16.msra.mxu1 %v12173_v55 }
 0x7d8   :  { %8042 = vmatprep.subr.bf16.mxu1 %v12178_v47 }
 0x7db   :  { %v6442_v27 = vpop.f32.mrb[196].mxu0  ;;  %8043 = vmatpush1.bf16.msra.mxu1 %v12176_v5 }
 0x7dc   :  { %v11073_v32 = vadd.f32 %v6442_v27, %v14060_v14  ;;  %v6444_v52 = vpop.f32.mrb[197].mxu0  ;;  %8044 = vmatprep.subr.bf16.mxu1 %v12181_v1  ;;  %v12190_v14 = vld [vmem:[#allocation14 + $0x804] ss:$8 sps:$4 sm:$0xff]   ;;  %v12230_v27 = vld [vmem:[#allocation14 + $0x8e0] ss:$8 sps:$4 sm:$0xff]  }
 0x7dd   :  { %v11081_v18 = vadd.f32 %v6444_v52, %v14062_v0  ;;  %v6446_v26 = vpop.f32.mrb[198].mxu0  ;;  %v12193_v0 = vld [vmem:[#allocation14 + $0x814] ss:$8 sps:$4 sm:$0xff]  }
 0x7de   :  { %v6447_v9 = vpop.f32.mrb[199].mxu0  ;;  %v14151_v40 = vadd.f32 %v11073_v32, %v14081_v35  ;;  %v12196_v35 = vld [vmem:[#allocation14 + $0x824] ss:$8 sps:$4 sm:$0xff]   ;;  %v12235_v32 = vld [vmem:[#allocation14 + $0x8f4] ss:$8 sps:$4 sm:$0xff]  }
 0x7df   :  { %8045 = vmatpush1.bf16.msra.mxu1 %v12179_v15  ;;  %v14154_v20 = vadd.f32 %v11081_v18, %v14084_v63  ;;  %v12197_v63 = vld [vmem:[#allocation14 + $0x830] ss:$8 sps:$4 sm:$0xff]   ;;  %v12238_v9 = vld [vmem:[#allocation14 + $0x904] ss:$8 sps:$4 sm:$0xff]  }
 0x7e0   :  { %8046 = vmatprep.subr.bf16.mxu1 %v12184_v49  ;;  %v12233_v18 = vld [vmem:[#allocation14 + $0x8f0] ss:$8 sps:$4 sm:$0xff]  }
 0x7e3   :  { %8047 = vmatpush1.bf16.msra.mxu1 %v12182_v56  ;;  %v12236_v56 = vld [vmem:[#allocation14 + $0x900] ss:$8 sps:$4 sm:$0xff]  }
 0x7e4   :  { %8048 = vmatprep.subr.bf16.mxu1 %v12187_v45  ;;  %v12239_v45 = vld [vmem:[#allocation14 + $0x910] ss:$8 sps:$4 sm:$0xff]  }
 0x7e7   :  { %8049 = vmatpush1.bf16.msra.mxu1 %v12185_v8  ;;  %v12244_v8 = vld [vmem:[#allocation14 + $0x924] ss:$8 sps:$4 sm:$0xff]  }
 0x7e8   :  { %8050 = vmatprep.subr.bf16.mxu1 %v12190_v14  ;;  %v12242_v14 = vld [vmem:[#allocation14 + $0x920] ss:$8 sps:$4 sm:$0xff]  }
 0x7eb   :  { %8051 = vmatpush1.bf16.msra.mxu1 %v12188_v36  ;;  %v12247_v36 = vld [vmem:[#allocation14 + $0x934] ss:$8 sps:$4 sm:$0xff]  }
 0x7ec   :  { %8052 = vmatprep.subr.bf16.mxu1 %v12193_v0  ;;  %v12245_v0 = vld [vmem:[#allocation14 + $0x930] ss:$8 sps:$4 sm:$0xff]  }
 0x7ef   :  { %8053 = vmatpush1.bf16.msra.mxu1 %v12191_v41  ;;  %v12250_v41 = vld [vmem:[#allocation14 + $0x944] ss:$8 sps:$4 sm:$0xff]  }
 0x7f0   :  { %8063 = vmatprep.subr.bf16.mxu1 %v12196_v35  ;;  %v12248_v35 = vld [vmem:[#allocation14 + $0x940] ss:$8 sps:$4 sm:$0xff]  }
 0x7f2   :  { %8055 = vmatmul.mubr.bf16.vlgmr.msra.gmra.mrb[160].mxu1 %v14124_v57 }
 0x7f3   :  { %8064 = vmatpush1.bf16.msra.mxu1 %v12194_v2  ;;  %8095 = vmatprep.mubr.bf16.mxu1 %v14265_v3  ;;  %v12253_v2 = vld [vmem:[#allocation14 + $0x954] ss:$8 sps:$4 sm:$0xff]  }
 0x7f4   :  { %8065 = vmatprep.subr.bf16.mxu1 %v12199_v51  ;;  %v12251_v51 = vld [vmem:[#allocation14 + $0x950] ss:$8 sps:$4 sm:$0xff]  }
 0x7f7   :  { %8066 = vmatpush1.bf16.msra.mxu1 %v12197_v63  ;;  %v8148_v63 = vrot.slane %v14124_v57, 4  ;;  %v8150_v57 = vrot.slane %v14099_v29, 4 }
 0x7f8   :  { %10534 = vmatprep.subr.msk.bf16.mxu1 %vm2765_vm4, %v12200_v34  ;;  %v12256_v34 = vld [vmem:[#allocation14 + $0x964] ss:$8 sps:$4 sm:$0xff]  }
 0x7fb   :  { %8068 = vmatpush1.bf16.msra.mxu1 %v8017_v44  ;;  %v12257_v44 = vld [vmem:[#allocation14 + $0x974] ss:$8 sps:$4 sm:$0x3f]  }
 0x7fc   :  { %8350 = vmatprep.subr.bf16.mxu1 %v12205_v22  ;;  %v12259_v22 = vld [vmem:[#allocation14 + $0x970] ss:$8 sps:$4 sm:$0x3f]  }
 0x7fe   :  { %10535 = vmatmul.mubr.msk.bf16.vlgmr.msra.gmra.mrb[160].mxu1 %vm2752_vm5, %v14099_v29  ;;  %v12272_v29 = vld [vmem:[#allocation14 + $0x9c0] ss:$8 sps:$4 sm:$0xff]  }
 0x7ff   :  { %8351 = vmatpush1.bf16.msra.mxu1 %v12203_v42  ;;  %8382 = vmatprep.mubr.bf16.mxu1 %v8149_v6  ;;  %v8345_v42 = vsel %vm2765_vm4, %v12259_v22, 0  ;;  %v12260_v6 = vld [vmem:[#allocation14 + $0x980] ss:$8 sps:$4 sm:$0xff]   ;;  %v12323_v22 = vld [vmem:[#allocation14 + $0xad0] ss:$8 sps:$4 sm:$0xff]  }
 0x800   :  { %8352 = vmatprep.subr.bf16.mxu1 %v12208_v58  ;;  %v12262_v58 = vld [vmem:[#allocation14 + $0x984] ss:$8 sps:$4 sm:$0xff]  }
 0x803   :  { %8353 = vmatpush1.bf16.msra.mxu1 %v12206_v59  ;;  %v12265_v59 = vld [vmem:[#allocation14 + $0x994] ss:$8 sps:$4 sm:$0xff]  }
 0x804   :  { %8354 = vmatprep.subr.bf16.mxu1 %v12211_v48  ;;  %v12263_v48 = vld [vmem:[#allocation14 + $0x990] ss:$8 sps:$4 sm:$0xff]  }
 0x807   :  { %8355 = vmatpush1.bf16.msra.mxu1 %v12209_v28  ;;  %v12268_v28 = vld [vmem:[#allocation14 + $0x9a4] ss:$8 sps:$4 sm:$0xff]  }
 0x808   :  { %8356 = vmatprep.subr.bf16.mxu1 %v12214_v21  ;;  %v12266_v21 = vld [vmem:[#allocation14 + $0x9a0] ss:$8 sps:$4 sm:$0xff]  }
 0x80b   :  { %8357 = vmatpush1.bf16.msra.mxu1 %v12212_v46  ;;  %v12271_v46 = vld [vmem:[#allocation14 + $0x9b4] ss:$8 sps:$4 sm:$0xff]  }
 0x80c   :  { %8358 = vmatprep.subr.bf16.mxu1 %v12217_v31  ;;  %v12269_v31 = vld [vmem:[#allocation14 + $0x9b0] ss:$8 sps:$4 sm:$0xff]  }
 0x80f   :  { %8359 = vmatpush1.bf16.msra.mxu1 %v12215_v16  ;;  %v12274_v16 = vld [vmem:[#allocation14 + $0x9c4] ss:$8 sps:$4 sm:$0xff]  }
 0x810   :  { %8360 = vmatprep.subr.bf16.mxu1 %v12220_v25  ;;  %v12277_v25 = vld [vmem:[#allocation14 + $0x9d4] ss:$8 sps:$4 sm:$0xff]  }
 0x813   :  { %8361 = vmatpush1.bf16.msra.mxu1 %v12218_v4 }
 0x814   :  { %8362 = vmatprep.subr.bf16.mxu1 %v12223_v43  ;;  %v12275_v43 = vld [vmem:[#allocation14 + $0x9d0] ss:$8 sps:$4 sm:$0xff]  }
 0x816   :  { %v6801_v7 = vpop.f32.mrb[152].mxu1 }
 0x817   :  { %8363 = vmatpush1.bf16.msra.mxu1 %v12221_v54  ;;  %v6803_v17 = vpop.f32.mrb[153].mxu1 }
 0x818   :  { %v6805_v24 = vpop.f32.mrb[154].mxu1  ;;  %8364 = vmatprep.subr.bf16.mxu1 %v12226_v30 }
 0x819   :  { %v6806_v37 = vpop.f32.mrb[155].mxu1 }
 0x81a   :  { %v12278_v37 = vld [vmem:[#allocation14 + $0x9e0] ss:$8 sps:$4 sm:$0xff]  }
 0x81b   :  { %v6760_v60 = vpop.f32.mrb[200].mxu0  ;;  %8365 = vmatpush1.bf16.msra.mxu1 %v12224_v10 }
 0x81c   :  { %v11075_v61 = vadd.f32 %v14151_v40, %v6760_v60  ;;  %v6762_v23 = vpop.f32.mrb[201].mxu0  ;;  %8366 = vmatprep.subr.bf16.mxu1 %v12229_v38 }
 0x81d   :  { %v11083_v55 = vadd.f32 %v14154_v20, %v6762_v23  ;;  %v6764_v47 = vpop.f32.mrb[202].mxu0  ;;  %v12241_v20 = vld [vmem:[#allocation14 + $0x914] ss:$8 sps:$4 sm:$0xff]   ;;  %v12286_v23 = vld [vmem:[#allocation14 + $0xa04] ss:$8 sps:$4 sm:$0xff]  }
 0x81e   :  { %v6765_v5 = vpop.f32.mrb[203].mxu0  ;;  %v14165_v1 = vadd.f32 %v11075_v61, %v6801_v7  ;;  %v12280_v7 = vld [vmem:[#allocation14 + $0x9e4] ss:$8 sps:$4 sm:$0xff]   ;;  %v12281_v61 = vld [vmem:[#allocation14 + $0x9f0] ss:$8 sps:$4 sm:$0xff]  }
 0x81f   :  { %8367 = vmatpush1.bf16.msra.mxu1 %v12227_v11  ;;  %v14167_v15 = vadd.f32 %v11083_v55, %v6803_v17  ;;  %v12283_v11 = vld [vmem:[#allocation14 + $0x9f4] ss:$8 sps:$4 sm:$0xff]   ;;  %v12287_v47 = vld [vmem:[#allocation14 + $0xa10] ss:$8 sps:$4 sm:$0xff]   ;;  %v12292_v5 = vld [vmem:[#allocation14 + $0xa24] ss:$8 sps:$4 sm:$0xff]  }
 0x820   :  { %8368 = vmatprep.subr.bf16.mxu1 %v12232_v53  ;;  %v12284_v53 = vld [vmem:[#allocation14 + $0xa00] ss:$8 sps:$4 sm:$0xff]   ;;  %v12289_v55 = vld [vmem:[#allocation14 + $0xa14] ss:$8 sps:$4 sm:$0xff]  }
 0x822   :  { %v14169_v52 = vpop.f32.mrb[156].mxu1 }
 0x823   :  { %8369 = vmatpush1.bf16.msra.mxu1 %v12230_v27  ;;  %v14171_v49 = vpop.f32.mrb[157].mxu1  ;;  %v12295_v27 = vld [vmem:[#allocation14 + $0xa34] ss:$8 sps:$4 sm:$0xff]  }
 0x824   :  { %v7133_v26 = vpop.f32.mrb[158].mxu1  ;;  %8370 = vmatprep.subr.bf16.mxu1 %v12235_v32  ;;  %v12298_v32 = vld [vmem:[#allocation14 + $0xa44] ss:$8 sps:$4 sm:$0xff]  }
 0x825   :  { %v7134_v40 = vpop.f32.mrb[159].mxu1  ;;  %v12304_v26 = vld [vmem:[#allocation14 + $0xa64] ss:$8 sps:$4 sm:$0xff]  }
 0x826   :  { %v12307_v40 = vld [vmem:[#allocation14 + $0xa74] ss:$8 sps:$4 sm:$0xff]  }
 0x827   :  { %8371 = vmatpush1.bf16.msra.mxu1 %v12233_v18  ;;  %v12299_v18 = vld [vmem:[#allocation14 + $0xa50] ss:$8 sps:$4 sm:$0xff]  }
 0x828   :  { %8372 = vmatprep.subr.bf16.mxu1 %v12238_v9  ;;  %v12302_v9 = vld [vmem:[#allocation14 + $0xa60] ss:$8 sps:$4 sm:$0xff]  }
 0x82b   :  { %8373 = vmatpush1.bf16.msra.mxu1 %v12236_v56  ;;  %v12305_v56 = vld [vmem:[#allocation14 + $0xa70] ss:$8 sps:$4 sm:$0xff]  }
 0x82c   :  { %8374 = vmatprep.subr.bf16.mxu1 %v12241_v20  ;;  %v12310_v20 = vld [vmem:[#allocation14 + $0xa84] ss:$8 sps:$4 sm:$0xff]  }
 0x82f   :  { %8375 = vmatpush1.bf16.msra.mxu1 %v12239_v45  ;;  %v12308_v45 = vld [vmem:[#allocation14 + $0xa80] ss:$8 sps:$4 sm:$0xff]  }
 0x830   :  { %8376 = vmatprep.subr.bf16.mxu1 %v12244_v8  ;;  %v12313_v8 = vld [vmem:[#allocation14 + $0xa94] ss:$8 sps:$4 sm:$0xff]  }
 0x833   :  { %8377 = vmatpush1.bf16.msra.mxu1 %v12242_v14  ;;  %v12311_v14 = vld [vmem:[#allocation14 + $0xa90] ss:$8 sps:$4 sm:$0xff]  }
 0x834   :  { %8378 = vmatprep.subr.bf16.mxu1 %v12247_v36  ;;  %v12314_v36 = vld [vmem:[#allocation14 + $0xaa4] ss:$8 sps:$4 sm:$0x3f]  }
 0x837   :  { %8379 = vmatpush1.bf16.msra.mxu1 %v12245_v0  ;;  %v12316_v0 = vld [vmem:[#allocation14 + $0xaa0] ss:$8 sps:$4 sm:$0x3f]  }
 0x838   :  { %8380 = vmatprep.subr.bf16.mxu1 %v12250_v41  ;;  %v8665_v41 = vsel %vm2765_vm4, %v12316_v0, 0  ;;  %v12391_v0 = vld [vmem:[#allocation14 + $0xc34] ss:$8 sps:$4 sm:$0xff]  }
 0x83b   :  { %8381 = vmatpush1.bf16.msra.mxu1 %v12248_v35  ;;  %v12319_v35 = vld [vmem:[#allocation14 + $0xab4] ss:$8 sps:$4 sm:$0xff]  }
 0x83c   :  { %8391 = vmatprep.subr.bf16.mxu1 %v12253_v2  ;;  %v12317_v2 = vld [vmem:[#allocation14 + $0xab0] ss:$8 sps:$4 sm:$0xff]  }
 0x83e   :  { %8383 = vmatmul.mubr.bf16.vlgmr.msra.gmra.mrb[160].mxu1 %v8148_v63  ;;  %v8797_v63 = vrot.slane %v14137_v33, 4 }
 0x83f   :  { %8392 = vmatpush1.bf16.msra.mxu1 %v12251_v51  ;;  %8423 = vmatprep.mubr.bf16.mxu1 %v14265_v3  ;;  %v12322_v51 = vld [vmem:[#allocation14 + $0xac4] ss:$8 sps:$4 sm:$0xff]  }
 0x840   :  { %8393 = vmatprep.subr.bf16.mxu1 %v12256_v34  ;;  %v12320_v34 = vld [vmem:[#allocation14 + $0xac0] ss:$8 sps:$4 sm:$0xff]  }
 0x843   :  { %8394 = vmatpush1.bf16.msra.mxu1 %v12254_v62  ;;  %v12325_v62 = vld [vmem:[#allocation14 + $0xad4] ss:$8 sps:$4 sm:$0xff]  }
 0x844   :  { %10574 = vmatprep.subr.msk.bf16.mxu1 %vm2765_vm4, %v12257_v44 }
 0x847   :  { %8396 = vmatpush1.bf16.msra.mxu1 %v8345_v42 }
 0x848   :  { %8670 = vmatprep.subr.bf16.mxu1 %v12262_v58 }
 0x84a   :  { %10575 = vmatmul.mubr.msk.bf16.vlgmr.msra.gmra.mrb[160].mxu1 %vm2752_vm5, %v8150_v57 }
 0x84b   :  { %8671 = vmatpush1.bf16.msra.mxu1 %v12260_v6  ;;  %8702 = vmatprep.mubr.bf16.mxu1 %v14137_v33  ;;  %v12328_v6 = vld [vmem:[#allocation14 + $0xae4] ss:$8 sps:$4 sm:$0xff]  }
 0x84c   :  { %8672 = vmatprep.subr.bf16.mxu1 %v12265_v59 }
 0x84f   :  { %8673 = vmatpush1.bf16.msra.mxu1 %v12263_v48  ;;  %v12326_v48 = vld [vmem:[#allocation14 + $0xae0] ss:$8 sps:$4 sm:$0xff]  }
 0x850   :  { %8674 = vmatprep.subr.bf16.mxu1 %v12268_v28  ;;  %v12331_v28 = vld [vmem:[#allocation14 + $0xaf4] ss:$8 sps:$4 sm:$0xff]  }
 0x853   :  { %8675 = vmatpush1.bf16.msra.mxu1 %v12266_v21  ;;  %v12329_v21 = vld [vmem:[#allocation14 + $0xaf0] ss:$8 sps:$4 sm:$0xff]  }
 0x854   :  { %8676 = vmatprep.subr.bf16.mxu1 %v12271_v46  ;;  %v12334_v46 = vld [vmem:[#allocation14 + $0xb04] ss:$8 sps:$4 sm:$0xff]  }
 0x857   :  { %8677 = vmatpush1.bf16.msra.mxu1 %v12269_v31  ;;  %v12332_v31 = vld [vmem:[#allocation14 + $0xb00] ss:$8 sps:$4 sm:$0xff]  }
 0x858   :  { %8678 = vmatprep.subr.bf16.mxu1 %v12274_v16  ;;  %v12337_v16 = vld [vmem:[#allocation14 + $0xb14] ss:$8 sps:$4 sm:$0xff]  }
 0x85b   :  { %v7088_v4 = vpop.f32.mrb[204].mxu0  ;;  %8679 = vmatpush1.bf16.msra.mxu1 %v12272_v29  ;;  %v12335_v29 = vld [vmem:[#allocation14 + $0xb10] ss:$8 sps:$4 sm:$0xff]  }
 0x85c   :  { %v11077_v54 = vadd.f32 %v14165_v1, %v7088_v4  ;;  %v7090_v30 = vpop.f32.mrb[205].mxu0  ;;  %8680 = vmatprep.subr.bf16.mxu1 %v12277_v25  ;;  %v12290_v1 = vld [vmem:[#allocation14 + $0xa20] ss:$8 sps:$4 sm:$0xff]   ;;  %v12340_v25 = vld [vmem:[#allocation14 + $0xb24] ss:$8 sps:$4 sm:$0xff]  }
 0x85d   :  { %v11085_v17 = vadd.f32 %v14167_v15, %v7090_v30  ;;  %v7092_v10 = vpop.f32.mrb[206].mxu0  ;;  %v12293_v15 = vld [vmem:[#allocation14 + $0xa30] ss:$8 sps:$4 sm:$0xff]   ;;  %v12338_v4 = vld [vmem:[#allocation14 + $0xb20] ss:$8 sps:$4 sm:$0xff]  }
 0x85e   :  { %v7093_v24 = vpop.f32.mrb[207].mxu0  ;;  %v14183_v38 = vadd.f32 %v11077_v54, %v14169_v52  ;;  %v12296_v52 = vld [vmem:[#allocation14 + $0xa40] ss:$8 sps:$4 sm:$0xff]   ;;  %v12341_v54 = vld [vmem:[#allocation14 + $0xb30] ss:$8 sps:$4 sm:$0xff]  }
 0x85f   :  { %8681 = vmatpush1.bf16.msra.mxu1 %v12275_v43  ;;  %v14186_v60 = vadd.f32 %v11085_v17, %v14171_v49  ;;  %v12301_v49 = vld [vmem:[#allocation14 + $0xa54] ss:$8 sps:$4 sm:$0xff]   ;;  %v12346_v30 = vld [vmem:[#allocation14 + $0xb44] ss:$8 sps:$4 sm:$0xff]   ;;  %v12347_v10 = vld [vmem:[#allocation14 + $0xb50] ss:$8 sps:$4 sm:$0xff]  }
 0x860   :  { %8682 = vmatprep.subr.bf16.mxu1 %v12280_v7  ;;  %v12343_v43 = vld [vmem:[#allocation14 + $0xb34] ss:$8 sps:$4 sm:$0xff]   ;;  %v12344_v7 = vld [vmem:[#allocation14 + $0xb40] ss:$8 sps:$4 sm:$0xff]   ;;  %v12352_v24 = vld [vmem:[#allocation14 + $0xb64] ss:$8 sps:$4 sm:$0xff]  }
 0x861   :  { %v12349_v17 = vld [vmem:[#allocation14 + $0xb54] ss:$8 sps:$4 sm:$0xff]  }
 0x863   :  { %8683 = vmatpush1.bf16.msra.mxu1 %v12278_v37  ;;  %v12355_v37 = vld [vmem:[#allocation14 + $0xb74] ss:$8 sps:$4 sm:$0xff]  }
 0x864   :  { %8684 = vmatprep.subr.bf16.mxu1 %v12283_v11  ;;  %v12358_v11 = vld [vmem:[#allocation14 + $0xb84] ss:$8 sps:$4 sm:$0xff]  }
 0x867   :  { %8685 = vmatpush1.bf16.msra.mxu1 %v12281_v61  ;;  %v12356_v61 = vld [vmem:[#allocation14 + $0xb80] ss:$8 sps:$4 sm:$0xff]  }
 0x868   :  { %8686 = vmatprep.subr.bf16.mxu1 %v12286_v23  ;;  %v12361_v23 = vld [vmem:[#allocation14 + $0xb94] ss:$8 sps:$4 sm:$0xff]  }
 0x86b   :  { %8687 = vmatpush1.bf16.msra.mxu1 %v12284_v53  ;;  %v12359_v53 = vld [vmem:[#allocation14 + $0xb90] ss:$8 sps:$4 sm:$0xff]  }
 0x86c   :  { %8688 = vmatprep.subr.bf16.mxu1 %v12289_v55  ;;  %v12364_v55 = vld [vmem:[#allocation14 + $0xba4] ss:$8 sps:$4 sm:$0xff]  }
 0x86f   :  { %8689 = vmatpush1.bf16.msra.mxu1 %v12287_v47  ;;  %v12362_v47 = vld [vmem:[#allocation14 + $0xba0] ss:$8 sps:$4 sm:$0xff]  }
 0x870   :  { %8690 = vmatprep.subr.bf16.mxu1 %v12292_v5  ;;  %v12367_v5 = vld [vmem:[#allocation14 + $0xbb4] ss:$8 sps:$4 sm:$0xff]  }
 0x873   :  { %8691 = vmatpush1.bf16.msra.mxu1 %v12290_v1  ;;  %v12365_v1 = vld [vmem:[#allocation14 + $0xbb0] ss:$8 sps:$4 sm:$0xff]  }
 0x874   :  { %8692 = vmatprep.subr.bf16.mxu1 %v12295_v27  ;;  %v8796_v27 = vrot.slane %v14135_v39, 4 }
 0x877   :  { %8693 = vmatpush1.bf16.msra.mxu1 %v12293_v15  ;;  %v12370_v15 = vld [vmem:[#allocation14 + $0xbc4] ss:$8 sps:$4 sm:$0xff]  }
 0x878   :  { %8694 = vmatprep.subr.bf16.mxu1 %v12298_v32  ;;  %v12368_v32 = vld [vmem:[#allocation14 + $0xbc0] ss:$8 sps:$4 sm:$0xff]  }
 0x87b   :  { %8695 = vmatpush1.bf16.msra.mxu1 %v12296_v52  ;;  %v12371_v52 = vld [vmem:[#allocation14 + $0xbd4] ss:$8 sps:$4 sm:$0x3f]  }
 0x87c   :  { %8696 = vmatprep.subr.bf16.mxu1 %v12301_v49  ;;  %v12373_v49 = vld [vmem:[#allocation14 + $0xbd0] ss:$8 sps:$4 sm:$0x3f]  }
 0x87f   :  { %8697 = vmatpush1.bf16.msra.mxu1 %v12299_v18  ;;  %v8993_v18 = vsel %vm2765_vm4, %v12373_v49, 0  ;;  %v12457_v49 = vld [vmem:[#allocation14 + $0xd94] ss:$8 sps:$4 sm:$0xff]  }
 0x880   :  { %8698 = vmatprep.subr.bf16.mxu1 %v12304_v26  ;;  %v12376_v26 = vld [vmem:[#allocation14 + $0xbe4] ss:$8 sps:$4 sm:$0xff]  }
 0x883   :  { %8699 = vmatpush1.bf16.msra.mxu1 %v12302_v9  ;;  %v12374_v9 = vld [vmem:[#allocation14 + $0xbe0] ss:$8 sps:$4 sm:$0xff]  }
 0x884   :  { %8700 = vmatprep.subr.bf16.mxu1 %v12307_v40  ;;  %v12379_v40 = vld [vmem:[#allocation14 + $0xbf4] ss:$8 sps:$4 sm:$0xff]  }
 0x887   :  { %8701 = vmatpush1.bf16.msra.mxu1 %v12305_v56  ;;  %v12377_v56 = vld [vmem:[#allocation14 + $0xbf0] ss:$8 sps:$4 sm:$0xff]  }
 0x888   :  { %8711 = vmatprep.subr.bf16.mxu1 %v12310_v20  ;;  %v12382_v20 = vld [vmem:[#allocation14 + $0xc04] ss:$8 sps:$4 sm:$0xff]  }
 0x88a   :  { %8703 = vmatmul.mubr.bf16.vlgmr.msra.gmra.mrb[160].mxu1 %v14135_v39  ;;  %v8798_v39 = vrot.slane %v14103_v50, 4 }
 0x88b   :  { %8712 = vmatpush1.bf16.msra.mxu1 %v12308_v45  ;;  %8743 = vmatprep.mubr.bf16.mxu1 %v14265_v3  ;;  %v12380_v45 = vld [vmem:[#allocation14 + $0xc00] ss:$8 sps:$4 sm:$0xff]  }
 0x88c   :  { %8713 = vmatprep.subr.bf16.mxu1 %v12313_v8  ;;  %v12385_v8 = vld [vmem:[#allocation14 + $0xc14] ss:$8 sps:$4 sm:$0xff]  }
 0x88f   :  { %8714 = vmatpush1.bf16.msra.mxu1 %v12311_v14  ;;  %v12383_v14 = vld [vmem:[#allocation14 + $0xc10] ss:$8 sps:$4 sm:$0xff]  }
 0x890   :  { %10614 = vmatprep.subr.msk.bf16.mxu1 %vm2765_vm4, %v12314_v36  ;;  %v12388_v36 = vld [vmem:[#allocation14 + $0xc24] ss:$8 sps:$4 sm:$0xff]  }
 0x893   :  { %8716 = vmatpush1.bf16.msra.mxu1 %v8665_v41  ;;  %v12389_v41 = vld [vmem:[#allocation14 + $0xc30] ss:$8 sps:$4 sm:$0xff]  }
 0x894   :  { %8998 = vmatprep.subr.bf16.mxu1 %v12319_v35  ;;  %v12394_v35 = vld [vmem:[#allocation14 + $0xc44] ss:$8 sps:$4 sm:$0xff]  }
 0x896   :  { %10615 = vmatmul.mubr.msk.bf16.vlgmr.msra.gmra.mrb[160].mxu1 %vm2752_vm5, %v14103_v50  ;;  %v12386_v50 = vld [vmem:[#allocation14 + $0xc20] ss:$8 sps:$4 sm:$0xff]  }
 0x897   :  { %8999 = vmatpush1.bf16.msra.mxu1 %v12317_v2  ;;  %9030 = vmatprep.mubr.bf16.mxu1 %v8797_v63  ;;  %v12392_v2 = vld [vmem:[#allocation14 + $0xc40] ss:$8 sps:$4 sm:$0xff]   ;;  %v12395_v63 = vld [vmem:[#allocation14 + $0xc50] ss:$8 sps:$4 sm:$0xff]  }
 0x898   :  { %9000 = vmatprep.subr.bf16.mxu1 %v12322_v51  ;;  %v12397_v51 = vld [vmem:[#allocation14 + $0xc54] ss:$8 sps:$4 sm:$0xff]  }
 0x89b   :  { %v7408_v44 = vpop.f32.mrb[208].mxu0  ;;  %9001 = vmatpush1.bf16.msra.mxu1 %v12320_v34  ;;  %v12400_v34 = vld [vmem:[#allocation14 + $0xc64] ss:$8 sps:$4 sm:$0xff]  }
 0x89c   :  { %v14196_v42 = vadd.f32 %v14183_v38, %v7408_v44  ;;  %v7410_v58 = vpop.f32.mrb[209].mxu0  ;;  %9002 = vmatprep.subr.bf16.mxu1 %v12325_v62  ;;  %v12350_v38 = vld [vmem:[#allocation14 + $0xb60] ss:$8 sps:$4 sm:$0xff]   ;;  %v12403_v44 = vld [vmem:[#allocation14 + $0xc74] ss:$8 sps:$4 sm:$0xff]  }
 0x89d   :  { %v14199_v57 = vadd.f32 %v14186_v60, %v7410_v58  ;;  %v7412_v33 = vpop.f32.mrb[210].mxu0  ;;  %v12353_v60 = vld [vmem:[#allocation14 + $0xb70] ss:$8 sps:$4 sm:$0xff]   ;;  %v12398_v62 = vld [vmem:[#allocation14 + $0xc60] ss:$8 sps:$4 sm:$0xff]  }
 0x89e   :  { %v7413_v59 = vpop.f32.mrb[211].mxu0  ;;  %v12406_v58 = vld [vmem:[#allocation14 + $0xc84] ss:$8 sps:$4 sm:$0xff]   ;;  %v12409_v33 = vld [vmem:[#allocation14 + $0xc94] ss:$8 sps:$4 sm:$0xff]  }
 0x89f   :  { %9003 = vmatpush1.bf16.msra.mxu1 %v12323_v22  ;;  %v12401_v22 = vld [vmem:[#allocation14 + $0xc70] ss:$8 sps:$4 sm:$0xff]  }
 0x8a0   :  { %9004 = vmatprep.subr.bf16.mxu1 %v12328_v6  ;;  %v12404_v6 = vld [vmem:[#allocation14 + $0xc80] ss:$8 sps:$4 sm:$0xff]   ;;  %v12407_v59 = vld [vmem:[#allocation14 + $0xc90] ss:$8 sps:$4 sm:$0xff]  }
 0x8a3   :  { %9005 = vmatpush1.bf16.msra.mxu1 %v12326_v48  ;;  %v12412_v48 = vld [vmem:[#allocation14 + $0xca4] ss:$8 sps:$4 sm:$0xff]  }
 0x8a4   :  { %9006 = vmatprep.subr.bf16.mxu1 %v12331_v28  ;;  %v12410_v28 = vld [vmem:[#allocation14 + $0xca0] ss:$8 sps:$4 sm:$0xff]  }
 0x8a7   :  { %9007 = vmatpush1.bf16.msra.mxu1 %v12329_v21  ;;  %v12415_v21 = vld [vmem:[#allocation14 + $0xcb4] ss:$8 sps:$4 sm:$0xff]  }
 0x8a8   :  { %9008 = vmatprep.subr.bf16.mxu1 %v12334_v46  ;;  %v12413_v46 = vld [vmem:[#allocation14 + $0xcb0] ss:$8 sps:$4 sm:$0xff]  }
 0x8ab   :  { %9009 = vmatpush1.bf16.msra.mxu1 %v12332_v31  ;;  %v12418_v31 = vld [vmem:[#allocation14 + $0xcc4] ss:$8 sps:$4 sm:$0xff]  }
 0x8ac   :  { %9010 = vmatprep.subr.bf16.mxu1 %v12337_v16  ;;  %v12416_v16 = vld [vmem:[#allocation14 + $0xcc0] ss:$8 sps:$4 sm:$0xff]  }
 0x8af   :  { %9011 = vmatpush1.bf16.msra.mxu1 %v12335_v29  ;;  %v12421_v29 = vld [vmem:[#allocation14 + $0xcd4] ss:$8 sps:$4 sm:$0xff]  }
 0x8b0   :  { %9012 = vmatprep.subr.bf16.mxu1 %v12340_v25  ;;  %v12419_v25 = vld [vmem:[#allocation14 + $0xcd0] ss:$8 sps:$4 sm:$0xff]  }
 0x8b3   :  { %9013 = vmatpush1.bf16.msra.mxu1 %v12338_v4  ;;  %v12424_v4 = vld [vmem:[#allocation14 + $0xce4] ss:$8 sps:$4 sm:$0xff]  }
 0x8b4   :  { %9014 = vmatprep.subr.bf16.mxu1 %v12343_v43  ;;  %v12422_v43 = vld [vmem:[#allocation14 + $0xce0] ss:$8 sps:$4 sm:$0xff]  }
 0x8b7   :  { %9015 = vmatpush1.bf16.msra.mxu1 %v12341_v54  ;;  %v12427_v54 = vld [vmem:[#allocation14 + $0xcf4] ss:$8 sps:$4 sm:$0xff]  }
 0x8b8   :  { %9016 = vmatprep.subr.bf16.mxu1 %v12346_v30  ;;  %v12425_v30 = vld [vmem:[#allocation14 + $0xcf0] ss:$8 sps:$4 sm:$0xff]  }
 0x8bb   :  { %9017 = vmatpush1.bf16.msra.mxu1 %v12344_v7  ;;  %v12428_v7 = vld [vmem:[#allocation14 + $0xd04] ss:$8 sps:$4 sm:$0x3f]  }
 0x8bc   :  { %9018 = vmatprep.subr.bf16.mxu1 %v12349_v17  ;;  %v12430_v17 = vld [vmem:[#allocation14 + $0xd00] ss:$8 sps:$4 sm:$0x3f]  }
 0x8bf   :  { %9019 = vmatpush1.bf16.msra.mxu1 %v12347_v10  ;;  %v9313_v10 = vsel %vm2765_vm4, %v12430_v17, 0 }
 0x8c0   :  { %9020 = vmatprep.subr.bf16.mxu1 %v12352_v24  ;;  %v12433_v24 = vld [vmem:[#allocation14 + $0xd14] ss:$8 sps:$4 sm:$0xff]  }
 0x8c3   :  { %9021 = vmatpush1.bf16.msra.mxu1 %v12350_v38  ;;  %v12431_v38 = vld [vmem:[#allocation14 + $0xd10] ss:$8 sps:$4 sm:$0xff]  }
 0x8c4   :  { %9022 = vmatprep.subr.bf16.mxu1 %v12355_v37  ;;  %v12436_v37 = vld [vmem:[#allocation14 + $0xd24] ss:$8 sps:$4 sm:$0xff]  }
 0x8c7   :  { %9023 = vmatpush1.bf16.msra.mxu1 %v12353_v60  ;;  %v9445_v60 = vrot.slane %v14145_v19, 4 }
 0x8c8   :  { %9024 = vmatprep.subr.bf16.mxu1 %v12358_v11  ;;  %v12434_v11 = vld [vmem:[#allocation14 + $0xd20] ss:$8 sps:$4 sm:$0xff]  }
 0x8cb   :  { %9025 = vmatpush1.bf16.msra.mxu1 %v12356_v61  ;;  %v12439_v61 = vld [vmem:[#allocation14 + $0xd34] ss:$8 sps:$4 sm:$0xff]  }
 0x8cc   :  { %9026 = vmatprep.subr.bf16.mxu1 %v12361_v23  ;;  %v12437_v23 = vld [vmem:[#allocation14 + $0xd30] ss:$8 sps:$4 sm:$0xff]  }
 0x8cf   :  { %9027 = vmatpush1.bf16.msra.mxu1 %v12359_v53  ;;  %v12442_v53 = vld [vmem:[#allocation14 + $0xd44] ss:$8 sps:$4 sm:$0xff]  }
 0x8d0   :  { %9028 = vmatprep.subr.bf16.mxu1 %v12364_v55  ;;  %v12440_v55 = vld [vmem:[#allocation14 + $0xd40] ss:$8 sps:$4 sm:$0xff]  }
 0x8d3   :  { %9029 = vmatpush1.bf16.msra.mxu1 %v12362_v47  ;;  %v12445_v47 = vld [vmem:[#allocation14 + $0xd54] ss:$8 sps:$4 sm:$0xff]  }
 0x8d4   :  { %9039 = vmatprep.subr.bf16.mxu1 %v12367_v5  ;;  %v12443_v5 = vld [vmem:[#allocation14 + $0xd50] ss:$8 sps:$4 sm:$0xff]  }
 0x8d6   :  { %9031 = vmatmul.mubr.bf16.vlgmr.msra.gmra.mrb[160].mxu1 %v8796_v27  ;;  %v12451_v27 = vld [vmem:[#allocation14 + $0xd74] ss:$8 sps:$4 sm:$0xff]  }
 0x8d7   :  { %9040 = vmatpush1.bf16.msra.mxu1 %v12365_v1  ;;  %9071 = vmatprep.mubr.bf16.mxu1 %v14265_v3  ;;  %v12446_v1 = vld [vmem:[#allocation14 + $0xd60] ss:$8 sps:$4 sm:$0xff]  }
 0x8d8   :  { %9041 = vmatprep.subr.bf16.mxu1 %v12370_v15  ;;  %v12449_v15 = vld [vmem:[#allocation14 + $0xd70] ss:$8 sps:$4 sm:$0xff]  }
 0x8db   :  { %9042 = vmatpush1.bf16.msra.mxu1 %v12368_v32  ;;  %v12454_v32 = vld [vmem:[#allocation14 + $0xd84] ss:$8 sps:$4 sm:$0xff]  }
 0x8dc   :  { %10654 = vmatprep.subr.msk.bf16.mxu1 %vm2765_vm4, %v12371_v52  ;;  %v12452_v52 = vld [vmem:[#allocation14 + $0xd80] ss:$8 sps:$4 sm:$0xff]  }
 0x8df   :  { %9044 = vmatpush1.bf16.msra.mxu1 %v8993_v18  ;;  %v12455_v18 = vld [vmem:[#allocation14 + $0xd90] ss:$8 sps:$4 sm:$0xff]  }
 0x8e0   :  { %9318 = vmatprep.subr.bf16.mxu1 %v12376_v26  ;;  %v12460_v26 = vld [vmem:[#allocation14 + $0xda4] ss:$8 sps:$4 sm:$0xff]  }
 0x8e2   :  { %10655 = vmatmul.mubr.msk.bf16.vlgmr.msra.gmra.mrb[160].mxu1 %vm2752_vm5, %v8798_v39  ;;  %v12463_v39 = vld [vmem:[#allocation14 + $0xdb4] ss:$8 sps:$4 sm:$0xff]  }
 0x8e3   :  { %9319 = vmatpush1.bf16.msra.mxu1 %v12374_v9  ;;  %9350 = vmatprep.mubr.bf16.mxu1 %v14145_v19  ;;  %v12448_v19 = vld [vmem:[#allocation14 + $0xd64] ss:$8 sps:$4 sm:$0xff]   ;;  %v12458_v9 = vld [vmem:[#allocation14 + $0xda0] ss:$8 sps:$4 sm:$0xff]  }
 0x8e4   :  { %9320 = vmatprep.subr.bf16.mxu1 %v12379_v40  ;;  %v12461_v40 = vld [vmem:[#allocation14 + $0xdb0] ss:$8 sps:$4 sm:$0xff]  }
 0x8e7   :  { %9321 = vmatpush1.bf16.msra.mxu1 %v12377_v56  ;;  %v12466_v56 = vld [vmem:[#allocation14 + $0xdc4] ss:$8 sps:$4 sm:$0xff]  }
 0x8e8   :  { %9322 = vmatprep.subr.bf16.mxu1 %v12382_v20  ;;  %v12464_v20 = vld [vmem:[#allocation14 + $0xdc0] ss:$8 sps:$4 sm:$0xff]  }
 0x8eb   :  { %9323 = vmatpush1.bf16.msra.mxu1 %v12380_v45  ;;  %v12469_v45 = vld [vmem:[#allocation14 + $0xdd4] ss:$8 sps:$4 sm:$0xff]  }
 0x8ec   :  { %9324 = vmatprep.subr.bf16.mxu1 %v12385_v8  ;;  %v12467_v8 = vld [vmem:[#allocation14 + $0xdd0] ss:$8 sps:$4 sm:$0xff]  }
 0x8ef   :  { %9325 = vmatpush1.bf16.msra.mxu1 %v12383_v14  ;;  %v12472_v14 = vld [vmem:[#allocation14 + $0xde4] ss:$8 sps:$4 sm:$0xff]  }
 0x8f0   :  { %9326 = vmatprep.subr.bf16.mxu1 %v12388_v36  ;;  %v12470_v36 = vld [vmem:[#allocation14 + $0xde0] ss:$8 sps:$4 sm:$0xff]  }
 0x8f3   :  { %9327 = vmatpush1.bf16.msra.mxu1 %v12386_v50  ;;  %v12475_v50 = vld [vmem:[#allocation14 + $0xdf4] ss:$8 sps:$4 sm:$0xff]  }
 0x8f4   :  { %9328 = vmatprep.subr.bf16.mxu1 %v12391_v0  ;;  %v12473_v0 = vld [vmem:[#allocation14 + $0xdf0] ss:$8 sps:$4 sm:$0xff]  }
 0x8f7   :  { %9329 = vmatpush1.bf16.msra.mxu1 %v12389_v41  ;;  %v12478_v41 = vld [vmem:[#allocation14 + $0xe04] ss:$8 sps:$4 sm:$0xff]  }
 0x8f8   :  { %9330 = vmatprep.subr.bf16.mxu1 %v12394_v35  ;;  %v12476_v35 = vld [vmem:[#allocation14 + $0xe00] ss:$8 sps:$4 sm:$0xff]  }
 0x8fb   :  { %9331 = vmatpush1.bf16.msra.mxu1 %v12392_v2  ;;  %v12481_v2 = vld [vmem:[#allocation14 + $0xe14] ss:$8 sps:$4 sm:$0xff]  }
 0x8fc   :  { %9332 = vmatprep.subr.bf16.mxu1 %v12397_v51  ;;  %v12479_v51 = vld [vmem:[#allocation14 + $0xe10] ss:$8 sps:$4 sm:$0xff]  }
 0x8ff   :  { %9333 = vmatpush1.bf16.msra.mxu1 %v12395_v63  ;;  %v9444_v63 = vrot.slane %v14143_v13, 4 }
 0x900   :  { %9334 = vmatprep.subr.bf16.mxu1 %v12400_v34  ;;  %v12484_v34 = vld [vmem:[#allocation14 + $0xe24] ss:$8 sps:$4 sm:$0xff]  }
 0x903   :  { %9335 = vmatpush1.bf16.msra.mxu1 %v12398_v62  ;;  %v12482_v62 = vld [vmem:[#allocation14 + $0xe20] ss:$8 sps:$4 sm:$0xff]  }
 0x904   :  { %9336 = vmatprep.subr.bf16.mxu1 %v12403_v44  ;;  %v12485_v44 = vld [vmem:[#allocation14 + $0xe34] ss:$8 sps:$4 sm:$0x3f]  }
 0x907   :  { %9337 = vmatpush1.bf16.msra.mxu1 %v12401_v22  ;;  %v12487_v22 = vld [vmem:[#allocation14 + $0xe30] ss:$8 sps:$4 sm:$0x3f]  }
 0x908   :  { %9338 = vmatprep.subr.bf16.mxu1 %v12406_v58  ;;  %v9641_v58 = vsel %vm2765_vm4, %v12487_v22, 0 }
 0x90b   :  { %9339 = vmatpush1.bf16.msra.mxu1 %v12404_v6  ;;  %v9446_v6 = vrot.slane %v14096_v12, 4 }
 0x90c   :  { %9340 = vmatprep.subr.bf16.mxu1 %v12409_v33 }
 0x90f   :  { %9341 = vmatpush1.bf16.msra.mxu1 %v12407_v59 }
 0x910   :  { %9342 = vmatprep.subr.bf16.mxu1 %v12412_v48 }
 0x913   :  { %9343 = vmatpush1.bf16.msra.mxu1 %v12410_v28 }
 0x914   :  { %9344 = vmatprep.subr.bf16.mxu1 %v12415_v21 }
 0x917   :  { %9345 = vmatpush1.bf16.msra.mxu1 %v12413_v46 }
 0x918   :  { %9346 = vmatprep.subr.bf16.mxu1 %v12418_v31 }
 0x91b   :  { %9347 = vmatpush1.bf16.msra.mxu1 %v12416_v16 }
 0x91c   :  { %9348 = vmatprep.subr.bf16.mxu1 %v12421_v29 }
 0x91f   :  { %9349 = vmatpush1.bf16.msra.mxu1 %v12419_v25 }
 0x920   :  { %9359 = vmatprep.subr.bf16.mxu1 %v12424_v4 }
 0x922   :  { %9351 = vmatmul.mubr.bf16.vlgmr.msra.gmra.mrb[160].mxu1 %v14143_v13 }
 0x923   :  { %9360 = vmatpush1.bf16.msra.mxu1 %v12422_v43  ;;  %9391 = vmatprep.mubr.bf16.mxu1 %v14265_v3 }
 0x924   :  { %9361 = vmatprep.subr.bf16.mxu1 %v12427_v54 }
 0x927   :  { %9362 = vmatpush1.bf16.msra.mxu1 %v12425_v30 }
 0x928   :  { %10694 = vmatprep.subr.msk.bf16.mxu1 %vm2765_vm4, %v12428_v7 }
 0x92b   :  { %9364 = vmatpush1.bf16.msra.mxu1 %v9313_v10 }
 0x92c   :  { %9646 = vmatprep.subr.bf16.mxu1 %v12433_v24 }
 0x92e   :  { %10695 = vmatmul.mubr.msk.bf16.vlgmr.msra.gmra.mrb[160].mxu1 %vm2752_vm5, %v14096_v12 }
 0x92f   :  { %9647 = vmatpush1.bf16.msra.mxu1 %v12431_v38  ;;  %9678 = vmatprep.mubr.bf16.mxu1 %v9445_v60 }
 0x930   :  { %9648 = vmatprep.subr.bf16.mxu1 %v12436_v37 }
 0x933   :  { %9649 = vmatpush1.bf16.msra.mxu1 %v12434_v11 }
 0x934   :  { %9650 = vmatprep.subr.bf16.mxu1 %v12439_v61 }
 0x937   :  { %9651 = vmatpush1.bf16.msra.mxu1 %v12437_v23 }
 0x938   :  { %9652 = vmatprep.subr.bf16.mxu1 %v12442_v53 }
 0x93b   :  { %9653 = vmatpush1.bf16.msra.mxu1 %v12440_v55 }
 0x93c   :  { %9654 = vmatprep.subr.bf16.mxu1 %v12445_v47 }
 0x93f   :  { %9655 = vmatpush1.bf16.msra.mxu1 %v12443_v5 }
 0x940   :  { %9656 = vmatprep.subr.bf16.mxu1 %v12448_v19 }
 0x943   :  { %9657 = vmatpush1.bf16.msra.mxu1 %v12446_v1 }
 0x944   :  { %9658 = vmatprep.subr.bf16.mxu1 %v12451_v27 }
 0x947   :  { %9659 = vmatpush1.bf16.msra.mxu1 %v12449_v15 }
 0x948   :  { %9660 = vmatprep.subr.bf16.mxu1 %v12454_v32 }
 0x94b   :  { %9661 = vmatpush1.bf16.msra.mxu1 %v12452_v52 }
 0x94c   :  { %9662 = vmatprep.subr.bf16.mxu1 %v12457_v49 }
 0x94f   :  { %9663 = vmatpush1.bf16.msra.mxu1 %v12455_v18 }
 0x950   :  { %9664 = vmatprep.subr.bf16.mxu1 %v12460_v26 }
 0x953   :  { %9665 = vmatpush1.bf16.msra.mxu1 %v12458_v9 }
 0x954   :  { %9666 = vmatprep.subr.bf16.mxu1 %v12463_v39 }
 0x957   :  { %9667 = vmatpush1.bf16.msra.mxu1 %v12461_v40 }
 0x958   :  { %9668 = vmatprep.subr.bf16.mxu1 %v12466_v56 }
 0x95b   :  { %9669 = vmatpush1.bf16.msra.mxu1 %v12464_v20 }
 0x95c   :  { %9670 = vmatprep.subr.bf16.mxu1 %v12469_v45 }
 0x95f   :  { %9671 = vmatpush1.bf16.msra.mxu1 %v12467_v8 }
 0x960   :  { %9672 = vmatprep.subr.bf16.mxu1 %v12472_v14 }
 0x963   :  { %9673 = vmatpush1.bf16.msra.mxu1 %v12470_v36 }
 0x964   :  { %9674 = vmatprep.subr.bf16.mxu1 %v12475_v50 }
 0x967   :  { %9675 = vmatpush1.bf16.msra.mxu1 %v12473_v0 }
 0x968   :  { %9676 = vmatprep.subr.bf16.mxu1 %v12478_v41 }
 0x96b   :  { %9677 = vmatpush1.bf16.msra.mxu1 %v12476_v35 }
 0x96c   :  { %9687 = vmatprep.subr.bf16.mxu1 %v12481_v2 }
 0x96e   :  { %9679 = vmatmul.mubr.bf16.vlgmr.msra.gmra.mrb[160].mxu1 %v9444_v63 }
 0x96f   :  { %9688 = vmatpush1.bf16.msra.mxu1 %v12479_v51  ;;  %9719 = vmatprep.mubr.bf16.mxu1 %v14265_v3 }
 0x970   :  { %9689 = vmatprep.subr.bf16.mxu1 %v12484_v34 }
 0x973   :  { %9690 = vmatpush1.bf16.msra.mxu1 %v12482_v62 }
 0x974   :  { %10734 = vmatprep.subr.msk.bf16.mxu1 %vm2765_vm4, %v12485_v44 }
 0x977   :  { %9692 = vmatpush1.bf16.msra.mxu1 %v9641_v58 }
 0x97a   :  { %10735 = vmatmul.mubr.msk.bf16.vlgmr.msra.gmra.mrb[160].mxu1 %vm2752_vm5, %v9446_v6 }
 0xa4d   :  { %v9721_v13 = vpop.f32.mrb[160].mxu1 }
 0xa4e   :  { %v11080_v33 = vadd.f32 %v14196_v42, %v9721_v13  ;;  %v9723_v59 = vpop.f32.mrb[161].mxu1 }
 0xa4f   :  { %v11088_v3 = vadd.f32 %v14199_v57, %v9723_v59  ;;  %v9725_v48 = vpop.f32.mrb[162].mxu1 }
 0xa50   :  { %9730 = vst [vmem:[#allocation16] sm:$0xff] %v11080_v33  ;;  %v9726_v28 = vpop.f32.mrb[163].mxu1 }
 0xa51   :  { %9731 = vst [vmem:[#allocation16 + $0x8] sm:$0xff] %v11088_v3 }
 0xa52   :  { %12676 = shalt.err (!%p12673_p12)
}
 0xa53   :  { %s12677_s27 = scalar_lea.hbm %s14244_s9, 256 }
 0xa54   :  { %p12678_p13 = scmp.ne.s32.totalorder %s14244_s9, %s12677_s27  ;;  %p12681_p0 = scmp.lt.u32.totalorder %s12677_s27, %s14244_s9 }
 0xa56   :  { %p12683_p1 = pnand %p12681_p0, %p12678_p13 }
 0xa58   :  { %12686 = shalt.err (!%p12683_p1)
}
 0xa59   :  { %9741 = dma.vmem_to_hbm [thread:$0]  %s9739_s21, 256, %s14244_s9, [#allocation4]  }
 0xa5a   :  { %12697 = dma.done.wait [#allocation4], 256  }
 0xa5b   :  { %12698 = vsyncadd [#allocation4], 4294967040 }
 0xa5c   :  { %9745 = vsyncpa [#allocation3], 1 }
 0xa5d   :  { %9746 = vsyncpa [#allocation6], 1 }
 0xa5e   :  { %9747 = vsyncpa [#allocation9], 1 }
 0xa5f   :  { %9748 = vsyncpa [#allocation12], 1 }
 0xa60   :  { %9749 = vsyncpa [#allocation15], 1 }
 0xa61   :  { %9750 = vsyncpa [#allocation4], 1 }

</bundles_post_ra>
